<compile_context>
chip_gen: v5e
topology: v5e:2x2
jax: 0.10.0
libtpu: 0.0.40
codegen_flags: <defaults>
</compile_context>

<pallas_src>
import functools

import jax
import jax.numpy as jnp
from jax import lax
from jax.experimental import pallas as pl
from jax.experimental.pallas import tpu as pltpu

LN_EPS = 1e-5  # PyTorch nn.LayerNorm default


def _round_up(x, m):
    return (x + m - 1) // m * m


def _layernorm(h, gamma, beta):
    # Single-pass statistics: sum(h) and sum(h*h) share one sweep of the data.
    # var = E[h^2] - mean^2 (clamped >= 0) matches nn.LayerNorm's population
    # variance; post-ReLU activations make the cancellation benign.
    mean = jnp.mean(h, axis=-1, keepdims=True)
    meansq = jnp.mean(h * h, axis=-1, keepdims=True)
    var = jnp.maximum(meansq - mean * mean, 0.0)
    return (h - mean) * lax.rsqrt(var + LN_EPS) * gamma + beta


def actor_kernel(x_ref,
                 w1_ref, b1_ref, g1_ref, be1_ref,
                 w2_ref, b2_ref, g2_ref, be2_ref,
                 w3t_ref, b3_ref,
                 o_ref,
                 *, max_action):
    x = x_ref[...]                                                   # (bm, obs) f32

    # --- layer 1: Linear -> ReLU -> LayerNorm (f32 accumulation / LN math) ---
    h = jnp.dot(x.astype(w1_ref.dtype), w1_ref[...],
                preferred_element_type=jnp.float32) + b1_ref[...]
    h = jnp.maximum(h, 0.0)
    h = _layernorm(h, g1_ref[...], be1_ref[...])

    # --- layer 2: Linear -> ReLU -> LayerNorm ---
    h = jnp.dot(h.astype(w2_ref.dtype), w2_ref[...],
                preferred_element_type=jnp.float32) + b2_ref[...]
    h = jnp.maximum(h, 0.0)
    h = _layernorm(h, g2_ref[...], be2_ref[...])

    # --- output head, computed as (act_dim, bm): lane axis = batch tile so the
    #     stores are full-width vst and tanh touches only ~bm/128 vregs. ---
    a = lax.dot_general(w3t_ref[...], h.astype(w3t_ref.dtype),
                        dimension_numbers=(((1,), (1,)), ((), ())),
                        preferred_element_type=jnp.float32)          # (act, bm)
    a = a + b3_ref[...]                                               # (act, 1) bcast
    o_ref[...] = (max_action * jnp.tanh(a)).astype(o_ref.dtype)


def prepare_actor_params(params, matmul_dtype=jnp.bfloat16):
    """One-time parameter preparation (hoisted out of the per-step hot path).

    Casts the MXU operands to `matmul_dtype` (bf16 is MXU-native on v5e/v6e/v7x;
    pass jnp.float32 if bit-exactness vs the PyTorch module is required) and
    stores the head as w3t (act, H) / b3 (act, 1) for the lane-dense output tile.
    Biases and LayerNorm parameters stay f32.
    """
    return {
        "w1": params["w1"].astype(matmul_dtype),
        "b1": params["b1"], "g1": params["g1"], "be1": params["be1"],
        "w2": params["w2"].astype(matmul_dtype),
        "b2": params["b2"], "g2": params["g2"], "be2": params["be2"],
        "w3t": jnp.transpose(params["w3"]).astype(matmul_dtype),   # (act, H)
        "b3": params["b3"].reshape(-1, 1),                         # (act, 1)
    }


def _actor_forward_impl(state, prepared, *, max_action, block_batch,
                        weight_pipeline_mode):
    B, obs_dim = state.shape
    H = prepared["w1"].shape[1]
    act_dim = prepared["w3t"].shape[0]

    # Batch tile: multiple of 128 so the (act_dim, bm) output block is lane-dense
    # and ragged-edge stores are hardware-masked.  When B allows it, pick bm so
    # the "parallel" grid has >=2 steps (v7x runs 2 TensorCores per chip).
    block_batch = max(128, _round_up(block_batch, 128))
    bm = min(block_batch, max(128, _round_up(pl.cdiv(B, 2), 128)))
    grid = (pl.cdiv(B, bm),)

    def wspec(shape):
        # Constant-index weight/bias/LN blocks: single-buffer if supported.
        if weight_pipeline_mode is None:
            return pl.BlockSpec(shape, lambda i: (0, 0))
        return pl.BlockSpec(shape, lambda i: (0, 0),
                            pipeline_mode=weight_pipeline_mode)

    in_specs = [
        pl.BlockSpec((bm, obs_dim), lambda i: (i, 0)),   # state tile (ragged edge ok)
        wspec((obs_dim, H)), wspec((1, H)), wspec((1, H)), wspec((1, H)),
        wspec((H, H)),       wspec((1, H)), wspec((1, H)), wspec((1, H)),
        wspec((act_dim, H)), wspec((act_dim, 1)),
    ]
    out_spec = pl.BlockSpec((act_dim, bm), lambda i: (0, i))

    # Advisory cost estimate so XLA schedules around this call sensibly.
    n_wflops = obs_dim * H + H * H + H * act_dim
    wbytes = sum(int(prepared[k].size) * prepared[k].dtype.itemsize
                 for k in ("w1", "w2", "w3t"))
    cost = pl.CostEstimate(
        flops=2 * B * n_wflops,
        transcendentals=B * (act_dim + 2),                 # tanh + 2x rsqrt per row
        bytes_accessed=(B * obs_dim * 4 + wbytes + (6 * H + act_dim) * 4
                        + B * act_dim * 4),
    )

    kernel = functools.partial(actor_kernel, max_action=max_action)

    out = pl.pallas_call(
        kernel,
        out_shape=jax.ShapeDtypeStruct((act_dim, B), jnp.float32),
        grid_spec=pltpu.PrefetchScalarGridSpec(
            num_scalar_prefetch=0,
            grid=grid,
            in_specs=in_specs,
            out_specs=out_spec,
        ),
        compiler_params=pltpu.CompilerParams(
            dimension_semantics=("parallel",),             # megacore: shard batch tiles
            vmem_limit_bytes=32 * 1024 * 1024,
        ),
        cost_estimate=cost,
    )(state,
      prepared["w1"], prepared["b1"], prepared["g1"], prepared["be1"],
      prepared["w2"], prepared["b2"], prepared["g2"], prepared["be2"],
      prepared["w3t"], prepared["b3"])

    # Kernel writes an (act_dim, B) lane-dense slab; tiny transpose back to the
    # PyTorch (B, act_dim) convention.
    return out.T


def actor_forward(state, prepared, *, max_action=1.0, block_batch=512):
    """Fused Pallas forward pass of the Actor.

    state:    (B, obs_dim) float32
    prepared: output of prepare_actor_params(params[, matmul_dtype])
    block_batch: batch tile upper bound (rounded to a multiple of 128);
                 sweep 512-1024 on v6e/v7x, 256-512 on v5e.
    """
    try:
        return _actor_forward_impl(state, prepared, max_action=max_action,
                                   block_batch=block_batch,
                                   weight_pipeline_mode=pl.Buffered(1))
    except Exception:
        # Fallback: default double-buffered weight blocks (only costs ~VMEM).
        return _actor_forward_impl(state, prepared, max_action=max_action,
                                   block_batch=block_batch,
                                   weight_pipeline_mode=None)


def init_actor_params(key, obs_dim, action_dim, hidden_dim=256):
    """Deterministic synthetic parameters (PyTorch-Linear init, stored as (in,out))."""
    ks = jax.random.split(key, 6)

    def lin(kw, kb, fan_in, fan_out):
        bound = 1.0 / jnp.sqrt(fan_in)
        w = jax.random.uniform(kw, (fan_in, fan_out), jnp.float32, -bound, bound)
        b = jax.random.uniform(kb, (1, fan_out), jnp.float32, -bound, bound)
        return w, b

    w1, b1 = lin(ks[0], ks[1], obs_dim, hidden_dim)
    w2, b2 = lin(ks[2], ks[3], hidden_dim, hidden_dim)
    w3, b3 = lin(ks[4], ks[5], hidden_dim, action_dim)
    return {
        "w1": w1, "b1": b1,
        "g1": jnp.ones((1, hidden_dim), jnp.float32),
        "be1": jnp.zeros((1, hidden_dim), jnp.float32),
        "w2": w2, "b2": b2,
        "g2": jnp.ones((1, hidden_dim), jnp.float32),
        "be2": jnp.zeros((1, hidden_dim), jnp.float32),
        "w3": w3, "b3": b3,
    }


def actor_reference(state, params, max_action=1.0):
    """Pure-JAX reference of the same forward pass (full-precision matmuls)."""
    hi = lax.Precision.HIGHEST

    def ln(h, g, b):
        m = jnp.mean(h, -1, keepdims=True)
        v = jnp.mean((h - m) ** 2, -1, keepdims=True)
        return (h - m) / jnp.sqrt(v + LN_EPS) * g + b

    h = jnp.maximum(jnp.dot(state, params["w1"], precision=hi) + params["b1"], 0.0)
    h = ln(h, params["g1"], params["be1"])
    h = jnp.maximum(jnp.dot(h, params["w2"], precision=hi) + params["b2"], 0.0)
    h = ln(h, params["g2"], params["be2"])
    return max_action * jnp.tanh(jnp.dot(h, params["w3"], precision=hi) + params["b3"])


if __name__ == "__main__":
    key = jax.random.PRNGKey(0)
    k_param, k_state = jax.random.split(key)

    obs_dim, action_dim, hidden_dim = 12, 4, 256
    max_action = 1.0
    params = init_actor_params(k_param, obs_dim, action_dim, hidden_dim)

    # Batch not a multiple of the 128-aligned tile -> exercises the ragged last
    # block (no host-side padding) and a 2-step "parallel" (megacore) grid.
    batch = 300
    state = jax.random.normal(k_state, (batch, obs_dim), jnp.float32)
    ref = actor_reference(state, params, max_action=max_action)

    # Exact-ish f32 MXU path.
    prep_f32 = prepare_actor_params(params, matmul_dtype=jnp.float32)
    out_f32 = jax.block_until_ready(
        actor_forward(state, prep_f32, max_action=max_action))
    assert out_f32.shape == (batch, action_dim)
    assert jnp.allclose(out_f32, ref, atol=1e-4, rtol=1e-4), "f32 mismatch vs reference"

    # Default bf16 MXU-operand path (f32 accumulation); looser tolerance.
    prep_bf16 = prepare_actor_params(params)
    out_bf16 = jax.block_until_ready(
        actor_forward(state, prep_bf16, max_action=max_action))
    assert out_bf16.shape == (batch, action_dim)
    assert jnp.allclose(out_bf16, ref, atol=2e-2, rtol=2e-2), "bf16 mismatch vs reference"

    # Tiny batch (B < one tile) -> single-step grid, masked edge lanes only.
    small = state[:10]
    out_small = jax.block_until_ready(
        actor_forward(small, prep_bf16, max_action=max_action))
    assert out_small.shape == (10, action_dim)
    assert jnp.allclose(out_small, ref[:10], atol=2e-2, rtol=2e-2), "small-batch mismatch"

    print("KERNEL_OK")
</pallas_src>

<mosaic_0001>
module attributes {stable_mosaic.version = 11 : i64} {
  func.func @actor_kernel(%arg0: i32, %arg1: memref<256x12xf32, #tpu.memory_space<vmem>>, %arg2: memref<12x256xf32, #tpu.memory_space<vmem>>, %arg3: memref<1x256xf32, #tpu.memory_space<vmem>>, %arg4: memref<1x256xf32, #tpu.memory_space<vmem>>, %arg5: memref<1x256xf32, #tpu.memory_space<vmem>>, %arg6: memref<256x256xf32, #tpu.memory_space<vmem>>, %arg7: memref<1x256xf32, #tpu.memory_space<vmem>>, %arg8: memref<1x256xf32, #tpu.memory_space<vmem>>, %arg9: memref<1x256xf32, #tpu.memory_space<vmem>>, %arg10: memref<4x256xf32, #tpu.memory_space<vmem>>, %arg11: memref<4x1xf32, #tpu.memory_space<vmem>>, %arg12: memref<4x256xf32, #tpu.memory_space<vmem>>) attributes {dimension_semantics = [#tpu.dimension_semantics<parallel>], iteration_bounds = array<i64: 2>, scalar_prefetch = 0 : i64, scratch_operands = 0 : i64, tpu.core_type = #tpu.core_type<tc>, window_params = [{transform_indices = @transform_0, window_bounds = array<i64: 256, 12>}, {pipeline_mode = #tpu.pipeline_mode<synchronous>, transform_indices = @transform_1, window_bounds = array<i64: 12, 256>}, {pipeline_mode = #tpu.pipeline_mode<synchronous>, transform_indices = @transform_2, window_bounds = array<i64: 1, 256>}, {pipeline_mode = #tpu.pipeline_mode<synchronous>, transform_indices = @transform_3, window_bounds = array<i64: 1, 256>}, {pipeline_mode = #tpu.pipeline_mode<synchronous>, transform_indices = @transform_4, window_bounds = array<i64: 1, 256>}, {pipeline_mode = #tpu.pipeline_mode<synchronous>, transform_indices = @transform_5, window_bounds = array<i64: 256, 256>}, {pipeline_mode = #tpu.pipeline_mode<synchronous>, transform_indices = @transform_6, window_bounds = array<i64: 1, 256>}, {pipeline_mode = #tpu.pipeline_mode<synchronous>, transform_indices = @transform_7, window_bounds = array<i64: 1, 256>}, {pipeline_mode = #tpu.pipeline_mode<synchronous>, transform_indices = @transform_8, window_bounds = array<i64: 1, 256>}, {pipeline_mode = #tpu.pipeline_mode<synchronous>, transform_indices = @transform_9, window_bounds = array<i64: 4, 256>}, {pipeline_mode = #tpu.pipeline_mode<synchronous>, transform_indices = @transform_10, window_bounds = array<i64: 4, 1>}, {transform_indices = @transform_11, window_bounds = array<i64: 4, 256>}]} {
    %c0 = arith.constant 0 : index
    %c0_0 = arith.constant 0 : index
    %0 = vector.load %arg1[%c0, %c0_0] : memref<256x12xf32, #tpu.memory_space<vmem>>, vector<256x12xf32>
    %c0_1 = arith.constant 0 : index
    %c0_2 = arith.constant 0 : index
    %1 = vector.load %arg2[%c0_1, %c0_2] : memref<12x256xf32, #tpu.memory_space<vmem>>, vector<12x256xf32>
    %cst = arith.constant dense<0.000000e+00> : vector<256x256xf32>
    %2 = tpu.matmul %0, %1, %cst {dimension_numbers = #tpu.dot_dimension_numbers<[1], [0], [0], [1], [0, 0, 1, 1], [], []>} : vector<256x12xf32>, vector<12x256xf32>, vector<256x256xf32> -> vector<256x256xf32>
    %c0_3 = arith.constant 0 : index
    %c0_4 = arith.constant 0 : index
    %3 = vector.load %arg3[%c0_3, %c0_4] : memref<1x256xf32, #tpu.memory_space<vmem>>, vector<1x256xf32>
    %4 = vector.broadcast %3 : vector<1x256xf32> to vector<256x256xf32>
    %5 = arith.addf %2, %4 : vector<256x256xf32>
    %cst_5 = arith.constant 0.000000e+00 : f32
    %6 = vector.broadcast %cst_5 : f32 to vector<256x256xf32>
    %7 = arith.maximumf %5, %6 : vector<256x256xf32>
    %c0_6 = arith.constant 0 : index
    %c0_7 = arith.constant 0 : index
    %8 = vector.load %arg4[%c0_6, %c0_7] : memref<1x256xf32, #tpu.memory_space<vmem>>, vector<1x256xf32>
    %c0_8 = arith.constant 0 : index
    %c0_9 = arith.constant 0 : index
    %9 = vector.load %arg5[%c0_8, %c0_9] : memref<1x256xf32, #tpu.memory_space<vmem>>, vector<1x256xf32>
    %cst_10 = arith.constant dense<0.000000e+00> : vector<256xf32>
    %10 = vector.multi_reduction <add>, %7, %cst_10 [1] : vector<256x256xf32> to vector<256xf32>
    %11 = vector.shape_cast %10 : vector<256xf32> to vector<256x1xf32>
    %cst_11 = arith.constant 2.560000e+02 : f32
    %12 = vector.broadcast %cst_11 : f32 to vector<256x1xf32>
    %13 = arith.divf %11, %12 : vector<256x1xf32>
    %14 = arith.mulf %7, %7 : vector<256x256xf32>
    %cst_12 = arith.constant dense<0.000000e+00> : vector<256xf32>
    %15 = vector.multi_reduction <add>, %14, %cst_12 [1] : vector<256x256xf32> to vector<256xf32>
    %16 = vector.shape_cast %15 : vector<256xf32> to vector<256x1xf32>
    %cst_13 = arith.constant 2.560000e+02 : f32
    %17 = vector.broadcast %cst_13 : f32 to vector<256x1xf32>
    %18 = arith.divf %16, %17 : vector<256x1xf32>
    %19 = arith.mulf %13, %13 : vector<256x1xf32>
    %20 = arith.subf %18, %19 : vector<256x1xf32>
    %cst_14 = arith.constant 0.000000e+00 : f32
    %21 = vector.broadcast %cst_14 : f32 to vector<256x1xf32>
    %22 = arith.maximumf %20, %21 : vector<256x1xf32>
    %23 = vector.broadcast %13 : vector<256x1xf32> to vector<256x256xf32>
    %24 = arith.subf %7, %23 : vector<256x256xf32>
    %cst_15 = arith.constant 9.99999974E-6 : f32
    %25 = vector.broadcast %cst_15 : f32 to vector<256x1xf32>
    %26 = arith.addf %22, %25 : vector<256x1xf32>
    %27 = math.rsqrt %26 : vector<256x1xf32>
    %28 = vector.broadcast %27 : vector<256x1xf32> to vector<256x256xf32>
    %29 = arith.mulf %24, %28 : vector<256x256xf32>
    %30 = vector.broadcast %8 : vector<1x256xf32> to vector<256x256xf32>
    %31 = arith.mulf %29, %30 : vector<256x256xf32>
    %32 = vector.broadcast %9 : vector<1x256xf32> to vector<256x256xf32>
    %33 = arith.addf %31, %32 : vector<256x256xf32>
    %c0_16 = arith.constant 0 : index
    %c0_17 = arith.constant 0 : index
    %34 = vector.load %arg6[%c0_16, %c0_17] : memref<256x256xf32, #tpu.memory_space<vmem>>, vector<256x256xf32>
    %cst_18 = arith.constant dense<0.000000e+00> : vector<256x256xf32>
    %35 = tpu.matmul %33, %34, %cst_18 {dimension_numbers = #tpu.dot_dimension_numbers<[1], [0], [0], [1], [0, 0, 1, 1], [], []>} : vector<256x256xf32>, vector<256x256xf32>, vector<256x256xf32> -> vector<256x256xf32>
    %c0_19 = arith.constant 0 : index
    %c0_20 = arith.constant 0 : index
    %36 = vector.load %arg7[%c0_19, %c0_20] : memref<1x256xf32, #tpu.memory_space<vmem>>, vector<1x256xf32>
    %37 = vector.broadcast %36 : vector<1x256xf32> to vector<256x256xf32>
    %38 = arith.addf %35, %37 : vector<256x256xf32>
    %cst_21 = arith.constant 0.000000e+00 : f32
    %39 = vector.broadcast %cst_21 : f32 to vector<256x256xf32>
    %40 = arith.maximumf %38, %39 : vector<256x256xf32>
    %c0_22 = arith.constant 0 : index
    %c0_23 = arith.constant 0 : index
    %41 = vector.load %arg8[%c0_22, %c0_23] : memref<1x256xf32, #tpu.memory_space<vmem>>, vector<1x256xf32>
    %c0_24 = arith.constant 0 : index
    %c0_25 = arith.constant 0 : index
    %42 = vector.load %arg9[%c0_24, %c0_25] : memref<1x256xf32, #tpu.memory_space<vmem>>, vector<1x256xf32>
    %cst_26 = arith.constant dense<0.000000e+00> : vector<256xf32>
    %43 = vector.multi_reduction <add>, %40, %cst_26 [1] : vector<256x256xf32> to vector<256xf32>
    %44 = vector.shape_cast %43 : vector<256xf32> to vector<256x1xf32>
    %cst_27 = arith.constant 2.560000e+02 : f32
    %45 = vector.broadcast %cst_27 : f32 to vector<256x1xf32>
    %46 = arith.divf %44, %45 : vector<256x1xf32>
    %47 = arith.mulf %40, %40 : vector<256x256xf32>
    %cst_28 = arith.constant dense<0.000000e+00> : vector<256xf32>
    %48 = vector.multi_reduction <add>, %47, %cst_28 [1] : vector<256x256xf32> to vector<256xf32>
    %49 = vector.shape_cast %48 : vector<256xf32> to vector<256x1xf32>
    %cst_29 = arith.constant 2.560000e+02 : f32
    %50 = vector.broadcast %cst_29 : f32 to vector<256x1xf32>
    %51 = arith.divf %49, %50 : vector<256x1xf32>
    %52 = arith.mulf %46, %46 : vector<256x1xf32>
    %53 = arith.subf %51, %52 : vector<256x1xf32>
    %cst_30 = arith.constant 0.000000e+00 : f32
    %54 = vector.broadcast %cst_30 : f32 to vector<256x1xf32>
    %55 = arith.maximumf %53, %54 : vector<256x1xf32>
    %56 = vector.broadcast %46 : vector<256x1xf32> to vector<256x256xf32>
    %57 = arith.subf %40, %56 : vector<256x256xf32>
    %cst_31 = arith.constant 9.99999974E-6 : f32
    %58 = vector.broadcast %cst_31 : f32 to vector<256x1xf32>
    %59 = arith.addf %55, %58 : vector<256x1xf32>
    %60 = math.rsqrt %59 : vector<256x1xf32>
    %61 = vector.broadcast %60 : vector<256x1xf32> to vector<256x256xf32>
    %62 = arith.mulf %57, %61 : vector<256x256xf32>
    %63 = vector.broadcast %41 : vector<1x256xf32> to vector<256x256xf32>
    %64 = arith.mulf %62, %63 : vector<256x256xf32>
    %65 = vector.broadcast %42 : vector<1x256xf32> to vector<256x256xf32>
    %66 = arith.addf %64, %65 : vector<256x256xf32>
    %c0_32 = arith.constant 0 : index
    %c0_33 = arith.constant 0 : index
    %67 = vector.load %arg10[%c0_32, %c0_33] : memref<4x256xf32, #tpu.memory_space<vmem>>, vector<4x256xf32>
    %cst_34 = arith.constant dense<0.000000e+00> : vector<4x256xf32>
    %68 = tpu.matmul %67, %66, %cst_34 {dimension_numbers = #tpu.dot_dimension_numbers<[1], [1], [0], [0], [0, 0, 1, 0], [], []>} : vector<4x256xf32>, vector<256x256xf32>, vector<4x256xf32> -> vector<4x256xf32>
    %c0_35 = arith.constant 0 : index
    %c0_36 = arith.constant 0 : index
    %69 = vector.load %arg11[%c0_35, %c0_36] : memref<4x1xf32, #tpu.memory_space<vmem>>, vector<4x1xf32>
    %70 = vector.broadcast %69 : vector<4x1xf32> to vector<4x256xf32>
    %71 = arith.addf %68, %70 : vector<4x256xf32>
    %72 = math.tanh %71 : vector<4x256xf32>
    %cst_37 = arith.constant 1.000000e+00 : f32
    %73 = vector.broadcast %cst_37 : f32 to vector<4x256xf32>
    %74 = arith.mulf %73, %72 : vector<4x256xf32>
    %c0_38 = arith.constant 0 : index
    %c0_39 = arith.constant 0 : index
    %75 = vector.load %arg12[%c0_38, %c0_39] : memref<4x256xf32, #tpu.memory_space<vmem>>, vector<4x256xf32>
    tpu.vector_store %arg12[%c0_38, %c0_39], %74 {strides = array<i32>} : memref<4x256xf32, #tpu.memory_space<vmem>>, vector<4x256xf32>,
    return
  }
  func.func @transform_0(%arg0: i32) -> (i32, i32) {
    %c0_i32 = arith.constant 0 : i32
    %c0_i32_0 = arith.constant 0 : i32
    return %arg0, %c0_i32 : i32, i32
  }
  func.func @transform_1(%arg0: i32) -> (i32, i32) {
    %c0_i32 = arith.constant 0 : i32
    %c0_i32_0 = arith.constant 0 : i32
    %c0_i32_1 = arith.constant 0 : i32
    return %c0_i32, %c0_i32_0 : i32, i32
  }
  func.func @transform_2(%arg0: i32) -> (i32, i32) {
    %c0_i32 = arith.constant 0 : i32
    %c0_i32_0 = arith.constant 0 : i32
    %c0_i32_1 = arith.constant 0 : i32
    return %c0_i32, %c0_i32_0 : i32, i32
  }
  func.func @transform_3(%arg0: i32) -> (i32, i32) {
    %c0_i32 = arith.constant 0 : i32
    %c0_i32_0 = arith.constant 0 : i32
    %c0_i32_1 = arith.constant 0 : i32
    return %c0_i32, %c0_i32_0 : i32, i32
  }
  func.func @transform_4(%arg0: i32) -> (i32, i32) {
    %c0_i32 = arith.constant 0 : i32
    %c0_i32_0 = arith.constant 0 : i32
    %c0_i32_1 = arith.constant 0 : i32
    return %c0_i32, %c0_i32_0 : i32, i32
  }
  func.func @transform_5(%arg0: i32) -> (i32, i32) {
    %c0_i32 = arith.constant 0 : i32
    %c0_i32_0 = arith.constant 0 : i32
    %c0_i32_1 = arith.constant 0 : i32
    return %c0_i32, %c0_i32_0 : i32, i32
  }
  func.func @transform_6(%arg0: i32) -> (i32, i32) {
    %c0_i32 = arith.constant 0 : i32
    %c0_i32_0 = arith.constant 0 : i32
    %c0_i32_1 = arith.constant 0 : i32
    return %c0_i32, %c0_i32_0 : i32, i32
  }
  func.func @transform_7(%arg0: i32) -> (i32, i32) {
    %c0_i32 = arith.constant 0 : i32
    %c0_i32_0 = arith.constant 0 : i32
    %c0_i32_1 = arith.constant 0 : i32
    return %c0_i32, %c0_i32_0 : i32, i32
  }
  func.func @transform_8(%arg0: i32) -> (i32, i32) {
    %c0_i32 = arith.constant 0 : i32
    %c0_i32_0 = arith.constant 0 : i32
    %c0_i32_1 = arith.constant 0 : i32
    return %c0_i32, %c0_i32_0 : i32, i32
  }
  func.func @transform_9(%arg0: i32) -> (i32, i32) {
    %c0_i32 = arith.constant 0 : i32
    %c0_i32_0 = arith.constant 0 : i32
    %c0_i32_1 = arith.constant 0 : i32
    return %c0_i32, %c0_i32_0 : i32, i32
  }
  func.func @transform_10(%arg0: i32) -> (i32, i32) {
    %c0_i32 = arith.constant 0 : i32
    %c0_i32_0 = arith.constant 0 : i32
    %c0_i32_1 = arith.constant 0 : i32
    return %c0_i32, %c0_i32_0 : i32, i32
  }
  func.func @transform_11(%arg0: i32) -> (i32, i32) {
    %c0_i32 = arith.constant 0 : i32
    %c0_i32_0 = arith.constant 0 : i32
    return %c0_i32, %arg0 : i32, i32
  }
}

module attributes {stable_mosaic.version = 11 : i64} {
  func.func @actor_kernel(%arg0: i32, %arg1: memref<256x12xf32, #tpu.memory_space<vmem>>, %arg2: memref<12x256xf32, #tpu.memory_space<vmem>>, %arg3: memref<1x256xf32, #tpu.memory_space<vmem>>, %arg4: memref<1x256xf32, #tpu.memory_space<vmem>>, %arg5: memref<1x256xf32, #tpu.memory_space<vmem>>, %arg6: memref<256x256xf32, #tpu.memory_space<vmem>>, %arg7: memref<1x256xf32, #tpu.memory_space<vmem>>, %arg8: memref<1x256xf32, #tpu.memory_space<vmem>>, %arg9: memref<1x256xf32, #tpu.memory_space<vmem>>, %arg10: memref<4x256xf32, #tpu.memory_space<vmem>>, %arg11: memref<4x1xf32, #tpu.memory_space<vmem>>, %arg12: memref<4x256xf32, #tpu.memory_space<vmem>>) attributes {dimension_semantics = [#tpu.dimension_semantics<parallel>], iteration_bounds = array<i64: 2>, scalar_prefetch = 0 : i64, scratch_operands = 0 : i64, tpu.core_type = #tpu.core_type<tc>, window_params = [{transform_indices = @transform_0, window_bounds = array<i64: 256, 12>}, {pipeline_mode = #tpu.pipeline_mode<synchronous>, transform_indices = @transform_1, window_bounds = array<i64: 12, 256>}, {pipeline_mode = #tpu.pipeline_mode<synchronous>, transform_indices = @transform_2, window_bounds = array<i64: 1, 256>}, {pipeline_mode = #tpu.pipeline_mode<synchronous>, transform_indices = @transform_3, window_bounds = array<i64: 1, 256>}, {pipeline_mode = #tpu.pipeline_mode<synchronous>, transform_indices = @transform_4, window_bounds = array<i64: 1, 256>}, {pipeline_mode = #tpu.pipeline_mode<synchronous>, transform_indices = @transform_5, window_bounds = array<i64: 256, 256>}, {pipeline_mode = #tpu.pipeline_mode<synchronous>, transform_indices = @transform_6, window_bounds = array<i64: 1, 256>}, {pipeline_mode = #tpu.pipeline_mode<synchronous>, transform_indices = @transform_7, window_bounds = array<i64: 1, 256>}, {pipeline_mode = #tpu.pipeline_mode<synchronous>, transform_indices = @transform_8, window_bounds = array<i64: 1, 256>}, {pipeline_mode = #tpu.pipeline_mode<synchronous>, transform_indices = @transform_9, window_bounds = array<i64: 4, 256>}, {pipeline_mode = #tpu.pipeline_mode<synchronous>, transform_indices = @transform_10, window_bounds = array<i64: 4, 1>}, {transform_indices = @transform_11, window_bounds = array<i64: 4, 256>}]} {
    %c0 = arith.constant 0 : index
    %c0_0 = arith.constant 0 : index
    %0 = vector.load %arg1[%c0, %c0_0] : memref<256x12xf32, #tpu.memory_space<vmem>>, vector<256x12xf32>
    %c0_1 = arith.constant 0 : index
    %c0_2 = arith.constant 0 : index
    %1 = vector.load %arg2[%c0_1, %c0_2] : memref<12x256xf32, #tpu.memory_space<vmem>>, vector<12x256xf32>
    %cst = arith.constant dense<0.000000e+00> : vector<256x256xf32>
    %2 = tpu.matmul %0, %1, %cst {dimension_numbers = #tpu.dot_dimension_numbers<[1], [0], [0], [1], [0, 0, 1, 1], [], []>} : vector<256x12xf32>, vector<12x256xf32>, vector<256x256xf32> -> vector<256x256xf32>
    %c0_3 = arith.constant 0 : index
    %c0_4 = arith.constant 0 : index
    %3 = vector.load %arg3[%c0_3, %c0_4] : memref<1x256xf32, #tpu.memory_space<vmem>>, vector<1x256xf32>
    %4 = vector.broadcast %3 : vector<1x256xf32> to vector<256x256xf32>
    %5 = arith.addf %2, %4 : vector<256x256xf32>
    %cst_5 = arith.constant 0.000000e+00 : f32
    %6 = vector.broadcast %cst_5 : f32 to vector<256x256xf32>
    %7 = arith.maximumf %5, %6 : vector<256x256xf32>
    %c0_6 = arith.constant 0 : index
    %c0_7 = arith.constant 0 : index
    %8 = vector.load %arg4[%c0_6, %c0_7] : memref<1x256xf32, #tpu.memory_space<vmem>>, vector<1x256xf32>
    %c0_8 = arith.constant 0 : index
    %c0_9 = arith.constant 0 : index
    %9 = vector.load %arg5[%c0_8, %c0_9] : memref<1x256xf32, #tpu.memory_space<vmem>>, vector<1x256xf32>
    %cst_10 = arith.constant dense<0.000000e+00> : vector<256xf32>
    %10 = vector.multi_reduction <add>, %7, %cst_10 [1] : vector<256x256xf32> to vector<256xf32>
    %11 = vector.shape_cast %10 : vector<256xf32> to vector<256x1xf32>
    %cst_11 = arith.constant 2.560000e+02 : f32
    %12 = vector.broadcast %cst_11 : f32 to vector<256x1xf32>
    %13 = arith.divf %11, %12 : vector<256x1xf32>
    %14 = arith.mulf %7, %7 : vector<256x256xf32>
    %cst_12 = arith.constant dense<0.000000e+00> : vector<256xf32>
    %15 = vector.multi_reduction <add>, %14, %cst_12 [1] : vector<256x256xf32> to vector<256xf32>
    %16 = vector.shape_cast %15 : vector<256xf32> to vector<256x1xf32>
    %cst_13 = arith.constant 2.560000e+02 : f32
    %17 = vector.broadcast %cst_13 : f32 to vector<256x1xf32>
    %18 = arith.divf %16, %17 : vector<256x1xf32>
    %19 = arith.mulf %13, %13 : vector<256x1xf32>
    %20 = arith.subf %18, %19 : vector<256x1xf32>
    %cst_14 = arith.constant 0.000000e+00 : f32
    %21 = vector.broadcast %cst_14 : f32 to vector<256x1xf32>
    %22 = arith.maximumf %20, %21 : vector<256x1xf32>
    %23 = vector.broadcast %13 : vector<256x1xf32> to vector<256x256xf32>
    %24 = arith.subf %7, %23 : vector<256x256xf32>
    %cst_15 = arith.constant 9.99999974E-6 : f32
    %25 = vector.broadcast %cst_15 : f32 to vector<256x1xf32>
    %26 = arith.addf %22, %25 : vector<256x1xf32>
    %27 = math.rsqrt %26 : vector<256x1xf32>
    %28 = vector.broadcast %27 : vector<256x1xf32> to vector<256x256xf32>
    %29 = arith.mulf %24, %28 : vector<256x256xf32>
    %30 = vector.broadcast %8 : vector<1x256xf32> to vector<256x256xf32>
    %31 = arith.mulf %29, %30 : vector<256x256xf32>
    %32 = vector.broadcast %9 : vector<1x256xf32> to vector<256x256xf32>
    %33 = arith.addf %31, %32 : vector<256x256xf32>
    %c0_16 = arith.constant 0 : index
    %c0_17 = arith.constant 0 : index
    %34 = vector.load %arg6[%c0_16, %c0_17] : memref<256x256xf32, #tpu.memory_space<vmem>>, vector<256x256xf32>
    %cst_18 = arith.constant dense<0.000000e+00> : vector<256x256xf32>
    %35 = tpu.matmul %33, %34, %cst_18 {dimension_numbers = #tpu.dot_dimension_numbers<[1], [0], [0], [1], [0, 0, 1, 1], [], []>} : vector<256x256xf32>, vector<256x256xf32>, vector<256x256xf32> -> vector<256x256xf32>
    %c0_19 = arith.constant 0 : index
    %c0_20 = arith.constant 0 : index
    %36 = vector.load %arg7[%c0_19, %c0_20] : memref<1x256xf32, #tpu.memory_space<vmem>>, vector<1x256xf32>
    %37 = vector.broadcast %36 : vector<1x256xf32> to vector<256x256xf32>
    %38 = arith.addf %35, %37 : vector<256x256xf32>
    %cst_21 = arith.constant 0.000000e+00 : f32
    %39 = vector.broadcast %cst_21 : f32 to vector<256x256xf32>
    %40 = arith.maximumf %38, %39 : vector<256x256xf32>
    %c0_22 = arith.constant 0 : index
    %c0_23 = arith.constant 0 : index
    %41 = vector.load %arg8[%c0_22, %c0_23] : memref<1x256xf32, #tpu.memory_space<vmem>>, vector<1x256xf32>
    %c0_24 = arith.constant 0 : index
    %c0_25 = arith.constant 0 : index
    %42 = vector.load %arg9[%c0_24, %c0_25] : memref<1x256xf32, #tpu.memory_space<vmem>>, vector<1x256xf32>
    %cst_26 = arith.constant dense<0.000000e+00> : vector<256xf32>
    %43 = vector.multi_reduction <add>, %40, %cst_26 [1] : vector<256x256xf32> to vector<256xf32>
    %44 = vector.shape_cast %43 : vector<256xf32> to vector<256x1xf32>
    %cst_27 = arith.constant 2.560000e+02 : f32
    %45 = vector.broadcast %cst_27 : f32 to vector<256x1xf32>
    %46 = arith.divf %44, %45 : vector<256x1xf32>
    %47 = arith.mulf %40, %40 : vector<256x256xf32>
    %cst_28 = arith.constant dense<0.000000e+00> : vector<256xf32>
    %48 = vector.multi_reduction <add>, %47, %cst_28 [1] : vector<256x256xf32> to vector<256xf32>
    %49 = vector.shape_cast %48 : vector<256xf32> to vector<256x1xf32>
    %cst_29 = arith.constant 2.560000e+02 : f32
    %50 = vector.broadcast %cst_29 : f32 to vector<256x1xf32>
    %51 = arith.divf %49, %50 : vector<256x1xf32>
    %52 = arith.mulf %46, %46 : vector<256x1xf32>
    %53 = arith.subf %51, %52 : vector<256x1xf32>
    %cst_30 = arith.constant 0.000000e+00 : f32
    %54 = vector.broadcast %cst_30 : f32 to vector<256x1xf32>
    %55 = arith.maximumf %53, %54 : vector<256x1xf32>
    %56 = vector.broadcast %46 : vector<256x1xf32> to vector<256x256xf32>
    %57 = arith.subf %40, %56 : vector<256x256xf32>
    %cst_31 = arith.constant 9.99999974E-6 : f32
    %58 = vector.broadcast %cst_31 : f32 to vector<256x1xf32>
    %59 = arith.addf %55, %58 : vector<256x1xf32>
    %60 = math.rsqrt %59 : vector<256x1xf32>
    %61 = vector.broadcast %60 : vector<256x1xf32> to vector<256x256xf32>
    %62 = arith.mulf %57, %61 : vector<256x256xf32>
    %63 = vector.broadcast %41 : vector<1x256xf32> to vector<256x256xf32>
    %64 = arith.mulf %62, %63 : vector<256x256xf32>
    %65 = vector.broadcast %42 : vector<1x256xf32> to vector<256x256xf32>
    %66 = arith.addf %64, %65 : vector<256x256xf32>
    %c0_32 = arith.constant 0 : index
    %c0_33 = arith.constant 0 : index
    %67 = vector.load %arg10[%c0_32, %c0_33] : memref<4x256xf32, #tpu.memory_space<vmem>>, vector<4x256xf32>
    %cst_34 = arith.constant dense<0.000000e+00> : vector<4x256xf32>
    %68 = tpu.matmul %67, %66, %cst_34 {dimension_numbers = #tpu.dot_dimension_numbers<[1], [1], [0], [0], [0, 0, 1, 0], [], []>} : vector<4x256xf32>, vector<256x256xf32>, vector<4x256xf32> -> vector<4x256xf32>
    %c0_35 = arith.constant 0 : index
    %c0_36 = arith.constant 0 : index
    %69 = vector.load %arg11[%c0_35, %c0_36] : memref<4x1xf32, #tpu.memory_space<vmem>>, vector<4x1xf32>
    %70 = vector.broadcast %69 : vector<4x1xf32> to vector<4x256xf32>
    %71 = arith.addf %68, %70 : vector<4x256xf32>
    %72 = math.tanh %71 : vector<4x256xf32>
    %cst_37 = arith.constant 1.000000e+00 : f32
    %73 = vector.broadcast %cst_37 : f32 to vector<4x256xf32>
    %74 = arith.mulf %73, %72 : vector<4x256xf32>
    %c0_38 = arith.constant 0 : index
    %c0_39 = arith.constant 0 : index
    %75 = vector.load %arg12[%c0_38, %c0_39] : memref<4x256xf32, #tpu.memory_space<vmem>>, vector<4x256xf32>
    tpu.vector_store %arg12[%c0_38, %c0_39], %74 {strides = array<i32>} : memref<4x256xf32, #tpu.memory_space<vmem>>, vector<4x256xf32>,
    return
  }
  func.func @transform_0(%arg0: i32) -> (i32, i32) {
    %c0_i32 = arith.constant 0 : i32
    %c0_i32_0 = arith.constant 0 : i32
    return %arg0, %c0_i32 : i32, i32
  }
  func.func @transform_1(%arg0: i32) -> (i32, i32) {
    %c0_i32 = arith.constant 0 : i32
    %c0_i32_0 = arith.constant 0 : i32
    %c0_i32_1 = arith.constant 0 : i32
    return %c0_i32, %c0_i32_0 : i32, i32
  }
  func.func @transform_2(%arg0: i32) -> (i32, i32) {
    %c0_i32 = arith.constant 0 : i32
    %c0_i32_0 = arith.constant 0 : i32
    %c0_i32_1 = arith.constant 0 : i32
    return %c0_i32, %c0_i32_0 : i32, i32
  }
  func.func @transform_3(%arg0: i32) -> (i32, i32) {
    %c0_i32 = arith.constant 0 : i32
    %c0_i32_0 = arith.constant 0 : i32
    %c0_i32_1 = arith.constant 0 : i32
    return %c0_i32, %c0_i32_0 : i32, i32
  }
  func.func @transform_4(%arg0: i32) -> (i32, i32) {
    %c0_i32 = arith.constant 0 : i32
    %c0_i32_0 = arith.constant 0 : i32
    %c0_i32_1 = arith.constant 0 : i32
    return %c0_i32, %c0_i32_0 : i32, i32
  }
  func.func @transform_5(%arg0: i32) -> (i32, i32) {
    %c0_i32 = arith.constant 0 : i32
    %c0_i32_0 = arith.constant 0 : i32
    %c0_i32_1 = arith.constant 0 : i32
    return %c0_i32, %c0_i32_0 : i32, i32
  }
  func.func @transform_6(%arg0: i32) -> (i32, i32) {
    %c0_i32 = arith.constant 0 : i32
    %c0_i32_0 = arith.constant 0 : i32
    %c0_i32_1 = arith.constant 0 : i32
    return %c0_i32, %c0_i32_0 : i32, i32
  }
  func.func @transform_7(%arg0: i32) -> (i32, i32) {
    %c0_i32 = arith.constant 0 : i32
    %c0_i32_0 = arith.constant 0 : i32
    %c0_i32_1 = arith.constant 0 : i32
    return %c0_i32, %c0_i32_0 : i32, i32
  }
  func.func @transform_8(%arg0: i32) -> (i32, i32) {
    %c0_i32 = arith.constant 0 : i32
    %c0_i32_0 = arith.constant 0 : i32
    %c0_i32_1 = arith.constant 0 : i32
    return %c0_i32, %c0_i32_0 : i32, i32
  }
  func.func @transform_9(%arg0: i32) -> (i32, i32) {
    %c0_i32 = arith.constant 0 : i32
    %c0_i32_0 = arith.constant 0 : i32
    %c0_i32_1 = arith.constant 0 : i32
    return %c0_i32, %c0_i32_0 : i32, i32
  }
  func.func @transform_10(%arg0: i32) -> (i32, i32) {
    %c0_i32 = arith.constant 0 : i32
    %c0_i32_0 = arith.constant 0 : i32
    %c0_i32_1 = arith.constant 0 : i32
    return %c0_i32, %c0_i32_0 : i32, i32
  }
  func.func @transform_11(%arg0: i32) -> (i32, i32) {
    %c0_i32 = arith.constant 0 : i32
    %c0_i32_0 = arith.constant 0 : i32
    return %c0_i32, %arg0 : i32, i32
  }
}

</mosaic_0001>

<bundles_post_ra>
// kernel: tpu_custom_call.1
= control target key start
LH: loop header
LB: loop body
LE: loop exit
PB: predicated region body
PF: predicated region fallthrough
CT: control target
= control target key end

     0   :  { %s7383_s0 = inlined_call_operand.vmem [shape: f32[300,12], index: 0, kind: input, shape index: {}]   ;;  %s7384_s1 = inlined_call_operand.vmem [shape: f32[12,256], index: 1, kind: input, shape index: {}]   ;;  %s7385_s2 = inlined_call_operand.vmem [shape: f32[1,256], index: 2, kind: input, shape index: {}]   ;;  %s7386_s3 = inlined_call_operand.vmem [shape: f32[1,256], index: 3, kind: input, shape index: {}]   ;;  %s7387_s4 = inlined_call_operand.vmem [shape: f32[1,256], index: 4, kind: input, shape index: {}]   ;;  %s7388_s5 = inlined_call_operand.hbm [shape: f32[256,256], index: 5, kind: input, shape index: {}]   ;;  %s7389_s6 = inlined_call_operand.vmem [shape: f32[1,256], index: 6, kind: input, shape index: {}]   ;;  %s7390_s7 = inlined_call_operand.vmem [shape: f32[1,256], index: 7, kind: input, shape index: {}]   ;;  %s7391_s8 = inlined_call_operand.vmem [shape: f32[1,256], index: 8, kind: input, shape index: {}]   ;;  %s7392_s9 = inlined_call_operand.vmem [shape: f32[4,256], index: 9, kind: input, shape index: {}]   ;;  %s7393_s10 = inlined_call_operand.vmem [shape: f32[4,1], index: 10, kind: input, shape index: {}]   ;;  %s7394_s11 = inlined_call_operand.hbm [shape: f32[4,300], index: 11, kind: output, shape index: {}]  }
   0x1   :  { %7502 = sst [smem:[#allocation73_spill]] %s7383_s0 }
   0x2   :  { %7503 = sst [smem:[#allocation74_spill]] %s7384_s1 }
   0x3   :  { %7504 = sst [smem:[#allocation75_spill]] %s7385_s2 }
   0x4   :  { %7505 = sst [smem:[#allocation76_spill]] %s7388_s5 }
   0x5   :  { %16 = vsyncpa [#allocation3], 0 }
   0x6   :  { %17 = vsyncpa [#allocation4], 0 }
   0x7   :  { %19 = vsyncpa [#allocation4 + $0x1], 0  ;;  %s4179_s17 = smov 0   ;;  %s4181_s18 = smov 0  }
   0x8   :  { %s4183_s19 = smov 0   ;;  %s4185_s20 = smov 0  }
   0x9 LB: > { %s4200_s21 = sadd.s32 4294967295, %s4111_s20   ;;  %s3726_s22 = sadd.s32 4294967294, %s4111_s20   ;;  %s4111_s20 = sphi %s4185_s20, %s7813_s20   ;;  %s4107_s19 = sphi %s4183_s19, %s7812_s19   ;;  %s4103_s18 = sphi %s4181_s18, %s7811_s18   ;;  %s4099_s17 = sphi %s4179_s17, %s7810_s17  }
   0xa   : > { %s4204_s23 = sadd.s32 1, %s4111_s20   ;;  %s268_s24 = sadd.s32 1, %s4107_s19 }
   0xb   : > { %s265_s25 = ssub.s32 %s4111_s20, %s4204_s23  ;;  %p278_p0 = scmp.ne.s32.totalorder %s4107_s19, %s4103_s18 }
   0xc   : > { %p266_p1 = scmp.eq.s32.totalorder %s265_s25, 0  ;;  %p279_p2 = scmp.eq.s32.totalorder %s4200_s21, 1 }
   0xd   : > { %p284_p3 = scmp.ne.s32.totalorder %s4103_s18, %s4099_s17  ;;  %p285_p4 = scmp.eq.s32.totalorder %s3726_s22, 1 }
   0xe   : > { %s4215_s26 = scalar_select %p266_p1, %s4107_s19, %s268_s24  }
   0xf   : > { %p4217_p5 = por %p279_p2, %p278_p0  ;;  %p4221_p6 = por %p285_p4, %p284_p3 }
  0x10   : > { %p3727_p7 = scmp.ge.s32.totalorder %s4111_s20, 1  ;;  %p292_p8 = scmp.lt.s32.totalorder %s4111_s20, 3 }
  0x11   : > { %p3828_p9 = scmp.eq.s32.totalorder %s4200_s21, 0  ;;  %s7508_s5 = sld [smem:[#allocation76_spill]] }
  0x12   : > { %p293_p10 = pnand %p3727_p7, %p292_p8  ;;  %s4113_s13 = smov [#allocation2]  }
  0x13   : > { %s317_s14 = sshll.u32 %s4113_s13, 4  ;;  %s4114_s15 = smov 256   ;;  %s318_s14 = int_to_ptr.vmem [resolvable:$true] %s317_s14 }
  0x14   : > { %p3820_p11 = pneg %p293_p10  ;;  %s4115_s16 = smov 16  }
  0x15   : > { %365 = sbr.rel (%p293_p10) target bundleno = 1175 (0x497), region = 64 }
  0x16   : > { %p3821_p12 = pnand %p3828_p9, %p3820_p11 }
  0x17   : > { %s315_s12 = sshll.u32 %s7508_s5, 4  ;;  %s316_s12 = int_to_ptr.hbm [resolvable:$true] %s315_s12 }
  0x18   : > { %3823 = dma.hbm_to_vmem [thread:$0]  (!%p3821_p12), %s316_s12, 8192, %s318_s14, [#allocation3], %s4114_s15, %s4114_s15, %s4115_s16  }
  0x1a   : > { %4090 = dma.done.wait (%p3828_p9), [#allocation3], 8192  }
  0x1b   : > { %4092 = vsyncadd (%p3828_p9), [#allocation3], 4294959104  ;;  %s3733_s22 = sshll.u32 %s4200_s21, 5  ;;  %vm568_vm0 = vcmask 1043456   ;;  %s7509_s0 = sld [smem:[#allocation73_spill]]  ;;  %vm471_vm1 = vcmask 97280  }
  0x1c   : > { %p415_p13 = scmp.lt.s32.totalorder %s3733_s22, 37  ;;  %s7510_s1 = sld [smem:[#allocation74_spill]] }
  0x1d   : > { %s7511_s2 = sld [smem:[#allocation75_spill]]  ;;  %s407_s12 = sand.u32 1, %s4103_s18  }
  0x1e   : > { %s7815_s22 = smov (!%p415_p13, %s3733_s22), 37  ;;  %s3732_s14 = sshll.u32 %s407_s12, 3 }
  0x1f   : > { %s3734_s24 = sshll.u32 %s7815_s22, 3  ;;  %s409_s15 = scalar_lea.vmem [#allocation5], %s3732_s14 }
  0x20   : > { %s7328_s16 = scalar_lea.sflag [#allocation4], %s407_s12  ;;  %s3802_s22 = sshll.u32 (%p4217_p5), %s4200_s21, 1 }
  0x21   : > { %s4241_s30 = scalar_lea.vmem %s7509_s0, %s3734_s24  ;;  %s3640_s24 = ssub.s32 (%p4217_p5), 3, %s3802_s22 }
  0x22   : > { %v463_v0 = vld [vmem:[%s7510_s1 + $0x10] sm:$0xf]  ;;  %v464_v1 = vld [vmem:[%s7510_s1 + $0x18] sm:$0xf]  ;;  %v461_v2 = vld [vmem:[%s7510_s1] sm:$0xff]  ;;  %p3641_p0 = scmp.lt.s32.totalorder (%p4217_p5), %s3640_s24, 2 }
  0x23   : > { %3735 = vmatpush.msk.msra.mxu0 %vm568_vm0, %v463_v0  ;;  %3768 = vmatpush.msk.msra.mxu1 %vm568_vm0, %v464_v1  ;;  %v462_v3 = vld [vmem:[%s7510_s1 + $0x8] sm:$0xff]  ;;  %v429_v4 = vld [vmem:[%s4241_s30] sm:$0xff]  ;;  %v431_v6 = vld [vmem:[%s4241_s30 + $0x10] sm:$0xff] }
  0x24   : > { %3813 = vmatpush.msk.msra.mxu3 %vm568_vm0, %v464_v1  ;;  %3811 = vmatpush.msk.msra.mxu2 %vm568_vm0, %v463_v0  ;;  %v430_v5 = vld [vmem:[%s4241_s30 + $0x8] sm:$0xff]  ;;  %v432_v7 = vld [vmem:[%s4241_s30 + $0x18] sm:$0xff]  ;;  %v433_v8 = vld [vmem:[%s4241_s30 + $0x20] sm:$0xff] }
  0x25   : > { %590 = vmatpush.msra.mxu0 %v461_v2  ;;  %703 = vmatpush.msra.mxu1 %v462_v3  ;;  %v434_v9 = vld [vmem:[%s4241_s30 + $0x28] sm:$0xff]  ;;  %v435_v10 = vld [vmem:[%s4241_s30 + $0x30] sm:$0xff]  ;;  %v436_v11 = vld [vmem:[%s4241_s30 + $0x38] sm:$0xff] }
  0x26   : > { %3736 = vmatmul.msk.f32.vlgmr.msra.gmra.mxu0 %vm471_vm1, %v429_v4  ;;  %3769 = vmatmul.msk.f32.vlgmr.msra.gmra.mxu1 %vm471_vm1, %v429_v4  ;;  %v437_v12 = vld [vmem:[%s4241_s30 + $0x40] sm:$0xff]  ;;  %v438_v13 = vld [vmem:[%s4241_s30 + $0x48] sm:$0xff]  ;;  %v439_v14 = vld [vmem:[%s4241_s30 + $0x50] sm:$0xff] }
  0x27   : > { %3814 = vmatpush.msra.mxu3 %v462_v3  ;;  %3812 = vmatpush.msra.mxu2 %v461_v2  ;;  %v440_v15 = vld [vmem:[%s4241_s30 + $0x58] sm:$0xff]  ;;  %v441_v16 = vld [vmem:[%s4241_s30 + $0x60] sm:$0xff]  ;;  %v4299_v17 = vld [vmem:[%s4241_s30 + $0xa8] sm:$0xff] }
  0x28   : > { %3790 = vmatmul.msk.f32.vlgmr.msra.gmra.mxu3 %vm471_vm1, %v4299_v17  ;;  %v442_v18 = vld [vmem:[%s4241_s30 + $0x68] sm:$0xff]  ;;  %v451_v19 = vld [vmem:[%s4241_s30 + $0xb0] sm:$0xff]  ;;  %v452_v21 = vld [vmem:[%s4241_s30 + $0xb8] sm:$0xff] }
  0x29   : > { %3758 = vmatmul.msk.f32.vlgmr.msra.gmra.mxu2 %vm471_vm1, %v451_v19  ;;  %v443_v20 = vld [vmem:[%s4241_s30 + $0x70] sm:$0xff]  ;;  %v444_v22 = vld [vmem:[%s4241_s30 + $0x78] sm:$0xff]  ;;  %v465_v23 = vld [vmem:[%s7511_s2] sm:$0x3] }
  0x2a   : > { %v453_v24 = vld [vmem:[%s4241_s30 + $0xc0] sm:$0xff]  ;;  %v4324_v25 = vperm.slane %v465_v23, 0  ;;  %v4326_v26 = vperm.slane %v465_v23, 1  ;;  %v454_v34 = vld [vmem:[%s4241_s30 + $0xc8] sm:$0xff]  ;;  %v455_v45 = vld [vmem:[%s4241_s30 + $0xd0] sm:$0xff] }
  0x2b   : > { %v445_v29 = vld [vmem:[%s4241_s30 + $0x80] sm:$0xff]  ;;  %v446_v38 = vld [vmem:[%s4241_s30 + $0x88] sm:$0xff]  ;;  %v447_v50 = vld [vmem:[%s4241_s30 + $0x90] sm:$0xff] }
  0x2c   : > { %v456_v57 = vld [vmem:[%s4241_s30 + $0xd8] sm:$0xff] }
  0x2d   : > { %v448_v62 = vld [vmem:[%s4241_s30 + $0x98] sm:$0xff] }
  0x2e   : > { %3737 = vmatmul.msk.f32.gmra.mxu0 %vm471_vm1, %v430_v5  ;;  %3770 = vmatmul.msk.f32.gmra.mxu1 %vm471_vm1, %v430_v5  ;;  %v1939_v5 = vld [vmem:[#allocation2 + $0xf8] sm:$0xff] }
  0x2f   : > { %2204 = vmatpush.msrb.mxu0 %v1939_v5 }
  0x30   : > { %3791 = vmatmul.msk.f32.gmra.mxu3 %vm471_vm1, %v451_v19 }
  0x31   : > { %3759 = vmatmul.msk.f32.gmra.mxu2 %vm471_vm1, %v452_v21 }
  0x36   : > { %3738 = vmatmul.msk.f32.gmra.mxu0 %vm471_vm1, %v431_v6  ;;  %3771 = vmatmul.msk.f32.gmra.mxu1 %vm471_vm1, %v431_v6  ;;  %v457_v6 = vld [vmem:[%s4241_s30 + $0xe0] sm:$0xff] }
  0x38   : > { %3792 = vmatmul.msk.f32.gmra.mxu3 %vm471_vm1, %v452_v21 }
  0x39   : > { %3760 = vmatmul.msk.f32.gmra.mxu2 %vm471_vm1, %v453_v24 }
  0x3e   : > { %3739 = vmatmul.msk.f32.gmra.mxu0 %vm471_vm1, %v432_v7  ;;  %3772 = vmatmul.msk.f32.gmra.mxu1 %vm471_vm1, %v432_v7 }
  0x40   : > { %3793 = vmatmul.msk.f32.gmra.mxu3 %vm471_vm1, %v453_v24 }
  0x41   : > { %3761 = vmatmul.msk.f32.gmra.mxu2 %vm471_vm1, %v454_v34 }
  0x46   : > { %3740 = vmatmul.msk.f32.gmra.mxu0 %vm471_vm1, %v433_v8  ;;  %3773 = vmatmul.msk.f32.gmra.mxu1 %vm471_vm1, %v433_v8 }
  0x48   : > { %3794 = vmatmul.msk.f32.gmra.mxu3 %vm471_vm1, %v454_v34 }
  0x49   : > { %3762 = vmatmul.msk.f32.gmra.mxu2 %vm471_vm1, %v455_v45 }
  0x4e   : > { %3741 = vmatmul.msk.f32.gmra.mxu0 %vm471_vm1, %v434_v9  ;;  %3774 = vmatmul.msk.f32.gmra.mxu1 %vm471_vm1, %v434_v9 }
  0x50   : > { %3795 = vmatmul.msk.f32.gmra.mxu3 %vm471_vm1, %v455_v45 }
  0x51   : > { %3763 = vmatmul.msk.f32.gmra.mxu2 %vm471_vm1, %v456_v57 }
  0x56   : > { %3742 = vmatmul.msk.f32.gmra.mxu0 %vm471_vm1, %v435_v10  ;;  %3775 = vmatmul.msk.f32.gmra.mxu1 %vm471_vm1, %v435_v10 }
  0x58   : > { %3796 = vmatmul.msk.f32.gmra.mxu3 %vm471_vm1, %v456_v57 }
  0x59   : > { %3764 = vmatmul.msk.f32.gmra.mxu2 %vm471_vm1, %v457_v6 }
  0x5e   : > { %3743 = vmatmul.msk.f32.gmra.mxu0 %vm471_vm1, %v436_v11  ;;  %3776 = vmatmul.msk.f32.gmra.mxu1 %vm471_vm1, %v436_v11 }
  0x60   : > { %3797 = vmatmul.msk.f32.gmra.mxu3 %vm471_vm1, %v457_v6 }
  0x66   : > { %3744 = vmatmul.msk.f32.gmra.mxu0 %vm471_vm1, %v437_v12  ;;  %3777 = vmatmul.msk.f32.gmra.mxu1 %vm471_vm1, %v437_v12 }
  0x6e   : > { %3745 = vmatmul.msk.f32.gmra.mxu0 %vm471_vm1, %v438_v13  ;;  %3778 = vmatmul.msk.f32.gmra.mxu1 %vm471_vm1, %v438_v13 }
  0x76   : > { %3746 = vmatmul.msk.f32.gmra.mxu0 %vm471_vm1, %v439_v14  ;;  %3779 = vmatmul.msk.f32.gmra.mxu1 %vm471_vm1, %v439_v14  ;;  %v449_v14 = vld [vmem:[%s4241_s30 + $0xa0] sm:$0xff] }
  0x7e   : > { %3747 = vmatmul.msk.f32.gmra.mxu0 %vm471_vm1, %v440_v15  ;;  %3780 = vmatmul.msk.f32.gmra.mxu1 %vm471_vm1, %v440_v15 }
  0x86   : > { %3748 = vmatmul.msk.f32.gmra.mxu0 %vm471_vm1, %v441_v16  ;;  %3781 = vmatmul.msk.f32.gmra.mxu1 %vm471_vm1, %v441_v16 }
  0x8e   : > { %3749 = vmatmul.msk.f32.gmra.mxu0 %vm471_vm1, %v442_v18  ;;  %3782 = vmatmul.msk.f32.gmra.mxu1 %vm471_vm1, %v442_v18 }
  0x96   : > { %3750 = vmatmul.msk.f32.gmra.mxu0 %vm471_vm1, %v443_v20  ;;  %3783 = vmatmul.msk.f32.gmra.mxu1 %vm471_vm1, %v443_v20  ;;  %v458_v20 = vld [vmem:[%s4241_s30 + $0xe8] sm:$0xff] }
  0x97   : > { %3765 = vmatmul.msk.f32.gmra.mxu2 %vm471_vm1, %v458_v20  ;;  %3798 = vmatmul.msk.f32.gmra.mxu3 %vm471_vm1, %v458_v20 }
  0x9e   : > { %3751 = vmatmul.msk.f32.gmra.mxu0 %vm471_vm1, %v444_v22  ;;  %3784 = vmatmul.msk.f32.gmra.mxu1 %vm471_vm1, %v444_v22 }
  0xa3   : > { %v592_v27 = vpop.f32.mrf.mxu0  ;;  %v705_v28 = vpop.f32.mrf.mxu1 }
  0xa4   : > { %v593_v30 = vadd.f32 %v592_v27, %v4324_v25  ;;  %v706_v31 = vadd.f32 %v705_v28, %v4326_v26 }
  0xa6   : > { %v4331_v32 = vmax.f32 %v593_v30, 0.0  ;;  %v4333_v33 = vmax.f32 %v706_v31, 0.0  ;;  %3752 = vmatmul.msk.f32.gmra.mxu0 %vm471_vm1, %v445_v29  ;;  %3785 = vmatmul.msk.f32.gmra.mxu1 %vm471_vm1, %v445_v29 }
  0xa8   : > { %v867_v35 = vadd.f32 %v4333_v33, %v4331_v32  ;;  %v1002_v41 = vmul.f32 %v4331_v32, %v4331_v32  ;;  %v1003_v42 = vmul.f32 %v4333_v33, %v4333_v33 }
  0xaa   : > { %868 = vadd.xlane.f32.xlu0 %v867_v35  ;;  %v1066_v47 = vadd.f32 %v1003_v42, %v1002_v41  ;;  %v1971_v35 = vld [vmem:[#allocation2 + $0x1f8] sm:$0xff] }
  0xab   : > { %v595_v36 = vpop.f32.mrf.mxu0  ;;  %v708_v37 = vpop.f32.mrf.mxu1  ;;  %2317 = vmatpush.msrb.mxu1 %v1971_v35 }
  0xac   : > { %v596_v39 = vadd.f32 %v595_v36, %v4324_v25  ;;  %v709_v40 = vadd.f32 %v708_v37, %v4326_v26  ;;  %v1937_v36 = vld [vmem:[#allocation2 + $0xe8] sm:$0xff] }
  0xad   : > { %v459_v37 = vld [vmem:[%s4241_s30 + $0xf0] sm:$0xff]  ;;  %2205 = vmatpush.msrb.mxu0 %v1937_v36 }
  0xae   : > { %v4349_v43 = vmax.f32 %v596_v39, 0.0  ;;  %v4351_v44 = vmax.f32 %v709_v40, 0.0  ;;  %3753 = vmatmul.msk.f32.gmra.mxu0 %vm471_vm1, %v446_v38  ;;  %3786 = vmatmul.msk.f32.gmra.mxu1 %vm471_vm1, %v446_v38 }
  0xaf   : > { %3766 = vmatmul.msk.f32.gmra.mxu2 %vm471_vm1, %v459_v37  ;;  %3799 = vmatmul.msk.f32.gmra.mxu3 %vm471_vm1, %v459_v37 }
  0xb0   : > { %v870_v46 = vadd.f32 %v4351_v44, %v4349_v43  ;;  %v1004_v53 = vmul.f32 %v4349_v43, %v4349_v43  ;;  %v1005_v54 = vmul.f32 %v4351_v44, %v4351_v44 }
  0xb2   : > { %871 = vadd.xlane.f32.xlu1 %v870_v46  ;;  %1067 = vadd.xlane.f32.xlu0 %v1066_v47  ;;  %v1069_v59 = vadd.f32 %v1005_v54, %v1004_v53 }
  0xb3   : > { %v598_v48 = vpop.f32.mrf.mxu0  ;;  %v711_v49 = vpop.f32.mrf.mxu1 }
  0xb4   : > { %v599_v51 = vadd.f32 %v598_v48, %v4324_v25  ;;  %v712_v52 = vadd.f32 %v711_v49, %v4326_v26  ;;  %v1969_v49 = vld [vmem:[#allocation2 + $0x1e8] sm:$0xff] }
  0xb5   : > { %2318 = vmatpush.msrb.mxu1 %v1969_v49  ;;  %v1929_v49 = vld [vmem:[#allocation2 + $0xa8] sm:$0xff] }
  0xb6   : > { %v4367_v55 = vmax.f32 %v599_v51, 0.0  ;;  %v4369_v56 = vmax.f32 %v712_v52, 0.0  ;;  %3754 = vmatmul.msk.f32.gmra.mxu0 %vm471_vm1, %v447_v50  ;;  %3787 = vmatmul.msk.f32.gmra.mxu1 %vm471_vm1, %v447_v50  ;;  %v1935_v50 = vld [vmem:[#allocation2 + $0xd8] sm:$0xff]  ;;  %v460_v51 = vld [vmem:[%s4241_s30 + $0xf8] sm:$0xff] }
  0xb7   : > { %2206 = vmatpush.msrb.mxu0 %v1935_v50  ;;  %3767 = vmatmul.msk.f32.gmra.mxu2 %vm471_vm1, %v460_v51 }
  0xb8   : > { %v873_v58 = vadd.f32 %v4369_v56, %v4367_v55  ;;  %v1006_v1 = vmul.f32 %v4367_v55, %v4367_v55  ;;  %v1007_v2 = vmul.f32 %v4369_v56, %v4369_v56  ;;  %3800 = vmatmul.msk.f32.gmra.mxu3 %vm471_vm1, %v460_v51 }
  0xba   : > { %874 = vadd.xlane.f32.xlu2 %v873_v58  ;;  %1070 = vadd.xlane.f32.xlu1 %v1069_v59  ;;  %v1072_v7 = vadd.f32 %v1007_v2, %v1006_v1  ;;  %v1933_v1 = vld [vmem:[#allocation2 + $0xc8] sm:$0xff] }
  0xbb   : > { %v601_v60 = vpop.f32.mrf.mxu0  ;;  %v714_v61 = vpop.f32.mrf.mxu1  ;;  %2207 = vmatpush.msrb.mxu0 %v1933_v1 }
  0xbc   : > { %v602_v63 = vadd.f32 %v601_v60, %v4324_v25  ;;  %v715_v0 = vadd.f32 %v714_v61, %v4326_v26 }
  0xbe   : > { %v4385_v3 = vmax.f32 %v602_v63, 0.0  ;;  %v4387_v4 = vmax.f32 %v715_v0, 0.0  ;;  %3755 = vmatmul.msk.f32.gmra.mxu0 %vm471_vm1, %v448_v62  ;;  %3788 = vmatmul.msk.f32.gmra.mxu1 %vm471_vm1, %v448_v62  ;;  %v1967_v0 = vld [vmem:[#allocation2 + $0x1d8] sm:$0xff] }
  0xbf   : > { %2319 = vmatpush.msrb.mxu1 %v1967_v0 }
  0xc0   : > { %v876_v8 = vadd.f32 %v4387_v4, %v4385_v3  ;;  %v1008_v9 = vmul.f32 %v4385_v3, %v4385_v3  ;;  %v1009_v10 = vmul.f32 %v4387_v4, %v4387_v4 }
  0xc2   : > { %1073 = vadd.xlane.f32.xlu2 %v1072_v7  ;;  %877 = vadd.xlane.f32.xlu0 %v876_v8  ;;  %v1075_v11 = vadd.f32 %v1009_v10, %v1008_v9 }
  0xc3   : > { %v604_v12 = vpop.f32.mrf.mxu0  ;;  %v717_v13 = vpop.f32.mrf.mxu1 }
  0xc4   : > { %v605_v15 = vadd.f32 %v604_v12, %v4324_v25  ;;  %v718_v16 = vadd.f32 %v717_v13, %v4326_v26  ;;  %1076 = vadd.xlane.f32.xlu1 %v1075_v11 }
  0xc6   : > { %v4403_v18 = vmax.f32 %v605_v15, 0.0  ;;  %v4405_v19 = vmax.f32 %v718_v16, 0.0  ;;  %3756 = vmatmul.msk.f32.gmra.mxu0 %vm471_vm1, %v449_v14  ;;  %3789 = vmatmul.msk.f32.gmra.mxu1 %vm471_vm1, %v449_v14 }
  0xc8   : > { %v879_v21 = vadd.f32 %v4405_v19, %v4403_v18  ;;  %v1010_v22 = vmul.f32 %v4403_v18, %v4403_v18  ;;  %v1011_v23 = vmul.f32 %v4405_v19, %v4405_v19 }
  0xca   : > { %880 = vadd.xlane.f32.xlu2 %v879_v21  ;;  %v1078_v24 = vadd.f32 %v1011_v23, %v1010_v22 }
  0xcb   : > { %v607_v27 = vpop.f32.mrf.mxu0  ;;  %v720_v28 = vpop.f32.mrf.mxu1 }
  0xcc   : > { %v608_v29 = vadd.f32 %v607_v27, %v4324_v25  ;;  %v721_v30 = vadd.f32 %v720_v28, %v4326_v26  ;;  %1079 = vadd.xlane.f32.xlu0 %v1078_v24 }
  0xce   : > { %v4420_v31 = vmax.f32 %v608_v29, 0.0  ;;  %v4422_v34 = vmax.f32 %v721_v30, 0.0  ;;  %3757 = vmatmul.msk.f32.gmra.mxu0 %vm471_vm1, %v4299_v17  ;;  %v1965_v29 = vld [vmem:[#allocation2 + $0x1c8] sm:$0xff]  ;;  %v1931_v30 = vld [vmem:[#allocation2 + $0xb8] sm:$0xff] }
  0xcf   : > { %2320 = vmatpush.msrb.mxu1 %v1965_v29  ;;  %2208 = vmatpush.msrb.mxu0 %v1931_v30  ;;  %v1936_v29 = vld [vmem:[#allocation2 + $0xe0] sm:$0xff] }
  0xd0   : > { %v882_v38 = vadd.f32 %v4422_v34, %v4420_v31  ;;  %v1012_v39 = vmul.f32 %v4420_v31, %v4420_v31  ;;  %v1013_v40 = vmul.f32 %v4422_v34, %v4422_v34  ;;  %v1968_v30 = vld [vmem:[#allocation2 + $0x1e0] sm:$0xff] }
  0xd1   : > { %2209 = vmatpush.msrb.mxu0 %v1929_v49  ;;  %v1964_v49 = vld [vmem:[#allocation2 + $0x1c0] sm:$0xff] }
  0xd2   : > { %883 = vadd.xlane.f32.xlu1 %v882_v38  ;;  %v1081_v17 = vadd.f32 %v1013_v40, %v1012_v39 }
  0xd3   : > { %v610_v41 = vpop.f32.mrf.mxu0  ;;  %v723_v42 = vpop.f32.mrf.mxu1 }
  0xd4   : > { %v611_v45 = vadd.f32 %v610_v41, %v4324_v25  ;;  %v724_v46 = vadd.f32 %v723_v42, %v4326_v26  ;;  %1082 = vadd.xlane.f32.xlu2 %v1081_v17 }
  0xd6   : > { %v4437_v47 = vmax.f32 %v611_v45, 0.0  ;;  %v4439_v48 = vmax.f32 %v724_v46, 0.0  ;;  %v1963_v46 = vld [vmem:[#allocation2 + $0x1b8] sm:$0xff] }
  0xd7   : > { %2321 = vmatpush.msrb.mxu1 %v1963_v46  ;;  %v1932_v46 = vld [vmem:[#allocation2 + $0xc0] sm:$0xff] }
  0xd8   : > { %v885_v52 = vadd.f32 %v4439_v48, %v4437_v47  ;;  %v1014_v53 = vmul.f32 %v4437_v47, %v4437_v47  ;;  %v1015_v54 = vmul.f32 %v4439_v48, %v4439_v48 }
  0xda   : > { %886 = vadd.xlane.f32.xlu0 %v885_v52  ;;  %v1084_v57 = vadd.f32 %v1015_v54, %v1014_v53 }
  0xdb   : > { %v613_v58 = vpop.f32.mrf.mxu0  ;;  %v726_v59 = vpop.f32.mrf.mxu1 }
  0xdc   : > { %v614_v60 = vadd.f32 %v613_v58, %v4324_v25  ;;  %v727_v61 = vadd.f32 %v726_v59, %v4326_v26  ;;  %1085 = vadd.xlane.f32.xlu1 %v1084_v57 }
  0xde   : > { %v4452_v62 = vmax.f32 %v614_v60, 0.0  ;;  %v4454_v63 = vmax.f32 %v727_v61, 0.0 }
  0xe0   : > { %v888_v2 = vadd.f32 %v4454_v63, %v4452_v62  ;;  %v1016_v5 = vmul.f32 %v4452_v62, %v4452_v62  ;;  %v1017_v6 = vmul.f32 %v4454_v63, %v4454_v63 }
  0xe2   : > { %889 = vadd.xlane.f32.xlu2 %v888_v2  ;;  %v1087_v7 = vadd.f32 %v1017_v6, %v1016_v5  ;;  %v1961_v5 = vld [vmem:[#allocation2 + $0x1a8] sm:$0xff] }
  0xe3   : > { %v616_v8 = vpop.f32.mrf.mxu0  ;;  %v729_v9 = vpop.f32.mrf.mxu1  ;;  %2322 = vmatpush.msrb.mxu1 %v1961_v5 }
  0xe4   : > { %v617_v10 = vadd.f32 %v616_v8, %v4324_v25  ;;  %v730_v11 = vadd.f32 %v729_v9, %v4326_v26  ;;  %1088 = vadd.xlane.f32.xlu0 %v1087_v7 }
  0xe6   : > { %v4464_v12 = vmax.f32 %v617_v10, 0.0  ;;  %v4466_v13 = vmax.f32 %v730_v11, 0.0 }
  0xe8   : > { %v891_v14 = vadd.f32 %v4466_v13, %v4464_v12  ;;  %v1018_v15 = vmul.f32 %v4464_v12, %v4464_v12  ;;  %v1019_v16 = vmul.f32 %v4466_v13, %v4466_v13 }
  0xea   : > { %892 = vadd.xlane.f32.xlu1 %v891_v14  ;;  %v1090_v20 = vadd.f32 %v1019_v16, %v1018_v15  ;;  %v4116_v15 = vmov 256.0   ;;  %v1927_v16 = vld [vmem:[#allocation2 + $0x98] sm:$0xff] }
  0xeb   : > { %v619_v21 = vpop.f32.mrf.mxu0  ;;  %v732_v22 = vpop.f32.mrf.mxu1  ;;  %3870 = vrcp.f32 %v4116_v15  ;;  %2210 = vmatpush.msrb.mxu0 %v1927_v16 }
  0xec   : > { %v620_v23 = vadd.f32 %v619_v21, %v4324_v25  ;;  %v733_v24 = vadd.f32 %v732_v22, %v4326_v26  ;;  %1091 = vadd.xlane.f32.xlu2 %v1090_v20  ;;  %v1938_v20 = vld [vmem:[#allocation2 + $0xf0] sm:$0xff] }
  0xed   : > { %v1970_v21 = vld [vmem:[#allocation2 + $0x1f0] sm:$0xff]  ;;  %1978 = vmatpush.msrb.mxu2 %v1938_v20  ;;  %v4539_v20 = vpop.f32.mrf.mxu3 }
  0xee   : > { %v4476_v27 = vmax.f32 %v620_v23, 0.0  ;;  %v4478_v28 = vmax.f32 %v733_v24, 0.0  ;;  %2091 = vmatpush.msrb.mxu3 %v1970_v21  ;;  %v1925_v21 = vld [vmem:[#allocation2 + $0x88] sm:$0xff] }
  0xef   : > { %1979 = vmatpush.msrb.mxu2 %v1936_v29  ;;  %2211 = vmatpush.msrb.mxu0 %v1925_v21 }
  0xf0   : > { %7512 = vst [vmem:[#allocation8_spill] sm:$0xff] %v4476_v27  ;;  %v894_v35 = vadd.f32 %v4478_v28, %v4476_v27  ;;  %v1020_v36 = vmul.f32 %v4476_v27, %v4476_v27  ;;  %v1021_v37 = vmul.f32 %v4478_v28, %v4478_v28  ;;  %2092 = vmatpush.msrb.mxu3 %v1968_v30  ;;  %v1957_v30 = vld [vmem:[#allocation2 + $0x188] sm:$0xff] }
  0xf1   : > { %7513 = vst [vmem:[#allocation9_spill] sm:$0xff] %v4478_v28 }
  0xf2   : > { %895 = vadd.xlane.f32.xlu0 %v894_v35  ;;  %v1093_v38 = vadd.f32 %v1021_v37, %v1020_v36 }
  0xf3   : > { %v622_v39 = vpop.f32.mrf.mxu0  ;;  %v735_v40 = vpop.f32.mrf.mxu1 }
  0xf4   : > { %v623_v17 = vadd.f32 %v622_v39, %v4324_v25  ;;  %v736_v41 = vadd.f32 %v735_v40, %v4326_v26  ;;  %1094 = vadd.xlane.f32.xlu1 %v1093_v38  ;;  %v1934_v38 = vld [vmem:[#allocation2 + $0xd0] sm:$0xff]  ;;  %v4522_v40 = vpop.eup %3870 }
  0xf5   : > { %v1966_v39 = vld [vmem:[#allocation2 + $0x1d0] sm:$0xff]  ;;  %1980 = vmatpush.msrb.mxu2 %v1934_v38  ;;  %v1923_v38 = vld [vmem:[#allocation2 + $0x78] sm:$0xff]  ;;  %vm968_vm2 = vweird.f32 %v4522_v40  ;;  %v4562_v21 = vpop.f32.mrf.mxu3 }
  0xf6   : > { %v4488_v42 = vmax.f32 %v623_v17, 0.0  ;;  %v4490_v45 = vmax.f32 %v736_v41, 0.0  ;;  %2093 = vmatpush.msrb.mxu3 %v1966_v39  ;;  %2212 = vmatpush.msrb.mxu0 %v1923_v38 }
  0xf7   : > { %1981 = vmatpush.msrb.mxu2 %v1932_v46  ;;  %v1955_v46 = vld [vmem:[#allocation2 + $0x178] sm:$0xff] }
  0xf8   : > { %7514 = vst [vmem:[#allocation10_spill] sm:$0xff] %v4488_v42  ;;  %v897_v50 = vadd.f32 %v4490_v45, %v4488_v42  ;;  %v1022_v51 = vmul.f32 %v4488_v42, %v4488_v42  ;;  %v1023_v52 = vmul.f32 %v4490_v45, %v4490_v45  ;;  %2094 = vmatpush.msrb.mxu3 %v1964_v49  ;;  %v1920_v49 = vld [vmem:[#allocation2 + $0x60] sm:$0xff] }
  0xf9   : > { %7515 = vst [vmem:[#allocation11_spill] sm:$0xff] %v4490_v45 }
  0xfa   : > { %898 = vadd.xlane.f32.xlu2 %v897_v50  ;;  %v1096_v53 = vadd.f32 %v1023_v52, %v1022_v51  ;;  %v964_v52 = vmul.f32 256.0, %v4522_v40 }
  0xfb   : > { %v625_v54 = vpop.f32.mrf.mxu0  ;;  %v738_v57 = vpop.f32.mrf.mxu1 }
  0xfc   : > { %v626_v58 = vadd.f32 %v625_v54, %v4324_v25  ;;  %v739_v59 = vadd.f32 %v738_v57, %v4326_v26  ;;  %1097 = vadd.xlane.f32.xlu0 %v1096_v53  ;;  %v1930_v53 = vld [vmem:[#allocation2 + $0xb0] sm:$0xff] }
  0xfd   : > { %v1962_v54 = vld [vmem:[#allocation2 + $0x1b0] sm:$0xff]  ;;  %1982 = vmatpush.msrb.mxu2 %v1930_v53  ;;  %v1921_v53 = vld [vmem:[#allocation2 + $0x68] sm:$0xff] }
  0xfe   : > { %v4500_v60 = vmax.f32 %v626_v58, 0.0  ;;  %v4502_v61 = vmax.f32 %v739_v59, 0.0  ;;  %2095 = vmatpush.msrb.mxu3 %v1962_v54  ;;  %2213 = vmatpush.msrb.mxu0 %v1921_v53 }
 0x100   : > { %7516 = vst [vmem:[#allocation12_spill] sm:$0xff] %v4500_v60  ;;  %v900_v0 = vadd.f32 %v4502_v61, %v4500_v60  ;;  %v1024_v1 = vmul.f32 %v4500_v60, %v4500_v60  ;;  %v1025_v2 = vmul.f32 %v4502_v61, %v4502_v61 }
 0x101   : > { %7517 = vst [vmem:[#allocation13_spill] sm:$0xff] %v4502_v61 }
 0x102   : > { %901 = vadd.xlane.f32.xlu1 %v900_v0  ;;  %v1099_v6 = vadd.f32 %v1025_v2, %v1024_v1  ;;  %v1928_v0 = vld [vmem:[#allocation2 + $0xa0] sm:$0xff] }
 0x103   : > { %v628_v7 = vpop.f32.mrf.mxu0  ;;  %v741_v8 = vpop.f32.mrf.mxu1  ;;  %v1960_v1 = vld [vmem:[#allocation2 + $0x1a0] sm:$0xff]  ;;  %1983 = vmatpush.msrb.mxu2 %v1928_v0 }
 0x104   : > { %v629_v9 = vadd.f32 %v628_v7, %v4324_v25  ;;  %v742_v10 = vadd.f32 %v741_v8, %v4326_v26  ;;  %1100 = vadd.xlane.f32.xlu2 %v1099_v6  ;;  %v965_v7 = vsub.f32 1.0, %v964_v52  ;;  %v1959_v8 = vld [vmem:[#allocation2 + $0x198] sm:$0xff]  ;;  %2096 = vmatpush.msrb.mxu3 %v1960_v1  ;;  %v1952_v52 = vld [vmem:[#allocation2 + $0x160] sm:$0xff]  ;;  %v1918_v1 = vld [vmem:[#allocation2 + $0x50] sm:$0xff] }
 0x105   : > { %2323 = vmatpush.msrb.mxu1 %v1959_v8  ;;  %v1951_v8 = vld [vmem:[#allocation2 + $0x158] sm:$0xff] }
 0x106   : > { %v4512_v11 = vmax.f32 %v629_v9, 0.0  ;;  %v4514_v14 = vmax.f32 %v742_v10, 0.0  ;;  %v1926_v9 = vld [vmem:[#allocation2 + $0x90] sm:$0xff] }
 0x107   : > { %v1958_v10 = vld [vmem:[#allocation2 + $0x190] sm:$0xff]  ;;  %1984 = vmatpush.msrb.mxu2 %v1926_v9  ;;  %2324 = vmatpush.msrb.mxu1 %v1957_v30  ;;  %v1917_v30 = vld [vmem:[#allocation2 + $0x48] sm:$0xff] }
 0x108   : > { %7518 = vst [vmem:[#allocation14_spill] sm:$0xff] %v4512_v11  ;;  %v903_v22 = vadd.f32 %v4514_v14, %v4512_v11  ;;  %v1026_v23 = vmul.f32 %v4512_v11, %v4512_v11  ;;  %v1027_v24 = vmul.f32 %v4514_v14, %v4514_v14  ;;  %2097 = vmatpush.msrb.mxu3 %v1958_v10 }
 0x109   : > { %7519 = vst [vmem:[#allocation15_spill] sm:$0xff] %v4514_v14  ;;  %2325 = vmatpush.msrb.mxu1 %v1955_v46 }
 0x10a   : > { %904 = vadd.xlane.f32.xlu0 %v903_v22  ;;  %v1102_v35 = vadd.f32 %v1027_v24, %v1026_v23  ;;  %v1924_v22 = vld [vmem:[#allocation2 + $0x80] sm:$0xff] }
 0x10b   : > { %v631_v36 = vpop.f32.mrf.mxu0  ;;  %v744_v37 = vpop.f32.mrf.mxu1  ;;  %v1956_v23 = vld [vmem:[#allocation2 + $0x180] sm:$0xff]  ;;  %1985 = vmatpush.msrb.mxu2 %v1924_v22 }
 0x10c   : > { %v632_v17 = vadd.f32 %v631_v36, %v4324_v25  ;;  %v745_v41 = vadd.f32 %v744_v37, %v4326_v26  ;;  %1103 = vadd.xlane.f32.xlu1 %v1102_v35  ;;  %v966_v35 = vmul.f32 %v4522_v40, %v965_v7  ;;  %2098 = vmatpush.msrb.mxu3 %v1956_v23  ;;  %v1922_v36 = vld [vmem:[#allocation2 + $0x70] sm:$0xff]  ;;  %v1916_v22 = vld [vmem:[#allocation2 + $0x40] sm:$0xff] }
 0x10d   : > { %v1954_v37 = vld [vmem:[#allocation2 + $0x170] sm:$0xff]  ;;  %1986 = vmatpush.msrb.mxu2 %v1922_v36  ;;  %v1948_v23 = vld [vmem:[#allocation2 + $0x140] sm:$0xff]  ;;  %v1949_v36 = vld [vmem:[#allocation2 + $0x148] sm:$0xff] }
 0x10e   : > { %v4526_v50 = vmax.f32 %v632_v17, 0.0  ;;  %v4528_v51 = vmax.f32 %v745_v41, 0.0  ;;  %2099 = vmatpush.msrb.mxu3 %v1954_v37  ;;  %v967_v0 = vadd.f32 %v4522_v40, %v966_v35 }
 0x10f   : > { %1987 = vmatpush.msrb.mxu2 %v1920_v49 }
 0x110   : > { %7520 = vst [vmem:[#allocation16_spill] sm:$0xff] %v4526_v50  ;;  %v906_v57 = vadd.f32 %v4528_v51, %v4526_v50  ;;  %v1028_v58 = vmul.f32 %v4526_v50, %v4526_v50  ;;  %v1029_v59 = vmul.f32 %v4528_v51, %v4528_v51  ;;  %2100 = vmatpush.msrb.mxu3 %v1952_v52  ;;  %v1912_v52 = vld [vmem:[#allocation2 + $0x20] sm:$0xff] }
 0x111   : > { %7521 = vst [vmem:[#allocation17_spill] sm:$0xff] %v4528_v51  ;;  %1988 = vmatpush.msrb.mxu2 %v1918_v1  ;;  %v4565_v35 = vsel %vm968_vm2, %v4522_v40, %v967_v0  ;;  %v1947_v40 = vld [vmem:[#allocation2 + $0x138] sm:$0xff] }
 0x112   : > { %907 = vadd.xlane.f32.xlu2 %v906_v57  ;;  %v1105_v2 = vadd.f32 %v1029_v59, %v1028_v58  ;;  %v1953_v57 = vld [vmem:[#allocation2 + $0x168] sm:$0xff]  ;;  %7526 = vst [vmem:[#allocation22_spill] sm:$0xff] %v4565_v35 }
 0x113   : > { %v634_v5 = vpop.f32.mrf.mxu0  ;;  %v747_v6 = vpop.f32.mrf.mxu1  ;;  %2326 = vmatpush.msrb.mxu1 %v1953_v57  ;;  %1989 = vmatpush.msrb.mxu2 %v1916_v22 }
 0x114   : > { %v635_v15 = vadd.f32 %v634_v5, %v4324_v25  ;;  %v748_v16 = vadd.f32 %v747_v6, %v4326_v26  ;;  %1106 = vadd.xlane.f32.xlu0 %v1105_v2  ;;  %v1950_v2 = vld [vmem:[#allocation2 + $0x150] sm:$0xff]  ;;  %v1919_v5 = vld [vmem:[#allocation2 + $0x58] sm:$0xff] }
 0x115   : > { %2101 = vmatpush.msrb.mxu3 %v1950_v2  ;;  %2214 = vmatpush.msrb.mxu0 %v1919_v5  ;;  %v1945_v2 = vld [vmem:[#allocation2 + $0x128] sm:$0xff]  ;;  %v1910_v5 = vld [vmem:[#allocation2 + $0x10] sm:$0xff] }
 0x116   : > { %v4541_v24 = vmax.f32 %v635_v15, 0.0  ;;  %v4543_v29 = vmax.f32 %v748_v16, 0.0  ;;  %v4560_v16 = vpop.f32.mrf.mxu2  ;;  %2327 = vmatpush.msrb.mxu1 %v1951_v8  ;;  %v1942_v8 = vld [vmem:[#allocation2 + $0x110] sm:$0xff] }
 0x117   : > { %2102 = vmatpush.msrb.mxu3 %v1948_v23  ;;  %2215 = vmatpush.msrb.mxu0 %v1917_v30 }
 0x118   : > { %7522 = vst [vmem:[#allocation18_spill] sm:$0xff] %v4541_v24  ;;  %v909_v39 = vadd.f32 %v4543_v29, %v4541_v24  ;;  %v1030_v17 = vmul.f32 %v4541_v24, %v4541_v24  ;;  %v1031_v41 = vmul.f32 %v4543_v29, %v4543_v29  ;;  %2328 = vmatpush.msrb.mxu1 %v1949_v36  ;;  %v1911_v36 = vld [vmem:[#allocation2 + $0x18] sm:$0xff] }
 0x119   : > { %7523 = vst [vmem:[#allocation19_spill] sm:$0xff] %v4543_v29 }
 0x11a   : > { %910 = vadd.xlane.f32.xlu1 %v909_v39  ;;  %v1108_v54 = vadd.f32 %v1031_v41, %v1030_v17  ;;  %v1914_v39 = vld [vmem:[#allocation2 + $0x30] sm:$0xff]  ;;  %v1915_v41 = vld [vmem:[#allocation2 + $0x38] sm:$0xff]  ;;  %2329 = vmatpush.msrb.mxu1 %v1947_v40  ;;  %v1940_v40 = vld [vmem:[#allocation2 + $0x100] sm:$0xff] }
 0x11b   : > { %v637_v58 = vpop.f32.mrf.mxu0  ;;  %v750_v59 = vpop.f32.mrf.mxu1  ;;  %v1946_v17 = vld [vmem:[#allocation2 + $0x130] sm:$0xff]  ;;  %1990 = vmatpush.msrb.mxu2 %v1914_v39  ;;  %2216 = vmatpush.msrb.mxu0 %v1915_v41 }
 0x11c   : > { %v638_v6 = vadd.f32 %v637_v58, %v4324_v25  ;;  %v751_v7 = vadd.f32 %v750_v59, %v4326_v26  ;;  %1109 = vadd.xlane.f32.xlu2 %v1108_v54  ;;  %2103 = vmatpush.msrb.mxu3 %v1946_v17  ;;  %v1944_v58 = vld [vmem:[#allocation2 + $0x120] sm:$0xff]  ;;  %v1913_v59 = vld [vmem:[#allocation2 + $0x28] sm:$0xff] }
 0x11d   : > { %v869_v9 = vpop.xlane.xlu0 %868  ;;  %1991 = vmatpush.msrb.mxu2 %v1912_v52  ;;  %2217 = vmatpush.msrb.mxu0 %v1913_v59  ;;  %v1909_v52 = vld [vmem:[#allocation2 + $0x8] sm:$0xff] }
 0x11e   : > { %v4556_v10 = vmax.f32 %v638_v6, 0.0  ;;  %v4558_v15 = vmax.f32 %v751_v7, 0.0  ;;  %v4574_v49 = vmul.f32 %v4565_v35, %v869_v9  ;;  %2104 = vmatpush.msrb.mxu3 %v1944_v58  ;;  %2330 = vmatpush.msrb.mxu1 %v1945_v2  ;;  %v4587_v41 = vpop.f32.mrf.mxu2 }
 0x11f   : > { %1992 = vmatpush.msrb.mxu2 %v1910_v5  ;;  %2218 = vmatpush.msrb.mxu0 %v1911_v36 }
 0x120   : > { %7524 = vst [vmem:[#allocation20_spill] sm:$0xff] %v4556_v10  ;;  %v912_v37 = vadd.f32 %v4558_v15, %v4556_v10  ;;  %v1032_v38 = vmul.f32 %v4556_v10, %v4556_v10  ;;  %v1033_v46 = vmul.f32 %v4558_v15, %v4558_v15  ;;  %v1194_v23 = vmul.f32 %v4574_v49, %v4574_v49 }
 0x121   : > { %7525 = vst [vmem:[#allocation21_spill] sm:$0xff] %v4558_v15  ;;  %2105 = vmatpush.msrb.mxu3 %v1942_v8  ;;  %2219 = vmatpush.msrb.mxu0 %v1909_v52 }
 0x122   : > { %913 = vadd.xlane.f32.xlu0 %v912_v37  ;;  %v1111_v57 = vadd.f32 %v1033_v46, %v1032_v38  ;;  %v1943_v37 = vld [vmem:[#allocation2 + $0x118] sm:$0xff]  ;;  %v1908_v38 = vld [vmem:[#allocation2] sm:$0xff]  ;;  %v4589_v46 = vpop.f32.mrf.mxu3 }
 0x123   : > { %v640_v53 = vpop.f32.mrf.mxu0  ;;  %v753_v54 = vpop.f32.mrf.mxu1  ;;  %2331 = vmatpush.msrb.mxu1 %v1943_v37  ;;  %1993 = vmatpush.msrb.mxu2 %v1908_v38 }
 0x124   : > { %v641_v0 = vadd.f32 %v640_v53, %v4324_v25  ;;  %v754_v1 = vadd.f32 %v753_v54, %v4326_v26  ;;  %1112 = vadd.xlane.f32.xlu1 %v1111_v57  ;;  %v1941_v57 = vld [vmem:[#allocation2 + $0x108] sm:$0xff]  ;;  %2106 = vmatpush.msrb.mxu3 %v1940_v40 }
 0x125   : > { %v872_v6 = vpop.xlane.xlu1 %871  ;;  %v1068_v7 = vpop.xlane.xlu0 %1067  ;;  %2332 = vmatpush.msrb.mxu1 %v1941_v57 }
 0x126   : > { %v4578_v9 = vmax.f32 %v641_v0, 0.0  ;;  %v4580_v22 = vmax.f32 %v754_v1, 0.0  ;;  %v1162_v30 = vmul.f32 %v1068_v7, %v4565_v35  ;;  %v4596_v59 = vmul.f32 %v4565_v35, %v872_v6 }
 0x128   : > { %7527 = vst [vmem:[#allocation23_spill] sm:$0xff] %v4578_v9  ;;  %v1226_v39 = vsub.f32 %v1162_v30, %v1194_v23  ;;  %v915_v17 = vadd.f32 %v4580_v22, %v4578_v9  ;;  %v1034_v53 = vmul.f32 %v4578_v9, %v4578_v9  ;;  %v1035_v54 = vmul.f32 %v4580_v22, %v4580_v22 }
 0x129   : > { %7528 = vst [vmem:[#allocation24_spill] sm:$0xff] %v4580_v22  ;;  %v1195_v37 = vmul.f32 %v4596_v59, %v4596_v59 }
 0x12a   : > { %v1258_v58 = vmax.f32 %v1226_v39, 0.0  ;;  %916 = vadd.xlane.f32.xlu2 %v915_v17  ;;  %v1114_v2 = vadd.f32 %v1035_v54, %v1034_v53  ;;  %v769_v39 = vadd.f32 %v4539_v20, %v4326_v26 }
 0x12b   : > { %v643_v0 = vpop.f32.mrf.mxu0  ;;  %v756_v1 = vpop.f32.mrf.mxu1 }
 0x12c   : > { %v4598_v5 = vadd.f32 1e-05, %v1258_v58  ;;  %v644_v7 = vadd.f32 %v643_v0, %v4324_v25  ;;  %v757_v8 = vadd.f32 %v756_v1, %v4326_v26  ;;  %1115 = vadd.xlane.f32.xlu0 %v1114_v2  ;;  %v4621_v58 = vpop.f32.mrf.mxu2  ;;  %v4623_v0 = vpop.f32.mrf.mxu3 }
 0x12d   : > { %v875_v23 = vpop.xlane.xlu2 %874  ;;  %v1071_v30 = vpop.xlane.xlu1 %1070 }
 0x12e   : > { %3872 = vrsqrt.f32 %v4598_v5  ;;  %v4603_v36 = vmax.f32 %v644_v7, 0.0  ;;  %v4605_v6 = vmax.f32 %v757_v8, 0.0  ;;  %v1163_v38 = vmul.f32 %v1071_v30, %v4565_v35 }
 0x12f   : > { %v4619_v53 = vmul.f32 %v4565_v35, %v875_v23  ;;  %v4627_v8 = vmax.f32 %v769_v39, 0.0  ;;  %v659_v23 = vadd.f32 %v4560_v16, %v4324_v25  ;;  %vm1392_vm4 = vweird.f32 %v4598_v5 }
 0x130   : > { %7529 = vst [vmem:[#allocation25_spill] sm:$0xff] %v4603_v36  ;;  %v918_v17 = vadd.f32 %v4605_v6, %v4603_v36  ;;  %v1036_v40 = vmul.f32 %v4603_v36, %v4603_v36  ;;  %v1037_v52 = vmul.f32 %v4605_v6, %v4605_v6  ;;  %v1227_v54 = vsub.f32 %v1163_v38, %v1195_v37 }
 0x131   : > { %7530 = vst [vmem:[#allocation26_spill] sm:$0xff] %v4605_v6  ;;  %v1196_v39 = vmul.f32 %v4619_v53, %v4619_v53 }
 0x132   : > { %919 = vadd.xlane.f32.xlu1 %v918_v17  ;;  %v1117_v57 = vadd.f32 %v1037_v52, %v1036_v40  ;;  %v1259_v20 = vmax.f32 %v1227_v54, 0.0  ;;  %v772_v17 = vadd.f32 %v4562_v21, %v4326_v26  ;;  %v865_v54 = vld [vmem:[%s7386_s3] sm:$0x3]  ;;  %v1290_v21 = vsub.f32 %v4331_v32, %v4574_v49 }
 0x133   : > { %v646_v1 = vpop.f32.mrf.mxu0  ;;  %v759_v2 = vpop.f32.mrf.mxu1  ;;  %v4664_v9 = vperm.slane %v865_v54, 1 }
 0x134   : > { %v4625_v7 = vpop.eup %3872  ;;  %v647_v30 = vadd.f32 %v646_v1, %v4324_v25  ;;  %v760_v6 = vadd.f32 %v759_v2, %v4326_v26  ;;  %1118 = vadd.xlane.f32.xlu2 %v1117_v57  ;;  %v4635_v38 = vadd.f32 1e-05, %v1259_v20 }
 0x135   : > { %v1387_v37 = vmul.f32 %v4625_v7, %v4598_v5  ;;  %v1074_v40 = vpop.xlane.xlu2 %1073  ;;  %v878_v52 = vpop.xlane.xlu0 %877  ;;  %vm1393_vm3 = vweird.f32 %v4625_v7 }
 0x136   : > { %v4644_v57 = vmax.f32 %v647_v30, 0.0  ;;  %v4646_v16 = vmax.f32 %v760_v6, 0.0  ;;  %v1164_v1 = vmul.f32 %v1074_v40, %v4565_v35  ;;  %v4650_v20 = vmul.f32 %v4565_v35, %v878_v52  ;;  %v866_v40 = vld [vmem:[%s7387_s4] sm:$0x3]  ;;  %vm1394_vm5 = vmor %vm1392_vm4, %vm1393_vm3 }
 0x137   : > { %v1388_v36 = vmul.f32 %v4625_v7, %v1387_v37  ;;  %3874 = vrsqrt.f32 %v4635_v38  ;;  %v1077_v22 = vpop.xlane.xlu1 %1076  ;;  %v4662_v52 = vperm.slane %v865_v54, 0  ;;  %v4679_v51 = vperm.slane %v866_v40, 0 }
 0x138   : > { %7531 = vst [vmem:[#allocation27_spill] sm:$0xff] %v4644_v57  ;;  %v1228_v30 = vsub.f32 %v1164_v1, %v1196_v39  ;;  %v1165_v6 = vmul.f32 %v1077_v22, %v4565_v35  ;;  %v1197_v2 = vmul.f32 %v4650_v20, %v4650_v20  ;;  %v921_v37 = vadd.f32 %v4646_v16, %v4644_v57 }
 0x139   : > { %7532 = vst [vmem:[#allocation28_spill] sm:$0xff] %v4646_v16  ;;  %v1389_v32 = vmul.f32 0.5, %v1388_v36  ;;  %v1038_v39 = vmul.f32 %v4644_v57, %v4644_v57  ;;  %v4672_v1 = vmax.f32 %v659_v23, 0.0  ;;  %v4674_v22 = vmax.f32 %v772_v17, 0.0 }
 0x13a   : > { %v1260_v15 = vmax.f32 %v1228_v30, 0.0  ;;  %v1039_v10 = vmul.f32 %v4646_v16, %v4646_v16  ;;  %v1229_v36 = vsub.f32 %v1165_v6, %v1197_v2  ;;  %922 = vadd.xlane.f32.xlu0 %v921_v37  ;;  %v4685_v30 = vpop.f32.mrf.mxu2  ;;  %v662_v16 = vadd.f32 %v4587_v41, %v4324_v25 }
 0x13b   : > { %7533 = vst [vmem:[#allocation29_spill] sm:$0xff] %v4674_v22  ;;  %v1390_v54 = vsub.f32 1.5, %v1389_v32  ;;  %v649_v29 = vpop.f32.mrf.mxu0  ;;  %v762_v24 = vpop.f32.mrf.mxu1  ;;  %vm1402_vm6 = vweird.f32 %v4635_v38 }
 0x13c   : > { %v4681_v50 = vadd.f32 1e-05, %v1260_v15  ;;  %v650_v23 = vadd.f32 %v649_v29, %v4324_v25  ;;  %v763_v17 = vadd.f32 %v762_v24, %v4326_v26  ;;  %v1120_v57 = vadd.f32 %v1039_v10, %v1038_v39  ;;  %v4693_v15 = vpop.f32.mrf.mxu3 }
 0x13d   : > { %v4687_v14 = vpop.eup %3874  ;;  %v1391_v2 = vmul.f32 %v4625_v7, %v1390_v54  ;;  %v1261_v6 = vmax.f32 %v1229_v36, 0.0  ;;  %v881_v37 = vpop.xlane.xlu2 %880  ;;  %v4739_v45 = vmax.f32 %v662_v16, 0.0 }
 0x13e   : > { %v1397_v24 = vmul.f32 %v4687_v14, %v4635_v38  ;;  %3876 = vrsqrt.f32 %v4681_v50  ;;  %v4702_v10 = vmax.f32 %v650_v23, 0.0  ;;  %1121 = vadd.xlane.f32.xlu1 %v1120_v57  ;;  %v4706_v5 = vmax.f32 %v763_v17, 0.0 }
 0x13f   : > { %v4704_v39 = vadd.f32 1e-05, %v1261_v6  ;;  %v4709_v54 = vmul.f32 %v4565_v35, %v881_v37  ;;  %v1080_v36 = vpop.xlane.xlu0 %1079  ;;  %v1395_v29 = vsel %vm1394_vm5, %v4625_v7, %v1391_v2  ;;  %v775_v57 = vadd.f32 %v4589_v46, %v4326_v26 }
 0x140   : > { %7534 = vst [vmem:[#allocation30_spill] sm:$0xff] %v4702_v10  ;;  %v1398_v32 = vmul.f32 %v4687_v14, %v1397_v24  ;;  %v1166_v11 = vmul.f32 %v1080_v36, %v4565_v35  ;;  %v1706_v23 = vmul.f32 %v1395_v29, %v1290_v21  ;;  %v1040_v17 = vmul.f32 %v4702_v10, %v4702_v10 }
 0x141   : > { %7535 = vst [vmem:[#allocation31_spill] sm:$0xff] %v4706_v5  ;;  %3878 = vrsqrt.f32 %v4704_v39  ;;  %v4721_v6 = vperm.slane %v866_v40, 1  ;;  %v1198_v2 = vmul.f32 %v4709_v54, %v4709_v54  ;;  %v924_v41 = vadd.f32 %v4706_v5, %v4702_v10 }
 0x142   : > { %v1041_v21 = vmul.f32 %v4706_v5, %v4706_v5  ;;  %v1399_v37 = vmul.f32 0.5, %v1398_v32  ;;  %v1775_v40 = vmul.f32 %v4662_v52, %v1706_v23  ;;  %v7536_v7 = vsub.f32 %v4333_v33, %v4574_v49 }
 0x143   : > { %v652_v24 = vpop.f32.mrf.mxu0  ;;  %v765_v36 = vpop.f32.mrf.mxu1  ;;  %v1230_v10 = vsub.f32 %v1166_v11, %v1198_v2  ;;  %925 = vadd.xlane.f32.xlu2 %v924_v41  ;;  %vm1403_vm7 = vweird.f32 %v4687_v14  ;;  %vm1412_vm8 = vweird.f32 %v4681_v50  ;;  %v7541_v38 = vsub.f32 %v4351_v44, %v4596_v59 }
 0x144   : > { %v1707_v61 = vmul.f32 %v1395_v29, %v7536_v7  ;;  %v4737_v60 = vpop.eup %3876  ;;  %v653_v5 = vadd.f32 %v652_v24, %v4324_v25  ;;  %v766_v42 = vadd.f32 %v765_v36, %v4326_v26  ;;  %v1123_v46 = vadd.f32 %v1041_v21, %v1040_v17  ;;  %v4754_v7 = vpop.f32.mrf.mxu2  ;;  %vm1404_vm9 = vmor %vm1402_vm6, %vm1403_vm7 }
 0x145   : > { %v1407_v32 = vmul.f32 %v4737_v60, %v4681_v50  ;;  %v884_v28 = vpop.xlane.xlu1 %883  ;;  %v1844_v23 = vadd.f32 %v4679_v51, %v1775_v40  ;;  %v1262_v49 = vmax.f32 %v1230_v10, 0.0  ;;  %v1400_v41 = vsub.f32 1.5, %v1399_v37 }
 0x146   : > { %v1776_v33 = vmul.f32 %v4664_v9, %v1707_v61  ;;  %v4747_v29 = vmax.f32 %v653_v5, 0.0  ;;  %v4749_v16 = vmax.f32 %v766_v42, 0.0  ;;  %v4752_v11 = vmul.f32 %v4565_v35, %v884_v28  ;;  %1124 = vadd.xlane.f32.xlu0 %v1123_v46  ;;  %v4762_v5 = vpop.f32.mrf.mxu3 }
 0x147   : > { %v4756_v2 = vpop.eup %3878  ;;  %v1408_v17 = vmul.f32 %v4737_v60, %v1407_v32  ;;  %v4759_v21 = vmax.f32 %v775_v57, 0.0  ;;  %1994 = vmatmul.f32.vlgmr.msrb.gmra.mxu2 %v1844_v23  ;;  %v1083_v10 = vpop.xlane.xlu2 %1082  ;;  %v4766_v42 = vadd.f32 1e-05, %v1262_v49  ;;  %v665_v24 = vadd.f32 %v4621_v58, %v4324_v25  ;;  %2220 = vmatmul.f32.vlgmr.msrb.gmra.mxu0 %v1844_v23 }
 0x148   : > { %7537 = vst [vmem:[#allocation32_spill] sm:$0xff] %v4747_v29  ;;  %v1845_v61 = vadd.f32 %v4721_v6, %v1776_v33  ;;  %v778_v37 = vadd.f32 %v4623_v0, %v4326_v26  ;;  %v1167_v57 = vmul.f32 %v1083_v10, %v4565_v35  ;;  %v1199_v46 = vmul.f32 %v4752_v11, %v4752_v11 }
 0x149   : > { %7538 = vst [vmem:[#allocation33_spill] sm:$0xff] %v4749_v16  ;;  %v927_v36 = vadd.f32 %v4749_v16, %v4747_v29  ;;  %v1417_v58 = vmul.f32 %v4756_v2, %v4704_v39  ;;  %3880 = vrsqrt.f32 %v4766_v42  ;;  %v1042_v0 = vmul.f32 %v4747_v29, %v4747_v29 }
 0x14a   : > { %7539 = vst [vmem:[#allocation34_spill] sm:$0xff] %v4759_v21  ;;  %2107 = vmatmul.f32.vlgmr.msrb.gmra.mxu3 %v1845_v61  ;;  %2333 = vmatmul.f32.vlgmr.msrb.gmra.mxu1 %v1845_v61  ;;  %v1409_v32 = vmul.f32 0.5, %v1408_v17  ;;  %v1231_v23 = vsub.f32 %v1167_v57, %v1199_v46  ;;  %v1043_v49 = vmul.f32 %v4749_v16, %v4749_v16  ;;  %v4788_v10 = vmax.f32 %v665_v24, 0.0 }
 0x14b   : > { %928 = vadd.xlane.f32.xlu1 %v927_v36  ;;  %v655_v33 = vpop.f32.mrf.mxu0  ;;  %v1401_v61 = vmul.f32 %v4687_v14, %v1400_v41  ;;  %v4790_v40 = vmax.f32 %v778_v37, 0.0  ;;  %v1418_v41 = vmul.f32 %v4756_v2, %v1417_v58  ;;  %vm1422_vm10 = vweird.f32 %v4704_v39 }
 0x14c   : > { %v656_v28 = vadd.f32 %v655_v33, %v4324_v25  ;;  %v1263_v57 = vmax.f32 %v1231_v23, 0.0  ;;  %v1126_v46 = vadd.f32 %v1043_v49, %v1042_v0  ;;  %v1410_v16 = vsub.f32 1.5, %v1409_v32 }
 0x14d   : > { %v887_v36 = vpop.xlane.xlu0 %886  ;;  %v1405_v33 = vsel %vm1404_vm9, %v4687_v14, %v1401_v61  ;;  %v7540_v0 = vsub.f32 %v4349_v43, %v4596_v59  ;;  %v1045_v61 = vmul.f32 %v4627_v8, %v4627_v8  ;;  %v4823_v43 = vpop.f32.mrf.mxu2  ;;  %v781_v59 = vadd.f32 %v4693_v15, %v4326_v26 }
 0x14e   : > { %v4800_v24 = vmax.f32 %v656_v28, 0.0  ;;  %v4803_v37 = vmul.f32 %v4565_v35, %v887_v36  ;;  %v4806_v29 = vadd.f32 1e-05, %v1263_v57  ;;  %1127 = vadd.xlane.f32.xlu2 %v1126_v46  ;;  %v1709_v49 = vmul.f32 %v1405_v33, %v7541_v38  ;;  %v4831_v57 = vpop.f32.mrf.mxu3 }
 0x14f   : > { %v1708_v23 = vmul.f32 %v1405_v33, %v7540_v0  ;;  %v1086_v58 = vpop.xlane.xlu1 %1085  ;;  %v4814_v28 = vpop.eup %3880  ;;  %v668_v36 = vadd.f32 %v4685_v30, %v4324_v25  ;;  %v933_v15 = vadd.f32 %v4674_v22, %v4672_v1  ;;  %vm1413_vm11 = vweird.f32 %v4737_v60 }
 0x150   : > { %v1168_v14 = vmul.f32 %v1086_v58, %v4565_v35  ;;  %v1200_v32 = vmul.f32 %v4803_v37, %v4803_v37  ;;  %v1427_v44 = vmul.f32 %v4814_v28, %v4766_v42  ;;  %3882 = vrsqrt.f32 %v4806_v29  ;;  %vm1414_vm12 = vmor %vm1412_vm8, %vm1413_vm11 }
 0x151   : > { %v1777_v30 = vmul.f32 %v4662_v52, %v1708_v23  ;;  %v1778_v46 = vmul.f32 %v4664_v9, %v1709_v49  ;;  %v930_v0 = vadd.f32 %v4627_v8, %v4800_v24  ;;  %v1044_v38 = vmul.f32 %v4800_v24, %v4800_v24 }
 0x152   : > { %v1232_v33 = vsub.f32 %v1168_v14, %v1200_v32  ;;  %v1419_v58 = vmul.f32 0.5, %v1418_v41  ;;  %v1411_v23 = vmul.f32 %v4737_v60, %v1410_v16  ;;  %v4847_v41 = vmax.f32 %v668_v36, 0.0 }
 0x153   : > { %v1846_v17 = vadd.f32 %v4679_v51, %v1777_v30  ;;  %v1847_v27 = vadd.f32 %v4721_v6, %v1778_v46  ;;  %931 = vadd.xlane.f32.xlu0 %v930_v0  ;;  %v1129_v14 = vadd.f32 %v1045_v61, %v1044_v38  ;;  %v1046_v16 = vmul.f32 %v4672_v1, %v4672_v1 }
 0x154   : > { %v1264_v49 = vmax.f32 %v1232_v33, 0.0  ;;  %v1047_v46 = vmul.f32 %v4674_v22, %v4674_v22  ;;  %v1428_v61 = vmul.f32 %v4814_v28, %v1427_v44  ;;  %v4866_v38 = vmax.f32 %v781_v59, 0.0 }
 0x155   : > { %1997 = vmatmul.f32.gmra.mxu2 %v1846_v17  ;;  %2223 = vmatmul.f32.gmra.mxu0 %v1846_v17  ;;  %v890_v30 = vpop.xlane.xlu2 %889  ;;  %v1415_v17 = vsel %vm1414_vm12, %v4737_v60, %v1411_v23  ;;  %v7542_v44 = vsub.f32 %v4367_v55, %v4619_v53  ;;  %v1420_v22 = vsub.f32 1.5, %v1419_v58  ;;  %v1048_v23 = vmul.f32 %v4739_v45, %v4739_v45 }
 0x156   : > { %2110 = vmatmul.f32.gmra.mxu3 %v1847_v27  ;;  %2336 = vmatmul.f32.gmra.mxu1 %v1847_v27  ;;  %v4856_v33 = vadd.f32 1e-05, %v1264_v49  ;;  %v4859_v36 = vmul.f32 %v4565_v35, %v890_v30  ;;  %v4862_v0 = vpop.eup %3882  ;;  %v7543_v49 = vsub.f32 %v4369_v56, %v4619_v53  ;;  %v1132_v60 = vadd.f32 %v1047_v46, %v1046_v16  ;;  %v4888_v46 = vpop.f32.mrf.mxu2 }
 0x157   : > { %934 = vadd.xlane.f32.xlu2 %v933_v15  ;;  %1130 = vadd.xlane.f32.xlu1 %v1129_v14  ;;  %v1710_v27 = vmul.f32 %v1415_v17, %v7542_v44  ;;  %v1089_v32 = vpop.xlane.xlu0 %1088  ;;  %v671_v59 = vadd.f32 %v4754_v7, %v4324_v25  ;;  %v1429_v56 = vmul.f32 0.5, %v1428_v61  ;;  %v1049_v16 = vmul.f32 %v4759_v21, %v4759_v21 }
 0x158   : > { %v1711_v30 = vmul.f32 %v1415_v17, %v7543_v49  ;;  %3884 = vrsqrt.f32 %v4856_v33  ;;  %v1201_v14 = vmul.f32 %v4859_v36, %v4859_v36  ;;  %v1169_v58 = vmul.f32 %v1089_v32, %v4565_v35 }
 0x159   : > { %v1779_v15 = vmul.f32 %v4662_v52, %v1710_v27  ;;  %v1437_v7 = vmul.f32 %v4862_v0, %v4806_v29  ;;  %v936_v61 = vadd.f32 %v4759_v21, %v4739_v45  ;;  %v4896_v27 = vpop.f32.mrf.mxu3  ;;  %vm1432_vm13 = vweird.f32 %v4766_v42 }
 0x15a   : > { %v1780_v55 = vmul.f32 %v4664_v9, %v1711_v30  ;;  %v1233_v32 = vsub.f32 %v1169_v58, %v1201_v14  ;;  %v1135_v49 = vadd.f32 %v1049_v16, %v1048_v23  ;;  %v1421_v30 = vmul.f32 %v4756_v2, %v1420_v22 }
 0x15b   : > { %v1848_v17 = vadd.f32 %v4679_v51, %v1779_v15  ;;  %1133 = vadd.xlane.f32.xlu0 %v1132_v60  ;;  %v4904_v50 = vmax.f32 %v671_v59, 0.0  ;;  %vm1423_vm14 = vweird.f32 %v4756_v2  ;;  %v784_v60 = vadd.f32 %v4762_v5, %v4326_v26 }
 0x15c   : > { %v1849_v44 = vadd.f32 %v4721_v6, %v1780_v55  ;;  %v1265_v23 = vmax.f32 %v1233_v32, 0.0  ;;  %vm1424_vm15 = vmor %vm1422_vm10, %vm1423_vm14  ;;  %v1430_v59 = vsub.f32 1.5, %v1429_v56  ;;  %v1438_v58 = vmul.f32 %v4862_v0, %v1437_v7 }
 0x15d   : > { %2000 = vmatmul.f32.gmra.mxu2 %v1848_v17  ;;  %2226 = vmatmul.f32.gmra.mxu0 %v1848_v17  ;;  %v893_v55 = vpop.xlane.xlu1 %892  ;;  %v1425_v16 = vsel %vm1424_vm15, %v4756_v2, %v1421_v30  ;;  %v939_v17 = vadd.f32 %v4790_v40, %v4788_v10  ;;  %v7544_v39 = vsub.f32 %v4385_v3, %v4650_v20  ;;  %vm1433_vm1 = vweird.f32 %v4814_v28 }
 0x15e   : > { %v4907_v21 = vpop.eup %3884  ;;  %2113 = vmatmul.f32.gmra.mxu3 %v1849_v44  ;;  %2339 = vmatmul.f32.gmra.mxu1 %v1849_v44  ;;  %v4914_v14 = vmul.f32 %v4565_v35, %v893_v55  ;;  %v4924_v32 = vadd.f32 1e-05, %v1265_v23  ;;  %v1050_v56 = vmul.f32 %v4788_v10, %v4788_v10  ;;  %v674_v7 = vadd.f32 %v4823_v43, %v4324_v25  ;;  %v679_v22 = vpop.f32.mrf.mxu2  ;;  %vm1434_vm3 = vmor %vm1432_vm13, %vm1433_vm1 }
 0x15f   : > { %1136 = vadd.xlane.f32.xlu2 %v1135_v49  ;;  %937 = vadd.xlane.f32.xlu1 %v936_v61  ;;  %v1092_v5 = vpop.xlane.xlu2 %1091  ;;  %v1447_v44 = vmul.f32 %v4907_v21, %v4856_v33  ;;  %v1712_v55 = vmul.f32 %v1425_v16, %v7544_v39  ;;  %v7545_v2 = vsub.f32 %v4387_v4, %v4650_v20  ;;  %v1439_v39 = vmul.f32 0.5, %v1438_v58 }
 0x160   : > { %v1170_v49 = vmul.f32 %v1092_v5, %v4565_v35  ;;  %v1202_v30 = vmul.f32 %v4914_v14, %v4914_v14  ;;  %3886 = vrsqrt.f32 %v4924_v32  ;;  %v1051_v23 = vmul.f32 %v4790_v40, %v4790_v40 }
 0x161   : > { %v1713_v61 = vmul.f32 %v1425_v16, %v7545_v2  ;;  %v1781_v3 = vmul.f32 %v4662_v52, %v1712_v55  ;;  %vm1442_vm2 = vweird.f32 %v4806_v29  ;;  %v942_v43 = vadd.f32 %v4866_v38, %v4847_v41 }
 0x162   : > { %v1234_v20 = vsub.f32 %v1170_v49, %v1202_v30  ;;  %v1448_v16 = vmul.f32 %v4907_v21, %v1447_v44  ;;  %v1138_v55 = vadd.f32 %v1051_v23, %v1050_v56  ;;  %v1431_v2 = vmul.f32 %v4814_v28, %v1430_v59 }
 0x163   : > { %v1782_v4 = vmul.f32 %v4664_v9, %v1713_v61  ;;  %v1850_v5 = vadd.f32 %v4679_v51, %v1781_v3  ;;  %940 = vadd.xlane.f32.xlu0 %v939_v17  ;;  %v787_v15 = vadd.f32 %v4831_v57, %v4326_v26  ;;  %v792_v17 = vpop.f32.mrf.mxu3  ;;  %v4960_v44 = vmax.f32 %v784_v60, 0.0 }
 0x164   : > { %v1266_v49 = vmax.f32 %v1234_v20, 0.0  ;;  %v1435_v56 = vsel %vm1434_vm3, %v4814_v28, %v1431_v2  ;;  %v1052_v57 = vmul.f32 %v4847_v41, %v4847_v41  ;;  %v7546_v42 = vsub.f32 %v4403_v18, %v4709_v54 }
 0x165   : > { %v1851_v61 = vadd.f32 %v4721_v6, %v1782_v4  ;;  %v896_v30 = vpop.xlane.xlu0 %895  ;;  %2003 = vmatmul.f32.gmra.mxu2 %v1850_v5  ;;  %2229 = vmatmul.f32.gmra.mxu0 %v1850_v5  ;;  %v7547_v60 = vsub.f32 %v4405_v19, %v4709_v54  ;;  %v1053_v5 = vmul.f32 %v4866_v38, %v4866_v38  ;;  %v1440_v2 = vsub.f32 1.5, %v1439_v39 }
 0x166   : > { %v4963_v59 = vmul.f32 %v4565_v35, %v896_v30  ;;  %v4968_v3 = vadd.f32 1e-05, %v1266_v49  ;;  %v1714_v23 = vmul.f32 %v1435_v56, %v7546_v42  ;;  %v4978_v28 = vpop.eup %3886  ;;  %v4980_v30 = vmul.f32 0.5, %v1448_v16 }
 0x167   : > { %2116 = vmatmul.f32.gmra.mxu3 %v1851_v61  ;;  %2342 = vmatmul.f32.gmra.mxu1 %v1851_v61  ;;  %v1715_v4 = vmul.f32 %v1435_v56, %v7547_v60  ;;  %v1095_v20 = vpop.xlane.xlu1 %1094  ;;  %v4982_v61 = vmax.f32 %v674_v7, 0.0  ;;  %v1457_v49 = vmul.f32 %v4978_v28, %v4924_v32  ;;  %v677_v19 = vadd.f32 %v4888_v46, %v4324_v25 }
 0x168   : > { %943 = vadd.xlane.f32.xlu2 %v942_v43  ;;  %1139 = vadd.xlane.f32.xlu1 %v1138_v55  ;;  %v1171_v18 = vmul.f32 %v1095_v20, %v4565_v35  ;;  %3888 = vrsqrt.f32 %v4968_v3  ;;  %v1783_v54 = vmul.f32 %v4662_v52, %v1714_v23  ;;  %v1203_v7 = vmul.f32 %v4963_v59, %v4963_v59 }
 0x169   : > { %v1784_v39 = vmul.f32 %v4664_v9, %v1715_v4  ;;  %v1141_v16 = vadd.f32 %v1053_v5, %v1052_v57  ;;  %v1054_v43 = vmul.f32 %v4904_v50, %v4904_v50  ;;  %v1458_v55 = vmul.f32 %v4978_v28, %v1457_v49 }
 0x16a   : > { %v790_v56 = vadd.f32 %v4896_v27, %v4326_v26  ;;  %v1055_v42 = vmul.f32 %v4960_v44, %v4960_v44  ;;  %vm1443_vm4 = vweird.f32 %v4862_v0  ;;  %vm1452_vm5 = vweird.f32 %v4856_v33 }
 0x16b   : > { %v5003_v46 = vmax.f32 %v787_v15, 0.0  ;;  %v1852_v23 = vadd.f32 %v4679_v51, %v1783_v54  ;;  %v1235_v57 = vsub.f32 %v1171_v18, %v1203_v7  ;;  %1142 = vadd.xlane.f32.xlu0 %v1141_v16  ;;  %v945_v60 = vadd.f32 %v4960_v44, %v4904_v50  ;;  %vm1444_vm6 = vmor %vm1442_vm2, %vm1443_vm4 }
 0x16c   : > { %v1450_v4 = vsub.f32 1.5, %v4980_v30  ;;  %v1853_v27 = vadd.f32 %v4721_v6, %v1784_v39  ;;  %v1144_v20 = vadd.f32 %v1055_v42, %v1054_v43  ;;  %v1441_v49 = vmul.f32 %v4862_v0, %v1440_v2  ;;  %v682_v30 = vpop.f32.mrf.mxu2  ;;  %v795_v43 = vpop.f32.mrf.mxu3 }
 0x16d   : > { %v899_v5 = vpop.xlane.xlu2 %898  ;;  %v5011_v58 = vmax.f32 %v677_v19, 0.0  ;;  %2006 = vmatmul.f32.gmra.mxu2 %v1852_v23  ;;  %2232 = vmatmul.f32.gmra.mxu0 %v1852_v23  ;;  %v1267_v15 = vmax.f32 %v1235_v57, 0.0  ;;  %v680_v54 = vadd.f32 %v679_v22, %v4324_v25  ;;  %v5023_v7 = vmul.f32 0.5, %v1458_v55 }
 0x16e   : > { %v5015_v18 = vmul.f32 %v4565_v35, %v899_v5  ;;  %v5021_v39 = vpop.eup %3888  ;;  %v5025_v2 = vmax.f32 %v790_v56, 0.0  ;;  %v793_v19 = vadd.f32 %v792_v17, %v4326_v26  ;;  %v1445_v22 = vsel %vm1444_vm6, %v4862_v0, %v1441_v49 }
 0x16f   : > { %2119 = vmatmul.f32.gmra.mxu3 %v1853_v27  ;;  %2345 = vmatmul.f32.gmra.mxu1 %v1853_v27  ;;  %v1098_v16 = vpop.xlane.xlu0 %1097  ;;  %v1467_v42 = vmul.f32 %v5021_v39, %v4968_v3  ;;  %v5031_v29 = vadd.f32 1e-05, %v1267_v15  ;;  %v948_v55 = vadd.f32 %v5003_v46, %v4982_v61  ;;  %v1056_v56 = vmul.f32 %v4982_v61, %v4982_v61 }
 0x170   : > { %1145 = vadd.xlane.f32.xlu2 %v1144_v20  ;;  %946 = vadd.xlane.f32.xlu1 %v945_v60  ;;  %v7548_v17 = vsub.f32 %v4420_v31, %v4752_v11  ;;  %v7549_v0 = vsub.f32 %v4422_v34, %v4752_v11  ;;  %v1204_v27 = vmul.f32 %v5015_v18, %v5015_v18  ;;  %v5048_v5 = vmax.f32 %v680_v54, 0.0 }
 0x171   : > { %v1172_v20 = vmul.f32 %v1098_v16, %v4565_v35  ;;  %v1468_v60 = vmul.f32 %v5021_v39, %v1467_v42  ;;  %3890 = vrsqrt.f32 %v5031_v29  ;;  %v1057_v49 = vmul.f32 %v5003_v46, %v5003_v46 }
 0x172   : > { %v1716_v23 = vmul.f32 %v1445_v22, %v7548_v17  ;;  %v1717_v57 = vmul.f32 %v1445_v22, %v7549_v0  ;;  %v951_v11 = vadd.f32 %v5025_v2, %v5011_v58  ;;  %v683_v16 = vadd.f32 %v682_v30, %v4324_v25 }
 0x173   : > { %v1236_v34 = vsub.f32 %v1172_v20, %v1204_v27  ;;  %v5056_v22 = vmul.f32 0.5, %v1468_v60  ;;  %949 = vadd.xlane.f32.xlu0 %v948_v55  ;;  %v796_v42 = vadd.f32 %v795_v43, %v4326_v26  ;;  %v1451_v54 = vmul.f32 %v4907_v21, %v1450_v4 }
 0x174   : > { %v1785_v31 = vmul.f32 %v4662_v52, %v1716_v23  ;;  %v1786_v15 = vmul.f32 %v4664_v9, %v1717_v57  ;;  %v1147_v53 = vadd.f32 %v1057_v49, %v1056_v56  ;;  %vm1462_vm7 = vweird.f32 %v4924_v32 }
 0x175   : > { %v1268_v23 = vmax.f32 %v1236_v34, 0.0  ;;  %v902_v57 = vpop.xlane.xlu1 %901  ;;  %v5064_v27 = vmax.f32 %v793_v19, 0.0  ;;  %vm1453_vm8 = vweird.f32 %v4907_v21  ;;  %v1460_v30 = vsub.f32 1.5, %v5023_v7 }
 0x176   : > { %v1854_v17 = vadd.f32 %v4679_v51, %v1785_v31  ;;  %v1855_v0 = vadd.f32 %v4721_v6, %v1786_v15  ;;  %v5067_v20 = vmul.f32 %v4565_v35, %v902_v57  ;;  %vm1454_vm9 = vmor %vm1452_vm5, %vm1453_vm8  ;;  %v1058_v55 = vmul.f32 %v5011_v58, %v5011_v58 }
 0x177   : > { %v5071_v4 = vadd.f32 1e-05, %v1268_v23  ;;  %v1101_v43 = vpop.xlane.xlu2 %1100  ;;  %v1059_v19 = vmul.f32 %v5025_v2, %v5025_v2  ;;  %v5079_v56 = vpop.eup %3890  ;;  %v5082_v7 = vmax.f32 %v683_v16, 0.0  ;;  %v5084_v49 = vmax.f32 %v796_v42, 0.0 }
 0x178   : > { %2009 = vmatmul.f32.gmra.mxu2 %v1854_v17  ;;  %2122 = vmatmul.f32.gmra.mxu3 %v1855_v0  ;;  %v1455_v33 = vsel %vm1454_vm9, %v4907_v21, %v1451_v54  ;;  %v1477_v31 = vmul.f32 %v5079_v56, %v5031_v29  ;;  %v7550_v15 = vsub.f32 %v4437_v47, %v4803_v37  ;;  %v685_v16 = vpop.f32.mrf.mxu2  ;;  %vm1463_vm10 = vweird.f32 %v4978_v28 }
 0x179   : > { %2235 = vmatmul.f32.gmra.mxu0 %v1854_v17  ;;  %2348 = vmatmul.f32.gmra.mxu1 %v1855_v0  ;;  %3892 = vrsqrt.f32 %v5071_v4  ;;  %v1060_v17 = vmul.f32 %v5048_v5, %v5048_v5  ;;  %v798_v0 = vpop.f32.mrf.mxu3  ;;  %v7551_v42 = vsub.f32 %v4439_v48, %v4803_v37  ;;  %v1173_v54 = vmul.f32 %v1101_v43, %v4565_v35  ;;  %vm1464_vm11 = vmor %vm1462_vm7, %vm1463_vm10 }
 0x17a   : > { %952 = vadd.xlane.f32.xlu2 %v951_v11  ;;  %1148 = vadd.xlane.f32.xlu1 %v1147_v53  ;;  %v1718_v34 = vmul.f32 %v1455_v33, %v7550_v15  ;;  %v1205_v23 = vmul.f32 %v5067_v20, %v5067_v20  ;;  %v1150_v11 = vadd.f32 %v1059_v19, %v1058_v55  ;;  %vm1472_vm12 = vweird.f32 %v4968_v3 }
 0x17b   : > { %v1719_v21 = vmul.f32 %v1455_v33, %v7551_v42  ;;  %v1478_v53 = vmul.f32 %v5079_v56, %v1477_v31  ;;  %v1061_v57 = vmul.f32 %v5064_v27, %v5064_v27  ;;  %v686_v48 = vadd.f32 %v685_v16, %v4324_v25 }
 0x17c   : > { %v1787_v47 = vmul.f32 %v4662_v52, %v1718_v34  ;;  %v1237_v60 = vsub.f32 %v1173_v54, %v1205_v23  ;;  %1151 = vadd.xlane.f32.xlu0 %v1150_v11  ;;  %v799_v37 = vadd.f32 %v798_v0, %v4326_v26  ;;  %v954_v19 = vadd.f32 %v5064_v27, %v5048_v5 }
 0x17d   : > { %v1788_v15 = vmul.f32 %v4664_v9, %v1719_v21  ;;  %v1153_v55 = vadd.f32 %v1061_v57, %v1060_v17  ;;  %v905_v33 = vpop.xlane.xlu0 %904  ;;  %v1461_v31 = vmul.f32 %v4978_v28, %v1460_v30  ;;  %v5113_v34 = vmul.f32 0.5, %v1478_v53 }
 0x17e   : > { %v1856_v43 = vadd.f32 %v4679_v51, %v1787_v47  ;;  %v1269_v21 = vmax.f32 %v1237_v60, 0.0  ;;  %v5116_v54 = vmax.f32 %v686_v48, 0.0  ;;  %v5124_v26 = vmax.f32 %v799_v37, 0.0 }
 0x17f   : > { %v1857_v42 = vadd.f32 %v4721_v6, %v1788_v15  ;;  %v5122_v25 = vpop.eup %3892  ;;  %v5127_v17 = vmul.f32 %v4565_v35, %v905_v33  ;;  %v1465_v30 = vsel %vm1464_vm11, %v4978_v28, %v1461_v31  ;;  %v1104_v16 = vpop.xlane.xlu1 %1103  ;;  %v957_v60 = vadd.f32 %v5084_v49, %v5082_v7 }
 0x180   : > { %7552 = vst [vmem:[#allocation35_spill] sm:$0xff] %v5116_v54  ;;  %2012 = vmatmul.f32.gmra.mxu2 %v1856_v43  ;;  %v1487_v0 = vmul.f32 %v5122_v25, %v5071_v4  ;;  %v5134_v32 = vadd.f32 1e-05, %v1269_v21  ;;  %v7554_v23 = vsub.f32 %v4452_v62, %v4859_v36  ;;  %v7555_v53 = vsub.f32 %v4454_v63, %v4859_v36 }
 0x181   : > { %7553 = vst [vmem:[#allocation36_spill] sm:$0xff] %v5124_v26  ;;  %2125 = vmatmul.f32.gmra.mxu3 %v1857_v42  ;;  %2238 = vmatmul.f32.gmra.mxu0 %v1856_v43  ;;  %v1306_v28 = vsub.f32 %v4464_v12, %v4914_v14  ;;  %v1307_v57 = vsub.f32 %v4466_v13, %v4914_v14  ;;  %vm1473_vm13 = vweird.f32 %v5021_v39  ;;  %v1480_v63 = vsub.f32 1.5, %v5113_v34 }
 0x182   : > { %v1720_v11 = vmul.f32 %v1465_v30, %v7554_v23  ;;  %v1721_v47 = vmul.f32 %v1465_v30, %v7555_v53  ;;  %2351 = vmatmul.f32.gmra.mxu1 %v1857_v42  ;;  %1154 = vadd.xlane.f32.xlu2 %v1153_v55  ;;  %v1174_v15 = vmul.f32 %v1104_v16, %v4565_v35  ;;  %3894 = vrsqrt.f32 %v5134_v32  ;;  %vm1474_vm14 = vmor %vm1472_vm12, %vm1473_vm13 }
 0x183   : > { %v1488_v48 = vmul.f32 %v5122_v25, %v1487_v0  ;;  %955 = vadd.xlane.f32.xlu1 %v954_v19  ;;  %v1206_v13 = vmul.f32 %v5127_v17, %v5127_v17  ;;  %v1062_v36 = vmul.f32 %v5082_v7, %v5082_v7  ;;  %v960_v37 = vadd.f32 %v5124_v26, %v5116_v54 }
 0x184   : > { %v1789_v62 = vmul.f32 %v4662_v52, %v1720_v11  ;;  %v1790_v12 = vmul.f32 %v4664_v9, %v1721_v47  ;;  %958 = vadd.xlane.f32.xlu0 %v957_v60  ;;  %v1063_v43 = vmul.f32 %v5084_v49, %v5084_v49  ;;  %v7556_v55 = vsub.f32 1.5, %v5056_v22 }
 0x185   : > { %v1489_v14 = vmul.f32 0.5, %v1488_v48  ;;  %v1238_v31 = vsub.f32 %v1174_v15, %v1206_v13  ;;  %v908_v34 = vpop.xlane.xlu2 %907  ;;  %v1064_v42 = vmul.f32 %v5116_v54, %v5116_v54  ;;  %v1065_v21 = vmul.f32 %v5124_v26, %v5124_v26 }
 0x186   : > { %v1471_v19 = vmul.f32 %v5021_v39, %v7556_v55  ;;  %v1858_v33 = vadd.f32 %v4679_v51, %v1789_v62  ;;  %v1859_v30 = vadd.f32 %v4721_v6, %v1790_v12  ;;  %v1156_v16 = vadd.f32 %v1063_v43, %v1062_v36  ;;  %v7557_v36 = vld [vmem:[#allocation8_spill] sm:$0xff]  ;;  %v7558_v43 = vld [vmem:[#allocation9_spill] sm:$0xff] }
 0x187   : > { %v5174_v22 = vmul.f32 %v4565_v35, %v908_v34  ;;  %vm1482_vm15 = vweird.f32 %v5031_v29  ;;  %v1270_v0 = vmax.f32 %v1238_v31, 0.0  ;;  %v1107_v11 = vpop.xlane.xlu0 %1106  ;;  %v1490_v47 = vsub.f32 1.5, %v1489_v14 }
 0x188   : > { %v1475_v60 = vsel %vm1474_vm14, %v5021_v39, %v1471_v19  ;;  %2015 = vmatmul.f32.gmra.mxu2 %v1858_v33  ;;  %v5178_v53 = vpop.eup %3894  ;;  %v1159_v48 = vadd.f32 %v1065_v21, %v1064_v42  ;;  %vm1483_vm1 = vweird.f32 %v5079_v56  ;;  %v1175_v12 = vmul.f32 %v1107_v11, %v4565_v35 }
 0x189   : > { %v1722_v3 = vmul.f32 %v1475_v60, %v1306_v28  ;;  %v1723_v23 = vmul.f32 %v1475_v60, %v1307_v57  ;;  %2128 = vmatmul.f32.gmra.mxu3 %v1859_v30  ;;  %2241 = vmatmul.f32.gmra.mxu0 %v1858_v33  ;;  %v1207_v15 = vmul.f32 %v5174_v22, %v5174_v22  ;;  %v5185_v62 = vadd.f32 1e-05, %v1270_v0  ;;  %vm1484_vm2 = vmor %vm1482_vm15, %vm1483_vm1 }
 0x18a   : > { %v1497_v39 = vmul.f32 %v5178_v53, %v5134_v32  ;;  %2354 = vmatmul.f32.gmra.mxu1 %v1859_v30  ;;  %961 = vadd.xlane.f32.xlu2 %v960_v37  ;;  %v1481_v13 = vmul.f32 %v5079_v56, %v1480_v63  ;;  %v1308_v14 = vsub.f32 %v7557_v36, %v4963_v59  ;;  %vm1492_vm3 = vweird.f32 %v5071_v4 }
 0x18b   : > { %v1791_v28 = vmul.f32 %v4662_v52, %v1722_v3  ;;  %v1792_v57 = vmul.f32 %v4664_v9, %v1723_v23  ;;  %1157 = vadd.xlane.f32.xlu1 %v1156_v16  ;;  %v1309_v55 = vsub.f32 %v7558_v43, %v4963_v59  ;;  %3896 = vrsqrt.f32 %v5185_v62  ;;  %v7559_v23 = vld [vmem:[#allocation10_spill] sm:$0xff] }
 0x18c   : > { %v1498_v19 = vmul.f32 %v5178_v53, %v1497_v39  ;;  %v1239_v37 = vsub.f32 %v1175_v12, %v1207_v15  ;;  %1160 = vadd.xlane.f32.xlu0 %v1159_v48  ;;  %v1485_v33 = vsel %vm1484_vm2, %v5079_v56, %v1481_v13  ;;  %v1491_v63 = vmul.f32 %v5122_v25, %v1490_v47 }
 0x18d   : > { %v1860_v31 = vadd.f32 %v4679_v51, %v1791_v28  ;;  %v1861_v34 = vadd.f32 %v4721_v6, %v1792_v57  ;;  %v911_v59 = vpop.xlane.xlu1 %910  ;;  %v1724_v42 = vmul.f32 %v1485_v33, %v1308_v14  ;;  %vm1493_vm4 = vweird.f32 %v5122_v25  ;;  %v7560_v57 = vld [vmem:[#allocation11_spill] sm:$0xff] }
 0x18e   : > { %v1499_v21 = vmul.f32 0.5, %v1498_v19  ;;  %v1271_v30 = vmax.f32 %v1239_v37, 0.0  ;;  %v5206_v29 = vmul.f32 %v4565_v35, %v911_v59  ;;  %v1725_v16 = vmul.f32 %v1485_v33, %v1309_v55  ;;  %vm1494_vm5 = vmor %vm1492_vm3, %vm1493_vm4 }
 0x18f   : > { %v1110_v60 = vpop.xlane.xlu2 %1109  ;;  %v1310_v11 = vsub.f32 %v7559_v23, %v5015_v18  ;;  %v1793_v47 = vmul.f32 %v4662_v52, %v1724_v42  ;;  %v1495_v48 = vsel %vm1494_vm5, %v5122_v25, %v1491_v63  ;;  %v1311_v12 = vsub.f32 %v7560_v57, %v5015_v18 }
 0x190   : > { %2018 = vmatmul.f32.gmra.mxu2 %v1860_v31  ;;  %v5208_v56 = vadd.f32 1e-05, %v1271_v30  ;;  %v1176_v0 = vmul.f32 %v1110_v60, %v4565_v35  ;;  %v1208_v15 = vmul.f32 %v5206_v29, %v5206_v29  ;;  %v1500_v39 = vsub.f32 1.5, %v1499_v21 }
 0x191   : > { %2131 = vmatmul.f32.gmra.mxu3 %v1861_v34  ;;  %2244 = vmatmul.f32.gmra.mxu0 %v1860_v31  ;;  %v5213_v3 = vpop.eup %3896  ;;  %v1794_v4 = vmul.f32 %v4664_v9, %v1725_v16  ;;  %vm1502_vm6 = vweird.f32 %v5134_v32  ;;  %v1726_v14 = vmul.f32 %v1495_v48, %v1310_v11  ;;  %v1862_v43 = vadd.f32 %v4679_v51, %v1793_v47  ;;  %v7561_v11 = vld [vmem:[#allocation12_spill] sm:$0xff] }
 0x192   : > { %2357 = vmatmul.f32.gmra.mxu1 %v1861_v34  ;;  %v1507_v28 = vmul.f32 %v5213_v3, %v5185_v62  ;;  %3898 = vrsqrt.f32 %v5208_v56  ;;  %v1240_v13 = vsub.f32 %v1176_v0, %v1208_v15  ;;  %v1727_v19 = vmul.f32 %v1495_v48, %v1311_v12 }
 0x193   : > { %vm1503_vm7 = vweird.f32 %v5178_v53  ;;  %v1863_v33 = vadd.f32 %v4721_v6, %v1794_v4  ;;  %v1501_v18 = vmul.f32 %v5178_v53, %v1500_v39  ;;  %v1795_v59 = vmul.f32 %v4662_v52, %v1726_v14  ;;  %v7562_v39 = vld [vmem:[#allocation13_spill] sm:$0xff] }
 0x194   : > { %v1508_v36 = vmul.f32 %v5213_v3, %v1507_v28  ;;  %v1272_v25 = vmax.f32 %v1240_v13, 0.0  ;;  %v1796_v16 = vmul.f32 %v4664_v9, %v1727_v19  ;;  %vm1504_vm8 = vmor %vm1502_vm6, %vm1503_vm7  ;;  %v1312_v47 = vsub.f32 %v7561_v11, %v5067_v20 }
 0x195   : > { %v914_v55 = vpop.xlane.xlu0 %913  ;;  %v1505_v23 = vsel %vm1504_vm8, %v5178_v53, %v1501_v18  ;;  %v1313_v28 = vsub.f32 %v7562_v39, %v5067_v20  ;;  %vm1512_vm9 = vweird.f32 %v5185_v62  ;;  %v1864_v4 = vadd.f32 %v4679_v51, %v1795_v59 }
 0x196   : > { %v1509_v37 = vmul.f32 0.5, %v1508_v36  ;;  %v5233_v63 = vmul.f32 %v4565_v35, %v914_v55  ;;  %v5236_v31 = vadd.f32 1e-05, %v1272_v25  ;;  %v1865_v57 = vadd.f32 %v4721_v6, %v1796_v16  ;;  %v7563_v16 = vld [vmem:[#allocation14_spill] sm:$0xff] }
 0x197   : > { %v1113_v42 = vpop.xlane.xlu1 %1112  ;;  %v1728_v13 = vmul.f32 %v1505_v23, %v1312_v47  ;;  %vm1513_vm10 = vweird.f32 %v5213_v3  ;;  %v1729_v14 = vmul.f32 %v1505_v23, %v1313_v28  ;;  %v7564_v23 = vld [vmem:[#allocation15_spill] sm:$0xff]  ;;  %vm1522_vm12 = vweird.f32 %v5208_v56 }
 0x198   : > { %2021 = vmatmul.f32.gmra.mxu2 %v1862_v43  ;;  %v5238_v34 = vpop.eup %3898  ;;  %v1209_v21 = vmul.f32 %v5233_v63, %v5233_v63  ;;  %3900 = vrsqrt.f32 %v5236_v31  ;;  %v1177_v60 = vmul.f32 %v1113_v42, %v4565_v35  ;;  %v1510_v0 = vsub.f32 1.5, %v1509_v37  ;;  %vm1514_vm11 = vmor %vm1512_vm9, %vm1513_vm10 }
 0x199   : > { %2134 = vmatmul.f32.gmra.mxu3 %v1863_v33  ;;  %2247 = vmatmul.f32.gmra.mxu0 %v1862_v43  ;;  %v1517_v30 = vmul.f32 %v5238_v34, %v5208_v56  ;;  %v1797_v37 = vmul.f32 %v4662_v52, %v1728_v13  ;;  %v1315_v11 = vsub.f32 %v7564_v23, %v5127_v17  ;;  %vm1523_vm13 = vweird.f32 %v5238_v34 }
 0x19a   : > { %2360 = vmatmul.f32.gmra.mxu1 %v1863_v33  ;;  %v1241_v48 = vsub.f32 %v1177_v60, %v1209_v21  ;;  %v1511_v43 = vmul.f32 %v5213_v3, %v1510_v0  ;;  %v1798_v21 = vmul.f32 %v4664_v9, %v1729_v14  ;;  %v1314_v60 = vsub.f32 %v7563_v16, %v5127_v17  ;;  %vm1524_vm14 = vmor %vm1522_vm12, %vm1523_vm13 }
 0x19b   : > { %v1518_v15 = vmul.f32 %v5238_v34, %v1517_v30  ;;  %v1866_v47 = vadd.f32 %v4679_v51, %v1797_v37  ;;  %vm1532_vm15 = vweird.f32 %v5236_v31 }
 0x19c   : > { %v1273_v32 = vmax.f32 %v1241_v48, 0.0  ;;  %v1515_v30 = vsel %vm1514_vm11, %v5213_v3, %v1511_v43  ;;  %v1867_v28 = vadd.f32 %v4721_v6, %v1798_v21 }
 0x19d   : > { %v917_v12 = vpop.xlane.xlu2 %916  ;;  %v1519_v53 = vmul.f32 0.5, %v1518_v15  ;;  %v1730_v39 = vmul.f32 %v1515_v30, %v1314_v60 }
 0x19e   : > { %v5263_v36 = vmul.f32 %v4565_v35, %v917_v12  ;;  %v5266_v25 = vpop.eup %3900  ;;  %v5268_v20 = vadd.f32 1e-05, %v1273_v32 }
 0x19f   : > { %v1527_v55 = vmul.f32 %v5266_v25, %v5236_v31  ;;  %v1116_v19 = vpop.xlane.xlu0 %1115  ;;  %v1520_v59 = vsub.f32 1.5, %v1519_v53  ;;  %v1799_v14 = vmul.f32 %v4662_v52, %v1730_v39  ;;  %vm1533_vm1 = vweird.f32 %v5266_v25 }
 0x1a0   : > { %2024 = vmatmul.f32.gmra.mxu2 %v1864_v4  ;;  %3902 = vrsqrt.f32 %v5268_v20  ;;  %v1210_v33 = vmul.f32 %v5263_v36, %v5263_v36  ;;  %v1178_v18 = vmul.f32 %v1116_v19, %v4565_v35  ;;  %vm1534_vm2 = vmor %vm1532_vm15, %vm1533_vm1  ;;  %vm1542_vm3 = vweird.f32 %v5268_v20 }
 0x1a1   : > { %2137 = vmatmul.f32.gmra.mxu3 %v1865_v57  ;;  %2250 = vmatmul.f32.gmra.mxu0 %v1864_v4  ;;  %v1528_v42 = vmul.f32 %v5266_v25, %v1527_v55  ;;  %v1731_v4 = vmul.f32 %v1515_v30, %v1315_v11  ;;  %v1868_v16 = vadd.f32 %v4679_v51, %v1799_v14  ;;  %v7567_v14 = vld [vmem:[#allocation18_spill] sm:$0xff] }
 0x1a2   : > { %2363 = vmatmul.f32.gmra.mxu1 %v1865_v57  ;;  %v1242_v0 = vsub.f32 %v1178_v18, %v1210_v33  ;;  %v1521_v57 = vmul.f32 %v5238_v34, %v1520_v59  ;;  %v7565_v18 = vld [vmem:[#allocation16_spill] sm:$0xff] }
 0x1a3   : > { %v1529_v62 = vmul.f32 0.5, %v1528_v42  ;;  %v1800_v19 = vmul.f32 %v4664_v9, %v1731_v4  ;;  %v1316_v59 = vsub.f32 %v7565_v18, %v5174_v22  ;;  %v7566_v42 = vld [vmem:[#allocation17_spill] sm:$0xff] }
 0x1a4   : > { %v1274_v15 = vmax.f32 %v1242_v0, 0.0  ;;  %v1525_v33 = vsel %vm1524_vm14, %v5238_v34, %v1521_v57  ;;  %v1317_v21 = vsub.f32 %v7566_v42, %v5174_v22 }
 0x1a5   : > { %v920_v48 = vpop.xlane.xlu1 %919  ;;  %v1530_v53 = vsub.f32 1.5, %v1529_v62  ;;  %v1732_v60 = vmul.f32 %v1525_v33, %v1316_v59  ;;  %v1869_v34 = vadd.f32 %v4721_v6, %v1800_v19 }
 0x1a6   : > { %v5293_v3 = vmul.f32 %v4565_v35, %v920_v48  ;;  %v5296_v32 = vpop.eup %3902  ;;  %v5298_v17 = vadd.f32 1e-05, %v1274_v15  ;;  %v1733_v0 = vmul.f32 %v1525_v33, %v1317_v21 }
 0x1a7   : > { %v1119_v12 = vpop.xlane.xlu2 %1118  ;;  %v1537_v13 = vmul.f32 %v5296_v32, %v5268_v20  ;;  %v1531_v30 = vmul.f32 %v5266_v25, %v1530_v53  ;;  %v1801_v48 = vmul.f32 %v4662_v52, %v1732_v60  ;;  %vm1543_vm4 = vweird.f32 %v5296_v32 }
 0x1a8   : > { %2027 = vmatmul.f32.gmra.mxu2 %v1866_v47  ;;  %3904 = vrsqrt.f32 %v5298_v17  ;;  %v1179_v43 = vmul.f32 %v1119_v12, %v4565_v35  ;;  %v1211_v37 = vmul.f32 %v5293_v3, %v5293_v3  ;;  %v1802_v39 = vmul.f32 %v4664_v9, %v1733_v0  ;;  %vm1544_vm5 = vmor %vm1542_vm3, %vm1543_vm4 }
 0x1a9   : > { %2140 = vmatmul.f32.gmra.mxu3 %v1867_v28  ;;  %2253 = vmatmul.f32.gmra.mxu0 %v1866_v47  ;;  %v1538_v55 = vmul.f32 %v5296_v32, %v1537_v13  ;;  %v1535_v57 = vsel %vm1534_vm2, %v5266_v25, %v1531_v30  ;;  %v1870_v25 = vadd.f32 %v4679_v51, %v1801_v48  ;;  %v7569_v48 = vld [vmem:[#allocation20_spill] sm:$0xff]  ;;  %vm1552_vm6 = vweird.f32 %v5298_v17 }
 0x1aa   : > { %2366 = vmatmul.f32.gmra.mxu1 %v1867_v28  ;;  %v1243_v56 = vsub.f32 %v1179_v43, %v1211_v37  ;;  %v1318_v43 = vsub.f32 %v7567_v14, %v5206_v29  ;;  %v1871_v33 = vadd.f32 %v4721_v6, %v1802_v39  ;;  %v1320_v39 = vsub.f32 %v7569_v48, %v5233_v63 }
 0x1ab   : > { %v1539_v23 = vmul.f32 0.5, %v1538_v55  ;;  %v7568_v55 = vld [vmem:[#allocation19_spill] sm:$0xff] }
 0x1ac   : > { %v1275_v11 = vmax.f32 %v1243_v56, 0.0  ;;  %v1319_v19 = vsub.f32 %v7568_v55, %v5206_v29  ;;  %v1734_v18 = vmul.f32 %v1535_v57, %v1318_v43 }
 0x1ad   : > { %v923_v62 = vpop.xlane.xlu0 %922  ;;  %v1540_v12 = vsub.f32 1.5, %v1539_v23 }
 0x1ae   : > { %v5323_v47 = vpop.eup %3904  ;;  %v5326_v22 = vmul.f32 %v4565_v35, %v923_v62  ;;  %v5330_v15 = vadd.f32 1e-05, %v1275_v11  ;;  %v1735_v56 = vmul.f32 %v1535_v57, %v1319_v19  ;;  %v1803_v23 = vmul.f32 %v4662_v52, %v1734_v18  ;;  %v7570_v57 = vld [vmem:[#allocation21_spill] sm:$0xff] }
 0x1af   : > { %v1547_v31 = vmul.f32 %v5323_v47, %v5298_v17  ;;  %v1541_v59 = vmul.f32 %v5296_v32, %v1540_v12  ;;  %v1321_v12 = vsub.f32 %v7570_v57, %v5233_v63  ;;  %vm1553_vm7 = vweird.f32 %v5323_v47 }
 0x1b0   : > { %2030 = vmatmul.f32.gmra.mxu2 %v1868_v16  ;;  %v1212_v4 = vmul.f32 %v5326_v22, %v5326_v22  ;;  %3906 = vrsqrt.f32 %v5330_v15  ;;  %v1804_v11 = vmul.f32 %v4664_v9, %v1735_v56  ;;  %vm1554_vm8 = vmor %vm1552_vm6, %vm1553_vm7  ;;  %v7571_v56 = vld [vmem:[#allocation23_spill] sm:$0xff]  ;;  %vm1562_vm9 = vweird.f32 %v5330_v15 }
 0x1b1   : > { %2143 = vmatmul.f32.gmra.mxu3 %v1869_v34  ;;  %2256 = vmatmul.f32.gmra.mxu0 %v1868_v16  ;;  %v1122_v28 = vpop.xlane.xlu1 %1121  ;;  %v1548_v13 = vmul.f32 %v5323_v47, %v1547_v31  ;;  %v1545_v31 = vsel %vm1544_vm5, %v5296_v32, %v1541_v59 }
 0x1b2   : > { %2369 = vmatmul.f32.gmra.mxu1 %v1869_v34  ;;  %v1180_v53 = vmul.f32 %v1122_v28, %v4565_v35  ;;  %v1736_v32 = vmul.f32 %v1545_v31, %v1320_v39  ;;  %v1873_v55 = vadd.f32 %v4721_v6, %v1804_v11  ;;  %v7572_v11 = vld [vmem:[#allocation24_spill] sm:$0xff] }
 0x1b3   : > { %v1549_v42 = vmul.f32 0.5, %v1548_v13 }
 0x1b4   : > { %v1244_v37 = vsub.f32 %v1180_v53, %v1212_v4  ;;  %v1872_v53 = vadd.f32 %v4679_v51, %v1803_v23 }
 0x1b5   : > { %v1550_v34 = vsub.f32 1.5, %v1549_v42 }
 0x1b6   : > { %v1276_v21 = vmax.f32 %v1244_v37, 0.0  ;;  %v926_v30 = vpop.xlane.xlu2 %925  ;;  %v5349_v16 = vpop.eup %3906  ;;  %v1737_v37 = vmul.f32 %v1545_v31, %v1321_v12 }
 0x1b7   : > { %v5354_v60 = vmul.f32 %v4565_v35, %v926_v30  ;;  %v1557_v0 = vmul.f32 %v5349_v16, %v5330_v15  ;;  %v1551_v43 = vmul.f32 %v5323_v47, %v1550_v34  ;;  %v1322_v30 = vsub.f32 %v7571_v56, %v5263_v36 }
 0x1b8   : > { %2033 = vmatmul.f32.gmra.mxu2 %v1870_v25  ;;  %v5351_v29 = vadd.f32 1e-05, %v1276_v21  ;;  %v1805_v21 = vmul.f32 %v4662_v52, %v1736_v32  ;;  %vm1563_vm10 = vweird.f32 %v5349_v16 }
 0x1b9   : > { %2146 = vmatmul.f32.gmra.mxu3 %v1871_v33  ;;  %2259 = vmatmul.f32.gmra.mxu0 %v1870_v25  ;;  %v1125_v62 = vpop.xlane.xlu0 %1124  ;;  %v1558_v20 = vmul.f32 %v5349_v16, %v1557_v0  ;;  %v1213_v28 = vmul.f32 %v5354_v60, %v5354_v60  ;;  %v1806_v0 = vmul.f32 %v4664_v9, %v1737_v37  ;;  %vm1564_vm11 = vmor %vm1562_vm9, %vm1563_vm10 }
 0x1ba   : > { %2372 = vmatmul.f32.gmra.mxu1 %v1871_v33  ;;  %3908 = vrsqrt.f32 %v5351_v29  ;;  %v1181_v4 = vmul.f32 %v1125_v62, %v4565_v35  ;;  %v1555_v17 = vsel %vm1554_vm8, %v5323_v47, %v1551_v43  ;;  %v1323_v62 = vsub.f32 %v7572_v11, %v5263_v36  ;;  %v7574_v43 = vld [vmem:[#allocation25_spill] sm:$0xff] }
 0x1bb   : > { %v1559_v13 = vmul.f32 0.5, %v1558_v20  ;;  %v1874_v20 = vadd.f32 %v4679_v51, %v1805_v21  ;;  %v1875_v36 = vadd.f32 %v4721_v6, %v1806_v0  ;;  %vm1572_vm12 = vweird.f32 %v5351_v29 }
 0x1bc   : > { %v1245_v14 = vsub.f32 %v1181_v4, %v1213_v28  ;;  %v1738_v4 = vmul.f32 %v1555_v17, %v1322_v30  ;;  %v1739_v47 = vmul.f32 %v1555_v17, %v1323_v62  ;;  %v7576_v30 = vld [vmem:[#allocation26_spill] sm:$0xff] }
 0x1bd   : > { %v1560_v18 = vsub.f32 1.5, %v1559_v13  ;;  %v1325_v0 = vsub.f32 %v7576_v30, %v5293_v3 }
 0x1be   : > { %v929_v19 = vpop.xlane.xlu1 %928  ;;  %v1277_v25 = vmax.f32 %v1245_v14, 0.0 }
 0x1bf   : > { %v5380_v33 = vmul.f32 %v4565_v35, %v929_v19  ;;  %v1561_v39 = vmul.f32 %v5349_v16, %v1560_v18  ;;  %v1808_v18 = vmul.f32 %v4664_v9, %v1739_v47 }
 0x1c0   : > { %2036 = vmatmul.f32.gmra.mxu2 %v1872_v53  ;;  %v5382_v63 = vpop.eup %3908  ;;  %v5388_v42 = vadd.f32 1e-05, %v1277_v25  ;;  %v1807_v25 = vmul.f32 %v4662_v52, %v1738_v4 }
 0x1c1   : > { %2149 = vmatmul.f32.gmra.mxu3 %v1873_v55  ;;  %2262 = vmatmul.f32.gmra.mxu0 %v1872_v53  ;;  %v1567_v59 = vmul.f32 %v5382_v63, %v5351_v29  ;;  %v1128_v23 = vpop.xlane.xlu2 %1127  ;;  %v1214_v34 = vmul.f32 %v5380_v33, %v5380_v33  ;;  %v1565_v14 = vsel %vm1564_vm11, %v5349_v16, %v1561_v39  ;;  %vm1573_vm13 = vweird.f32 %v5382_v63 }
 0x1c2   : > { %2375 = vmatmul.f32.gmra.mxu1 %v1873_v55  ;;  %3910 = vrsqrt.f32 %v5388_v42  ;;  %v1182_v48 = vmul.f32 %v1128_v23, %v4565_v35  ;;  %v1324_v55 = vsub.f32 %v7574_v43, %v5293_v3  ;;  %v1876_v62 = vadd.f32 %v4679_v51, %v1807_v25  ;;  %vm1574_vm14 = vmor %vm1572_vm12, %vm1573_vm13 }
 0x1c3   : > { %v1568_v31 = vmul.f32 %v5382_v63, %v1567_v59  ;;  %v1741_v3 = vmul.f32 %v1565_v14, %v1325_v0  ;;  %vm1582_vm15 = vweird.f32 %v5388_v42 }
 0x1c4   : > { %v1246_v28 = vsub.f32 %v1182_v48, %v1214_v34  ;;  %v5407_v53 = vpop.f32.mrf.mxu0  ;;  %v1740_v23 = vmul.f32 %v1565_v14, %v1324_v55  ;;  %v7579_v55 = vld [vmem:[#allocation27_spill] sm:$0xff] }
 0x1c5   : > { %v1569_v57 = vmul.f32 0.5, %v1568_v31  ;;  %7573 = vst [vmem:[#allocation8_spill] sm:$0xff] %v5407_v53  ;;  %v1877_v31 = vadd.f32 %v4721_v6, %v1808_v18  ;;  %v1326_v25 = vsub.f32 %v7579_v55, %v5326_v22  ;;  %v1810_v18 = vmul.f32 %v4664_v9, %v1741_v3 }
 0x1c6   : > { %v1278_v12 = vmax.f32 %v1246_v28, 0.0  ;;  %v932_v13 = vpop.xlane.xlu0 %931 }
 0x1c7   : > { %v5410_v15 = vmul.f32 %v4565_v35, %v932_v13  ;;  %v5419_v37 = vpop.f32.mrf.mxu1  ;;  %v1570_v59 = vsub.f32 1.5, %v1569_v57 }
 0x1c8   : > { %2039 = vmatmul.f32.gmra.mxu2 %v1874_v20  ;;  %v5413_v32 = vpop.eup %3910  ;;  %v5417_v19 = vadd.f32 1e-05, %v1278_v12  ;;  %7575 = vst [vmem:[#allocation9_spill] sm:$0xff] %v5419_v37  ;;  %v1809_v12 = vmul.f32 %v4662_v52, %v1740_v23  ;;  %v7581_v23 = vld [vmem:[#allocation28_spill] sm:$0xff] }
 0x1c9   : > { %2152 = vmatmul.f32.gmra.mxu3 %v1875_v36  ;;  %2265 = vmatmul.f32.gmra.mxu0 %v1874_v20  ;;  %v1577_v21 = vmul.f32 %v5413_v32, %v5388_v42  ;;  %v1215_v11 = vmul.f32 %v5410_v15, %v5410_v15  ;;  %v1571_v39 = vmul.f32 %v5382_v63, %v1570_v59  ;;  %vm1583_vm1 = vweird.f32 %v5413_v32 }
 0x1ca   : > { %2378 = vmatmul.f32.gmra.mxu1 %v1875_v36  ;;  %v935_v56 = vpop.xlane.xlu2 %934  ;;  %v1131_v16 = vpop.xlane.xlu1 %1130  ;;  %3912 = vrsqrt.f32 %v5417_v19  ;;  %vm1584_vm2 = vmor %vm1582_vm15, %vm1583_vm1  ;;  %vm1592_vm3 = vweird.f32 %v5417_v19 }
 0x1cb   : > { %v1578_v34 = vmul.f32 %v5413_v32, %v1577_v21  ;;  %v1183_v17 = vmul.f32 %v1131_v16, %v4565_v35  ;;  %v5436_v48 = vmul.f32 %v4565_v35, %v935_v56  ;;  %v5440_v4 = vpop.f32.mrf.mxu2  ;;  %v1575_v0 = vsel %vm1574_vm14, %v5382_v63, %v1571_v39 }
 0x1cc   : > { %7577 = vst [vmem:[#allocation10_spill] sm:$0xff] %v5440_v4  ;;  %v1879_v63 = vadd.f32 %v4721_v6, %v1810_v18  ;;  %v1742_v39 = vmul.f32 %v1575_v0, %v1326_v25 }
 0x1cd   : > { %v1579_v20 = vmul.f32 0.5, %v1578_v34  ;;  %v1247_v28 = vsub.f32 %v1183_v17, %v1215_v11  ;;  %v5442_v47 = vpop.f32.mrf.mxu3  ;;  %v1216_v57 = vmul.f32 %v5436_v48, %v5436_v48  ;;  %v1327_v34 = vsub.f32 %v7581_v23, %v5326_v22 }
 0x1ce   : > { %7578 = vst [vmem:[#allocation11_spill] sm:$0xff] %v5442_v47  ;;  %v1134_v36 = vpop.xlane.xlu0 %1133  ;;  %v1878_v11 = vadd.f32 %v4679_v51, %v1809_v12  ;;  %v1811_v18 = vmul.f32 %v4662_v52, %v1742_v39 }
 0x1cf   : > { %v1279_v13 = vmax.f32 %v1247_v28, 0.0  ;;  %v1184_v14 = vmul.f32 %v1134_v36, %v4565_v35  ;;  %v1580_v59 = vsub.f32 1.5, %v1579_v20  ;;  %v1743_v12 = vmul.f32 %v1575_v0, %v1327_v34 }
 0x1d0   : > { %2042 = vmatmul.f32.gmra.mxu2 %v1876_v62  ;;  %v5448_v43 = vpop.eup %3912  ;;  %v1880_v39 = vadd.f32 %v4679_v51, %v1811_v18 }
 0x1d1   : > { %2155 = vmatmul.f32.gmra.mxu3 %v1877_v31  ;;  %2268 = vmatmul.f32.gmra.mxu0 %v1876_v62  ;;  %v1587_v21 = vmul.f32 %v5448_v43, %v5417_v19  ;;  %v5459_v56 = vadd.f32 1e-05, %v1279_v13  ;;  %v1248_v17 = vsub.f32 %v1184_v14, %v1216_v57  ;;  %v1581_v28 = vmul.f32 %v5413_v32, %v1580_v59 }
 0x1d2   : > { %2381 = vmatmul.f32.gmra.mxu1 %v1877_v31  ;;  %v5461_v16 = vpop.f32.mrf.mxu0  ;;  %v1137_v30 = vpop.xlane.xlu2 %1136  ;;  %v1812_v34 = vmul.f32 %v4664_v9, %v1743_v12  ;;  %vm1593_vm4 = vweird.f32 %v5448_v43 }
 0x1d3   : > { %7580 = vst [vmem:[#allocation12_spill] sm:$0xff] %v5461_v16  ;;  %v5467_v29 = vpop.f32.mrf.mxu1  ;;  %v938_v62 = vpop.xlane.xlu1 %937  ;;  %v1588_v31 = vmul.f32 %v5448_v43, %v1587_v21  ;;  %3914 = vrsqrt.f32 %v5459_v56  ;;  %v1185_v3 = vmul.f32 %v1137_v30, %v4565_v35  ;;  %v1280_v22 = vmax.f32 %v1248_v17, 0.0  ;;  %vm1594_vm5 = vmor %vm1592_vm3, %vm1593_vm4 }
 0x1d4   : > { %7582 = vst [vmem:[#allocation13_spill] sm:$0xff] %v5467_v29  ;;  %v5474_v20 = vmul.f32 %v4565_v35, %v938_v62  ;;  %v1585_v17 = vsel %vm1584_vm2, %v5413_v32, %v1581_v28  ;;  %vm1602_vm6 = vweird.f32 %v5459_v56 }
 0x1d5   : > { %v1589_v57 = vmul.f32 0.5, %v1588_v31  ;;  %v5481_v13 = vadd.f32 1e-05, %v1280_v22  ;;  %v7588_v31 = vld [vmem:[#allocation31_spill] sm:$0xff] }
 0x1d6   : > { %v1217_v36 = vmul.f32 %v5474_v20, %v5474_v20  ;;  %v941_v14 = vpop.xlane.xlu0 %940 }
 0x1d7   : > { %v1590_v30 = vsub.f32 1.5, %v1589_v57  ;;  %3916 = vrsqrt.f32 %v5481_v13  ;;  %v5507_v22 = vmul.f32 %v4565_v35, %v941_v14  ;;  %vm1612_vm9 = vweird.f32 %v5481_v13 }
 0x1d8   : > { %2045 = vmatmul.f32.gmra.mxu2 %v1878_v11  ;;  %v1249_v55 = vsub.f32 %v1185_v3, %v1217_v36  ;;  %v5483_v21 = vpop.f32.mrf.mxu2  ;;  %v1329_v3 = vsub.f32 %v7588_v31, %v5354_v60 }
 0x1d9   : > { %2158 = vmatmul.f32.gmra.mxu3 %v1879_v63  ;;  %2271 = vmatmul.f32.gmra.mxu0 %v1878_v11  ;;  %7583 = vst [vmem:[#allocation14_spill] sm:$0xff] %v5483_v21  ;;  %v5489_v25 = vpop.f32.mrf.mxu3  ;;  %v5492_v59 = vpop.eup %3914  ;;  %v7586_v11 = vld [vmem:[#allocation30_spill] sm:$0xff]  ;;  %v1591_v57 = vmul.f32 %v5448_v43, %v1590_v30 }
 0x1da   : > { %2384 = vmatmul.f32.gmra.mxu1 %v1879_v63  ;;  %7584 = vst [vmem:[#allocation15_spill] sm:$0xff] %v5489_v25  ;;  %v1281_v0 = vmax.f32 %v1249_v55, 0.0  ;;  %v5494_v23 = vpop.f32.mrf.mxu0  ;;  %v1328_v62 = vsub.f32 %v7586_v11, %v5354_v60  ;;  %v1597_v32 = vmul.f32 %v5492_v59, %v5459_v56  ;;  %v1881_v60 = vadd.f32 %v4721_v6, %v1812_v34 }
 0x1db   : > { %7585 = vst [vmem:[#allocation16_spill] sm:$0xff] %v5494_v23  ;;  %v5501_v42 = vpop.f32.mrf.mxu1  ;;  %v1140_v63 = vpop.xlane.xlu1 %1139  ;;  %v1745_v55 = vmul.f32 %v1585_v17, %v1329_v3  ;;  %v1218_v11 = vmul.f32 %v5507_v22, %v5507_v22  ;;  %vm1603_vm7 = vweird.f32 %v5492_v59  ;;  %v1336_v23 = vsub.f32 %v4739_v45, %v5474_v20 }
 0x1dc   : > { %7587 = vst [vmem:[#allocation17_spill] sm:$0xff] %v5501_v42  ;;  %v1744_v28 = vmul.f32 %v1585_v17, %v1328_v62  ;;  %v5514_v36 = vadd.f32 1e-05, %v1281_v0  ;;  %v944_v12 = vpop.xlane.xlu2 %943  ;;  %v1186_v14 = vmul.f32 %v1140_v63, %v4565_v35  ;;  %v1598_v30 = vmul.f32 %v5492_v59, %v1597_v32  ;;  %vm1604_vm8 = vmor %vm1602_vm6, %vm1603_vm7 }
 0x1dd   : > { %v5522_v62 = vpop.eup %3916  ;;  %v5530_v0 = vmul.f32 %v4565_v35, %v944_v12  ;;  %v1814_v3 = vmul.f32 %v4664_v9, %v1745_v55  ;;  %v1595_v63 = vsel %vm1594_vm5, %v5448_v43, %v1591_v57  ;;  %v7593_v12 = vld [vmem:[#allocation33_spill] sm:$0xff] }
 0x1de   : > { %v1143_v18 = vpop.xlane.xlu0 %1142  ;;  %v1813_v17 = vmul.f32 %v4662_v52, %v1744_v28  ;;  %3918 = vrsqrt.f32 %v5514_v36  ;;  %v1331_v47 = vsub.f32 %v7593_v12, %v5380_v33  ;;  %v1607_v28 = vmul.f32 %v5522_v62, %v5481_v13 }
 0x1df   : > { %v1219_v32 = vmul.f32 %v5530_v0, %v5530_v0  ;;  %v1250_v53 = vsub.f32 %v1186_v14, %v1218_v11  ;;  %v1599_v57 = vmul.f32 0.5, %v1598_v30  ;;  %v1883_v25 = vadd.f32 %v4721_v6, %v1814_v3 }
 0x1e0   : > { %2048 = vmatmul.f32.gmra.mxu2 %v1880_v39  ;;  %v5520_v31 = vpop.f32.mrf.mxu2  ;;  %v1747_v21 = vmul.f32 %v1595_v63, %v1331_v47  ;;  %v1608_v12 = vmul.f32 %v5522_v62, %v1607_v28  ;;  %vm1613_vm10 = vweird.f32 %v5522_v62  ;;  %vm1622_vm12 = vweird.f32 %v5514_v36 }
 0x1e1   : > { %2161 = vmatmul.f32.gmra.mxu3 %v1881_v60  ;;  %2274 = vmatmul.f32.gmra.mxu0 %v1880_v39  ;;  %7589 = vst [vmem:[#allocation18_spill] sm:$0xff] %v5520_v31  ;;  %v5532_v34 = vpop.f32.mrf.mxu3  ;;  %v7591_v39 = vld [vmem:[#allocation32_spill] sm:$0xff]  ;;  %v1282_v14 = vmax.f32 %v1250_v53, 0.0  ;;  %v1600_v11 = vsub.f32 1.5, %v1599_v57  ;;  %vm1614_vm11 = vmor %vm1612_vm9, %vm1613_vm10 }
 0x1e2   : > { %2387 = vmatmul.f32.gmra.mxu1 %v1881_v60  ;;  %7590 = vst [vmem:[#allocation19_spill] sm:$0xff] %v5532_v34  ;;  %v1330_v19 = vsub.f32 %v7591_v39, %v5380_v33  ;;  %v5540_v37 = vpop.f32.mrf.mxu0  ;;  %v1187_v60 = vmul.f32 %v1143_v18, %v4565_v35  ;;  %v1882_v39 = vadd.f32 %v4679_v51, %v1813_v17 }
 0x1e3   : > { %7592 = vst [vmem:[#allocation20_spill] sm:$0xff] %v5540_v37  ;;  %v947_v43 = vpop.xlane.xlu1 %946 }
 0x1e4   : > { %v5549_v55 = vpop.f32.mrf.mxu1  ;;  %v1746_v4 = vmul.f32 %v1595_v63, %v1330_v19  ;;  %v1251_v34 = vsub.f32 %v1187_v60, %v1219_v32  ;;  %v5554_v18 = vmul.f32 %v4565_v35, %v947_v43  ;;  %v5556_v33 = vpop.eup %3918  ;;  %v1816_v32 = vmul.f32 %v4664_v9, %v1747_v21 }
 0x1e5   : > { %7594 = vst [vmem:[#allocation21_spill] sm:$0xff] %v5549_v55  ;;  %v1146_v30 = vpop.xlane.xlu2 %1145  ;;  %v1617_v53 = vmul.f32 %v5556_v33, %v5514_v36  ;;  %v5570_v43 = vadd.f32 1e-05, %v1282_v14  ;;  %vm1623_vm13 = vweird.f32 %v5556_v33 }
 0x1e6   : > { %v1815_v3 = vmul.f32 %v4662_v52, %v1746_v4  ;;  %v1188_v47 = vmul.f32 %v1146_v30, %v4565_v35  ;;  %v1220_v63 = vmul.f32 %v5554_v18, %v5554_v18  ;;  %v1283_v60 = vmax.f32 %v1251_v34, 0.0  ;;  %v1972_v4 = vld [vmem:[%s7389_s6] sm:$0x3]  ;;  %v950_v21 = vpop.xlane.xlu0 %949  ;;  %vm1624_vm14 = vmor %vm1622_vm12, %vm1623_vm13 }
 0x1e7   : > { %v1885_v34 = vadd.f32 %v4721_v6, %v1816_v32  ;;  %v5583_v55 = vperm.slane %v1972_v4, 1  ;;  %3920 = vrsqrt.f32 %v5570_v43  ;;  %v5586_v56 = vperm.slane %v1972_v4, 0 }
 0x1e8   : > { %2051 = vmatmul.f32.gmra.mxu2 %v1882_v39  ;;  %v5559_v17 = vpop.f32.mrf.mxu2  ;;  %v1884_v30 = vadd.f32 %v4679_v51, %v1815_v3  ;;  %v5581_v14 = vadd.f32 1e-05, %v1283_v60  ;;  %v5589_v3 = vmul.f32 %v4565_v35, %v950_v21  ;;  %v1332_v32 = vsub.f32 %v4800_v24, %v5410_v15 }
 0x1e9   : > { %2164 = vmatmul.f32.gmra.mxu3 %v1883_v25  ;;  %2277 = vmatmul.f32.gmra.mxu0 %v1882_v39  ;;  %7595 = vst [vmem:[#allocation23_spill] sm:$0xff] %v5559_v17  ;;  %v1601_v39 = vmul.f32 %v5492_v59, %v1600_v11  ;;  %vm1632_vm15 = vweird.f32 %v5570_v43 }
 0x1ea   : > { %2390 = vmatmul.f32.gmra.mxu1 %v1883_v25  ;;  %v5565_v19 = vpop.f32.mrf.mxu3  ;;  %v2233_v28 = vpop.f32.mrf.mxu0  ;;  %v1609_v25 = vmul.f32 0.5, %v1608_v12  ;;  %v1618_v12 = vmul.f32 %v5556_v33, %v1617_v53  ;;  %7597 = vst [vmem:[#allocation25_spill] sm:$0xff] %v5583_v55  ;;  %v1333_v53 = vsub.f32 %v4627_v8, %v5410_v15  ;;  %3922 = vrsqrt.f32 %v5581_v14 }
 0x1eb   : > { %7596 = vst [vmem:[#allocation24_spill] sm:$0xff] %v5565_v19  ;;  %v1252_v19 = vsub.f32 %v1188_v47, %v1220_v63  ;;  %v1605_v63 = vsel %vm1604_vm8, %v5492_v59, %v1601_v39  ;;  %v1221_v15 = vmul.f32 %v5589_v3, %v5589_v3  ;;  %vm1642_vm2 = vweird.f32 %v5581_v14 }
 0x1ec   : > { %v2346_v57 = vpop.f32.mrf.mxu1  ;;  %v1610_v11 = vsub.f32 1.5, %v1609_v25  ;;  %7598 = vst [vmem:[#allocation26_spill] sm:$0xff] %v5586_v56  ;;  %v2234_v25 = vadd.f32 %v2233_v28, %v5583_v55  ;;  %v1619_v4 = vmul.f32 0.5, %v1618_v12  ;;  %v1748_v24 = vmul.f32 %v1605_v63, %v1332_v32 }
 0x1ed   : > { %v1149_v17 = vpop.xlane.xlu1 %1148  ;;  %v1284_v60 = vmax.f32 %v1252_v19, 0.0  ;;  %v953_v59 = vpop.xlane.xlu2 %952  ;;  %v1749_v39 = vmul.f32 %v1605_v63, %v1333_v53  ;;  %v1334_v32 = vsub.f32 %v4672_v1, %v5436_v48 }
 0x1ee   : > { %v1189_v8 = vmul.f32 %v1149_v17, %v4565_v35  ;;  %v5605_v12 = vpop.eup %3920  ;;  %v1620_v63 = vsub.f32 1.5, %v1619_v4 }
 0x1ef   : > { %v5607_v29 = vadd.f32 1e-05, %v1284_v60  ;;  %v1818_v37 = vmul.f32 %v4664_v9, %v1749_v39  ;;  %v1152_v17 = vpop.xlane.xlu0 %1151  ;;  %vm1633_vm1 = vweird.f32 %v5605_v12 }
 0x1f0   : > { %2054 = vmatmul.f32.gmra.mxu2 %v1884_v30  ;;  %v2007_v47 = vpop.f32.mrf.mxu2  ;;  %vm5718_vm5 = vmor %vm1632_vm15, %vm1633_vm1 }
 0x1f1   : > { %2167 = vmatmul.f32.gmra.mxu3 %v1885_v34  ;;  %2280 = vmatmul.f32.gmra.mxu0 %v1884_v30  ;;  %v2008_v21 = vadd.f32 %v2007_v47, %v5586_v56  ;;  %v1611_v30 = vmul.f32 %v5522_v62, %v1610_v11  ;;  %v2347_v47 = vadd.f32 %v2346_v57, %v2234_v25  ;;  %v5621_v57 = vpop.eup %3922  ;;  %3924 = vrsqrt.f32 %v5607_v29 }
 0x1f2   : > { %2393 = vmatmul.f32.gmra.mxu1 %v1885_v34  ;;  %v2120_v42 = vpop.f32.mrf.mxu3  ;;  %v1817_v11 = vmul.f32 %v4662_v52, %v1748_v24  ;;  %v1627_v25 = vmul.f32 %v5605_v12, %v5570_v43  ;;  %v1887_v4 = vadd.f32 %v4721_v6, %v1818_v37  ;;  %vm1643_vm3 = vweird.f32 %v5621_v57 }
 0x1f3   : > { %v2121_v19 = vadd.f32 %v2120_v42, %v2008_v21  ;;  %v5616_v42 = vmul.f32 %v4565_v35, %v953_v59  ;;  %v1615_v60 = vsel %vm1614_vm11, %v5522_v62, %v1611_v30  ;;  %v1253_v21 = vsub.f32 %v1189_v8, %v1221_v15  ;;  %vm5742_vm7 = vmor %vm1642_vm2, %vm1643_vm3 }
 0x1f4   : > { %v1886_v13 = vadd.f32 %v4679_v51, %v1817_v11  ;;  %v5628_v1 = vmax.f32 %v2347_v47, 0.0  ;;  %v1190_v62 = vmul.f32 %v1152_v17, %v4565_v35  ;;  %v1621_v8 = vmul.f32 %v5556_v33, %v1620_v63 }
 0x1f5   : > { %v5618_v53 = vmax.f32 %v2121_v19, 0.0  ;;  %v1222_v59 = vmul.f32 %v5616_v42, %v5616_v42  ;;  %v7601_v19 = vld [vmem:[#allocation29_spill] sm:$0xff]  ;;  %v1637_v15 = vmul.f32 %v5621_v57, %v5581_v14  ;;  %v1285_v11 = vmax.f32 %v1253_v21, 0.0 }
 0x1f6   : > { %v2236_v28 = vpop.f32.mrf.mxu0  ;;  %v2349_v34 = vpop.f32.mrf.mxu1  ;;  %7600 = vst [vmem:[#allocation28_spill] sm:$0xff] %v5628_v1  ;;  %v1335_v31 = vsub.f32 %v7601_v19, %v5436_v48  ;;  %v1628_v16 = vmul.f32 %v5605_v12, %v1627_v25  ;;  %v1625_v25 = vsel %vm1624_vm14, %v5556_v33, %v1621_v8  ;;  %vm1652_vm4 = vweird.f32 %v5607_v29 }
 0x1f7   : > { %7599 = vst [vmem:[#allocation27_spill] sm:$0xff] %v5618_v53  ;;  %v956_v24 = vpop.xlane.xlu1 %955  ;;  %v2237_v37 = vadd.f32 %v2236_v28, %v5583_v55  ;;  %v2508_v48 = vadd.f32 %v5628_v1, %v5618_v53  ;;  %v1750_v28 = vmul.f32 %v1615_v60, %v1334_v32  ;;  %v1254_v26 = vsub.f32 %v1190_v62, %v1222_v59  ;;  %v959_v33 = vpop.xlane.xlu0 %958 }
 0x1f8   : > { %2057 = vmatmul.f32.gmra.mxu2 %v1886_v13  ;;  %v5645_v63 = vmul.f32 %v4565_v35, %v956_v24  ;;  %v1751_v19 = vmul.f32 %v1615_v60, %v1335_v31  ;;  %v5659_v60 = vpop.eup %3924  ;;  %v1155_v24 = vpop.xlane.xlu2 %1154  ;;  %v5666_v36 = vadd.f32 1e-05, %v1285_v11  ;;  %v1629_v8 = vmul.f32 0.5, %v1628_v16 }
 0x1f9   : > { %2170 = vmatmul.f32.gmra.mxu3 %v1887_v4  ;;  %2283 = vmatmul.f32.gmra.mxu0 %v1886_v13  ;;  %v2350_v32 = vadd.f32 %v2349_v34, %v2237_v37  ;;  %v1819_v45 = vmul.f32 %v4662_v52, %v1750_v28  ;;  %v1191_v62 = vmul.f32 %v1155_v24, %v4565_v35  ;;  %v1286_v37 = vmax.f32 %v1254_v26, 0.0 }
 0x1fa   : > { %2396 = vmatmul.f32.gmra.mxu1 %v1887_v4  ;;  %2509 = vadd.xlane.f32.xlu2 %v2508_v48  ;;  %v1820_v59 = vmul.f32 %v4664_v9, %v1751_v19  ;;  %v1223_v34 = vmul.f32 %v5645_v63, %v5645_v63  ;;  %v1647_v11 = vmul.f32 %v5659_v60, %v5607_v29  ;;  %3926 = vrsqrt.f32 %v5666_v36 }
 0x1fb   : > { %v2010_v30 = vpop.f32.mrf.mxu2  ;;  %v2123_v39 = vpop.f32.mrf.mxu3  ;;  %v5680_v28 = vmax.f32 %v2350_v32, 0.0  ;;  %v1888_v19 = vadd.f32 %v4679_v51, %v1819_v45  ;;  %v1630_v32 = vsub.f32 1.5, %v1629_v8  ;;  %v5686_v1 = vadd.f32 1e-05, %v1286_v37 }
 0x1fc   : > { %v2011_v47 = vadd.f32 %v2010_v30, %v5586_v56  ;;  %v7602_v30 = vld [vmem:[#allocation34_spill] sm:$0xff]  ;;  %v1889_v16 = vadd.f32 %v4721_v6, %v1820_v59  ;;  %v1255_v26 = vsub.f32 %v1191_v62, %v1223_v34  ;;  %v5699_v34 = vmul.f32 %v4565_v35, %v959_v33 }
 0x1fd   : > { %v1337_v54 = vsub.f32 %v7602_v30, %v5474_v20  ;;  %v1638_v20 = vmul.f32 %v5621_v57, %v1637_v15  ;;  %7604 = vst [vmem:[#allocation31_spill] sm:$0xff] %v5680_v28  ;;  %v2635_v59 = vmul.f32 %v5680_v28, %v5680_v28  ;;  %3928 = vrsqrt.f32 %v5686_v1 }
 0x1fe   : > { %v2239_v17 = vpop.f32.mrf.mxu0  ;;  %v2124_v13 = vadd.f32 %v2123_v39, %v2011_v47  ;;  %vm1653_vm6 = vweird.f32 %v5659_v60  ;;  %vm1662_vm9 = vweird.f32 %v5666_v36  ;;  %vm1672_vm12 = vweird.f32 %v5686_v1 }
 0x1ff   : > { %v2352_v4 = vpop.f32.mrf.mxu1  ;;  %v2240_v39 = vadd.f32 %v2239_v17, %v5583_v55  ;;  %v1752_v17 = vmul.f32 %v1625_v25, %v1336_v23  ;;  %v1753_v24 = vmul.f32 %v1625_v25, %v1337_v54  ;;  %v1639_v21 = vmul.f32 0.5, %v1638_v20  ;;  %v1158_v37 = vpop.xlane.xlu1 %1157  ;;  %vm5793_vm8 = vmor %vm1652_vm4, %vm1653_vm6 }
 0x200   : > { %v5674_v47 = vmax.f32 %v2124_v13, 0.0  ;;  %2060 = vmatmul.f32.gmra.mxu2 %v1888_v19  ;;  %v1161_v14 = vpop.xlane.xlu0 %1160 }
 0x201   : > { %v2353_v13 = vadd.f32 %v2352_v4, %v2240_v39  ;;  %2286 = vmatmul.f32.gmra.mxu0 %v1888_v19  ;;  %2173 = vmatmul.f32.gmra.mxu3 %v1889_v16  ;;  %v1648_v4 = vmul.f32 %v5659_v60, %v1647_v11  ;;  %v1640_v62 = vsub.f32 1.5, %v1639_v21  ;;  %v1287_v39 = vmax.f32 %v1255_v26, 0.0  ;;  %v5709_v11 = vpop.eup %3926 }
 0x202   : > { %7603 = vst [vmem:[#allocation30_spill] sm:$0xff] %v5674_v47  ;;  %2399 = vmatmul.f32.gmra.mxu1 %v1889_v16  ;;  %v2511_v54 = vadd.f32 %v5680_v28, %v5674_v47  ;;  %v2634_v45 = vmul.f32 %v5674_v47, %v5674_v47  ;;  %v1822_v16 = vmul.f32 %v4664_v9, %v1753_v24  ;;  %vm1663_vm10 = vweird.f32 %v5709_v11 }
 0x203   : > { %v2013_v15 = vpop.f32.mrf.mxu2  ;;  %v5701_v8 = vmax.f32 %v2353_v13, 0.0  ;;  %v1649_v33 = vmul.f32 0.5, %v1648_v4  ;;  %v1641_v24 = vmul.f32 %v5621_v57, %v1640_v62  ;;  %vm5842_vm11 = vmor %vm1662_vm9, %vm1663_vm10 }
 0x204   : > { %v2126_v30 = vpop.f32.mrf.mxu3  ;;  %v2014_v48 = vadd.f32 %v2013_v15, %v5586_v56  ;;  %2512 = vadd.xlane.f32.xlu1 %v2511_v54  ;;  %v1224_v54 = vmul.f32 %v5699_v34, %v5699_v34 }
 0x206   : > { %v2242_v31 = vpop.f32.mrf.mxu0  ;;  %v2127_v25 = vadd.f32 %v2126_v30, %v2014_v48  ;;  %v2703_v48 = vadd.f32 %v2635_v59, %v2634_v45  ;;  %v1821_v30 = vmul.f32 %v4662_v52, %v1752_v17  ;;  %v5729_v45 = vadd.f32 1e-05, %v1287_v39  ;;  %v962_v59 = vpop.xlane.xlu2 %961 }
 0x207   : > { %v2355_v23 = vpop.f32.mrf.mxu1  ;;  %v2243_v20 = vadd.f32 %v2242_v31, %v5583_v55  ;;  %v1631_v31 = vmul.f32 %v5605_v12, %v1630_v32  ;;  %v1192_v32 = vmul.f32 %v1158_v37, %v4565_v35  ;;  %v1891_v37 = vadd.f32 %v4721_v6, %v1822_v16 }
 0x208   : > { %v5703_v15 = vmax.f32 %v2127_v25, 0.0  ;;  %2704 = vadd.xlane.f32.xlu0 %v2703_v48  ;;  %v1890_v43 = vadd.f32 %v4679_v51, %v1821_v30  ;;  %v2637_v25 = vmul.f32 %v5701_v8, %v5701_v8  ;;  %3930 = vrsqrt.f32 %v5729_v45 }
 0x209   : > { %v2356_v19 = vadd.f32 %v2355_v23, %v2243_v20  ;;  %v1657_v20 = vmul.f32 %v5709_v11, %v5666_v36  ;;  %v1635_v16 = vsel %vm5718_vm5, %v5605_v12, %v1631_v31  ;;  %v1256_v47 = vsub.f32 %v1192_v32, %v1224_v54  ;;  %2176 = vmatmul.f32.gmra.mxu3 %v1891_v37 }
 0x20a   : > { %v2636_v17 = vmul.f32 %v5703_v15, %v5703_v15  ;;  %2063 = vmatmul.f32.gmra.mxu2 %v1890_v43  ;;  %2289 = vmatmul.f32.gmra.mxu0 %v1890_v43  ;;  %v2514_v12 = vadd.f32 %v5701_v8, %v5703_v15  ;;  %v7610_v31 = vsub.f32 %v4790_v40, %v5507_v22  ;;  %vm1682_vm15 = vweird.f32 %v5729_v45 }
 0x20b   : > { %v2016_v21 = vpop.f32.mrf.mxu2  ;;  %v5746_v39 = vmax.f32 %v2356_v19, 0.0  ;;  %2402 = vmatmul.f32.gmra.mxu1 %v1891_v37  ;;  %v7609_v19 = vsub.f32 %v4788_v10, %v5507_v22  ;;  %v1658_v13 = vmul.f32 %v5709_v11, %v1657_v20 }
 0x20c   : > { %v2129_v26 = vpop.f32.mrf.mxu3  ;;  %v2017_v23 = vadd.f32 %v2016_v21, %v5586_v56  ;;  %v2706_v28 = vadd.f32 %v2637_v25, %v2636_v17  ;;  %v5761_v17 = vmul.f32 %v4565_v35, %v962_v59  ;;  %v1193_v25 = vmul.f32 %v1161_v14, %v4565_v35 }
 0x20d   : > { %v1754_v43 = vmul.f32 %v1635_v16, %v7609_v19  ;;  %v2639_v22 = vmul.f32 %v5746_v39, %v5746_v39 }
 0x20e   : > { %v2245_v4 = vpop.f32.mrf.mxu0  ;;  %v2130_v48 = vadd.f32 %v2129_v26, %v2017_v23  ;;  %v5752_v26 = vpop.eup %3928  ;;  %v1650_v23 = vsub.f32 1.5, %v1649_v33  ;;  %2707 = vadd.xlane.f32.xlu2 %v2706_v28  ;;  %v1755_v33 = vmul.f32 %v1635_v16, %v7610_v31  ;;  %v1225_v28 = vmul.f32 %v5761_v17, %v5761_v17 }
 0x20f   : > { %v2358_v21 = vpop.f32.mrf.mxu1  ;;  %v2246_v30 = vadd.f32 %v2245_v4, %v5583_v55  ;;  %v1823_v32 = vmul.f32 %v4662_v52, %v1754_v43  ;;  %v1645_v4 = vsel %vm5742_vm7, %v5621_v57, %v1641_v24  ;;  %v1667_v37 = vmul.f32 %v5752_v26, %v5686_v1 }
 0x210   : > { %v5754_v53 = vmax.f32 %v2130_v48, 0.0  ;;  %2515 = vadd.xlane.f32.xlu0 %v2514_v12  ;;  %v1651_v20 = vmul.f32 %v5659_v60, %v1650_v23  ;;  %v1288_v48 = vmax.f32 %v1256_v47, 0.0  ;;  %v1824_v62 = vmul.f32 %v4664_v9, %v1755_v33 }
 0x211   : > { %v2359_v59 = vadd.f32 %v2358_v21, %v2246_v30  ;;  %v1892_v57 = vadd.f32 %v4679_v51, %v1823_v32  ;;  %v7611_v21 = vsub.f32 %v4847_v41, %v5530_v0  ;;  %v1659_v47 = vmul.f32 0.5, %v1658_v13  ;;  %v5802_v41 = vpop.eup %3930 }
 0x212   : > { %v2638_v10 = vmul.f32 %v5754_v53, %v5754_v53  ;;  %v1893_v19 = vadd.f32 %v4721_v6, %v1824_v62  ;;  %v7614_v31 = vsub.f32 %v4866_v38, %v5530_v0  ;;  %v1257_v32 = vsub.f32 %v1193_v25, %v1225_v28 }
 0x213   : > { %v2019_v54 = vpop.f32.mrf.mxu2  ;;  %v1756_v30 = vmul.f32 %v1645_v4, %v7611_v21  ;;  %2066 = vmatmul.f32.gmra.mxu2 %v1892_v57  ;;  %2292 = vmatmul.f32.gmra.mxu0 %v1892_v57  ;;  %v2517_v13 = vadd.f32 %v5746_v39, %v5754_v53  ;;  %v1668_v38 = vmul.f32 %v5752_v26, %v1667_v37  ;;  %v5813_v0 = vadd.f32 1e-05, %v1288_v48 }
 0x214   : > { %v2132_v40 = vpop.f32.mrf.mxu3  ;;  %v2020_v24 = vadd.f32 %v2019_v54, %v5586_v56  ;;  %v2709_v14 = vadd.f32 %v2639_v22, %v2638_v10  ;;  %v1757_v33 = vmul.f32 %v1645_v4, %v7614_v31  ;;  %v5804_v54 = vmax.f32 %v2359_v59, 0.0  ;;  %2179 = vmatmul.f32.gmra.mxu3 %v1893_v19  ;;  %2405 = vmatmul.f32.gmra.mxu1 %v1893_v19 }
 0x215   : > { %v1342_v10 = vsub.f32 %v4904_v50, %v5554_v18  ;;  %v1343_v22 = vsub.f32 %v4960_v44, %v5554_v18  ;;  %v1655_v4 = vsel %vm5793_vm8, %v5659_v60, %v1651_v20  ;;  %v1825_v50 = vmul.f32 %v4662_v52, %v1756_v30 }
 0x216   : > { %v2248_v16 = vpop.f32.mrf.mxu0  ;;  %7615 = vst [vmem:[#allocation32_spill] sm:$0xff] %v5804_v54  ;;  %v2133_v29 = vadd.f32 %v2132_v40, %v2020_v24  ;;  %2710 = vadd.xlane.f32.xlu1 %v2709_v14  ;;  %2518 = vadd.xlane.f32.xlu2 %v2517_v13  ;;  %v1660_v59 = vsub.f32 1.5, %v1659_v47  ;;  %v1826_v44 = vmul.f32 %v4664_v9, %v1757_v33  ;;  %v1289_v40 = vmax.f32 %v1257_v32, 0.0 }
 0x217   : > { %v2249_v43 = vadd.f32 %v2248_v16, %v5583_v55  ;;  %v2361_v12 = vpop.f32.mrf.mxu1  ;;  %v2641_v20 = vmul.f32 %v5804_v54, %v5804_v54  ;;  %v1758_v62 = vmul.f32 %v1655_v4, %v1342_v10  ;;  %v1669_v57 = vmul.f32 0.5, %v1668_v38 }
 0x218   : > { %v5818_v28 = vmax.f32 %v2133_v29, 0.0  ;;  %v1677_v24 = vmul.f32 %v5802_v41, %v5729_v45  ;;  %3932 = vrsqrt.f32 %v5813_v0  ;;  %v1894_v14 = vadd.f32 %v4679_v51, %v1825_v50 }
 0x219   : > { %v2362_v25 = vadd.f32 %v2361_v12, %v2249_v43  ;;  %v1759_v47 = vmul.f32 %v1655_v4, %v1343_v22  ;;  %v1661_v19 = vmul.f32 %v5709_v11, %v1660_v59  ;;  %v1895_v43 = vadd.f32 %v4721_v6, %v1826_v44 }
 0x21a   : > { %7616 = vst [vmem:[#allocation33_spill] sm:$0xff] %v5818_v28  ;;  %v2640_v60 = vmul.f32 %v5818_v28, %v5818_v28  ;;  %v5846_v32 = vadd.f32 1e-05, %v1289_v40  ;;  %v2520_v13 = vadd.f32 %v5804_v54, %v5818_v28  ;;  %v1670_v10 = vsub.f32 1.5, %v1669_v57 }
 0x21b   : > { %v2022_v18 = vpop.f32.mrf.mxu2  ;;  %v5832_v16 = vmax.f32 %v2362_v25, 0.0  ;;  %2069 = vmatmul.f32.gmra.mxu2 %v1894_v14  ;;  %2295 = vmatmul.f32.gmra.mxu0 %v1894_v14  ;;  %v1678_v22 = vmul.f32 %v5802_v41, %v1677_v24  ;;  %v1827_v36 = vmul.f32 %v4662_v52, %v1758_v62  ;;  %v1344_v59 = vsub.f32 %v4982_v61, %v5589_v3 }
 0x21c   : > { %v2023_v37 = vadd.f32 %v2022_v18, %v5586_v56  ;;  %v2135_v48 = vpop.f32.mrf.mxu3  ;;  %v2712_v23 = vadd.f32 %v2641_v20, %v2640_v60  ;;  %2182 = vmatmul.f32.gmra.mxu3 %v1895_v43  ;;  %2408 = vmatmul.f32.gmra.mxu1 %v1895_v43  ;;  %v1828_v44 = vmul.f32 %v4664_v9, %v1759_v47  ;;  %3934 = vrsqrt.f32 %v5846_v32 }
 0x21d   : > { %7617 = vst [vmem:[#allocation29_spill] sm:$0xff] %v5832_v16  ;;  %v2643_v25 = vmul.f32 %v5832_v16, %v5832_v16  ;;  %v1665_v40 = vsel %vm5842_vm11, %v5709_v11, %v1661_v19  ;;  %v1671_v62 = vmul.f32 %v5752_v26, %v1670_v10  ;;  %vm1673_vm13 = vweird.f32 %v5752_v26 }
 0x21e   : > { %v2136_v21 = vadd.f32 %v2135_v48, %v2023_v37  ;;  %v2251_v30 = vpop.f32.mrf.mxu0  ;;  %2713 = vadd.xlane.f32.xlu0 %v2712_v23  ;;  %2521 = vadd.xlane.f32.xlu1 %v2520_v13  ;;  %v5858_v50 = vpop.eup %3932  ;;  %v1345_v37 = vsub.f32 %v5003_v46, %v5589_v3  ;;  %v1679_v61 = vmul.f32 0.5, %v1678_v22  ;;  %v1896_v11 = vadd.f32 %v4679_v51, %v1827_v36  ;;  %vm5880_vm14 = vmor %vm1672_vm12, %vm1673_vm13 }
 0x21f   : > { %v2252_v12 = vadd.f32 %v2251_v30, %v5583_v55  ;;  %v2364_v31 = vpop.f32.mrf.mxu1  ;;  %v1760_v46 = vmul.f32 %v1665_v40, %v1344_v59  ;;  %v1687_v3 = vmul.f32 %v5858_v50, %v5813_v0  ;;  %v1346_v36 = vsub.f32 %v5011_v58, %v5616_v42 }
 0x220   : > { %v5848_v29 = vmax.f32 %v2136_v21, 0.0  ;;  %v1897_v21 = vadd.f32 %v4721_v6, %v1828_v44  ;;  %v1761_v1 = vmul.f32 %v1665_v40, %v1345_v37  ;;  %v1675_v59 = vsel %vm5880_vm14, %v5752_v26, %v1671_v62 }
 0x221   : > { %v2365_v38 = vadd.f32 %v2364_v31, %v2252_v12  ;;  %v1680_v12 = vsub.f32 1.5, %v1679_v61  ;;  %v1829_v13 = vmul.f32 %v4662_v52, %v1760_v46  ;;  %v1347_v44 = vsub.f32 %v5025_v2, %v5616_v42 }
 0x222   : > { %7620 = vst [vmem:[#allocation34_spill] sm:$0xff] %v5848_v29  ;;  %v2642_v4 = vmul.f32 %v5848_v29, %v5848_v29  ;;  %v2523_v43 = vadd.f32 %v5832_v16, %v5848_v29  ;;  %v5888_v31 = vpop.eup %3934  ;;  %vm1683_vm1 = vweird.f32 %v5802_v41  ;;  %v1762_v62 = vmul.f32 %v1675_v59, %v1346_v36 }
 0x223   : > { %v2025_v18 = vpop.f32.mrf.mxu2  ;;  %v5873_v57 = vmax.f32 %v2365_v38, 0.0  ;;  %2072 = vmatmul.f32.gmra.mxu2 %v1896_v11  ;;  %2298 = vmatmul.f32.gmra.mxu0 %v1896_v11  ;;  %v1688_v38 = vmul.f32 %v5858_v50, %v1687_v3  ;;  %v1681_v58 = vmul.f32 %v5802_v41, %v1680_v12  ;;  %v1898_v2 = vadd.f32 %v4679_v51, %v1829_v13  ;;  %vm1684_vm2 = vmor %vm1682_vm15, %vm1683_vm1 }
 0x224   : > { %v2026_v48 = vadd.f32 %v2025_v18, %v5586_v56  ;;  %v2138_v60 = vpop.f32.mrf.mxu3  ;;  %v2715_v20 = vadd.f32 %v2643_v25, %v2642_v4  ;;  %2185 = vmatmul.f32.gmra.mxu3 %v1897_v21  ;;  %2411 = vmatmul.f32.gmra.mxu1 %v1897_v21  ;;  %v1830_v4 = vmul.f32 %v4664_v9, %v1761_v1  ;;  %vm1692_vm3 = vweird.f32 %v5813_v0 }
 0x225   : > { %7621 = vst [vmem:[#allocation37_spill] sm:$0xff] %v5873_v57  ;;  %v2645_v22 = vmul.f32 %v5873_v57, %v5873_v57  ;;  %v1689_v61 = vmul.f32 0.5, %v1688_v38  ;;  %v1763_v46 = vmul.f32 %v1675_v59, %v1347_v44  ;;  %v1685_v45 = vsel %vm1684_vm2, %v5802_v41, %v1681_v58 }
 0x226   : > { %v2139_v24 = vadd.f32 %v2138_v60, %v2026_v48  ;;  %v2254_v14 = vpop.f32.mrf.mxu0  ;;  %2716 = vadd.xlane.f32.xlu2 %v2715_v20  ;;  %2524 = vadd.xlane.f32.xlu0 %v2523_v43  ;;  %v1697_v60 = vmul.f32 %v5888_v31, %v5846_v32  ;;  %v1899_v11 = vadd.f32 %v4721_v6, %v1830_v4  ;;  %vm1693_vm4 = vweird.f32 %v5858_v50 }
 0x227   : > { %v2255_v30 = vadd.f32 %v2254_v14, %v5583_v55  ;;  %v2367_v23 = vpop.f32.mrf.mxu1  ;;  %v1690_v43 = vsub.f32 1.5, %v1689_v61  ;;  %v1832_v12 = vmul.f32 %v4664_v9, %v1763_v46  ;;  %v1348_v13 = vsub.f32 %v5048_v5, %v5645_v63  ;;  %vm1694_vm5 = vmor %vm1692_vm3, %vm1693_vm4 }
 0x228   : > { %v5884_v19 = vmax.f32 %v2139_v24, 0.0  ;;  %v1698_v21 = vmul.f32 %v5888_v31, %v1697_v60  ;;  %v1349_v4 = vsub.f32 %v5064_v27, %v5645_v63  ;;  %vm1702_vm6 = vweird.f32 %v5846_v32 }
 0x229   : > { %v2368_v33 = vadd.f32 %v2367_v23, %v2255_v30  ;;  %v1831_v23 = vmul.f32 %v4662_v52, %v1762_v62  ;;  %vm1703_vm7 = vweird.f32 %v5888_v31  ;;  %v1351_v32 = vsub.f32 %v5084_v49, %v5699_v34 }
 0x22a   : > { %7624 = vst [vmem:[#allocation38_spill] sm:$0xff] %v5884_v19  ;;  %v2644_v10 = vmul.f32 %v5884_v19, %v5884_v19  ;;  %v2526_v48 = vadd.f32 %v5873_v57, %v5884_v19  ;;  %v1699_v41 = vmul.f32 0.5, %v1698_v21  ;;  %vm5965_vm8 = vmor %vm1702_vm6, %vm1703_vm7 }
 0x22b   : > { %v2028_v25 = vpop.f32.mrf.mxu2  ;;  %v5912_v26 = vmax.f32 %v2368_v33, 0.0  ;;  %2075 = vmatmul.f32.gmra.mxu2 %v1898_v2  ;;  %2301 = vmatmul.f32.gmra.mxu0 %v1898_v2  ;;  %v1900_v5 = vadd.f32 %v4679_v51, %v1831_v23 }
 0x22c   : > { %v2029_v18 = vadd.f32 %v2028_v25, %v5586_v56  ;;  %v2141_v40 = vpop.f32.mrf.mxu3  ;;  %v2718_v37 = vadd.f32 %v2645_v22, %v2644_v10  ;;  %2188 = vmatmul.f32.gmra.mxu3 %v1899_v11  ;;  %2414 = vmatmul.f32.gmra.mxu1 %v1899_v11  ;;  %v1764_v25 = vmul.f32 %v1685_v45, %v1348_v13  ;;  %v1700_v60 = vsub.f32 1.5, %v1699_v41  ;;  %v7629_v41 = vld [vmem:[#allocation35_spill] sm:$0xff] }
 0x22d   : > { %7625 = vst [vmem:[#allocation39_spill] sm:$0xff] %v5912_v26  ;;  %v2647_v47 = vmul.f32 %v5912_v26, %v5912_v26 }
 0x22e   : > { %v2142_v42 = vadd.f32 %v2141_v40, %v2029_v18  ;;  %v2257_v20 = vpop.f32.mrf.mxu0  ;;  %2719 = vadd.xlane.f32.xlu1 %v2718_v37  ;;  %2527 = vadd.xlane.f32.xlu2 %v2526_v48  ;;  %v1765_v40 = vmul.f32 %v1685_v45, %v1349_v4  ;;  %v1691_v37 = vmul.f32 %v5858_v50, %v1690_v43 }
 0x22f   : > { %v2258_v24 = vadd.f32 %v2257_v20, %v5583_v55  ;;  %v2370_v14 = vpop.f32.mrf.mxu1  ;;  %v1901_v48 = vadd.f32 %v4721_v6, %v1832_v12  ;;  %v1701_v23 = vmul.f32 %v5888_v31, %v1700_v60 }
 0x230   : > { %v5919_v3 = vmax.f32 %v2142_v42, 0.0  ;;  %v1833_v42 = vmul.f32 %v4662_v52, %v1764_v25  ;;  %v1834_v0 = vmul.f32 %v4664_v9, %v1765_v40  ;;  %v1695_v11 = vsel %vm1694_vm5, %v5858_v50, %v1691_v37 }
 0x231   : > { %v2371_v30 = vadd.f32 %v2370_v14, %v2258_v24  ;;  %v1350_v24 = vsub.f32 %v5082_v7, %v5699_v34  ;;  %v1767_v34 = vmul.f32 %v1695_v11, %v1351_v32  ;;  %v1352_v25 = vsub.f32 %v7629_v41, %v5761_v17 }
 0x232   : > { %7626 = vst [vmem:[#allocation40_spill] sm:$0xff] %v5919_v3  ;;  %v2646_v1 = vmul.f32 %v5919_v3, %v5919_v3  ;;  %v2529_v38 = vadd.f32 %v5912_v26, %v5919_v3  ;;  %v1902_v7 = vadd.f32 %v4679_v51, %v1833_v42  ;;  %v1903_v12 = vadd.f32 %v4721_v6, %v1834_v0 }
 0x233   : > { %v2031_v33 = vpop.f32.mrf.mxu2  ;;  %v5938_v59 = vmax.f32 %v2371_v30, 0.0  ;;  %2078 = vmatmul.f32.gmra.mxu2 %v1900_v5  ;;  %2304 = vmatmul.f32.gmra.mxu0 %v1900_v5  ;;  %v1766_v43 = vmul.f32 %v1695_v11, %v1350_v24  ;;  %v1836_v5 = vmul.f32 %v4664_v9, %v1767_v34 }
 0x234   : > { %v2032_v10 = vadd.f32 %v2031_v33, %v5586_v56  ;;  %v2144_v22 = vpop.f32.mrf.mxu3  ;;  %v2721_v36 = vadd.f32 %v2647_v47, %v2646_v1  ;;  %2191 = vmatmul.f32.gmra.mxu3 %v1901_v48  ;;  %2417 = vmatmul.f32.gmra.mxu1 %v1901_v48  ;;  %v7630_v48 = vld [vmem:[#allocation36_spill] sm:$0xff] }
 0x235   : > { %v2649_v62 = vmul.f32 %v5938_v59, %v5938_v59 }
 0x236   : > { %v2145_v44 = vadd.f32 %v2144_v22, %v2032_v10  ;;  %v2260_v18 = vpop.f32.mrf.mxu0  ;;  %2722 = vadd.xlane.f32.xlu0 %v2721_v36  ;;  %2530 = vadd.xlane.f32.xlu1 %v2529_v38  ;;  %v1705_v10 = vsel %vm5965_vm8, %v5888_v31, %v1701_v23  ;;  %v1835_v36 = vmul.f32 %v4662_v52, %v1766_v43 }
 0x237   : > { %v2261_v27 = vadd.f32 %v2260_v18, %v5583_v55  ;;  %v2373_v63 = vpop.f32.mrf.mxu1 }
 0x238   : > { %v5946_v58 = vmax.f32 %v2145_v44, 0.0 }
 0x239   : > { %v2374_v2 = vadd.f32 %v2373_v63, %v2261_v27  ;;  %v1353_v27 = vsub.f32 %v7630_v48, %v5761_v17  ;;  %v1768_v63 = vmul.f32 %v1705_v10, %v1352_v25 }
 0x23a   : > { %v2648_v20 = vmul.f32 %v5946_v58, %v5946_v58  ;;  %v2532_v30 = vadd.f32 %v5938_v59, %v5946_v58 }
 0x23b   : > { %v2034_v61 = vpop.f32.mrf.mxu2  ;;  %v5969_v50 = vmax.f32 %v2374_v2, 0.0  ;;  %2081 = vmatmul.f32.gmra.mxu2 %v1902_v7  ;;  %2307 = vmatmul.f32.gmra.mxu0 %v1902_v7  ;;  %v1904_v2 = vadd.f32 %v4679_v51, %v1835_v36  ;;  %v1769_v11 = vmul.f32 %v1705_v10, %v1353_v27  ;;  %v1837_v17 = vmul.f32 %v4662_v52, %v1768_v63 }
 0x23c   : > { %v2035_v14 = vadd.f32 %v2034_v61, %v5586_v56  ;;  %v2147_v46 = vpop.f32.mrf.mxu3  ;;  %v2724_v21 = vadd.f32 %v2649_v62, %v2648_v20  ;;  %2194 = vmatmul.f32.gmra.mxu3 %v1903_v12  ;;  %2420 = vmatmul.f32.gmra.mxu1 %v1903_v12  ;;  %v1905_v62 = vadd.f32 %v4721_v6, %v1836_v5 }
 0x23d   : > { %v2651_v4 = vmul.f32 %v5969_v50, %v5969_v50  ;;  %v1838_v32 = vmul.f32 %v4664_v9, %v1769_v11  ;;  %v1906_v52 = vadd.f32 %v4679_v51, %v1837_v17 }
 0x23e   : > { %v2148_v47 = vadd.f32 %v2147_v46, %v2035_v14  ;;  %v2263_v45 = vpop.f32.mrf.mxu0  ;;  %2725 = vadd.xlane.f32.xlu2 %v2724_v21  ;;  %2533 = vadd.xlane.f32.xlu0 %v2532_v30 }
 0x23f   : > { %v2264_v33 = vadd.f32 %v2263_v45, %v5583_v55  ;;  %v2376_v49 = vpop.f32.mrf.mxu1 }
 0x240   : > { %v5974_v13 = vmax.f32 %v2148_v47, 0.0 }
 0x241   : > { %v2377_v22 = vadd.f32 %v2376_v49, %v2264_v33  ;;  %v1907_v33 = vadd.f32 %v4721_v6, %v1838_v32 }
 0x242   : > { %v2650_v38 = vmul.f32 %v5974_v13, %v5974_v13  ;;  %v2535_v31 = vadd.f32 %v5969_v50, %v5974_v13 }
 0x243   : > { %v2037_v44 = vpop.f32.mrf.mxu2  ;;  %v5992_v60 = vmax.f32 %v2377_v22, 0.0  ;;  %2084 = vmatmul.f32.gmra.mxu2 %v1904_v2  ;;  %2310 = vmatmul.f32.gmra.mxu0 %v1904_v2 }
 0x244   : > { %v2038_v18 = vadd.f32 %v2037_v44, %v5586_v56  ;;  %v2150_v40 = vpop.f32.mrf.mxu3  ;;  %v2727_v37 = vadd.f32 %v2651_v4, %v2650_v38  ;;  %2197 = vmatmul.f32.gmra.mxu3 %v1905_v62  ;;  %2423 = vmatmul.f32.gmra.mxu1 %v1905_v62 }
 0x245   : > { %v2653_v30 = vmul.f32 %v5992_v60, %v5992_v60 }
 0x246   : > { %v2151_v42 = vadd.f32 %v2150_v40, %v2038_v18  ;;  %v2266_v20 = vpop.f32.mrf.mxu0  ;;  %2728 = vadd.xlane.f32.xlu1 %v2727_v37  ;;  %2536 = vadd.xlane.f32.xlu2 %v2535_v31 }
 0x247   : > { %v2267_v0 = vadd.f32 %v2266_v20, %v5583_v55  ;;  %v2379_v61 = vpop.f32.mrf.mxu1 }
 0x248   : > { %v5997_v24 = vmax.f32 %v2151_v42, 0.0 }
 0x249   : > { %v2380_v14 = vadd.f32 %v2379_v61, %v2267_v0 }
 0x24a   : > { %v2538_v46 = vadd.f32 %v5992_v60, %v5997_v24  ;;  %v2652_v21 = vmul.f32 %v5997_v24, %v5997_v24 }
 0x24b   : > { %v2040_v23 = vpop.f32.mrf.mxu2  ;;  %v6008_v45 = vmax.f32 %v2380_v14, 0.0  ;;  %2087 = vmatmul.f32.gmra.mxu2 %v1906_v52  ;;  %2313 = vmatmul.f32.gmra.mxu0 %v1906_v52 }
 0x24c   : > { %v2041_v1 = vadd.f32 %v2040_v23, %v5586_v56  ;;  %v2153_v7 = vpop.f32.mrf.mxu3  ;;  %2539 = vadd.xlane.f32.xlu0 %v2538_v46  ;;  %v2730_v47 = vadd.f32 %v2653_v30, %v2652_v21  ;;  %2200 = vmatmul.f32.gmra.mxu3 %v1907_v33 }
 0x24d   : > { %2426 = vmatmul.f32.gmra.mxu1 %v1907_v33  ;;  %v2655_v51 = vmul.f32 %v6008_v45, %v6008_v45 }
 0x24e   : > { %v2154_v43 = vadd.f32 %v2153_v7, %v2041_v1  ;;  %v2269_v12 = vpop.f32.mrf.mxu0  ;;  %2731 = vadd.xlane.f32.xlu1 %v2730_v47 }
 0x24f   : > { %v2270_v49 = vadd.f32 %v2269_v12, %v5583_v55  ;;  %v2382_v34 = vpop.f32.mrf.mxu1 }
 0x250   : > { %v6013_v9 = vmax.f32 %v2154_v43, 0.0 }
 0x251   : > { %v6015_v10 = vadd.f32 %v2382_v34, %v2270_v49 }
 0x252   : > { %v2654_v22 = vmul.f32 %v6013_v9, %v6013_v9  ;;  %v2541_v41 = vadd.f32 %v6008_v45, %v6013_v9 }
 0x253   : > { %7631 = vst [vmem:[#allocation35_spill] sm:$0xff] %v6015_v10  ;;  %v2043_v36 = vpop.f32.mrf.mxu2 }
 0x254   : > { %v2044_v6 = vadd.f32 %v2043_v36, %v5586_v56  ;;  %v2156_v38 = vpop.f32.mrf.mxu3  ;;  %v2733_v4 = vadd.f32 %v2655_v51, %v2654_v22 }
 0x256   : > { %v6024_v25 = vadd.f32 %v2156_v38, %v2044_v6  ;;  %v2272_v5 = vpop.f32.mrf.mxu0  ;;  %2734 = vadd.xlane.f32.xlu2 %v2733_v4  ;;  %2542 = vadd.xlane.f32.xlu1 %v2541_v41 }
 0x257   : > { %v2273_v44 = vadd.f32 %v2272_v5, %v5583_v55  ;;  %v2385_v18 = vpop.f32.mrf.mxu1 }
 0x258   : > { %7632 = vst [vmem:[#allocation36_spill] sm:$0xff] %v6024_v25 }
 0x259   : > { %v6027_v40 = vadd.f32 %v2385_v18, %v2273_v44 }
 0x25b   : > { %7633 = vst [vmem:[#allocation41_spill] sm:$0xff] %v6027_v40  ;;  %v2046_v37 = vpop.f32.mrf.mxu2 }
 0x25c   : > { %v2047_v31 = vadd.f32 %v2046_v37, %v5586_v56  ;;  %v2159_v48 = vpop.f32.mrf.mxu3 }
 0x25e   : > { %v6030_v27 = vadd.f32 %v2159_v48, %v2047_v31  ;;  %v2275_v63 = vpop.f32.mrf.mxu0 }
 0x25f   : > { %v2276_v2 = vadd.f32 %v2275_v63, %v5583_v55  ;;  %v2388_v42 = vpop.f32.mrf.mxu1 }
 0x260   : > { %7634 = vst [vmem:[#allocation42_spill] sm:$0xff] %v6030_v27 }
 0x261   : > { %v6033_v20 = vadd.f32 %v2388_v42, %v2276_v2 }
 0x263   : > { %7635 = vst [vmem:[#allocation43_spill] sm:$0xff] %v6033_v20  ;;  %v2049_v62 = vpop.f32.mrf.mxu2  ;;  %v7659_v20 = vld [vmem:[#allocation19_spill] sm:$0xff] }
 0x264   : > { %v2050_v0 = vadd.f32 %v2049_v62, %v5586_v56  ;;  %v2162_v61 = vpop.f32.mrf.mxu3 }
 0x266   : > { %v6036_v11 = vadd.f32 %v2162_v61, %v2050_v0  ;;  %v2278_v17 = vpop.f32.mrf.mxu0 }
 0x267   : > { %v2279_v14 = vadd.f32 %v2278_v17, %v5583_v55  ;;  %v2391_v46 = vpop.f32.mrf.mxu1 }
 0x268   : > { %7636 = vst [vmem:[#allocation44_spill] sm:$0xff] %v6036_v11 }
 0x269   : > { %v6039_v21 = vadd.f32 %v2391_v46, %v2279_v14 }
 0x26b   : > { %7637 = vst [vmem:[#allocation45_spill] sm:$0xff] %v6039_v21  ;;  %v2052_v30 = vpop.f32.mrf.mxu2 }
 0x26c   : > { %v2053_v32 = vadd.f32 %v2052_v30, %v5586_v56  ;;  %v2165_v23 = vpop.f32.mrf.mxu3 }
 0x26d   : > { %v6051_v38 = vpop.xlane.xlu2 %2509 }
 0x26e   : > { %v6042_v1 = vadd.f32 %v2165_v23, %v2053_v32  ;;  %v2281_v7 = vpop.f32.mrf.mxu0  ;;  %7639 = vst [vmem:[#allocation47_spill] sm:$0xff] %v6051_v38 }
 0x26f   : > { %v2282_v47 = vadd.f32 %v2281_v7, %v5583_v55  ;;  %v2394_v52 = vpop.f32.mrf.mxu1 }
 0x270   : > { %7638 = vst [vmem:[#allocation46_spill] sm:$0xff] %v6042_v1 }
 0x271   : > { %v6045_v43 = vadd.f32 %v2394_v52, %v2282_v47 }
 0x273   : > { %v2055_v12 = vpop.f32.mrf.mxu2 }
 0x274   : > { %v2056_v33 = vadd.f32 %v2055_v12, %v5586_v56  ;;  %v2168_v49 = vpop.f32.mrf.mxu3 }
 0x276   : > { %v6048_v34 = vadd.f32 %v2168_v49, %v2056_v33  ;;  %v2284_v22 = vpop.f32.mrf.mxu0 }
 0x277   : > { %v2397_v51 = vpop.f32.mrf.mxu1  ;;  %v2285_v36 = vadd.f32 %v2284_v22, %v5583_v55  ;;  %v2513_v6 = vpop.xlane.xlu1 %2512 }
 0x278   : > { %v6056_v41 = vmul.f32 %v2513_v6, %v4565_v35 }
 0x279   : > { %v6053_v4 = vadd.f32 %v2397_v51, %v2285_v36 }
 0x27a   : > { %v6060_v5 = vmul.f32 %v6056_v41, %v6056_v41 }
 0x27b   : > { %v2705_v44 = vpop.xlane.xlu0 %2704  ;;  %v2058_v18 = vpop.f32.mrf.mxu2 }
 0x27c   : > { %v6063_v37 = vmul.f32 %v2705_v44, %v4565_v35  ;;  %v2059_v31 = vadd.f32 %v2058_v18, %v5586_v56  ;;  %v2171_v48 = vpop.f32.mrf.mxu3 }
 0x27e   : > { %v6068_v2 = vadd.f32 %v2171_v48, %v2059_v31  ;;  %v2287_v42 = vpop.f32.mrf.mxu0 }
 0x27f   : > { %v2288_v62 = vadd.f32 %v2287_v42, %v5583_v55  ;;  %v2400_v0 = vpop.f32.mrf.mxu1 }
 0x281   : > { %v2708_v61 = vpop.xlane.xlu2 %2707  ;;  %v6071_v17 = vadd.f32 %v2400_v0, %v2288_v62 }
 0x282   : > { %v2790_v32 = vmul.f32 %v2708_v61, %v4565_v35 }
 0x283   : > { %v2516_v14 = vpop.xlane.xlu0 %2515  ;;  %v2061_v30 = vpop.f32.mrf.mxu2 }
 0x284   : > { %v6074_v46 = vmul.f32 %v2516_v14, %v4565_v35  ;;  %v2062_v7 = vadd.f32 %v2061_v30, %v5586_v56  ;;  %v2174_v47 = vpop.f32.mrf.mxu3 }
 0x286   : > { %v2822_v23 = vmul.f32 %v6074_v46, %v6074_v46  ;;  %v6080_v12 = vadd.f32 %v2174_v47, %v2062_v7 }
 0x287   : > { %v2290_v33 = vpop.f32.mrf.mxu0 }
 0x288   : > { %v2854_v52 = vsub.f32 %v2790_v32, %v2822_v23  ;;  %v2291_v51 = vadd.f32 %v2290_v33, %v5583_v55  ;;  %v2403_v36 = vpop.f32.mrf.mxu1 }
 0x289   : > { %v2711_v49 = vpop.xlane.xlu1 %2710  ;;  %v2519_v6 = vpop.xlane.xlu2 %2518 }
 0x28a   : > { %v2886_v22 = vmax.f32 %v2854_v52, 0.0  ;;  %v6084_v44 = vmul.f32 %v2519_v6, %v4565_v35  ;;  %v2791_v31 = vmul.f32 %v2711_v49, %v4565_v35  ;;  %v2404_v42 = vadd.f32 %v2403_v36, %v2291_v51 }
 0x28c   : > { %v2982_v18 = vadd.f32 1e-05, %v2886_v22  ;;  %v2823_v48 = vmul.f32 %v6084_v44, %v6084_v44  ;;  %v2177_v14 = vpop.f32.mrf.mxu3  ;;  %v6090_v23 = vmax.f32 %v2404_v42, 0.0 }
 0x28d   : > { %v2064_v0 = vpop.f32.mrf.mxu2 }
 0x28e   : > { %3936 = vrsqrt.f32 %v2982_v18  ;;  %v2855_v62 = vsub.f32 %v2791_v31, %v2823_v48  ;;  %v2065_v61 = vadd.f32 %v2064_v0, %v5586_v56  ;;  %7640 = vst [vmem:[#allocation48_spill] sm:$0xff] %v6090_v23  ;;  %v2671_v31 = vmul.f32 %v6090_v23, %v6090_v23 }
 0x28f   : > { %vm3074_vm10 = vweird.f32 %v2982_v18 }
 0x290   : > { %v2887_v30 = vmax.f32 %v2855_v62, 0.0  ;;  %v2293_v32 = vpop.f32.mrf.mxu0  ;;  %v2178_v7 = vadd.f32 %v2177_v14, %v2065_v61 }
 0x291   : > { %v2406_v47 = vpop.f32.mrf.mxu1  ;;  %v2294_v33 = vadd.f32 %v2293_v32, %v5583_v55  ;;  %v6104_v62 = vpop.xlane.xlu0 %2713 }
 0x292   : > { %v6092_v52 = vadd.f32 1e-05, %v2887_v30  ;;  %v6095_v22 = vmax.f32 %v2178_v7, 0.0 }
 0x293   : > { %v2407_v42 = vadd.f32 %v2406_v47, %v2294_v33 }
 0x294   : > { %v3937_v49 = vpop.eup %3936  ;;  %7641 = vst [vmem:[#allocation49_spill] sm:$0xff] %v6095_v22  ;;  %3938 = vrsqrt.f32 %v6092_v52  ;;  %v2565_v51 = vadd.f32 %v6090_v23, %v6095_v22  ;;  %v2670_v36 = vmul.f32 %v6095_v22, %v6095_v22  ;;  %vm3084_vm13 = vweird.f32 %v6092_v52 }
 0x295   : > { %v3069_v6 = vmul.f32 %v3937_v49, %v2982_v18  ;;  %vm3075_vm9 = vweird.f32 %v3937_v49  ;;  %v6107_v25 = vmax.f32 %v2407_v42, 0.0 }
 0x296   : > { %v2067_v0 = vpop.f32.mrf.mxu2  ;;  %2566 = vadd.xlane.f32.xlu2 %v2565_v51  ;;  %v2757_v30 = vadd.f32 %v2671_v31, %v2670_v36  ;;  %v2924_v31 = vsub.f32 %v5703_v15, %v6074_v46  ;;  %vm3076_vm11 = vmor %vm3074_vm10, %vm3075_vm9 }
 0x297   : > { %v3070_v48 = vmul.f32 %v3937_v49, %v3069_v6  ;;  %v2068_v61 = vadd.f32 %v2067_v0, %v5586_v56  ;;  %v2180_v14 = vpop.f32.mrf.mxu3  ;;  %7642 = vst [vmem:[#allocation50_spill] sm:$0xff] %v6107_v25  ;;  %v6109_v6 = vpop.xlane.xlu1 %2521 }
 0x298   : > { %v2296_v7 = vpop.f32.mrf.mxu0  ;;  %2758 = vadd.xlane.f32.xlu1 %v2757_v30 }
 0x299   : > { %v3071_v32 = vmul.f32 0.5, %v3070_v48  ;;  %v2181_v63 = vadd.f32 %v2180_v14, %v2068_v61  ;;  %v2409_v38 = vpop.f32.mrf.mxu1  ;;  %v2297_v47 = vadd.f32 %v2296_v7, %v5583_v55  ;;  %v6112_v33 = vpop.xlane.xlu2 %2716  ;;  %v2925_v48 = vsub.f32 %v5701_v8, %v6074_v46 }
 0x29a   : > { %v3939_v10 = vpop.eup %3938  ;;  %v6130_v8 = vpop.xlane.xlu0 %2524 }
 0x29b   : > { %v3072_v22 = vsub.f32 1.5, %v3071_v32  ;;  %v3079_v0 = vmul.f32 %v3939_v10, %v6092_v52  ;;  %v6115_v51 = vmax.f32 %v2181_v63, 0.0  ;;  %v2410_v14 = vadd.f32 %v2409_v38, %v2297_v47 }
 0x29c   : > { %v2673_v63 = vmul.f32 %v6107_v25, %v6107_v25  ;;  %vm3085_vm12 = vweird.f32 %v3939_v10 }
 0x29d   : > { %7643 = vst [vmem:[#allocation51_spill] sm:$0xff] %v6115_v51  ;;  %v3073_v36 = vmul.f32 %v3937_v49, %v3072_v22  ;;  %v3080_v42 = vmul.f32 %v3939_v10, %v3079_v0  ;;  %v2672_v32 = vmul.f32 %v6115_v51, %v6115_v51  ;;  %v2568_v38 = vadd.f32 %v6107_v25, %v6115_v51  ;;  %vm3086_vm14 = vmor %vm3084_vm13, %vm3085_vm12 }
 0x29e   : > { %v2070_v30 = vpop.f32.mrf.mxu2 }
 0x29f   : > { %v3077_v61 = vsel %vm3076_vm11, %v3937_v49, %v3073_v36  ;;  %v3081_v22 = vmul.f32 0.5, %v3080_v42  ;;  %v2071_v15 = vadd.f32 %v2070_v30, %v5586_v56  ;;  %v2183_v23 = vpop.f32.mrf.mxu3  ;;  %v2760_v49 = vadd.f32 %v2673_v63, %v2672_v32 }
 0x2a0   : > { %v6125_v7 = vmul.f32 %v3077_v61, %v2924_v31  ;;  %v6127_v18 = vmul.f32 %v3077_v61, %v2925_v48  ;;  %v2299_v46 = vpop.f32.mrf.mxu0  ;;  %2569 = vadd.xlane.f32.xlu1 %v2568_v38  ;;  %v6138_v61 = vmax.f32 %v2410_v14, 0.0  ;;  %v2926_v32 = vsub.f32 %v5754_v53, %v6084_v44 }
 0x2a1   : > { %v3082_v47 = vsub.f32 1.5, %v3081_v22  ;;  %v2184_v0 = vadd.f32 %v2183_v23, %v2071_v15  ;;  %v2412_v36 = vpop.f32.mrf.mxu1  ;;  %v2300_v31 = vadd.f32 %v2299_v46, %v5583_v55  ;;  %2761 = vadd.xlane.f32.xlu0 %v2760_v49  ;;  %v6135_v48 = vpop.xlane.xlu1 %2719  ;;  %v2927_v23 = vsub.f32 %v5746_v39, %v6084_v44 }
 0x2a2   : > { %7644 = vst [vmem:[#allocation52_spill] sm:$0xff] %v6125_v7  ;;  %v6146_v63 = vpop.xlane.xlu2 %2527  ;;  %v2675_v53 = vmul.f32 %v6138_v61, %v6138_v61 }
 0x2a3   : > { %7645 = vst [vmem:[#allocation53_spill] sm:$0xff] %v6127_v18  ;;  %v3083_v42 = vmul.f32 %v3939_v10, %v3082_v47  ;;  %v6140_v30 = vmax.f32 %v2184_v0, 0.0  ;;  %v2413_v49 = vadd.f32 %v2412_v36, %v2300_v31 }
 0x2a4   : > { %7646 = vst [vmem:[#allocation54_spill] sm:$0xff] %v6138_v61 }
 0x2a5   : > { %7647 = vst [vmem:[#allocation55_spill] sm:$0xff] %v6140_v30  ;;  %v3087_v22 = vsel %vm3086_vm14, %v3939_v10, %v3083_v42  ;;  %v2674_v47 = vmul.f32 %v6140_v30, %v6140_v30  ;;  %v2571_v44 = vadd.f32 %v6138_v61, %v6140_v30  ;;  %v7653_v61 = vld [vmem:[#allocation16_spill] sm:$0xff] }
 0x2a6   : > { %v6148_v15 = vmul.f32 %v3087_v22, %v2926_v32  ;;  %v6150_v46 = vmul.f32 %v3087_v22, %v2927_v23  ;;  %v2073_v52 = vpop.f32.mrf.mxu2  ;;  %v6162_v32 = vmax.f32 %v2413_v49, 0.0  ;;  %v7651_v23 = vld [vmem:[#allocation12_spill] sm:$0xff]  ;;  %v2228_v30 = vadd.f32 %v7653_v61, %v5583_v55 }
 0x2a7   : > { %v2074_v14 = vadd.f32 %v2073_v52, %v5586_v56  ;;  %v2186_v38 = vpop.f32.mrf.mxu3  ;;  %v2763_v31 = vadd.f32 %v2675_v53, %v2674_v47  ;;  %v2225_v22 = vadd.f32 %v7651_v23, %v5583_v55  ;;  %v7655_v53 = vld [vmem:[#allocation20_spill] sm:$0xff] }
 0x2a8   : > { %7648 = vst [vmem:[#allocation56_spill] sm:$0xff] %v6148_v15  ;;  %v2302_v39 = vpop.f32.mrf.mxu0  ;;  %v2677_v47 = vmul.f32 %v6162_v32, %v6162_v32  ;;  %v7658_v15 = vld [vmem:[#allocation17_spill] sm:$0xff] }
 0x2a9   : > { %7649 = vst [vmem:[#allocation57_spill] sm:$0xff] %v6150_v46  ;;  %v6159_v10 = vpop.xlane.xlu0 %2722  ;;  %v2187_v0 = vadd.f32 %v2186_v38, %v2074_v14  ;;  %v2303_v42 = vadd.f32 %v2302_v39, %v5583_v55  ;;  %v2415_v36 = vpop.f32.mrf.mxu1  ;;  %2572 = vadd.xlane.f32.xlu0 %v2571_v44  ;;  %2764 = vadd.xlane.f32.xlu2 %v2763_v31  ;;  %v7654_v14 = vld [vmem:[#allocation18_spill] sm:$0xff] }
 0x2aa   : > { %7650 = vst [vmem:[#allocation58_spill] sm:$0xff] %v6162_v32  ;;  %v2531_v25 = vpop.xlane.xlu1 %2530  ;;  %v2002_v38 = vadd.f32 %v7654_v14, %v5586_v56  ;;  %v2231_v44 = vadd.f32 %v7655_v53, %v5583_v55  ;;  %v2341_v27 = vadd.f32 %v7658_v15, %v2228_v30  ;;  %v7660_v53 = vsub.f32 %v6063_v37, %v6060_v5  ;;  %v7665_v15 = vld [vmem:[#allocation23_spill] sm:$0xff] }
 0x2ab   : > { %v6166_v52 = vmax.f32 %v2187_v0, 0.0  ;;  %v2416_v18 = vadd.f32 %v2415_v36, %v2303_v42  ;;  %v7656_v42 = vld [vmem:[#allocation13_spill] sm:$0xff]  ;;  %v2005_v5 = vadd.f32 %v7665_v15, %v5586_v56 }
 0x2ac   : > { %v2338_v36 = vadd.f32 %v7656_v42, %v2225_v22  ;;  %v2115_v54 = vadd.f32 %v7659_v20, %v2002_v38  ;;  %v6208_v42 = vmax.f32 %v2341_v27, 0.0  ;;  %v6223_v27 = vmul.f32 %v6109_v6, %v4565_v35 }
 0x2ad   : > { %7652 = vst [vmem:[#allocation12_spill] sm:$0xff] %v6166_v52  ;;  %v2676_v49 = vmul.f32 %v6166_v52, %v6166_v52  ;;  %v6180_v7 = vmax.f32 %v2416_v18, 0.0  ;;  %v2574_v40 = vadd.f32 %v6162_v32, %v6166_v52 }
 0x2ae   : > { %v2076_v39 = vpop.f32.mrf.mxu2  ;;  %7666 = vst [vmem:[#allocation13_spill] sm:$0xff] %v6208_v42 }
 0x2af   : > { %v2077_v0 = vadd.f32 %v2076_v39, %v5586_v56  ;;  %v2189_v31 = vpop.f32.mrf.mxu3  ;;  %v2766_v61 = vadd.f32 %v2677_v47, %v2676_v49  ;;  %7657 = vst [vmem:[#allocation16_spill] sm:$0xff] %v6180_v7  ;;  %v2885_v39 = vmax.f32 %v7660_v53, 0.0  ;;  %v7661_v49 = vld [vmem:[#allocation21_spill] sm:$0xff] }
 0x2b0   : > { %v2305_v23 = vpop.f32.mrf.mxu0  ;;  %v2344_v18 = vadd.f32 %v7661_v49, %v2231_v44  ;;  %v2679_v44 = vmul.f32 %v6180_v7, %v6180_v7 }
 0x2b1   : > { %v2726_v51 = vpop.xlane.xlu2 %2725  ;;  %v2190_v14 = vadd.f32 %v2189_v31, %v2077_v0  ;;  %v2418_v46 = vpop.f32.mrf.mxu1  ;;  %v2306_v21 = vadd.f32 %v2305_v23, %v5583_v55  ;;  %2767 = vadd.xlane.f32.xlu1 %v2766_v61  ;;  %2575 = vadd.xlane.f32.xlu2 %v2574_v40  ;;  %v6193_v0 = vmax.f32 %v2338_v36, 0.0  ;;  %v7664_v31 = vld [vmem:[#allocation14_spill] sm:$0xff]  ;;  %v6210_v36 = vmax.f32 %v2115_v54, 0.0 }
 0x2b2   : > { %v2534_v22 = vpop.xlane.xlu0 %2533  ;;  %v6197_v30 = vadd.f32 %v7664_v31, %v5586_v56  ;;  %v6212_v23 = vadd.f32 1e-05, %v2885_v39  ;;  %v6214_v53 = vmax.f32 %v2344_v18, 0.0  ;;  %7670 = vst [vmem:[#allocation14_spill] sm:$0xff] %v6223_v27  ;;  %v6226_v54 = vmul.f32 %v2531_v25, %v4565_v35 }
 0x2b3   : > { %v6191_v47 = vmax.f32 %v2190_v14, 0.0  ;;  %7663 = vst [vmem:[#allocation20_spill] sm:$0xff] %v6193_v0  ;;  %v6202_v37 = vmul.f32 %v2534_v22, %v4565_v35  ;;  %v2419_v61 = vadd.f32 %v2418_v46, %v2306_v21  ;;  %v6218_v22 = vmul.f32 %v6130_v8, %v4565_v35  ;;  %v7672_v8 = vld [vmem:[#allocation24_spill] sm:$0xff] }
 0x2b4   : > { %7667 = vst [vmem:[#allocation17_spill] sm:$0xff] %v6210_v36  ;;  %v2118_v18 = vadd.f32 %v7672_v8, %v2005_v5  ;;  %3940 = vrsqrt.f32 %v6212_v23  ;;  %v2792_v5 = vmul.f32 %v6104_v62, %v4565_v35  ;;  %vm3064_vm1 = vweird.f32 %v6212_v23 }
 0x2b5   : > { %7662 = vst [vmem:[#allocation18_spill] sm:$0xff] %v6191_v47  ;;  %v2678_v38 = vmul.f32 %v6191_v47, %v6191_v47  ;;  %v2577_v21 = vadd.f32 %v6180_v7, %v6191_v47  ;;  %v6238_v25 = vmax.f32 %v2419_v61, 0.0  ;;  %v2824_v61 = vmul.f32 %v6223_v27, %v6223_v27 }
 0x2b6   : > { %v2079_v14 = vpop.f32.mrf.mxu2  ;;  %7668 = vst [vmem:[#allocation19_spill] sm:$0xff] %v6214_v53  ;;  %v2793_v47 = vmul.f32 %v6112_v33, %v4565_v35 }
 0x2b7   : > { %7669 = vst [vmem:[#allocation21_spill] sm:$0xff] %v6218_v22  ;;  %v2080_v49 = vadd.f32 %v2079_v14, %v5586_v56  ;;  %v2192_v31 = vpop.f32.mrf.mxu3  ;;  %v2769_v15 = vadd.f32 %v2679_v44, %v2678_v38  ;;  %v2828_v14 = vmul.f32 %v6202_v37, %v6202_v37 }
 0x2b8   : > { %7671 = vst [vmem:[#allocation23_spill] sm:$0xff] %v6226_v54  ;;  %v2308_v39 = vpop.f32.mrf.mxu0 }
 0x2b9   : > { %v2729_v20 = vpop.xlane.xlu1 %2728  ;;  %v2537_v40 = vpop.xlane.xlu2 %2536  ;;  %v2193_v38 = vadd.f32 %v2192_v31, %v2080_v49  ;;  %v2309_v44 = vadd.f32 %v2308_v39, %v5583_v55  ;;  %2770 = vadd.xlane.f32.xlu0 %v2769_v15  ;;  %7673 = vst [vmem:[#allocation24_spill] sm:$0xff] %v6238_v25  ;;  %2578 = vadd.xlane.f32.xlu1 %v2577_v21 }
 0x2ba   : > { %v6231_v46 = vmul.f32 %v2537_v40, %v4565_v35  ;;  %v2421_v6 = vpop.f32.mrf.mxu1  ;;  %v2797_v7 = vmul.f32 %v2729_v20, %v4565_v35  ;;  %v2825_v49 = vmul.f32 %v6218_v22, %v6218_v22  ;;  %v2796_v31 = vmul.f32 %v2726_v51, %v4565_v35 }
 0x2bb   : > { %v6248_v39 = vmax.f32 %v2193_v38, 0.0  ;;  %v6254_v20 = vmul.f32 %v6146_v63, %v4565_v35  ;;  %v2827_v21 = vmul.f32 %v6226_v54, %v6226_v54  ;;  %v2795_v51 = vmul.f32 %v6159_v10, %v4565_v35 }
 0x2bc   : > { %v2829_v40 = vmul.f32 %v6231_v46, %v6231_v46  ;;  %v2860_v38 = vsub.f32 %v2796_v31, %v2828_v14  ;;  %v2422_v32 = vadd.f32 %v2421_v6, %v2309_v44  ;;  %v2681_v63 = vmul.f32 %v6238_v25, %v6238_v25  ;;  %v6274_v14 = vpop.eup %3940 }
 0x2bd   : > { %7674 = vst [vmem:[#allocation59_spill] sm:$0xff] %v6248_v39  ;;  %v2680_v28 = vmul.f32 %v6248_v39, %v6248_v39  ;;  %v2580_v10 = vadd.f32 %v6238_v25, %v6248_v39  ;;  %v2856_v44 = vsub.f32 %v2792_v5, %v2824_v61  ;;  %v2826_v6 = vmul.f32 %v6254_v20, %v6254_v20 }
 0x2be   : > { %7675 = vst [vmem:[#allocation60_spill] sm:$0xff] %v6254_v20  ;;  %v2861_v8 = vsub.f32 %v2797_v7, %v2829_v40  ;;  %v2082_v11 = vpop.f32.mrf.mxu2  ;;  %v6269_v7 = vmax.f32 %v2118_v18, 0.0  ;;  %v2857_v40 = vsub.f32 %v2793_v47, %v2825_v49  ;;  %v2859_v31 = vsub.f32 %v2795_v51, %v2827_v21  ;;  %v7679_v51 = vld [vmem:[#allocation27_spill] sm:$0xff] }
 0x2bf   : > { %v2540_v15 = vpop.xlane.xlu0 %2539  ;;  %v2083_v33 = vadd.f32 %v2082_v11, %v5586_v56  ;;  %v2195_v1 = vpop.f32.mrf.mxu3  ;;  %v2772_v16 = vadd.f32 %v2681_v63, %v2680_v28  ;;  %v6278_v29 = vmax.f32 %v2422_v32, 0.0  ;;  %v2794_v47 = vmul.f32 %v6135_v48, %v4565_v35 }
 0x2c0   : > { %v2893_v52 = vmax.f32 %v2861_v8, 0.0  ;;  %v6267_v27 = vmul.f32 %v2540_v15, %v4565_v35  ;;  %7676 = vst [vmem:[#allocation61_spill] sm:$0xff] %v6269_v7  ;;  %v2311_v8 = vpop.f32.mrf.mxu0  ;;  %v2892_v15 = vmax.f32 %v2860_v38, 0.0  ;;  %v3059_v28 = vmul.f32 %v6274_v14, %v6212_v23 }
 0x2c1   : > { %v2732_v62 = vpop.xlane.xlu1 %2731  ;;  %7677 = vst [vmem:[#allocation62_spill] sm:$0xff] %v6278_v29  ;;  %v2196_v18 = vadd.f32 %v2195_v1, %v2083_v33  ;;  %2581 = vadd.xlane.f32.xlu0 %v2580_v10  ;;  %v2312_v5 = vadd.f32 %v2311_v8, %v5583_v55  ;;  %2773 = vadd.xlane.f32.xlu2 %v2772_v16  ;;  %v2889_v32 = vmax.f32 %v2857_v40, 0.0  ;;  %v2888_v38 = vmax.f32 %v2856_v44, 0.0  ;;  %v7680_v33 = vld [vmem:[#allocation28_spill] sm:$0xff] }
 0x2c2   : > { %v2798_v11 = vmul.f32 %v2732_v62, %v4565_v35  ;;  %v6283_v49 = vadd.f32 1e-05, %v2893_v52  ;;  %v2830_v61 = vmul.f32 %v6267_v27, %v6267_v27  ;;  %v2424_v1 = vpop.f32.mrf.mxu1  ;;  %v2632_v62 = vmul.f32 %v7679_v51, %v7679_v51 }
 0x2c3   : > { %v6290_v21 = vmax.f32 %v2196_v18, 0.0  ;;  %v2858_v48 = vsub.f32 %v2794_v47, %v2826_v6  ;;  %v2633_v16 = vmul.f32 %v7680_v33, %v7680_v33  ;;  %v2891_v10 = vmax.f32 %v2859_v31, 0.0 }
 0x2c4   : > { %v2862_v52 = vsub.f32 %v2798_v11, %v2830_v61  ;;  %v6296_v8 = vadd.f32 1e-05, %v2892_v15  ;;  %v2683_v40 = vmul.f32 %v6278_v29, %v6278_v29  ;;  %3942 = vrsqrt.f32 %v6283_v49 }
 0x2c5   : > { %7678 = vst [vmem:[#allocation63_spill] sm:$0xff] %v6290_v21  ;;  %v2682_v25 = vmul.f32 %v6290_v21, %v6290_v21  ;;  %v2425_v18 = vadd.f32 %v2424_v1, %v2312_v5  ;;  %v3060_v47 = vmul.f32 %v6274_v14, %v3059_v28  ;;  %v6307_v31 = vadd.f32 1e-05, %v2889_v32 }
 0x2c6   : > { %v2894_v51 = vmax.f32 %v2862_v52, 0.0  ;;  %v2085_v44 = vpop.f32.mrf.mxu2  ;;  %v2890_v39 = vmax.f32 %v2858_v48, 0.0  ;;  %v2583_v5 = vadd.f32 %v6278_v29, %v6290_v21  ;;  %v6316_v52 = vadd.f32 1e-05, %v2888_v38  ;;  %v7684_v48 = vld [vmem:[#allocation15_spill] sm:$0xff] }
 0x2c7   : > { %7681 = vst [vmem:[#allocation64_spill] sm:$0xff] %v6307_v31  ;;  %v2086_v15 = vadd.f32 %v2085_v44, %v5586_v56  ;;  %v2198_v61 = vpop.f32.mrf.mxu3  ;;  %v2775_v33 = vadd.f32 %v2683_v40, %v2682_v25  ;;  %3944 = vrsqrt.f32 %v6296_v8  ;;  %v6322_v25 = vmax.f32 %v2425_v18, 0.0 }
 0x2c8   : > { %v6310_v22 = vadd.f32 1e-05, %v2894_v51  ;;  %v2314_v57 = vpop.f32.mrf.mxu0  ;;  %7682 = vst [vmem:[#allocation65_spill] sm:$0xff] %v6316_v52  ;;  %v6328_v40 = vadd.f32 %v7684_v48, %v6197_v30  ;;  %v6339_v18 = vadd.f32 1e-05, %v2890_v39  ;;  %v3061_v30 = vmul.f32 0.5, %v3060_v47 }
 0x2c9   : > { %v2543_v63 = vpop.xlane.xlu1 %2542  ;;  %v2735_v6 = vpop.xlane.xlu2 %2734  ;;  %2776 = vadd.xlane.f32.xlu1 %v2775_v33  ;;  %7683 = vst [vmem:[#allocation66_spill] sm:$0xff] %v6322_v25  ;;  %v2199_v32 = vadd.f32 %v2198_v61, %v2086_v15  ;;  %v2315_v51 = vadd.f32 %v2314_v57, %v5583_v55  ;;  %2584 = vadd.xlane.f32.xlu2 %v2583_v5  ;;  %vm3065_vm15 = vweird.f32 %v6274_v14  ;;  %vm3134_vm9 = vweird.f32 %v6296_v8 }
 0x2ca   : > { %v6304_v11 = vmul.f32 %v2543_v63, %v4565_v35  ;;  %v6318_v63 = vadd.f32 1e-05, %v2891_v10  ;;  %v2799_v28 = vmul.f32 %v2735_v6, %v4565_v35  ;;  %3946 = vrsqrt.f32 %v6310_v22  ;;  %v6336_v44 = vpop.eup %3942  ;;  %vm3066_vm13 = vmor %vm3064_vm1, %vm3065_vm15 }
 0x2cb   : > { %v6330_v10 = vadd.f32 %v2633_v16, %v2632_v62  ;;  %v6334_v33 = vadd.f32 %v6208_v42, %v6210_v36  ;;  %3948 = vrsqrt.f32 %v6307_v31  ;;  %v6341_v6 = vmax.f32 %v2199_v32, 0.0  ;;  %v2427_v62 = vpop.f32.mrf.mxu1 }
 0x2cc   : > { %v2831_v1 = vmul.f32 %v6304_v11, %v6304_v11  ;;  %v2630_v57 = vmul.f32 %v6269_v7, %v6269_v7  ;;  %3950 = vrsqrt.f32 %v6316_v52  ;;  %v2631_v15 = vmul.f32 %v6214_v53, %v6214_v53 }
 0x2cd   : > { %7685 = vst [vmem:[#allocation15_spill] sm:$0xff] %v6341_v6  ;;  %3952 = vrsqrt.f32 %v6318_v63  ;;  %v2428_v61 = vadd.f32 %v2427_v62, %v2315_v51  ;;  %v2684_v39 = vmul.f32 %v6341_v6, %v6341_v6  ;;  %v3139_v47 = vmul.f32 %v6336_v44, %v6283_v49 }
 0x2ce   : > { %v2863_v38 = vsub.f32 %v2799_v28, %v2831_v1  ;;  %v2088_v5 = vpop.f32.mrf.mxu2  ;;  %v2685_v1 = vmul.f32 %v6322_v25, %v6322_v25  ;;  %v6353_v28 = vpop.eup %3944  ;;  %3954 = vrsqrt.f32 %v6339_v18  ;;  %v6365_v29 = vadd.f32 %v2631_v15, %v2630_v57  ;;  %v7689_v15 = vld [vmem:[#allocation30_spill] sm:$0xff] }
 0x2cf   : > { %v2089_v48 = vadd.f32 %v2088_v5, %v5586_v56  ;;  %v6369_v21 = vadd.f32 %v6214_v53, %v6269_v7  ;;  %v6372_v35 = vmax.f32 %v6045_v43, 0.0  ;;  %v6383_v57 = vmax.f32 %v6053_v4, 0.0 }
 0x2d0   : > { %v2895_v16 = vmax.f32 %v2863_v38, 0.0  ;;  %v2586_v38 = vadd.f32 %v6322_v25, %v6341_v6  ;;  %v6362_v51 = vpop.eup %3946  ;;  %v2778_v62 = vadd.f32 %v2685_v1, %v2684_v39  ;;  %v2201_v25 = vpop.f32.mrf.mxu3  ;;  %v6387_v43 = vmax.f32 %v2428_v61, 0.0  ;;  %v7691_v61 = vld [vmem:[#allocation31_spill] sm:$0xff] }
 0x2d1   : > { %7686 = vst [vmem:[#allocation67_spill] sm:$0xff] %v6372_v35  ;;  %v3149_v5 = vmul.f32 %v6362_v51, %v6310_v22  ;;  %v6380_v39 = vpop.eup %3948  ;;  %v2202_v6 = vadd.f32 %v2201_v25, %v2089_v48  ;;  %v3062_v7 = vsub.f32 1.5, %v3061_v30  ;;  %v3140_v4 = vmul.f32 %v6336_v44, %v3139_v47 }
 0x2d2   : > { %v6357_v32 = vadd.f32 1e-05, %v2895_v16  ;;  %v6375_v16 = vmax.f32 %v6048_v34, 0.0  ;;  %2587 = vadd.xlane.f32.xlu1 %v2586_v38  ;;  %7688 = vst [vmem:[#allocation69_spill] sm:$0xff] %v6383_v57  ;;  %v2494_v34 = vld [vmem:[%s7390_s7] sm:$0x3]  ;;  %2779 = vadd.xlane.f32.xlu0 %v2778_v62  ;;  %v6392_v53 = vpop.eup %3950  ;;  %v3129_v38 = vmul.f32 %v6353_v28, %v6296_v8  ;;  %v3099_v47 = vmul.f32 %v6380_v39, %v6307_v31 }
 0x2d3   : > { %7690 = vst [vmem:[#allocation30_spill] sm:$0xff] %v6387_v43  ;;  %v3150_v55 = vmul.f32 %v6362_v51, %v3149_v5  ;;  %v6398_v42 = vpop.eup %3952  ;;  %v6403_v36 = vmax.f32 %v6068_v2, 0.0  ;;  %v6406_v25 = vmax.f32 %v6071_v17, 0.0  ;;  %v6408_v48 = vmax.f32 %v2202_v6, 0.0 }
 0x2d4   : > { %7687 = vst [vmem:[#allocation68_spill] sm:$0xff] %v6375_v16  ;;  %3956 = vrsqrt.f32 %v6357_v32  ;;  %v6411_v30 = vmax.f32 %v6080_v12, 0.0  ;;  %v6415_v5 = vperm.slane %v2494_v34, 0  ;;  %v6417_v0 = vpop.eup %3954  ;;  %v6419_v1 = vperm.slane %v2494_v34, 1 }
 0x2d5   : > { %7692 = vst [vmem:[#allocation31_spill] sm:$0xff] %v6403_v36  ;;  %v3151_v62 = vmul.f32 0.5, %v3150_v55  ;;  %v2686_v2 = vmul.f32 %v6408_v48, %v6408_v48  ;;  %v2687_v17 = vmul.f32 %v6387_v43, %v6387_v43  ;;  %v6427_v12 = vmul.f32 %v6372_v35, %v6372_v35 }
 0x2d6   : > { %7693 = vst [vmem:[#allocation70_spill] sm:$0xff] %v6408_v48  ;;  %v6430_v31 = vmul.f32 %v6274_v14, %v3062_v7  ;;  %v3119_v55 = vmul.f32 %v6398_v42, %v6318_v63  ;;  %v3130_v34 = vmul.f32 %v6353_v28, %v3129_v38  ;;  %v3141_v56 = vmul.f32 0.5, %v3140_v4 }
 0x2d7   : > { %7694 = vst [vmem:[#allocation71_spill] sm:$0xff] %v6427_v12  ;;  %v3152_v26 = vsub.f32 1.5, %v3151_v62  ;;  %v2781_v20 = vadd.f32 %v2687_v17, %v2686_v2  ;;  %v2589_v3 = vadd.f32 %v6387_v43, %v6408_v48  ;;  %v3089_v12 = vmul.f32 %v6392_v53, %v6316_v52 }
 0x2d8   : > { %v3100_v54 = vmul.f32 %v6380_v39, %v3099_v47  ;;  %v2559_v7 = vadd.f32 %v6383_v57, %v6403_v36  ;;  %v2668_v38 = vmul.f32 %v6411_v30, %v6411_v30  ;;  %v3109_v4 = vmul.f32 %v6417_v0, %v6339_v18 }
 0x2d9   : > { %2782 = vadd.xlane.f32.xlu2 %v2781_v20  ;;  %v2669_v2 = vmul.f32 %v6406_v25, %v6406_v25  ;;  %v3120_v47 = vmul.f32 %v6398_v42, %v3119_v55  ;;  %v6454_v17 = vmul.f32 %v6375_v16, %v6375_v16  ;;  %v6458_v43 = vadd.f32 %v6372_v35, %v6375_v16  ;;  %v2495_v20 = vld [vmem:[%s7391_s8] sm:$0x3] }
 0x2da   : > { %v3957_v6 = vpop.eup %3956  ;;  %2701 = vadd.xlane.f32.xlu1 %v6330_v10  ;;  %2590 = vadd.xlane.f32.xlu0 %v2589_v3  ;;  %v3131_v10 = vmul.f32 0.5, %v3130_v34  ;;  %v3142_v48 = vsub.f32 1.5, %v3141_v56  ;;  %vm3155_vm2 = vweird.f32 %v6362_v51  ;;  %v3090_v55 = vmul.f32 %v6392_v53, %v3089_v12 }
 0x2db   : > { %v3159_v19 = vmul.f32 %v3957_v6, %v6357_v32  ;;  %7695 = vst [vmem:[#allocation72_spill] sm:$0xff] %v6458_v43  ;;  %v6467_v34 = vmul.f32 0.5, %v3100_v54  ;;  %v2754_v52 = vadd.f32 %v2669_v2, %v2668_v38  ;;  %v2562_v35 = vadd.f32 %v6406_v25, %v6411_v30 }
 0x2dc   : > { %v3110_v16 = vmul.f32 %v6417_v0, %v3109_v4  ;;  %vm3154_vm3 = vweird.f32 %v6310_v22  ;;  %vm3165_vm4 = vweird.f32 %v3957_v6  ;;  %vm3145_vm5 = vweird.f32 %v6336_v44 }
 0x2dd   : > { %v3160_v62 = vmul.f32 %v3957_v6, %v3159_v19  ;;  %v3153_v19 = vmul.f32 %v6362_v51, %v3152_v26  ;;  %v3121_v26 = vmul.f32 0.5, %v3120_v47  ;;  %vm3156_vm6 = vmor %vm3154_vm3, %vm3155_vm2  ;;  %v6474_v43 = vperm.slane %v2495_v20, 0 }
 0x2de   : > { %v3143_v54 = vmul.f32 %v6336_v44, %v3142_v48  ;;  %vm3164_vm7 = vweird.f32 %v6357_v32  ;;  %v2940_v4 = vsub.f32 %v5997_v24, %v6267_v27  ;;  %v2942_v22 = vsub.f32 %v6013_v9, %v6304_v11 }
 0x2df   : > { %v3161_v3 = vmul.f32 0.5, %v3160_v62  ;;  %v3132_v62 = vsub.f32 1.5, %v3131_v10  ;;  %v3157_v38 = vsel %vm3156_vm6, %v6362_v51, %v3153_v19  ;;  %v2943_v2 = vsub.f32 %v6008_v45, %v6304_v11  ;;  %vm3166_vm8 = vmor %vm3164_vm7, %vm3165_vm4 }
 0x2e0   : > { %v6485_v47 = vperm.slane %v2495_v20, 1  ;;  %v3111_v10 = vmul.f32 0.5, %v3110_v16  ;;  %vm3144_vm10 = vweird.f32 %v6283_v49  ;;  %v2941_v24 = vsub.f32 %v5992_v60, %v6267_v27 }
 0x2e1   : > { %v3162_v56 = vsub.f32 1.5, %v3161_v3  ;;  %2755 = vadd.xlane.f32.xlu2 %v2754_v52  ;;  %vm3146_vm11 = vmor %vm3144_vm10, %vm3145_vm5  ;;  %v3356_v11 = vmul.f32 %v3157_v38, %v2940_v4  ;;  %v3122_v51 = vsub.f32 1.5, %v3121_v26  ;;  %v3133_v48 = vmul.f32 %v6353_v28, %v3132_v62  ;;  %v7698_v62 = vld [vmem:[#allocation23_spill] sm:$0xff] }
 0x2e2   : > { %2560 = vadd.xlane.f32.xlu1 %v2559_v7  ;;  %2563 = vadd.xlane.f32.xlu0 %v2562_v35  ;;  %vm3135_vm12 = vweird.f32 %v6353_v28  ;;  %v3147_v16 = vsel %vm3146_vm11, %v6336_v44, %v3143_v54  ;;  %v2938_v35 = vsub.f32 %v5974_v13, %v6231_v46  ;;  %v3357_v49 = vmul.f32 %v3157_v38, %v2941_v24  ;;  %v7699_v54 = vld [vmem:[#allocation40_spill] sm:$0xff] }
 0x2e3   : > { %v3163_v12 = vmul.f32 %v3957_v6, %v3162_v56  ;;  %v3112_v52 = vsub.f32 1.5, %v3111_v10  ;;  %vm3125_vm14 = vweird.f32 %v6398_v42  ;;  %v3067_v44 = vsel %vm3066_vm13, %v6274_v14, %v6430_v31  ;;  %vm3136_vm15 = vmor %vm3134_vm9, %vm3135_vm12 }
 0x2e4   : > { %v3354_v23 = vmul.f32 %v3147_v16, %v2938_v35  ;;  %v3425_v19 = vmul.f32 %v6415_v5, %v3356_v11  ;;  %v3123_v3 = vmul.f32 %v6398_v42, %v3122_v51  ;;  %v3137_v20 = vsel %vm3136_vm15, %v6353_v28, %v3133_v48 }
 0x2e5   : > { %v3167_v32 = vsel %vm3166_vm8, %v3957_v6, %v3163_v12  ;;  %v2939_v6 = vsub.f32 %v5969_v50, %v6231_v46  ;;  %v7696_v50 = vsub.f32 %v7689_v15, %v6056_v41  ;;  %v7697_v14 = vsub.f32 %v7691_v61, %v6056_v41 }
 0x2e6   : > { %v3358_v9 = vmul.f32 %v3167_v32, %v2942_v22  ;;  %v3359_v45 = vmul.f32 %v3167_v32, %v2943_v2  ;;  %v6527_v31 = vmax.f32 %v6328_v40, 0.0  ;;  %v2936_v56 = vsub.f32 %v5946_v58, %v6202_v37  ;;  %v7700_v22 = vld [vmem:[#allocation60_spill] sm:$0xff]  ;;  %v7701_v2 = vld [vmem:[#allocation38_spill] sm:$0xff] }
 0x2e7   : > { %v6519_v46 = vmul.f32 %v3067_v44, %v7696_v50  ;;  %v6524_v8 = vmul.f32 %v3067_v44, %v7697_v14  ;;  %v3355_v26 = vmul.f32 %v3147_v16, %v2939_v6  ;;  %v3426_v28 = vmul.f32 %v6419_v1, %v3357_v49  ;;  %v7707_v6 = vld [vmem:[#allocation72_spill] sm:$0xff] }
 0x2e8   : > { %v3427_v60 = vmul.f32 %v6415_v5, %v3358_v9  ;;  %v3428_v27 = vmul.f32 %v6419_v1, %v3359_v45  ;;  %v3091_v15 = vmul.f32 0.5, %v3090_v55  ;;  %vm3124_vm1 = vweird.f32 %v6318_v63 }
 0x2e9   : > { %2698 = vadd.xlane.f32.xlu2 %v6365_v29  ;;  %v2666_v41 = vmul.f32 %v6403_v36, %v6403_v36  ;;  %v2667_v40 = vmul.f32 %v6383_v57, %v6383_v57  ;;  %vm3126_vm2 = vmor %vm3124_vm1, %vm3125_vm14  ;;  %v2937_v58 = vsub.f32 %v5938_v59, %v6202_v37  ;;  %v3494_v63 = vadd.f32 %v6474_v43, %v3425_v19 }
 0x2ea   : > { %v3496_v13 = vadd.f32 %v6474_v43, %v3427_v60  ;;  %v3497_v7 = vadd.f32 %v6485_v47, %v3428_v27  ;;  %2503 = vadd.xlane.f32.xlu1 %v6334_v33  ;;  %2506 = vadd.xlane.f32.xlu0 %v6369_v21  ;;  %v3352_v33 = vmul.f32 %v3137_v20, %v2936_v56  ;;  %v3102_v21 = vsub.f32 1.5, %v6467_v34  ;;  %v7702_v34 = vld [vmem:[#allocation71_spill] sm:$0xff]  ;;  %v7704_v60 = vld [vmem:[#allocation26_spill] sm:$0xff]  ;;  %v7710_v56 = vld [vmem:[#allocation17_spill] sm:$0xff] }
 0x2eb   : > { %v3423_v29 = vmul.f32 %v6415_v5, %v3354_v23  ;;  %v3113_v61 = vmul.f32 %v6417_v0, %v3112_v52  ;;  %vm3115_vm3 = vweird.f32 %v6417_v0  ;;  %v3127_v55 = vsel %vm3126_vm2, %v6398_v42, %v3123_v3  ;;  %v7703_v42 = vld [vmem:[#allocation39_spill] sm:$0xff]  ;;  %v7705_v27 = vld [vmem:[#allocation10_spill] sm:$0xff]  ;;  %v7706_v52 = vld [vmem:[#allocation64_spill] sm:$0xff] }
 0x2ec   : > { %3543 = vmatpush.xpose.msra.mxu2 %v3496_v13  ;;  %3563 = vmatpush.xpose.msra.mxu3 %v3497_v7  ;;  %v2934_v12 = vsub.f32 %v7699_v54, %v7698_v62  ;;  %v3353_v38 = vmul.f32 %v3137_v20, %v2937_v58  ;;  %v3495_v59 = vadd.f32 %v6485_v47, %v3426_v28  ;;  %v3092_v4 = vsub.f32 1.5, %v3091_v15  ;;  %v7709_v13 = vld [vmem:[#allocation37_spill] sm:$0xff]  ;;  %v7712_v15 = vld [vmem:[#allocation34_spill] sm:$0xff] }
 0x2ed   : > { %v3424_v37 = vmul.f32 %v6419_v1, %v3355_v26  ;;  %v2932_v10 = vsub.f32 %v7701_v2, %v7700_v22  ;;  %vm3114_vm4 = vweird.f32 %v6339_v18  ;;  %v2748_v32 = vadd.f32 %v7702_v34, %v6454_v17  ;;  %v7711_v28 = vld [vmem:[#allocation21_spill] sm:$0xff] }
 0x2ee   : > { %vm3116_vm5 = vmor %vm3114_vm4, %vm3115_vm3  ;;  %v2935_v24 = vsub.f32 %v7703_v42, %v7698_v62  ;;  %v3492_v9 = vadd.f32 %v6474_v43, %v3423_v29  ;;  %v3421_v45 = vmul.f32 %v6415_v5, %v3352_v33  ;;  %v3350_v11 = vmul.f32 %v3127_v55, %v2934_v12 }
 0x2ef   : > { %v3103_v51 = vmul.f32 %v6380_v39, %v3102_v21  ;;  %vm3105_vm6 = vweird.f32 %v6380_v39  ;;  %v3117_v48 = vsel %vm3116_vm5, %v6417_v0, %v3113_v61  ;;  %v2751_v18 = vadd.f32 %v2667_v40, %v2666_v41  ;;  %v7708_v0 = vld [vmem:[#allocation20_spill] sm:$0xff]  ;;  %v7714_v61 = vld [vmem:[#allocation13_spill] sm:$0xff] }
 0x2f0   : > { %3544 = vmatpush.xpose.msra.mxu2 %v3494_v63  ;;  %3564 = vmatpush.xpose.msra.mxu3 %v3495_v59  ;;  %v3493_v17 = vadd.f32 %v6485_v47, %v3424_v37  ;;  %v3422_v16 = vmul.f32 %v6419_v1, %v3353_v38  ;;  %v3351_v35 = vmul.f32 %v3127_v55, %v2935_v24  ;;  %vm3104_vm7 = vweird.f32 %v7706_v52  ;;  %v7713_v63 = vld [vmem:[#allocation65_spill] sm:$0xff]  ;;  %v7716_v59 = vld [vmem:[#allocation46_spill] sm:$0xff]  ;;  %v7727_v52 = vld [vmem:[#allocation11_spill] sm:$0xff] }
 0x2f1   : > { %v1996_v49 = vadd.f32 %v7705_v27, %v7704_v60  ;;  %2557 = vadd.xlane.f32.xlu2 %v7707_v6  ;;  %v2626_v44 = vmul.f32 %v6527_v31, %v6527_v31  ;;  %v2627_v23 = vmul.f32 %v7708_v0, %v7708_v0  ;;  %vm3106_vm8 = vmor %vm3104_vm7, %vm3105_vm6  ;;  %v2933_v7 = vsub.f32 %v7709_v13, %v7700_v22  ;;  %v7715_v55 = vld [vmem:[#allocation29_spill] sm:$0xff] }
 0x2f2   : > { %2749 = vadd.xlane.f32.xlu1 %v2748_v32  ;;  %2752 = vadd.xlane.f32.xlu0 %v2751_v18  ;;  %v3348_v19 = vmul.f32 %v3117_v48, %v2932_v10  ;;  %v3490_v3 = vadd.f32 %v6474_v43, %v3421_v45  ;;  %v3419_v20 = vmul.f32 %v6415_v5, %v3350_v11  ;;  %vm3095_vm9 = vweird.f32 %v6392_v53  ;;  %v7719_v22 = vld [vmem:[#allocation33_spill] sm:$0xff]  ;;  %v7721_v45 = vld [vmem:[#allocation8_spill] sm:$0xff] }
 0x2f3   : > { %v3093_v50 = vmul.f32 %v6392_v53, %v3092_v4  ;;  %v3107_v14 = vsel %vm3106_vm8, %v6380_v39, %v3103_v51  ;;  %v2628_v26 = vmul.f32 %v7710_v56, %v7710_v56  ;;  %v2930_v41 = vsub.f32 %v7712_v15, %v7711_v28  ;;  %v7718_v4 = vld [vmem:[#allocation14_spill] sm:$0xff]  ;;  %v7722_v51 = vld [vmem:[#allocation44_spill] sm:$0xff]  ;;  %v7724_v18 = vld [vmem:[#allocation45_spill] sm:$0xff] }
 0x2f4   : > { %3545 = vmatpush.xpose.msra.mxu2 %v3492_v9  ;;  %3565 = vmatpush.xpose.msra.mxu3 %v3493_v17  ;;  %v3349_v40 = vmul.f32 %v3117_v48, %v2933_v7  ;;  %v3491_v58 = vadd.f32 %v6485_v47, %v3422_v16  ;;  %v3420_v33 = vmul.f32 %v6419_v1, %v3351_v35  ;;  %vm3094_vm10 = vweird.f32 %v7713_v63  ;;  %v7720_v9 = vld [vmem:[#allocation25_spill] sm:$0xff] }
 0x2f5   : > { %v2691_v29 = vadd.f32 %v2627_v23, %v2626_v44  ;;  %v2499_v21 = vadd.f32 %v7708_v0, %v6527_v31  ;;  %v2629_v39 = vmul.f32 %v7714_v61, %v7714_v61  ;;  %vm3096_vm11 = vmor %vm3094_vm10, %vm3095_vm9  ;;  %v2931_v62 = vsub.f32 %v7715_v55, %v7711_v28  ;;  %v7728_v23 = vld [vmem:[#allocation43_spill] sm:$0xff]  ;;  %v7734_v55 = vld [vmem:[#allocation56_spill] sm:$0xff] }
 0x2f6   : > { %v3346_v54 = vmul.f32 %v3107_v14, %v2930_v41  ;;  %v3488_v12 = vadd.f32 %v6474_v43, %v3419_v20  ;;  %v3417_v38 = vmul.f32 %v6415_v5, %v3348_v19  ;;  %v6599_v37 = vmax.f32 %v7716_v59, 0.0  ;;  %v7730_v20 = vld [vmem:[#allocation9_spill] sm:$0xff] }
 0x2f7   : > { %v2928_v2 = vsub.f32 %v7719_v22, %v7718_v4  ;;  %v2694_v10 = vadd.f32 %v2629_v39, %v2628_v26  ;;  %v3097_v34 = vsel %vm3096_vm11, %v6392_v53, %v3093_v50  ;;  %v3347_v32 = vmul.f32 %v3107_v14, %v2931_v62  ;;  %v7726_v53 = vld [vmem:[#allocation32_spill] sm:$0xff] }
 0x2f8   : > { %3546 = vmatpush.xpose.msra.mxu2 %v3490_v3  ;;  %3566 = vmatpush.xpose.msra.mxu3 %v3491_v58  ;;  %7717 = vst [vmem:[#allocation23_spill] sm:$0xff] %v6599_v37  ;;  %v3489_v42 = vadd.f32 %v6485_v47, %v3420_v33  ;;  %v3418_v24 = vmul.f32 %v6419_v1, %v3349_v40  ;;  %v6609_v48 = vmax.f32 %v7722_v51, 0.0  ;;  %v6612_v17 = vmax.f32 %v7724_v18, 0.0 }
 0x2f9   : > { %v2222_v11 = vadd.f32 %v7721_v45, %v7720_v9  ;;  %2500 = vadd.xlane.f32.xlu2 %v2499_v21  ;;  %v2929_v16 = vsub.f32 %v7726_v53, %v7718_v4  ;;  %v3486_v35 = vadd.f32 %v6474_v43, %v3417_v38  ;;  %v3415_v60 = vmul.f32 %v6415_v5, %v3346_v54  ;;  %v7737_v4 = vld [vmem:[#allocation57_spill] sm:$0xff]  ;;  %v7741_v45 = vld [vmem:[#allocation35_spill] sm:$0xff] }
 0x2fa   : > { %2692 = vadd.xlane.f32.xlu1 %v2691_v29  ;;  %7723 = vst [vmem:[#allocation40_spill] sm:$0xff] %v6609_v48  ;;  %2695 = vadd.xlane.f32.xlu0 %v2694_v10  ;;  %v3344_v27 = vmul.f32 %v3097_v34, %v2928_v2  ;;  %v2109_v6 = vadd.f32 %v7727_v52, %v1996_v49  ;;  %v6622_v13 = vmax.f32 %v7728_v23, 0.0  ;;  %v7732_v29 = vld [vmem:[#allocation42_spill] sm:$0xff]  ;;  %v7738_v10 = vld [vmem:[#allocation36_spill] sm:$0xff] }
 0x2fb   : > { %7725 = vst [vmem:[#allocation60_spill] sm:$0xff] %v6612_v17  ;;  %v2662_v44 = vmul.f32 %v6599_v37, %v6599_v37  ;;  %v3487_v7 = vadd.f32 %v6485_v47, %v3418_v24  ;;  %v3416_v19 = vmul.f32 %v6419_v1, %v3347_v32  ;;  %v3345_v3 = vmul.f32 %v3097_v34, %v2929_v16  ;;  %v7740_v24 = vld [vmem:[#allocation52_spill] sm:$0xff]  ;;  %v7743_v16 = vld [vmem:[#allocation53_spill] sm:$0xff] }
 0x2fc   : > { %3547 = vmatpush.xpose.msra.mxu2 %v3488_v12  ;;  %3567 = vmatpush.xpose.msra.mxu3 %v3489_v42  ;;  %7729 = vst [vmem:[#allocation38_spill] sm:$0xff] %v6622_v13  ;;  %v2335_v50 = vadd.f32 %v7730_v20, %v2222_v11  ;;  %v2663_v14 = vmul.f32 %v6612_v17, %v6612_v17  ;;  %v6633_v15 = vmax.f32 %v2109_v6, 0.0  ;;  %v6642_v21 = vmax.f32 %v7732_v29, 0.0  ;;  %v7735_v12 = vld [vmem:[#allocation41_spill] sm:$0xff] }
 0x2fd   : > { %v2550_v49 = vadd.f32 %v6622_v13, %v6609_v48  ;;  %v3484_v26 = vadd.f32 %v6474_v43, %v3415_v60  ;;  %v3413_v28 = vmul.f32 %v6415_v5, %v3344_v27  ;;  %v2553_v40 = vadd.f32 %v6612_v17, %v6599_v37  ;;  %v7744_v27 = vld [vmem:[#allocation22_spill] sm:$0xff] }
 0x2fe   : > { %v2745_v41 = vadd.f32 %v2663_v14, %v2662_v44  ;;  %v3485_v58 = vadd.f32 %v6485_v47, %v3416_v19  ;;  %v3414_v33 = vmul.f32 %v6419_v1, %v3345_v3  ;;  %v6639_v63 = vmax.f32 %v2335_v50, 0.0  ;;  %7733 = vst [vmem:[#allocation39_spill] sm:$0xff] %v6642_v21 }
 0x2ff   : > { %v3482_v39 = vadd.f32 %v6474_v43, %v3413_v28  ;;  %v3411_v62 = vmul.f32 %v6415_v5, %v7734_v55  ;;  %v2624_v54 = vmul.f32 %v6633_v15, %v6633_v15  ;;  %v6650_v38 = vmax.f32 %v7735_v12, 0.0 }
 0x300   : > { %3548 = vmatpush.xpose.msra.mxu2 %v3486_v35  ;;  %3568 = vmatpush.xpose.msra.mxu3 %v3487_v7  ;;  %7731 = vst [vmem:[#allocation71_spill] sm:$0xff] %v6639_v63  ;;  %v3483_v59 = vadd.f32 %v6485_v47, %v3414_v33  ;;  %v3412_v22 = vmul.f32 %v6419_v1, %v7737_v4  ;;  %v6658_v34 = vmax.f32 %v7738_v10, 0.0  ;;  %v6666_v11 = vmax.f32 %v7741_v45, 0.0 }
 0x301   : > { %2746 = vadd.xlane.f32.xlu2 %v2745_v41  ;;  %7736 = vst [vmem:[#allocation26_spill] sm:$0xff] %v6650_v38  ;;  %v2625_v2 = vmul.f32 %v6639_v63, %v6639_v63  ;;  %v2547_v32 = vadd.f32 %v6650_v38, %v6642_v21  ;;  %v3480_v42 = vadd.f32 %v6474_v43, %v3411_v62 }
 0x302   : > { %2551 = vadd.xlane.f32.xlu1 %v2550_v49  ;;  %2554 = vadd.xlane.f32.xlu0 %v2553_v40  ;;  %7739 = vst [vmem:[#allocation10_spill] sm:$0xff] %v6658_v34  ;;  %v3409_v9 = vmul.f32 %v6415_v5, %v7740_v24  ;;  %v2496_v18 = vadd.f32 %v6639_v63, %v6633_v15 }
 0x303   : > { %7742 = vst [vmem:[#allocation64_spill] sm:$0xff] %v6666_v11  ;;  %v2688_v51 = vadd.f32 %v2625_v2, %v2624_v54  ;;  %v3481_v53 = vadd.f32 %v6485_v47, %v3412_v22  ;;  %v3410_v35 = vmul.f32 %v6419_v1, %v7743_v16  ;;  %v2656_v6 = vmul.f32 %v6658_v34, %v6658_v34 }
 0x304   : > { %3549 = vmatpush.xpose.msra.mxu2 %v3484_v26  ;;  %3569 = vmatpush.xpose.msra.mxu3 %v3485_v58  ;;  %v3478_v44 = vadd.f32 %v6474_v43, %v3409_v9  ;;  %v3407_v23 = vmul.f32 %v6415_v5, %v6519_v46  ;;  %v2657_v19 = vmul.f32 %v6666_v11, %v6666_v11 }
 0x305   : > { %v2658_v3 = vmul.f32 %v6642_v21, %v6642_v21  ;;  %v2660_v20 = vmul.f32 %v6609_v48, %v6609_v48  ;;  %v3479_v46 = vadd.f32 %v6485_v47, %v3410_v35  ;;  %v3408_v49 = vmul.f32 %v6419_v1, %v6524_v8 }
 0x306   : > { %v2659_v26 = vmul.f32 %v6650_v38, %v6650_v38  ;;  %v2661_v28 = vmul.f32 %v6622_v13, %v6622_v13  ;;  %v2736_v40 = vadd.f32 %v2657_v19, %v2656_v6  ;;  %v3476_v58 = vadd.f32 %v6474_v43, %v3407_v23 }
 0x308   : > { %3550 = vmatpush.xpose.msra.mxu2 %v3482_v39  ;;  %3570 = vmatpush.xpose.msra.mxu3 %v3483_v59  ;;  %v2739_v33 = vadd.f32 %v2659_v26, %v2658_v3  ;;  %v2742_v29 = vadd.f32 %v2661_v28, %v2660_v20  ;;  %v3477_v39 = vadd.f32 %v6485_v47, %v3408_v49 }
 0x309   : > { %2689 = vadd.xlane.f32.xlu2 %v2688_v51  ;;  %v2567_v60 = vpop.xlane.xlu2 %2566  ;;  %v2544_v59 = vadd.f32 %v6666_v11, %v6658_v34  ;;  %v7760_v34 = vld [vmem:[#allocation27_spill] sm:$0xff] }
 0x30a   : > { %2548 = vadd.xlane.f32.xlu1 %v2547_v32  ;;  %2497 = vadd.xlane.f32.xlu0 %v2496_v18  ;;  %v6674_v52 = vmul.f32 %v2567_v60, %v7744_v27 }
 0x30b   : > { %v2759_v7 = vpop.xlane.xlu1 %2758 }
 0x30c   : > { %3551 = vmatpush.xpose.msra.mxu2 %v3480_v42  ;;  %3571 = vmatpush.xpose.msra.mxu3 %v3481_v53  ;;  %v6688_v50 = vmul.f32 %v2759_v7, %v7744_v27  ;;  %v6692_v14 = vmul.f32 %v6674_v52, %v6674_v52 }
 0x30e   : > { %v2871_v41 = vsub.f32 %v6688_v50, %v6692_v14 }
 0x310   : > { %3552 = vmatpush.xpose.msra.mxu2 %v3478_v44  ;;  %3572 = vmatpush.xpose.msra.mxu3 %v3479_v46 }
 0x311   : > { %2740 = vadd.xlane.f32.xlu2 %v2739_v33 }
 0x312   : > { %2737 = vadd.xlane.f32.xlu1 %v2736_v40  ;;  %2743 = vadd.xlane.f32.xlu0 %v2742_v29 }
 0x313   : > { %v2570_v8 = vpop.xlane.xlu1 %2569 }
 0x314   : > { %3553 = vmatpush.xpose.msra.mxu2 %v3476_v58  ;;  %3573 = vmatpush.xpose.msra.mxu3 %v3477_v39  ;;  %v2762_v55 = vpop.xlane.xlu0 %2761  ;;  %v6706_v62 = vmul.f32 %v2570_v8, %v7744_v27 }
 0x315   : > { %v6713_v12 = vmul.f32 %v2762_v55, %v7744_v27 }
 0x316   : > { %v6710_v54 = vmul.f32 %v6706_v62, %v6706_v62 }
 0x318   : > { %v2872_v4 = vsub.f32 %v6713_v12, %v6710_v54 }
 0x31a   : > { %2545 = vadd.xlane.f32.xlu0 %v2544_v59  ;;  %v2904_v50 = vmax.f32 %v2872_v4, 0.0 }
 0x31c   : > { %v2573_v22 = vpop.xlane.xlu0 %2572  ;;  %v2765_v2 = vpop.xlane.xlu2 %2764 }
 0x31d   : > { %v2617_v10 = vmul.f32 %v2573_v22, %v7744_v27  ;;  %v2809_v32 = vmul.f32 %v2765_v2, %v7744_v27  ;;  %v7745_v2 = vld [vmem:[#allocation55_spill] sm:$0xff] }
 0x31f   : > { %v2841_v42 = vmul.f32 %v2617_v10, %v2617_v10 }
 0x321   : > { %v2873_v24 = vsub.f32 %v2809_v32, %v2841_v42  ;;  %v2962_v32 = vsub.f32 %v7745_v2, %v2617_v10  ;;  %v7746_v42 = vld [vmem:[#allocation54_spill] sm:$0xff] }
 0x323   : > { %v2905_v9 = vmax.f32 %v2873_v24, 0.0  ;;  %v2963_v24 = vsub.f32 %v7746_v42, %v2617_v10  ;;  %v7749_v10 = vld [vmem:[#allocation12_spill] sm:$0xff] }
 0x324   : > { %v2768_v45 = vpop.xlane.xlu1 %2767  ;;  %v2576_v18 = vpop.xlane.xlu2 %2575 }
 0x325   : > { %v3001_v51 = vadd.f32 1e-05, %v2905_v9  ;;  %v2618_v53 = vmul.f32 %v2576_v18, %v7744_v27  ;;  %v2810_v16 = vmul.f32 %v2768_v45, %v7744_v27 }
 0x327   : > { %3958 = vrsqrt.f32 %v3001_v51  ;;  %v2842_v35 = vmul.f32 %v2618_v53, %v2618_v53  ;;  %vm3264_vm13 = vweird.f32 %v3001_v51 }
 0x329   : > { %v2874_v60 = vsub.f32 %v2810_v16, %v2842_v35 }
 0x32b   : > { %v2906_v44 = vmax.f32 %v2874_v60, 0.0 }
 0x32c   : > { %v2771_v6 = vpop.xlane.xlu0 %2770  ;;  %v2579_v23 = vpop.xlane.xlu1 %2578 }
 0x32d   : > { %v3959_v7 = vpop.eup %3958  ;;  %v6724_v19 = vmul.f32 %v2579_v23, %v7744_v27  ;;  %v3002_v20 = vadd.f32 1e-05, %v2906_v44  ;;  %v6731_v49 = vmul.f32 %v2771_v6, %v7744_v27 }
 0x32e   : > { %v3259_v3 = vmul.f32 %v3959_v7, %v3001_v51  ;;  %vm3265_vm12 = vweird.f32 %v3959_v7 }
 0x32f   : > { %v6728_v46 = vmul.f32 %v6724_v19, %v6724_v19  ;;  %3960 = vrsqrt.f32 %v3002_v20  ;;  %vm3266_vm14 = vmor %vm3264_vm13, %vm3265_vm12  ;;  %vm3274_vm1 = vweird.f32 %v3002_v20 }
 0x330   : > { %v3260_v26 = vmul.f32 %v3959_v7, %v3259_v3 }
 0x332   : > { %v3261_v40 = vmul.f32 0.5, %v3260_v26 }
 0x334   : > { %v2582_v58 = vpop.xlane.xlu0 %2581  ;;  %v3262_v33 = vsub.f32 1.5, %v3261_v40  ;;  %v2774_v29 = vpop.xlane.xlu2 %2773  ;;  %v2964_v40 = vsub.f32 %v7749_v10, %v2618_v53 }
 0x335   : > { %v2620_v39 = vmul.f32 %v2582_v58, %v7744_v27  ;;  %v3961_v8 = vpop.eup %3960  ;;  %v2812_v59 = vmul.f32 %v2774_v29, %v7744_v27  ;;  %v7750_v58 = vld [vmem:[#allocation58_spill] sm:$0xff] }
 0x336   : > { %v3263_v55 = vmul.f32 %v3959_v7, %v3262_v33  ;;  %v3269_v9 = vmul.f32 %v3961_v8, %v3002_v20  ;;  %vm3275_vm15 = vweird.f32 %v3961_v8  ;;  %v7753_v20 = vld [vmem:[#allocation47_spill] sm:$0xff] }
 0x337   : > { %v2844_v22 = vmul.f32 %v2620_v39, %v2620_v39  ;;  %vm3276_vm2 = vmor %vm3274_vm1, %vm3275_vm15 }
 0x338   : > { %v3267_v45 = vsel %vm3266_vm14, %v3959_v7, %v3263_v55  ;;  %v3270_v60 = vmul.f32 %v3961_v8, %v3269_v9  ;;  %v2965_v7 = vsub.f32 %v7750_v58, %v2618_v53  ;;  %v6757_v9 = vmul.f32 %v7753_v20, %v7744_v27 }
 0x339   : > { %v2876_v18 = vsub.f32 %v2812_v59, %v2844_v22  ;;  %v6739_v16 = vmul.f32 %v3267_v45, %v2962_v32  ;;  %v6741_v35 = vmul.f32 %v3267_v45, %v2963_v24 }
 0x33a   : > { %v3271_v44 = vmul.f32 0.5, %v3270_v60  ;;  %v2920_v38 = vsub.f32 %v7760_v34, %v6757_v9 }
 0x33b   : > { %7747 = vst [vmem:[#allocation72_spill] sm:$0xff] %v6739_v16  ;;  %v2908_v6 = vmax.f32 %v2876_v18, 0.0 }
 0x33c   : > { %7748 = vst [vmem:[#allocation20_spill] sm:$0xff] %v6741_v35  ;;  %v6743_v23 = vpop.xlane.xlu1 %2776  ;;  %v3272_v3 = vsub.f32 1.5, %v3271_v44  ;;  %v2585_v2 = vpop.xlane.xlu2 %2584 }
 0x33d   : > { %v3004_v51 = vadd.f32 1e-05, %v2908_v6  ;;  %v6798_v4 = vmul.f32 %v2585_v2, %v7744_v27 }
 0x33e   : > { %v3273_v26 = vmul.f32 %v3961_v8, %v3272_v3  ;;  %v2820_v3 = vmul.f32 %v6757_v9, %v6757_v9 }
 0x33f   : > { %3962 = vrsqrt.f32 %v3004_v51  ;;  %vm3294_vm4 = vweird.f32 %v3004_v51 }
 0x340   : > { %v3277_v33 = vsel %vm3276_vm2, %v3961_v8, %v3273_v26  ;;  %v7754_v26 = vld [vmem:[#allocation59_spill] sm:$0xff] }
 0x341   : > { %v6747_v29 = vmul.f32 %v3277_v33, %v2964_v40  ;;  %v6749_v55 = vmul.f32 %v3277_v33, %v2965_v7  ;;  %v2968_v10 = vsub.f32 %v7754_v26, %v2620_v39  ;;  %v7755_v40 = vld [vmem:[#allocation24_spill] sm:$0xff] }
 0x342   : > { %v2969_v58 = vsub.f32 %v7755_v40, %v2620_v39 }
 0x343   : > { %7751 = vst [vmem:[#allocation37_spill] sm:$0xff] %v6747_v29 }
 0x344   : > { %7752 = vst [vmem:[#allocation17_spill] sm:$0xff] %v6749_v55 }
 0x345   : > { %v6751_v59 = vpop.xlane.xlu1 %2587  ;;  %v3963_v22 = vpop.eup %3962 }
 0x346   : > { %v6753_v32 = vpop.xlane.xlu0 %2779  ;;  %v3289_v42 = vmul.f32 %v3963_v22, %v3004_v51  ;;  %vm3295_vm3 = vweird.f32 %v3963_v22 }
 0x347   : > { %vm3296_vm5 = vmor %vm3294_vm4, %vm3295_vm3  ;;  %v2814_v17 = vmul.f32 %v6753_v32, %v7744_v27 }
 0x348   : > { %v3290_v24 = vmul.f32 %v3963_v22, %v3289_v42  ;;  %v2903_v42 = vmax.f32 %v2871_v41, 0.0 }
 0x34a   : > { %v3291_v45 = vmul.f32 0.5, %v3290_v24 }
 0x34c   : > { %v3292_v53 = vsub.f32 1.5, %v3291_v45  ;;  %v2783_v60 = vpop.xlane.xlu2 %2782 }
 0x34d   : > { %v2702_v8 = vpop.xlane.xlu1 %2701 }
 0x34e   : > { %v2788_v18 = vmul.f32 %v2702_v8, %v7744_v27  ;;  %v2591_v6 = vpop.xlane.xlu0 %2590  ;;  %v3293_v44 = vmul.f32 %v3963_v22, %v3292_v53  ;;  %v6773_v8 = vadd.f32 1e-05, %v2903_v42 }
 0x350   : > { %v3297_v7 = vsel %vm3296_vm5, %v3963_v22, %v3293_v44  ;;  %v2852_v33 = vsub.f32 %v2788_v18, %v2820_v3  ;;  %v6786_v3 = vadd.f32 1e-05, %v2904_v50  ;;  %vm3244_vm15 = vweird.f32 %v6773_v8 }
 0x351   : > { %v6767_v24 = vmul.f32 %v3297_v7, %v2968_v10  ;;  %v6769_v20 = vmul.f32 %v3297_v7, %v2969_v58 }
 0x352   : > { %v2884_v45 = vmax.f32 %v2852_v33, 0.0  ;;  %vm3254_vm2 = vweird.f32 %v6786_v3 }
 0x353   : > { %7756 = vst [vmem:[#allocation21_spill] sm:$0xff] %v6767_v24 }
 0x354   : > { %7757 = vst [vmem:[#allocation34_spill] sm:$0xff] %v6769_v20  ;;  %v6771_v51 = vadd.f32 1e-05, %v2884_v45  ;;  %v2756_v26 = vpop.xlane.xlu2 %2755 }
 0x355   : > { %v2561_v53 = vpop.xlane.xlu1 %2560  ;;  %v2806_v14 = vmul.f32 %v2756_v26, %v7744_v27 }
 0x356   : > { %v2564_v28 = vpop.xlane.xlu0 %2563  ;;  %3964 = vrsqrt.f32 %v6771_v51  ;;  %vm3054_vm7 = vweird.f32 %v6771_v51 }
 0x357   : > { %v6777_v39 = vmul.f32 %v2564_v28, %v7744_v27  ;;  %3966 = vrsqrt.f32 %v6773_v8  ;;  %v6790_v28 = vmul.f32 %v2591_v6, %v7744_v27 }
 0x358   : > { %3968 = vrsqrt.f32 %v6786_v3 }
 0x359   : > { %v2838_v41 = vmul.f32 %v6777_v39, %v6777_v39  ;;  %v2847_v50 = vmul.f32 %v6790_v28, %v6790_v28 }
 0x35b   : > { %v2870_v18 = vsub.f32 %v2806_v14, %v2838_v41  ;;  %v7758_v41 = vsub.f32 %v6731_v49, %v6728_v46  ;;  %v6826_v46 = vmul.f32 %v6751_v59, %v7744_v27 }
 0x35c   : > { %v3965_v22 = vpop.eup %3964  ;;  %v2699_v40 = vpop.xlane.xlu2 %2698 }
 0x35d   : > { %v2504_v44 = vpop.xlane.xlu1 %2503  ;;  %v3049_v10 = vmul.f32 %v3965_v22, %v6771_v51  ;;  %v2902_v7 = vmax.f32 %v2870_v18, 0.0  ;;  %v6795_v12 = vpop.eup %3966  ;;  %v2787_v45 = vmul.f32 %v2699_v40, %v7744_v27  ;;  %v2907_v18 = vmax.f32 %v7758_v41, 0.0 }
 0x35e   : > { %v2507_v58 = vpop.xlane.xlu0 %2506  ;;  %v3239_v14 = vmul.f32 %v6795_v12, %v6773_v8  ;;  %v6837_v34 = vpop.eup %3968  ;;  %vm3055_vm6 = vweird.f32 %v3965_v22  ;;  %v6865_v37 = vmul.f32 %v2504_v44, %v7744_v27  ;;  %vm3245_vm1 = vweird.f32 %v6795_v12 }
 0x35f   : > { %v6793_v54 = vmul.f32 %v2507_v58, %v7744_v27  ;;  %v3050_v33 = vmul.f32 %v3965_v22, %v3049_v10  ;;  %v6800_v42 = vadd.f32 1e-05, %v2902_v7  ;;  %v2845_v10 = vmul.f32 %v6798_v4, %v6798_v4  ;;  %vm3056_vm8 = vmor %vm3054_vm7, %vm3055_vm6 }
 0x360   : > { %v2815_v58 = vmul.f32 %v2783_v60, %v7744_v27  ;;  %v6818_v7 = vmul.f32 %v2561_v53, %v7744_v27  ;;  %v3240_v60 = vmul.f32 %v6795_v12, %v3239_v14  ;;  %v3249_v48 = vmul.f32 %v6837_v34, %v6786_v3  ;;  %vm3246_vm7 = vmor %vm3244_vm15, %vm3245_vm1 }
 0x361   : > { %v2819_v6 = vmul.f32 %v6793_v54, %v6793_v54  ;;  %v3051_v26 = vmul.f32 0.5, %v3050_v33  ;;  %3970 = vrsqrt.f32 %v6800_v42  ;;  %vm3234_vm10 = vweird.f32 %v6800_v42 }
 0x362   : > { %7759 = vst [vmem:[#allocation65_spill] sm:$0xff] %v6818_v7  ;;  %v2879_v49 = vsub.f32 %v2815_v58, %v2847_v50  ;;  %vm3255_vm3 = vweird.f32 %v6837_v34 }
 0x363   : > { %v2851_v2 = vsub.f32 %v2787_v45, %v2819_v6  ;;  %v3052_v40 = vsub.f32 1.5, %v3051_v26  ;;  %v2813_v45 = vmul.f32 %v6743_v23, %v7744_v27  ;;  %v6839_v23 = vadd.f32 1e-05, %v2907_v18 }
 0x364   : > { %v2558_v6 = vpop.xlane.xlu2 %2557  ;;  %v2911_v18 = vmax.f32 %v2879_v49, 0.0 }
 0x365   : > { %v2883_v33 = vmax.f32 %v2851_v2, 0.0  ;;  %v2750_v11 = vpop.xlane.xlu1 %2749  ;;  %v6832_v53 = vmul.f32 %v2558_v6, %v7744_v27  ;;  %v2877_v21 = vsub.f32 %v2813_v45, %v2845_v10  ;;  %v3053_v59 = vmul.f32 %v3965_v22, %v3052_v40  ;;  %v7761_v40 = vld [vmem:[#allocation28_spill] sm:$0xff] }
 0x366   : > { %v2753_v26 = vpop.xlane.xlu0 %2752  ;;  %v2804_v14 = vmul.f32 %v2750_v11, %v7744_v27  ;;  %v2846_v6 = vmul.f32 %v6826_v46, %v6826_v46  ;;  %v2921_v45 = vsub.f32 %v7761_v40, %v6757_v9  ;;  %v6867_v35 = vadd.f32 1e-05, %v2911_v18 }
 0x367   : > { %v6829_v41 = vadd.f32 1e-05, %v2883_v33  ;;  %v6835_v2 = vmul.f32 %v2753_v26, %v7744_v27  ;;  %v3971_v50 = vpop.eup %3970  ;;  %v2836_v58 = vmul.f32 %v6832_v53, %v6832_v53  ;;  %v6847_v33 = vmul.f32 %v6818_v7, %v6818_v7 }
 0x368   : > { %v3229_v10 = vmul.f32 %v3971_v50, %v6800_v42  ;;  %v6855_v26 = vmul.f32 0.5, %v3240_v60  ;;  %v3057_v49 = vsel %vm3056_vm8, %v3965_v22, %v3053_v59  ;;  %vm3235_vm9 = vweird.f32 %v3971_v50  ;;  %vm3256_vm8 = vmor %vm3254_vm2, %vm3255_vm3 }
 0x369   : > { %3972 = vrsqrt.f32 %v6829_v41  ;;  %v2868_v11 = vsub.f32 %v2804_v14, %v2836_v58  ;;  %v3336_v40 = vmul.f32 %v3057_v49, %v2920_v38  ;;  %v2909_v14 = vmax.f32 %v2877_v21, 0.0  ;;  %vm3236_vm11 = vmor %vm3234_vm10, %vm3235_vm9 }
 0x36a   : > { %v3230_v51 = vmul.f32 %v3971_v50, %v3229_v10  ;;  %3974 = vrsqrt.f32 %v6839_v23  ;;  %v2878_v58 = vsub.f32 %v2814_v17, %v2846_v6  ;;  %v3337_v17 = vmul.f32 %v3057_v49, %v2921_v45 }
 0x36b   : > { %v2900_v9 = vmax.f32 %v2868_v11, 0.0  ;;  %v3405_v21 = vmul.f32 %v6415_v5, %v3336_v40  ;;  %v2818_v18 = vmul.f32 %v6865_v37, %v6865_v37  ;;  %v2957_v45 = vsub.f32 %v6406_v25, %v6777_v39 }
 0x36c   : > { %v3231_v13 = vmul.f32 0.5, %v3230_v51  ;;  %v2501_v16 = vpop.xlane.xlu2 %2500  ;;  %vm3044_vm13 = vweird.f32 %v6829_v41  ;;  %vm3284_vm15 = vweird.f32 %v6839_v23  ;;  %vm3324_vm3 = vweird.f32 %v6867_v35 }
 0x36d   : > { %v2693_v60 = vpop.xlane.xlu1 %2692  ;;  %v6869_v32 = vadd.f32 1e-05, %v2900_v9  ;;  %v6872_v22 = vmul.f32 %v2501_v16, %v7744_v27  ;;  %v2956_v16 = vsub.f32 %v6411_v30, %v6777_v39  ;;  %v3474_v9 = vadd.f32 %v6474_v43, %v3405_v21 }
 0x36e   : > { %v2696_v55 = vpop.xlane.xlu0 %2695  ;;  %v3232_v59 = vsub.f32 1.5, %v3231_v13  ;;  %v2785_v38 = vmul.f32 %v2693_v60, %v7744_v27  ;;  %v2910_v60 = vmax.f32 %v2878_v58, 0.0  ;;  %v3406_v30 = vmul.f32 %v6419_v1, %v3337_v17 }
 0x36f   : > { %v3973_v29 = vpop.eup %3972  ;;  %v2786_v44 = vmul.f32 %v2696_v55, %v7744_v27  ;;  %3976 = vrsqrt.f32 %v6869_v32  ;;  %v2817_v6 = vmul.f32 %v6872_v22, %v6872_v22  ;;  %3554 = vmatpush.xpose.msra.mxu2 %v3474_v9  ;;  %v3250_v21 = vmul.f32 %v6837_v34, %v3249_v48  ;;  %v7764_v48 = vld [vmem:[#allocation49_spill] sm:$0xff]  ;;  %v7769_v9 = vld [vmem:[#allocation68_spill] sm:$0xff] }
 0x370   : > { %v3039_v10 = vmul.f32 %v3973_v29, %v6829_v41  ;;  %v3233_v55 = vmul.f32 %v3971_v50, %v3232_v59  ;;  %v6886_v11 = vpop.eup %3974  ;;  %3978 = vrsqrt.f32 %v6867_v35  ;;  %vm3045_vm12 = vweird.f32 %v3973_v29 }
 0x371   : > { %v2849_v51 = vsub.f32 %v2785_v38, %v2817_v6  ;;  %v2850_v49 = vsub.f32 %v2786_v44, %v2818_v18  ;;  %v3475_v39 = vadd.f32 %v6485_v47, %v3406_v30  ;;  %v6904_v17 = vadd.f32 1e-05, %v2909_v14  ;;  %vm3046_vm14 = vmor %vm3044_vm13, %vm3045_vm12  ;;  %v7770_v14 = vld [vmem:[#allocation67_spill] sm:$0xff] }
 0x372   : > { %v3040_v13 = vmul.f32 %v3973_v29, %v3039_v10  ;;  %v3237_v40 = vsel %vm3236_vm11, %v3971_v50, %v3233_v55  ;;  %v6913_v55 = vadd.f32 1e-05, %v2910_v60  ;;  %v3251_v41 = vmul.f32 0.5, %v3250_v21  ;;  %v7767_v60 = vld [vmem:[#allocation50_spill] sm:$0xff] }
 0x373   : > { %v6893_v59 = vmul.f32 %v3237_v40, %v2956_v16  ;;  %v6895_v42 = vmul.f32 %v3237_v40, %v2957_v45  ;;  %v2881_v10 = vmax.f32 %v2849_v51, 0.0  ;;  %v2882_v24 = vmax.f32 %v2850_v49, 0.0  ;;  %3574 = vmatpush.xpose.msra.mxu3 %v3475_v39  ;;  %v7766_v49 = vld [vmem:[#allocation51_spill] sm:$0xff] }
 0x374   : > { %v3041_v20 = vmul.f32 0.5, %v3040_v13  ;;  %v6899_v44 = vpop.xlane.xlu2 %2746  ;;  %v3242_v16 = vsub.f32 1.5, %v6855_v26  ;;  %v7765_v26 = vld [vmem:[#allocation61_spill] sm:$0xff]  ;;  %v3252_v40 = vsub.f32 1.5, %v3251_v41  ;;  %vm3214_vm5 = vweird.f32 %v6869_v32 }
 0x375   : > { %7762 = vst [vmem:[#allocation13_spill] sm:$0xff] %v6893_v59  ;;  %v3977_v50 = vpop.eup %3976  ;;  %v6906_v38 = vadd.f32 1e-05, %v2881_v10  ;;  %v6908_v6 = vadd.f32 1e-05, %v2882_v24  ;;  %v2918_v45 = vsub.f32 %v7765_v26, %v6793_v54  ;;  %vm3285_vm1 = vweird.f32 %v6886_v11 }
 0x376   : > { %7763 = vst [vmem:[#allocation29_spill] sm:$0xff] %v6895_v42  ;;  %v3042_v25 = vsub.f32 1.5, %v3041_v20  ;;  %v6901_v58 = vpop.xlane.xlu0 %2554  ;;  %v3209_v20 = vmul.f32 %v3977_v50, %v6869_v32  ;;  %v6924_v51 = vpop.eup %3978  ;;  %vm3215_vm4 = vweird.f32 %v3977_v50  ;;  %v2953_v42 = vsub.f32 %v7770_v14, %v6832_v53 }
 0x377   : > { %3980 = vrsqrt.f32 %v6906_v38  ;;  %vm3216_vm6 = vmor %vm3214_vm5, %vm3215_vm4  ;;  %vm3024_vm10 = vweird.f32 %v6906_v38  ;;  %vm3034_vm13 = vweird.f32 %v6908_v6  ;;  %vm3325_vm2 = vweird.f32 %v6924_v51 }
 0x378   : > { %v3043_v18 = vmul.f32 %v3973_v29, %v3042_v25  ;;  %v3210_v24 = vmul.f32 %v3977_v50, %v3209_v20  ;;  %3982 = vrsqrt.f32 %v6908_v6  ;;  %v3243_v25 = vmul.f32 %v6795_v12, %v3242_v16  ;;  %vm3326_vm5 = vmor %vm3324_vm3, %vm3325_vm2 }
 0x379   : > { %3984 = vrsqrt.f32 %v6904_v17  ;;  %v3319_v16 = vmul.f32 %v6924_v51, %v6867_v35  ;;  %vm3304_vm4 = vweird.f32 %v6904_v17  ;;  %v7781_v35 = vld [vmem:[#allocation70_spill] sm:$0xff] }
 0x37a   : > { %v3047_v13 = vsel %vm3046_vm14, %v3973_v29, %v3043_v18  ;;  %v7768_v29 = vld [vmem:[#allocation19_spill] sm:$0xff]  ;;  %v3211_v10 = vmul.f32 0.5, %v3210_v24  ;;  %3986 = vrsqrt.f32 %v6913_v55 }
 0x37b   : > { %v2919_v30 = vsub.f32 %v7768_v29, %v6793_v54  ;;  %v3334_v39 = vmul.f32 %v3047_v13, %v2918_v45  ;;  %v3279_v54 = vmul.f32 %v6886_v11, %v6839_v23  ;;  %v3320_v8 = vmul.f32 %v6924_v51, %v3319_v16 }
 0x37c   : > { %v3212_v18 = vsub.f32 1.5, %v3211_v10  ;;  %v2690_v24 = vpop.xlane.xlu2 %2689 }
 0x37d   : > { %v3335_v21 = vmul.f32 %v3047_v13, %v2919_v30  ;;  %v3981_v26 = vpop.eup %3980  ;;  %v2952_v13 = vsub.f32 %v7769_v9, %v6832_v53  ;;  %v3403_v9 = vmul.f32 %v6415_v5, %v3334_v39  ;;  %v2784_v36 = vmul.f32 %v2690_v24, %v7744_v27 }
 0x37e   : > { %v2498_v20 = vpop.xlane.xlu0 %2497  ;;  %v6944_v45 = vpop.eup %3982  ;;  %v3213_v30 = vmul.f32 %v3977_v50, %v3212_v18  ;;  %v3019_v41 = vmul.f32 %v3981_v26, %v6906_v38  ;;  %v3280_v39 = vmul.f32 %v6886_v11, %v3279_v54  ;;  %vm3025_vm9 = vweird.f32 %v3981_v26 }
 0x37f   : > { %v6942_v29 = vmul.f32 %v2498_v20, %v7744_v27  ;;  %v6950_v10 = vpop.eup %3984  ;;  %v7771_v20 = vsub.f32 %v6835_v2, %v6847_v33  ;;  %v3029_v57 = vmul.f32 %v6944_v45, %v6908_v6  ;;  %v3404_v7 = vmul.f32 %v6419_v1, %v3335_v21  ;;  %vm3026_vm12 = vmor %vm3024_vm10, %vm3025_vm9 }
 0x380   : > { %v3217_v18 = vsel %vm3216_vm6, %v3977_v50, %v3213_v30  ;;  %v3020_v32 = vmul.f32 %v3981_v26, %v3019_v41  ;;  %v6963_v63 = vpop.eup %3986  ;;  %v3253_v50 = vmul.f32 %v6837_v34, %v3252_v40  ;;  %v3299_v21 = vmul.f32 %v6950_v10, %v6904_v17 }
 0x381   : > { %v2901_v59 = vmax.f32 %v7771_v20, 0.0  ;;  %v6965_v53 = vmul.f32 %v3217_v18, %v2952_v13  ;;  %v6967_v14 = vmul.f32 %v3217_v18, %v2953_v42  ;;  %v3030_v2 = vmul.f32 %v6944_v45, %v3029_v57 }
 0x382   : > { %v2816_v33 = vmul.f32 %v6942_v29, %v6942_v29  ;;  %v3021_v24 = vmul.f32 0.5, %v3020_v32  ;;  %v3472_v57 = vadd.f32 %v6474_v43, %v3403_v9  ;;  %v6982_v30 = vsel %vm3246_vm7, %v6795_v12, %v3243_v25 }
 0x383   : > { %v3031_v42 = vmul.f32 0.5, %v3030_v2  ;;  %v3309_v41 = vmul.f32 %v6963_v63, %v6913_v55  ;;  %v3473_v40 = vadd.f32 %v6485_v47, %v3404_v7  ;;  %v6992_v54 = vadd.f32 1e-05, %v2901_v59 }
 0x384   : > { %v2848_v13 = vsub.f32 %v2784_v36, %v2816_v33  ;;  %v3022_v20 = vsub.f32 1.5, %v3021_v24  ;;  %3555 = vmatpush.xpose.msra.mxu2 %v3472_v57  ;;  %v3257_v25 = vsel %vm3256_vm8, %v6837_v34, %v3253_v50  ;;  %v7772_v7 = vsub.f32 %v7764_v48, %v6674_v52  ;;  %vm7078_vm8 = vmor %vm3284_vm15, %vm3285_vm1 }
 0x385   : > { %v3032_v36 = vsub.f32 1.5, %v3031_v42  ;;  %3575 = vmatpush.xpose.msra.mxu3 %v3473_v40  ;;  %vm3035_vm11 = vweird.f32 %v6944_v45  ;;  %v7773_v18 = vsub.f32 %v7766_v49, %v6706_v62  ;;  %v3281_v38 = vmul.f32 0.5, %v3280_v39 }
 0x386   : > { %v2880_v9 = vmax.f32 %v2848_v13, 0.0  ;;  %v3023_v12 = vmul.f32 %v3981_v26, %v3022_v20  ;;  %v7000_v16 = vmul.f32 %v6982_v30, %v7772_v7  ;;  %v7774_v34 = vsub.f32 %v7767_v60, %v6706_v62  ;;  %vm3036_vm14 = vmor %vm3034_vm13, %vm3035_vm11 }
 0x387   : > { %v3033_v3 = vmul.f32 %v6944_v45, %v3032_v36  ;;  %v7009_v32 = vmul.f32 %v3257_v25, %v7773_v18  ;;  %v3310_v2 = vmul.f32 %v6963_v63, %v3309_v41  ;;  %v3321_v33 = vmul.f32 0.5, %v3320_v8 }
 0x388   : > { %v7004_v59 = vadd.f32 1e-05, %v2880_v9  ;;  %v7014_v48 = vmul.f32 %v3257_v25, %v7774_v34  ;;  %v3027_v50 = vsel %vm3026_vm12, %v3981_v26, %v3023_v12  ;;  %v2916_v24 = vsub.f32 %v7710_v56, %v6865_v37  ;;  %v7778_v9 = vld [vmem:[#allocation63_spill] sm:$0xff] }
 0x389   : > { %v2917_v49 = vsub.f32 %v7714_v61, %v6865_v37  ;;  %v2914_v39 = vsub.f32 %v6527_v31, %v6872_v22  ;;  %v3300_v62 = vmul.f32 %v6950_v10, %v3299_v21  ;;  %v3037_v60 = vsel %vm3036_vm14, %v6944_v45, %v3033_v3  ;;  %v7775_v61 = vld [vmem:[#allocation48_spill] sm:$0xff]  ;;  %v7776_v31 = vld [vmem:[#allocation18_spill] sm:$0xff] }
 0x38a   : > { %3988 = vrsqrt.f32 %v7004_v59  ;;  %v2915_v6 = vsub.f32 %v7708_v0, %v6872_v22  ;;  %v3332_v56 = vmul.f32 %v3037_v60, %v2916_v24  ;;  %v2959_v37 = vsub.f32 %v7775_v61, %v6674_v52  ;;  %v7777_v45 = vld [vmem:[#allocation16_spill] sm:$0xff]  ;;  %v2552_v22 = vpop.xlane.xlu1 %2551 }
 0x38b   : > { %3990 = vrsqrt.f32 %v6992_v54  ;;  %v3330_v26 = vmul.f32 %v3027_v50, %v2914_v39  ;;  %v3333_v42 = vmul.f32 %v3037_v60, %v2917_v49  ;;  %v2966_v13 = vsub.f32 %v7776_v31, %v6724_v19 }
 0x38c   : > { %v3322_v57 = vsub.f32 1.5, %v3321_v33  ;;  %v3282_v41 = vsub.f32 1.5, %v3281_v38  ;;  %v3311_v8 = vmul.f32 0.5, %v3310_v2  ;;  %v3331_v21 = vmul.f32 %v3027_v50, %v2915_v6  ;;  %v7779_v38 = vld [vmem:[#allocation62_spill] sm:$0xff] }
 0x38d   : > { %v3401_v20 = vmul.f32 %v6415_v5, %v3332_v56  ;;  %v2967_v40 = vsub.f32 %v7777_v45, %v6724_v19  ;;  %v3301_v0 = vmul.f32 0.5, %v3300_v62  ;;  %v2970_v12 = vsub.f32 %v7778_v9, %v6798_v4  ;;  %v7780_v56 = vld [vmem:[#allocation15_spill] sm:$0xff] }
 0x38e   : > { %v3402_v7 = vmul.f32 %v6419_v1, %v3333_v42  ;;  %v3399_v3 = vmul.f32 %v6415_v5, %v3330_v26  ;;  %v2971_v34 = vsub.f32 %v7779_v38, %v6798_v4  ;;  %v3323_v2 = vmul.f32 %v6924_v51, %v3322_v57  ;;  %v2744_v26 = vpop.xlane.xlu0 %2743 }
 0x38f   : > { %v3470_v25 = vadd.f32 %v6474_v43, %v3401_v20  ;;  %v3283_v50 = vmul.f32 %v6886_v11, %v3282_v41  ;;  %v3312_v24 = vsub.f32 1.5, %v3311_v8  ;;  %v3400_v39 = vmul.f32 %v6419_v1, %v3331_v21 }
 0x390   : > { %v3989_v36 = vpop.eup %3988  ;;  %v3471_v49 = vadd.f32 %v6485_v47, %v3402_v7  ;;  %v3302_v62 = vsub.f32 1.5, %v3301_v0  ;;  %v7057_v60 = vmul.f32 %v6901_v58, %v7744_v27  ;;  %v2972_v42 = vsub.f32 %v7780_v56, %v6826_v46  ;;  %v7782_v0 = vld [vmem:[#allocation30_spill] sm:$0xff] }
 0x391   : > { %v7044_v18 = vpop.eup %3990  ;;  %v3009_v33 = vmul.f32 %v3989_v36, %v7004_v59  ;;  %3556 = vmatpush.xpose.msra.mxu2 %v3470_v25  ;;  %v3468_v41 = vadd.f32 %v6474_v43, %v3399_v3  ;;  %vm3305_vm6 = vweird.f32 %v6950_v10  ;;  %v2974_v58 = vsub.f32 %v7781_v35, %v6790_v28 }
 0x392   : > { %v3219_v57 = vmul.f32 %v7044_v18, %v6992_v54  ;;  %3576 = vmatpush.xpose.msra.mxu3 %v3471_v49  ;;  %v3327_v8 = vsel %vm3326_vm5, %v6924_v51, %v3323_v2  ;;  %v3313_v20 = vmul.f32 %v6963_v63, %v3312_v24  ;;  %vm3315_vm7 = vweird.f32 %v6963_v63  ;;  %vm7087_vm10 = vmor %vm3304_vm4, %vm3305_vm6  ;;  %v7787_v24 = vld [vmem:[#allocation66_spill] sm:$0xff] }
 0x393   : > { %v3010_v6 = vmul.f32 %v3989_v36, %v3009_v33  ;;  %v2975_v25 = vsub.f32 %v7782_v0, %v6790_v28  ;;  %v3469_v7 = vadd.f32 %v6485_v47, %v3400_v39  ;;  %v3303_v51 = vmul.f32 %v6950_v10, %v3302_v62 }
 0x394   : > { %v2835_v2 = vmul.f32 %v7057_v60, %v7057_v60  ;;  %vm3015_vm9 = vweird.f32 %v3989_v36  ;;  %v2973_v23 = vsub.f32 %v7787_v24, %v6826_v46  ;;  %vm3314_vm11 = vweird.f32 %v6913_v55  ;;  %v7788_v55 = vld [vmem:[#allocation71_spill] sm:$0xff] }
 0x395   : > { %v3011_v21 = vmul.f32 0.5, %v3010_v6  ;;  %3557 = vmatpush.xpose.msra.mxu2 %v3468_v41  ;;  %v3390_v49 = vmul.f32 %v3327_v8, %v2974_v58  ;;  %v3220_v39 = vmul.f32 %v7044_v18, %v3219_v57  ;;  %vm3316_vm12 = vmor %vm3314_vm11, %vm3315_vm7  ;;  %v3391_v62 = vmul.f32 %v3327_v8, %v2975_v25  ;;  %v2549_v6 = vpop.xlane.xlu1 %2548 }
 0x396   : > { %3577 = vmatpush.xpose.msra.mxu3 %v3469_v7  ;;  %v2803_v17 = vmul.f32 %v6899_v44, %v7744_v27  ;;  %vm3014_vm13 = vweird.f32 %v7004_v59  ;;  %v2912_v46 = vsub.f32 %v6633_v15, %v6942_v29  ;;  %v2913_v41 = vsub.f32 %v7788_v55, %v6942_v29  ;;  %v2546_v0 = vpop.xlane.xlu0 %2545  ;;  %v7790_v55 = vld [vmem:[#allocation31_spill] sm:$0xff] }
 0x397   : > { %v3012_v33 = vsub.f32 1.5, %v3011_v21  ;;  %vm3016_vm14 = vmor %vm3014_vm13, %vm3015_vm9  ;;  %v3317_v57 = vsel %vm3316_vm12, %v6963_v63, %v3313_v20  ;;  %v3287_v35 = vsel %vm7078_vm8, %v6886_v11, %v3283_v50  ;;  %v3307_v44 = vsel %vm7087_vm10, %v6950_v10, %v3303_v51  ;;  %v2741_v11 = vpop.xlane.xlu2 %2740 }
 0x398   : > { %v7113_v59 = vmul.f32 %v2552_v22, %v7744_v27  ;;  %v2867_v58 = vsub.f32 %v2803_v17, %v2835_v2  ;;  %v3221_v8 = vmul.f32 0.5, %v3220_v39  ;;  %v7118_v63 = vmul.f32 %v3287_v35, %v2966_v13 }
 0x399   : > { %v3013_v56 = vmul.f32 %v3989_v36, %v3012_v33  ;;  %v3459_v20 = vmul.f32 %v6415_v5, %v3390_v49  ;;  %v2802_v50 = vmul.f32 %v2744_v26, %v7744_v27  ;;  %v3388_v10 = vmul.f32 %v3317_v57, %v2972_v42 }
 0x39a   : > { %v7125_v22 = vmul.f32 %v3287_v35, %v2967_v40  ;;  %v7129_v25 = vmul.f32 %v2549_v6, %v7744_v27  ;;  %v3389_v13 = vmul.f32 %v3317_v57, %v2973_v23  ;;  %v3386_v7 = vmul.f32 %v3307_v44, %v2970_v12  ;;  %v7791_v57 = vld [vmem:[#allocation69_spill] sm:$0xff] }
 0x39b   : > { %v3017_v15 = vsel %vm3016_vm14, %v3989_v36, %v3013_v56  ;;  %v3460_v36 = vmul.f32 %v6419_v1, %v3391_v62  ;;  %v2899_v26 = vmax.f32 %v2867_v58, 0.0  ;;  %v2834_v42 = vmul.f32 %v7113_v59, %v7113_v59 }
 0x39c   : > { %v3328_v21 = vmul.f32 %v3017_v15, %v2912_v46  ;;  %v3329_v29 = vmul.f32 %v3017_v15, %v2913_v41  ;;  %v3222_v45 = vsub.f32 1.5, %v3221_v8  ;;  %v2801_v40 = vmul.f32 %v2741_v11, %v7744_v27  ;;  %v7792_v8 = vld [vmem:[#allocation21_spill] sm:$0xff]  ;;  %v7793_v11 = vld [vmem:[#allocation34_spill] sm:$0xff] }
 0x39d   : > { %v7140_v3 = vmul.f32 %v2546_v0, %v7744_v27  ;;  %v2866_v2 = vsub.f32 %v2802_v50, %v2834_v42  ;;  %v3528_v9 = vadd.f32 %v6474_v43, %v3459_v20  ;;  %v3457_v12 = vmul.f32 %v6415_v5, %v3388_v10  ;;  %v2738_v62 = vpop.xlane.xlu1 %2737 }
 0x39e   : > { %v3397_v31 = vmul.f32 %v6415_v5, %v3328_v21  ;;  %v3398_v19 = vmul.f32 %v6419_v1, %v3329_v29  ;;  %v3387_v28 = vmul.f32 %v3307_v44, %v2971_v34  ;;  %v2833_v24 = vmul.f32 %v7129_v25, %v7129_v25 }
 0x39f   : > { %v3529_v23 = vadd.f32 %v6485_v47, %v3460_v36  ;;  %v3458_v49 = vmul.f32 %v6419_v1, %v3389_v13  ;;  %v7153_v39 = vadd.f32 1e-05, %v2899_v26  ;;  %v7159_v17 = vmul.f32 %v6982_v30, %v2959_v37  ;;  %v7789_v37 = vld [vmem:[#allocation65_spill] sm:$0xff] }
 0x3a0   : > { %v3466_v51 = vadd.f32 %v6474_v43, %v3397_v31  ;;  %v3467_v33 = vadd.f32 %v6485_v47, %v3398_v19  ;;  %v3223_v4 = vmul.f32 %v7044_v18, %v3222_v45  ;;  %vm3225_vm15 = vweird.f32 %v7044_v18 }
 0x3a1   : > { %v2865_v38 = vsub.f32 %v2801_v40, %v2833_v24  ;;  %v2832_v34 = vmul.f32 %v7140_v3, %v7140_v3  ;;  %v2898_v6 = vmax.f32 %v2866_v2, 0.0  ;;  %v3526_v56 = vadd.f32 %v6474_v43, %v3457_v12  ;;  %v7794_v40 = vld [vmem:[#allocation37_spill] sm:$0xff] }
 0x3a2   : > { %3558 = vmatpush.xpose.msra.mxu2 %v3466_v51  ;;  %3578 = vmatpush.xpose.msra.mxu3 %v3467_v33  ;;  %v3455_v46 = vmul.f32 %v6415_v5, %v3386_v7  ;;  %vm3224_vm1 = vweird.f32 %v6992_v54  ;;  %v2800_v52 = vmul.f32 %v2738_v62, %v7744_v27  ;;  %v3527_v30 = vadd.f32 %v6485_v47, %v3458_v49  ;;  %v7795_v2 = vld [vmem:[#allocation17_spill] sm:$0xff]  ;;  %v7797_v62 = vld [vmem:[#allocation20_spill] sm:$0xff] }
 0x3a3   : > { %v3456_v61 = vmul.f32 %v6419_v1, %v3387_v28  ;;  %v2954_v41 = vsub.f32 %v7790_v55, %v7789_v37  ;;  %vm3226_vm2 = vmor %vm3224_vm1, %vm3225_vm15  ;;  %3992 = vrsqrt.f32 %v7153_v39  ;;  %v2955_v35 = vsub.f32 %v7791_v57, %v7789_v37  ;;  %v7796_v28 = vld [vmem:[#allocation72_spill] sm:$0xff] }
 0x3a4   : > { %v2897_v44 = vmax.f32 %v2865_v38, 0.0  ;;  %v2864_v58 = vsub.f32 %v2800_v52, %v2832_v34  ;;  %v3227_v54 = vsel %vm3226_vm2, %v7044_v18, %v3223_v4  ;;  %v7177_v27 = vadd.f32 1e-05, %v2898_v6 }
 0x3a5   : > { %v3524_v15 = vadd.f32 %v6474_v43, %v3455_v46  ;;  %v3453_v21 = vmul.f32 %v6415_v5, %v7792_v8  ;;  %v7182_v29 = vmul.f32 %v3227_v54, %v2954_v41  ;;  %v3525_v20 = vadd.f32 %v6485_v47, %v3456_v61 }
 0x3a6   : > { %3583 = vmatpush.xpose.msrb.mxu2 %v3528_v9  ;;  %3603 = vmatpush.xpose.msrb.mxu3 %v3529_v23  ;;  %v3454_v50 = vmul.f32 %v6419_v1, %v7793_v11  ;;  %v7187_v0 = vmul.f32 %v3227_v54, %v2955_v35  ;;  %v2896_v10 = vmax.f32 %v2864_v58, 0.0  ;;  %v7191_v36 = vadd.f32 1e-05, %v2897_v44 }
 0x3a7   : > { %3994 = vrsqrt.f32 %v7177_v27  ;;  %v3522_v31 = vadd.f32 %v6474_v43, %v3453_v21  ;;  %v3451_v13 = vmul.f32 %v6415_v5, %v7118_v63  ;;  %v3452_v26 = vmul.f32 %v6419_v1, %v7125_v22  ;;  %v7798_v21 = vld [vmem:[#allocation13_spill] sm:$0xff] }
 0x3a8   : > { %v3523_v7 = vadd.f32 %v6485_v47, %v3454_v50  ;;  %v7202_v19 = vadd.f32 1e-05, %v2896_v10  ;;  %3996 = vrsqrt.f32 %v7191_v36  ;;  %v3449_v51 = vmul.f32 %v6415_v5, %v7794_v40  ;;  %v7799_v10 = vld [vmem:[#allocation29_spill] sm:$0xff] }
 0x3a9   : > { %v7189_v18 = vpop.eup %3992  ;;  %v3520_v45 = vadd.f32 %v6474_v43, %v3451_v13  ;;  %v3521_v63 = vadd.f32 %v6485_v47, %v3452_v26  ;;  %v3450_v33 = vmul.f32 %v6419_v1, %v7795_v2  ;;  %v3447_v24 = vmul.f32 %v6415_v5, %v7796_v28  ;;  %v7800_v13 = vld [vmem:[#allocation23_spill] sm:$0xff]  ;;  %v7801_v26 = vld [vmem:[#allocation60_spill] sm:$0xff] }
 0x3aa   : > { %3584 = vmatpush.xpose.msrb.mxu2 %v3526_v56  ;;  %3604 = vmatpush.xpose.msrb.mxu3 %v3527_v30  ;;  %v3199_v42 = vmul.f32 %v7189_v18, %v7153_v39  ;;  %3998 = vrsqrt.f32 %v7202_v19  ;;  %v3518_v12 = vadd.f32 %v6474_v43, %v3449_v51  ;;  %v3448_v4 = vmul.f32 %v6419_v1, %v7797_v62 }
 0x3ab   : > { %v3519_v49 = vadd.f32 %v6485_v47, %v3450_v33  ;;  %v3516_v6 = vadd.f32 %v6474_v43, %v3447_v24  ;;  %v3445_v56 = vmul.f32 %v6415_v5, %v7009_v32  ;;  %v3446_v37 = vmul.f32 %v6419_v1, %v7014_v48 }
 0x3ac   : > { %v3200_v9 = vmul.f32 %v7189_v18, %v3199_v42  ;;  %v3517_v61 = vadd.f32 %v6485_v47, %v3448_v4  ;;  %v3443_v57 = vmul.f32 %v6415_v5, %v7000_v16  ;;  %v3444_v54 = vmul.f32 %v6419_v1, %v7159_v17 }
 0x3ad   : > { %v7211_v22 = vpop.eup %3994  ;;  %v3514_v32 = vadd.f32 %v6474_v43, %v3445_v56  ;;  %v3515_v58 = vadd.f32 %v6485_v47, %v3446_v37  ;;  %vm3205_vm3 = vweird.f32 %v7189_v18  ;;  %vm3204_vm4 = vweird.f32 %v7153_v39  ;;  %v3531_v39 = vld [vmem:[%s7393_s10] sm:$0xf] }
 0x3ae   : > { %3585 = vmatpush.xpose.msrb.mxu2 %v3524_v15  ;;  %3605 = vmatpush.xpose.msrb.mxu3 %v3525_v20  ;;  %v3189_v23 = vmul.f32 %v7211_v22, %v7177_v27  ;;  %v7223_v38 = vpop.eup %3996  ;;  %v3201_v34 = vmul.f32 0.5, %v3200_v9  ;;  %v3530_v15 = vld [vmem:[%s7392_s9] sm:$0xff]  ;;  %v3512_v8 = vadd.f32 %v6474_v43, %v3443_v57  ;;  %v3441_v20 = vmul.f32 %v6415_v5, %v7798_v21  ;;  %vm3206_vm5 = vmor %vm3204_vm4, %vm3205_vm3  ;;  %v7805_v57 = vld [vmem:[#allocation26_spill] sm:$0xff] }
 0x3af   : > { %v3179_v52 = vmul.f32 %v7223_v38, %v7191_v36  ;;  %3538 = vst [vmem:[#allocation1] ss:$2 sm:$0xff] %v3530_v15  ;;  %v3513_v50 = vadd.f32 %v6485_v47, %v3444_v54  ;;  %v2951_v42 = vsub.f32 %v7801_v26, %v7057_v60  ;;  %v4117_v40 = vmov 0  }
 0x3b0   : > { %v7228_v46 = vpop.eup %3998  ;;  %v3190_v30 = vmul.f32 %v7211_v22, %v3189_v23  ;;  %v3202_v55 = vsub.f32 1.5, %v3201_v34  ;;  %3868 = vset.pattern.permute.xlu2 %v4117_v40  ;;  %vm3195_vm6 = vweird.f32 %v7211_v22  ;;  %v3439_v2 = vmul.f32 %v6415_v5, %v7182_v29  ;;  %3869 = vset.pattern.permute.xlu0 %v4117_v40 }
 0x3b1   : > { %v3169_v41 = vmul.f32 %v7228_v46, %v7202_v19  ;;  %v3180_v35 = vmul.f32 %v7223_v38, %v3179_v52  ;;  %3534 = vperm.xlu2 %3868, %v3531_v39   ;;  %vm3194_vm7 = vweird.f32 %v7177_v27  ;;  %vm3185_vm8 = vweird.f32 %v7223_v38  ;;  %v7803_v52 = vld [vmem:[#allocation38_spill] sm:$0xff] }
 0x3b2   : > { %3586 = vmatpush.xpose.msrb.mxu2 %v3522_v31  ;;  %3606 = vmatpush.xpose.msrb.mxu3 %v3523_v7  ;;  %v3191_v44 = vmul.f32 0.5, %v3190_v30  ;;  %v3203_v48 = vmul.f32 %v7189_v18, %v3202_v55  ;;  %v3442_v31 = vmul.f32 %v6419_v1, %v7799_v10  ;;  %v2950_v7 = vsub.f32 %v7800_v13, %v7057_v60  ;;  %vm3196_vm9 = vmor %vm3194_vm7, %vm3195_vm6 }
 0x3b3   : > { %v3170_v16 = vmul.f32 %v7228_v46, %v3169_v41  ;;  %v3181_v17 = vmul.f32 0.5, %v3180_v35  ;;  %v3437_v62 = vmul.f32 %v6415_v5, %v6965_v53  ;;  %v3438_v4 = vmul.f32 %v6419_v1, %v6967_v14  ;;  %v7804_v41 = vld [vmem:[#allocation39_spill] sm:$0xff] }
 0x3b4   : > { %v3192_v11 = vsub.f32 1.5, %v3191_v44  ;;  %v3511_v60 = vadd.f32 %v6485_v47, %v3442_v31  ;;  %v2949_v30 = vsub.f32 %v7803_v52, %v7113_v59  ;;  %vm3184_vm10 = vweird.f32 %v7191_v36 }
 0x3b5   : > { %v3171_v51 = vmul.f32 0.5, %v3170_v16  ;;  %v3182_v33 = vsub.f32 1.5, %v3181_v17  ;;  %vm3175_vm11 = vweird.f32 %v7228_v46  ;;  %vm3186_vm12 = vmor %vm3184_vm10, %vm3185_vm8  ;;  %v3506_v14 = vadd.f32 %v6474_v43, %v3437_v62 }
 0x3b6   : > { %3587 = vmatpush.xpose.msrb.mxu2 %v3520_v45  ;;  %3607 = vmatpush.xpose.msrb.mxu3 %v3521_v63  ;;  %v3207_v45 = vsel %vm3206_vm5, %v7189_v18, %v3203_v48  ;;  %v3510_v63 = vadd.f32 %v6474_v43, %v3441_v20  ;;  %v3193_v9 = vmul.f32 %v7211_v22, %v3192_v11  ;;  %v3539_v24 = vld.sshfl [vmem:[#allocation1] sm:$0xff pattern:$0x75316420]  ;;  %v3540_v23 = vld.sshfl [vmem:[#allocation1 + $0x8] sm:$0xff pattern:$0x75316420]  ;;  %vm3174_vm13 = vweird.f32 %v7202_v19 }
 0x3b7   : > { %v3440_v18 = vmul.f32 %v6419_v1, %v7187_v0  ;;  %v3367_v28 = vmul.f32 %v3207_v45, %v2951_v42  ;;  %v3172_v29 = vsub.f32 1.5, %v3171_v51  ;;  %3559 = vmatmul.f32.vlgmr.msra.gmra.mxu2 %v3539_v24  ;;  %3579 = vmatmul.f32.vlgmr.msra.gmra.mxu3 %v3540_v23  ;;  %v3183_v0 = vmul.f32 %v7223_v38, %v3182_v33  ;;  %vm3176_vm14 = vmor %vm3174_vm13, %vm3175_vm11  ;;  %v7807_v19 = vld [vmem:[#allocation64_spill] sm:$0xff] }
 0x3b8   : > { %v3197_v34 = vsel %vm3196_vm9, %v7211_v22, %v3193_v9  ;;  %v3507_v37 = vadd.f32 %v6485_v47, %v3438_v4  ;;  %v2947_v35 = vsub.f32 %v7805_v57, %v7129_v25  ;;  %v2945_v21 = vsub.f32 %v7807_v19, %v7140_v3 }
 0x3b9   : > { %v3509_v27 = vadd.f32 %v6485_v47, %v3440_v18  ;;  %v3173_v53 = vmul.f32 %v7228_v46, %v3172_v29  ;;  %v3436_v55 = vmul.f32 %v6419_v1, %v3367_v28  ;;  %v3187_v36 = vsel %vm3186_vm12, %v7223_v38, %v3183_v0 }
 0x3ba   : > { %3588 = vmatpush.xpose.msrb.mxu2 %v3518_v12  ;;  %3608 = vmatpush.xpose.msrb.mxu3 %v3519_v49  ;;  %v3366_v12 = vmul.f32 %v3207_v45, %v2950_v7  ;;  %v3508_v49 = vadd.f32 %v6474_v43, %v3439_v2  ;;  %v3363_v16 = vmul.f32 %v3187_v36, %v2947_v35 }
 0x3bb   : > { %v3177_v38 = vsel %vm3176_vm14, %v7228_v46, %v3173_v53  ;;  %v3505_v48 = vadd.f32 %v6485_v47, %v3436_v55 }
 0x3bc   : > { %v3435_v22 = vmul.f32 %v6415_v5, %v3366_v12  ;;  %v3432_v10 = vmul.f32 %v6419_v1, %v3363_v16 }
 0x3be   : > { %3589 = vmatpush.xpose.msrb.mxu2 %v3516_v6  ;;  %3609 = vmatpush.xpose.msrb.mxu3 %v3517_v61  ;;  %v7802_v6 = vld [vmem:[#allocation40_spill] sm:$0xff]  ;;  %v3504_v44 = vadd.f32 %v6474_v43, %v3435_v22 }
 0x3bf   : > { %v2948_v56 = vsub.f32 %v7802_v6, %v7113_v59  ;;  %v3365_v59 = vmul.f32 %v3197_v34, %v2949_v30 }
 0x3c1   : > { %v3364_v61 = vmul.f32 %v3197_v34, %v2948_v56  ;;  %v3434_v15 = vmul.f32 %v6419_v1, %v3365_v59 }
 0x3c2   : > { %3590 = vmatpush.xpose.msrb.mxu2 %v3514_v32  ;;  %3610 = vmatpush.xpose.msrb.mxu3 %v3515_v58  ;;  %v2946_v32 = vsub.f32 %v7804_v41, %v7129_v25  ;;  %v7806_v25 = vld [vmem:[#allocation10_spill] sm:$0xff] }
 0x3c3   : > { %v3433_v58 = vmul.f32 %v6415_v5, %v3364_v61  ;;  %v3503_v46 = vadd.f32 %v6485_v47, %v3434_v15 }
 0x3c4   : > { %v3362_v54 = vmul.f32 %v3187_v36, %v2946_v32 }
 0x3c5   : > { %v3502_v17 = vadd.f32 %v6474_v43, %v3433_v58 }
 0x3c6   : > { %3591 = vmatpush.xpose.msrb.mxu2 %v3512_v8  ;;  %3611 = vmatpush.xpose.msrb.mxu3 %v3513_v50  ;;  %v2944_v8 = vsub.f32 %v7806_v25, %v7140_v3  ;;  %v3431_v11 = vmul.f32 %v6415_v5, %v3362_v54  ;;  %v3361_v50 = vmul.f32 %v3177_v38, %v2945_v21 }
 0x3c7   : > { %v3501_v3 = vadd.f32 %v6485_v47, %v3432_v10 }
 0x3c8   : > { %v3360_v20 = vmul.f32 %v3177_v38, %v2944_v8  ;;  %v3500_v31 = vadd.f32 %v6474_v43, %v3431_v11  ;;  %v3430_v13 = vmul.f32 %v6419_v1, %v3361_v50 }
 0x3ca   : > { %3592 = vmatpush.xpose.msrb.mxu2 %v3510_v63  ;;  %3612 = vmatpush.xpose.msrb.mxu3 %v3511_v60  ;;  %v3429_v39 = vmul.f32 %v6415_v5, %v3360_v20  ;;  %v3499_v26 = vadd.f32 %v6485_v47, %v3430_v13 }
 0x3cc   : > { %v3498_v7 = vadd.f32 %v6474_v43, %v3429_v39 }
 0x3ce   : > { %3593 = vmatpush.xpose.msrb.mxu2 %v3508_v49  ;;  %3613 = vmatpush.xpose.msrb.mxu3 %v3509_v27 }
 0x3d2   : > { %3594 = vmatpush.xpose.msrb.mxu2 %v3506_v14  ;;  %3614 = vmatpush.xpose.msrb.mxu3 %v3507_v37 }
 0x3d6   : > { %3595 = vmatpush.xpose.msrb.mxu2 %v3504_v44  ;;  %3615 = vmatpush.xpose.msrb.mxu3 %v3505_v48 }
 0x3da   : > { %3596 = vmatpush.xpose.msrb.mxu2 %v3502_v17  ;;  %3616 = vmatpush.xpose.msrb.mxu3 %v3503_v46 }
 0x3de   : > { %3597 = vmatpush.xpose.msrb.mxu2 %v3500_v31  ;;  %3617 = vmatpush.xpose.msrb.mxu3 %v3501_v3 }
 0x3e2   : > { %3598 = vmatpush.xpose.msrb.mxu2 %v3498_v7  ;;  %3618 = vmatpush.xpose.msrb.mxu3 %v3499_v26 }
 0x3e5   : > { %3599 = vmatmul.f32.vlgmr.msrb.gmra.mxu2 %v3539_v24  ;;  %3619 = vmatmul.f32.vlgmr.msrb.gmra.mxu3 %v3540_v23 }
 0x40b   : > { %v3535_v40 = vpop.permute.xlu2 %3534 }
 0x43a   : > { %v3560_v42 = vpop.f32.mrf.mxu2  ;;  %v3580_v45 = vpop.f32.mrf.mxu3 }
 0x43b   : > { %v3561_v51 = vadd.f32 %v3560_v42, %v3535_v40 }
 0x43d   : > { %v3581_v33 = vadd.f32 %v3580_v45, %v3561_v51 }
 0x468   : > { %v3600_v5 = vpop.f32.mrf.mxu2  ;;  %v3620_v2 = vpop.f32.mrf.mxu3 }
 0x469   : > { %v3601_v63 = vadd.f32 %v3600_v5, %v3535_v40 }
 0x46b   : > { %v3621_v1 = vadd.f32 %v3620_v2, %v3601_v63 }
 0x46d   : > { %4000 = vtanh.f32 %v3621_v1 }
 0x46e   : > { %4002 = vtanh.f32 %v3581_v33 }
 0x473   : > { %v4001_v43 = vpop.eup %4000  ;;  %3638 = sbr.rel (!%p4217_p5) target bundleno = 1175 (0x497), region = 72 }
 0x474   : > { %v3627_v9 = vrot.slane %v4001_v43, 4  ;;  %v4003_v47 = vpop.eup %4002 }
 0x476   : > { %v3628_v60 = vsel %vm568_vm0, %v4003_v47, %v3627_v9 }
 0x477   : > { %3630 = vst [vmem:[%s409_s15] sm:$0xff] %v3628_v60 }
 0x478   : > { %s7817_s24 = smov (!%p3641_p0, %s3640_s24), 2 }
 0x479   : > { %s3803_s5 = sshll.u32 %s7817_s24, 2 }
 0x47a   : > { %s3644_s25 = ssub.s32 8, %s3803_s5 }
 0x47b   : > { %s3645_s29 = sshll.u32 %s3644_s25, 4 }
 0x47c   : > { %3646 = vsyncadd %s7328_s16, %s3645_s29  ;;  %p7337_p1 = scmp.ne.s32.totalorder %s3803_s5, 0  ;;  %s3810_s27 = sshll.u32 %s4200_s21, 3 }
 0x47d   : > { %s3649_s14 = scalar_lea.hbm %s7394_s11, %s3810_s27  ;;  %s7501_s22 = sshll.u32 %s7817_s24, 6 }
 0x47e   : > { %s7346_s0 = sshll.u32 %s409_s15, 4  ;;  %s3654_s1 = sshll.u32 %s3649_s14, 4  ;;  %s3653_s0 = int_to_ptr.vmem [resolvable:$true] %s7346_s0  ;;  %s3655_s1 = int_to_ptr.hbm [resolvable:$true] %s3654_s1 }
 0x47f   : > { %s4034_s25 = sshra.s32 %s3653_s0, 4  ;;  %s4036_s5 = sshrl.u32 %s7501_s22, 4  ;;  %s4035_s25 = int_to_ptr.vmem [resolvable:$true] %s4034_s25 }
 0x480   : > { %s4041_s29 = scalar_lea.vmem %s4035_s25, %s4036_s5  ;;  %s4118_s21 = smov [#allocation5]  }
 0x481   : > { %p4042_p2 = scmp.ne.s32.totalorder %s4035_s25, %s4041_s29  ;;  %s4045_s2 = scalar_lea.vmem %s4118_s21, 16 }
 0x482   : > { %p4047_p5 = scmp.lt.s32.totalorder %s4045_s2, %s4041_s29 }
 0x483   : > { %p4043_p3 = pnand %p4042_p2, %p7337_p1 }
 0x485   : > { %p4044_p4 = pneg %p4043_p3 }
 0x487   : > { %p4049_p7 = pnand %p4047_p5, %p4044_p4 }
 0x489   : > { %4052 = shalt.err (!%p4049_p7)
}
 0x48a   : > { %s4053_s15 = sshra.s32 %s3655_s1, 4  ;;  %s4064_s14 = scalar_lea.hbm %s7394_s11, 12  ;;  %s4054_s15 = int_to_ptr.hbm [resolvable:$true] %s4053_s15 }
 0x48b   : > { %s4060_s27 = scalar_lea.hbm %s4054_s15, %s4036_s5  ;;  %p4065_p11 = scmp.lt.s32.totalorder %s4054_s15, %s7394_s11 }
 0x48c   : > { %p4061_p8 = scmp.ne.s32.totalorder %s4054_s15, %s4060_s27  ;;  %p4066_p12 = scmp.lt.s32.totalorder %s4064_s14, %s4060_s27 }
 0x48e   : > { %p4062_p9 = pnand %p4061_p8, %p7337_p1  ;;  %p4067_p13 = por %p4066_p12, %p4065_p11 }
 0x490   : > { %p4063_p10 = pneg %p4062_p9 }
 0x492   : > { %p4068_p0 = pnand %p4067_p13, %p4063_p10 }
 0x494   : > { %4071 = shalt.err (!%p4068_p0)
}
 0x495   : > { %s7809_s2 = sshll.u32 %s7817_s24, 6 }
 0x496   : > { %3657 = dma.vmem_to_hbm [thread:$0]  (%p7337_p1), %s3653_s0, %s7809_s2, %s3655_s1, %s7328_s16  }
 0x497 PF: > { %p3830_p2 = scmp.ge.s32.totalorder %s4111_s20, 2  ;;  %s3666_s5 = sand.u32 1, %s4099_s17  }
 0x498   : > { %s3667_s22 = scalar_lea.sflag [#allocation4], %s3666_s5 }
 0x499   : > { %p3825_p3 = pnand %p3830_p2, %p4221_p6 }
 0x49b   : > { %p3826_p4 = pneg %p3825_p3 }
 0x49d   : > { %4094 = dma.done.wait (%p3826_p4), %s3667_s22, 128  }
 0x49e   : > { %4096 = vsyncadd (%p3826_p4), %s3667_s22, 4294967168  ;;  %p22_p5 = scmp.ge.s32.totalorder %s4204_s23, 4   ;;  %s7810_s17 = smov %s4103_s18 }
 0x49f   : > { %s7811_s18 = smov %s4107_s19  ;;  %s7812_s19 = smov %s4215_s26 }
 0x4a0   : > { %s7813_s20 = smov %s4204_s23  ;;  %24 = sbr.rel (!%p22_p5) target bundleno = 9 (0x9), region = 104 }
 0x4a5   :  { %3673 = vsyncpa [#allocation3], 1 }
 0x4a6   :  { %3675 = vsyncpa [#allocation3 + $0x1], 1 }
 0x4a7   :  { %3676 = vsyncpa [#allocation4], 1 }
 0x4a8   :  { %3678 = vsyncpa [#allocation4 + $0x1], 1 }

// kernel: tpu_custom_call.1
= control target key start
LH: loop header
LB: loop body
LE: loop exit
PB: predicated region body
PF: predicated region fallthrough
CT: control target
= control target key end

     0   :  { %s7383_s0 = inlined_call_operand.vmem [shape: f32[300,12], index: 0, kind: input, shape index: {}]   ;;  %s7384_s1 = inlined_call_operand.vmem [shape: f32[12,256], index: 1, kind: input, shape index: {}]   ;;  %s7385_s2 = inlined_call_operand.vmem [shape: f32[1,256], index: 2, kind: input, shape index: {}]   ;;  %s7386_s3 = inlined_call_operand.vmem [shape: f32[1,256], index: 3, kind: input, shape index: {}]   ;;  %s7387_s4 = inlined_call_operand.vmem [shape: f32[1,256], index: 4, kind: input, shape index: {}]   ;;  %s7388_s5 = inlined_call_operand.hbm [shape: f32[256,256], index: 5, kind: input, shape index: {}]   ;;  %s7389_s6 = inlined_call_operand.vmem [shape: f32[1,256], index: 6, kind: input, shape index: {}]   ;;  %s7390_s7 = inlined_call_operand.vmem [shape: f32[1,256], index: 7, kind: input, shape index: {}]   ;;  %s7391_s8 = inlined_call_operand.vmem [shape: f32[1,256], index: 8, kind: input, shape index: {}]   ;;  %s7392_s9 = inlined_call_operand.vmem [shape: f32[4,256], index: 9, kind: input, shape index: {}]   ;;  %s7393_s10 = inlined_call_operand.vmem [shape: f32[4,1], index: 10, kind: input, shape index: {}]   ;;  %s7394_s11 = inlined_call_operand.hbm [shape: f32[4,300], index: 11, kind: output, shape index: {}]  }
   0x1   :  { %7502 = sst [smem:[#allocation73_spill]] %s7383_s0 }
   0x2   :  { %7503 = sst [smem:[#allocation74_spill]] %s7384_s1 }
   0x3   :  { %7504 = sst [smem:[#allocation75_spill]] %s7385_s2 }
   0x4   :  { %7505 = sst [smem:[#allocation76_spill]] %s7388_s5 }
   0x5   :  { %16 = vsyncpa [#allocation3], 0 }
   0x6   :  { %17 = vsyncpa [#allocation4], 0 }
   0x7   :  { %19 = vsyncpa [#allocation4 + $0x1], 0  ;;  %s4179_s17 = smov 0   ;;  %s4181_s18 = smov 0  }
   0x8   :  { %s4183_s19 = smov 0   ;;  %s4185_s20 = smov 0  }
   0x9 LB: > { %s4200_s21 = sadd.s32 4294967295, %s4111_s20   ;;  %s3726_s22 = sadd.s32 4294967294, %s4111_s20   ;;  %s4111_s20 = sphi %s4185_s20, %s7813_s20   ;;  %s4107_s19 = sphi %s4183_s19, %s7812_s19   ;;  %s4103_s18 = sphi %s4181_s18, %s7811_s18   ;;  %s4099_s17 = sphi %s4179_s17, %s7810_s17  }
   0xa   : > { %s4204_s23 = sadd.s32 1, %s4111_s20   ;;  %s268_s24 = sadd.s32 1, %s4107_s19 }
   0xb   : > { %s265_s25 = ssub.s32 %s4111_s20, %s4204_s23  ;;  %p278_p0 = scmp.ne.s32.totalorder %s4107_s19, %s4103_s18 }
   0xc   : > { %p266_p1 = scmp.eq.s32.totalorder %s265_s25, 0  ;;  %p279_p2 = scmp.eq.s32.totalorder %s4200_s21, 1 }
   0xd   : > { %p284_p3 = scmp.ne.s32.totalorder %s4103_s18, %s4099_s17  ;;  %p285_p4 = scmp.eq.s32.totalorder %s3726_s22, 1 }
   0xe   : > { %s4215_s26 = scalar_select %p266_p1, %s4107_s19, %s268_s24  }
   0xf   : > { %p4217_p5 = por %p279_p2, %p278_p0  ;;  %p4221_p6 = por %p285_p4, %p284_p3 }
  0x10   : > { %p3727_p7 = scmp.ge.s32.totalorder %s4111_s20, 1  ;;  %p292_p8 = scmp.lt.s32.totalorder %s4111_s20, 3 }
  0x11   : > { %p3828_p9 = scmp.eq.s32.totalorder %s4200_s21, 0  ;;  %s7508_s5 = sld [smem:[#allocation76_spill]] }
  0x12   : > { %p293_p10 = pnand %p3727_p7, %p292_p8  ;;  %s4113_s13 = smov [#allocation2]  }
  0x13   : > { %s317_s14 = sshll.u32 %s4113_s13, 4  ;;  %s4114_s15 = smov 256   ;;  %s318_s14 = int_to_ptr.vmem [resolvable:$true] %s317_s14 }
  0x14   : > { %p3820_p11 = pneg %p293_p10  ;;  %s4115_s16 = smov 16  }
  0x15   : > { %365 = sbr.rel (%p293_p10) target bundleno = 1175 (0x497), region = 64 }
  0x16   : > { %p3821_p12 = pnand %p3828_p9, %p3820_p11 }
  0x17   : > { %s315_s12 = sshll.u32 %s7508_s5, 4  ;;  %s316_s12 = int_to_ptr.hbm [resolvable:$true] %s315_s12 }
  0x18   : > { %3823 = dma.hbm_to_vmem [thread:$0]  (!%p3821_p12), %s316_s12, 8192, %s318_s14, [#allocation3], %s4114_s15, %s4114_s15, %s4115_s16  }
  0x1a   : > { %4090 = dma.done.wait (%p3828_p9), [#allocation3], 8192  }
  0x1b   : > { %4092 = vsyncadd (%p3828_p9), [#allocation3], 4294959104  ;;  %s3733_s22 = sshll.u32 %s4200_s21, 5  ;;  %vm568_vm0 = vcmask 1043456   ;;  %s7509_s0 = sld [smem:[#allocation73_spill]]  ;;  %vm471_vm1 = vcmask 97280  }
  0x1c   : > { %p415_p13 = scmp.lt.s32.totalorder %s3733_s22, 37  ;;  %s7510_s1 = sld [smem:[#allocation74_spill]] }
  0x1d   : > { %s7511_s2 = sld [smem:[#allocation75_spill]]  ;;  %s407_s12 = sand.u32 1, %s4103_s18  }
  0x1e   : > { %s7815_s22 = smov (!%p415_p13, %s3733_s22), 37  ;;  %s3732_s14 = sshll.u32 %s407_s12, 3 }
  0x1f   : > { %s3734_s24 = sshll.u32 %s7815_s22, 3  ;;  %s409_s15 = scalar_lea.vmem [#allocation5], %s3732_s14 }
  0x20   : > { %s7328_s16 = scalar_lea.sflag [#allocation4], %s407_s12  ;;  %s3802_s22 = sshll.u32 (%p4217_p5), %s4200_s21, 1 }
  0x21   : > { %s4241_s30 = scalar_lea.vmem %s7509_s0, %s3734_s24  ;;  %s3640_s24 = ssub.s32 (%p4217_p5), 3, %s3802_s22 }
  0x22   : > { %v463_v0 = vld [vmem:[%s7510_s1 + $0x10] sm:$0xf]  ;;  %v464_v1 = vld [vmem:[%s7510_s1 + $0x18] sm:$0xf]  ;;  %v461_v2 = vld [vmem:[%s7510_s1] sm:$0xff]  ;;  %p3641_p0 = scmp.lt.s32.totalorder (%p4217_p5), %s3640_s24, 2 }
  0x23   : > { %3735 = vmatpush.msk.msra.mxu0 %vm568_vm0, %v463_v0  ;;  %3768 = vmatpush.msk.msra.mxu1 %vm568_vm0, %v464_v1  ;;  %v462_v3 = vld [vmem:[%s7510_s1 + $0x8] sm:$0xff]  ;;  %v429_v4 = vld [vmem:[%s4241_s30] sm:$0xff]  ;;  %v431_v6 = vld [vmem:[%s4241_s30 + $0x10] sm:$0xff] }
  0x24   : > { %3813 = vmatpush.msk.msra.mxu3 %vm568_vm0, %v464_v1  ;;  %3811 = vmatpush.msk.msra.mxu2 %vm568_vm0, %v463_v0  ;;  %v430_v5 = vld [vmem:[%s4241_s30 + $0x8] sm:$0xff]  ;;  %v432_v7 = vld [vmem:[%s4241_s30 + $0x18] sm:$0xff]  ;;  %v433_v8 = vld [vmem:[%s4241_s30 + $0x20] sm:$0xff] }
  0x25   : > { %590 = vmatpush.msra.mxu0 %v461_v2  ;;  %703 = vmatpush.msra.mxu1 %v462_v3  ;;  %v434_v9 = vld [vmem:[%s4241_s30 + $0x28] sm:$0xff]  ;;  %v435_v10 = vld [vmem:[%s4241_s30 + $0x30] sm:$0xff]  ;;  %v436_v11 = vld [vmem:[%s4241_s30 + $0x38] sm:$0xff] }
  0x26   : > { %3736 = vmatmul.msk.f32.vlgmr.msra.gmra.mxu0 %vm471_vm1, %v429_v4  ;;  %3769 = vmatmul.msk.f32.vlgmr.msra.gmra.mxu1 %vm471_vm1, %v429_v4  ;;  %v437_v12 = vld [vmem:[%s4241_s30 + $0x40] sm:$0xff]  ;;  %v438_v13 = vld [vmem:[%s4241_s30 + $0x48] sm:$0xff]  ;;  %v439_v14 = vld [vmem:[%s4241_s30 + $0x50] sm:$0xff] }
  0x27   : > { %3814 = vmatpush.msra.mxu3 %v462_v3  ;;  %3812 = vmatpush.msra.mxu2 %v461_v2  ;;  %v440_v15 = vld [vmem:[%s4241_s30 + $0x58] sm:$0xff]  ;;  %v441_v16 = vld [vmem:[%s4241_s30 + $0x60] sm:$0xff]  ;;  %v4299_v17 = vld [vmem:[%s4241_s30 + $0xa8] sm:$0xff] }
  0x28   : > { %3790 = vmatmul.msk.f32.vlgmr.msra.gmra.mxu3 %vm471_vm1, %v4299_v17  ;;  %v442_v18 = vld [vmem:[%s4241_s30 + $0x68] sm:$0xff]  ;;  %v451_v19 = vld [vmem:[%s4241_s30 + $0xb0] sm:$0xff]  ;;  %v452_v21 = vld [vmem:[%s4241_s30 + $0xb8] sm:$0xff] }
  0x29   : > { %3758 = vmatmul.msk.f32.vlgmr.msra.gmra.mxu2 %vm471_vm1, %v451_v19  ;;  %v443_v20 = vld [vmem:[%s4241_s30 + $0x70] sm:$0xff]  ;;  %v444_v22 = vld [vmem:[%s4241_s30 + $0x78] sm:$0xff]  ;;  %v465_v23 = vld [vmem:[%s7511_s2] sm:$0x3] }
  0x2a   : > { %v453_v24 = vld [vmem:[%s4241_s30 + $0xc0] sm:$0xff]  ;;  %v4324_v25 = vperm.slane %v465_v23, 0  ;;  %v4326_v26 = vperm.slane %v465_v23, 1  ;;  %v454_v34 = vld [vmem:[%s4241_s30 + $0xc8] sm:$0xff]  ;;  %v455_v45 = vld [vmem:[%s4241_s30 + $0xd0] sm:$0xff] }
  0x2b   : > { %v445_v29 = vld [vmem:[%s4241_s30 + $0x80] sm:$0xff]  ;;  %v446_v38 = vld [vmem:[%s4241_s30 + $0x88] sm:$0xff]  ;;  %v447_v50 = vld [vmem:[%s4241_s30 + $0x90] sm:$0xff] }
  0x2c   : > { %v456_v57 = vld [vmem:[%s4241_s30 + $0xd8] sm:$0xff] }
  0x2d   : > { %v448_v62 = vld [vmem:[%s4241_s30 + $0x98] sm:$0xff] }
  0x2e   : > { %3737 = vmatmul.msk.f32.gmra.mxu0 %vm471_vm1, %v430_v5  ;;  %3770 = vmatmul.msk.f32.gmra.mxu1 %vm471_vm1, %v430_v5  ;;  %v1939_v5 = vld [vmem:[#allocation2 + $0xf8] sm:$0xff] }
  0x2f   : > { %2204 = vmatpush.msrb.mxu0 %v1939_v5 }
  0x30   : > { %3791 = vmatmul.msk.f32.gmra.mxu3 %vm471_vm1, %v451_v19 }
  0x31   : > { %3759 = vmatmul.msk.f32.gmra.mxu2 %vm471_vm1, %v452_v21 }
  0x36   : > { %3738 = vmatmul.msk.f32.gmra.mxu0 %vm471_vm1, %v431_v6  ;;  %3771 = vmatmul.msk.f32.gmra.mxu1 %vm471_vm1, %v431_v6  ;;  %v457_v6 = vld [vmem:[%s4241_s30 + $0xe0] sm:$0xff] }
  0x38   : > { %3792 = vmatmul.msk.f32.gmra.mxu3 %vm471_vm1, %v452_v21 }
  0x39   : > { %3760 = vmatmul.msk.f32.gmra.mxu2 %vm471_vm1, %v453_v24 }
  0x3e   : > { %3739 = vmatmul.msk.f32.gmra.mxu0 %vm471_vm1, %v432_v7  ;;  %3772 = vmatmul.msk.f32.gmra.mxu1 %vm471_vm1, %v432_v7 }
  0x40   : > { %3793 = vmatmul.msk.f32.gmra.mxu3 %vm471_vm1, %v453_v24 }
  0x41   : > { %3761 = vmatmul.msk.f32.gmra.mxu2 %vm471_vm1, %v454_v34 }
  0x46   : > { %3740 = vmatmul.msk.f32.gmra.mxu0 %vm471_vm1, %v433_v8  ;;  %3773 = vmatmul.msk.f32.gmra.mxu1 %vm471_vm1, %v433_v8 }
  0x48   : > { %3794 = vmatmul.msk.f32.gmra.mxu3 %vm471_vm1, %v454_v34 }
  0x49   : > { %3762 = vmatmul.msk.f32.gmra.mxu2 %vm471_vm1, %v455_v45 }
  0x4e   : > { %3741 = vmatmul.msk.f32.gmra.mxu0 %vm471_vm1, %v434_v9  ;;  %3774 = vmatmul.msk.f32.gmra.mxu1 %vm471_vm1, %v434_v9 }
  0x50   : > { %3795 = vmatmul.msk.f32.gmra.mxu3 %vm471_vm1, %v455_v45 }
  0x51   : > { %3763 = vmatmul.msk.f32.gmra.mxu2 %vm471_vm1, %v456_v57 }
  0x56   : > { %3742 = vmatmul.msk.f32.gmra.mxu0 %vm471_vm1, %v435_v10  ;;  %3775 = vmatmul.msk.f32.gmra.mxu1 %vm471_vm1, %v435_v10 }
  0x58   : > { %3796 = vmatmul.msk.f32.gmra.mxu3 %vm471_vm1, %v456_v57 }
  0x59   : > { %3764 = vmatmul.msk.f32.gmra.mxu2 %vm471_vm1, %v457_v6 }
  0x5e   : > { %3743 = vmatmul.msk.f32.gmra.mxu0 %vm471_vm1, %v436_v11  ;;  %3776 = vmatmul.msk.f32.gmra.mxu1 %vm471_vm1, %v436_v11 }
  0x60   : > { %3797 = vmatmul.msk.f32.gmra.mxu3 %vm471_vm1, %v457_v6 }
  0x66   : > { %3744 = vmatmul.msk.f32.gmra.mxu0 %vm471_vm1, %v437_v12  ;;  %3777 = vmatmul.msk.f32.gmra.mxu1 %vm471_vm1, %v437_v12 }
  0x6e   : > { %3745 = vmatmul.msk.f32.gmra.mxu0 %vm471_vm1, %v438_v13  ;;  %3778 = vmatmul.msk.f32.gmra.mxu1 %vm471_vm1, %v438_v13 }
  0x76   : > { %3746 = vmatmul.msk.f32.gmra.mxu0 %vm471_vm1, %v439_v14  ;;  %3779 = vmatmul.msk.f32.gmra.mxu1 %vm471_vm1, %v439_v14  ;;  %v449_v14 = vld [vmem:[%s4241_s30 + $0xa0] sm:$0xff] }
  0x7e   : > { %3747 = vmatmul.msk.f32.gmra.mxu0 %vm471_vm1, %v440_v15  ;;  %3780 = vmatmul.msk.f32.gmra.mxu1 %vm471_vm1, %v440_v15 }
  0x86   : > { %3748 = vmatmul.msk.f32.gmra.mxu0 %vm471_vm1, %v441_v16  ;;  %3781 = vmatmul.msk.f32.gmra.mxu1 %vm471_vm1, %v441_v16 }
  0x8e   : > { %3749 = vmatmul.msk.f32.gmra.mxu0 %vm471_vm1, %v442_v18  ;;  %3782 = vmatmul.msk.f32.gmra.mxu1 %vm471_vm1, %v442_v18 }
  0x96   : > { %3750 = vmatmul.msk.f32.gmra.mxu0 %vm471_vm1, %v443_v20  ;;  %3783 = vmatmul.msk.f32.gmra.mxu1 %vm471_vm1, %v443_v20  ;;  %v458_v20 = vld [vmem:[%s4241_s30 + $0xe8] sm:$0xff] }
  0x97   : > { %3765 = vmatmul.msk.f32.gmra.mxu2 %vm471_vm1, %v458_v20  ;;  %3798 = vmatmul.msk.f32.gmra.mxu3 %vm471_vm1, %v458_v20 }
  0x9e   : > { %3751 = vmatmul.msk.f32.gmra.mxu0 %vm471_vm1, %v444_v22  ;;  %3784 = vmatmul.msk.f32.gmra.mxu1 %vm471_vm1, %v444_v22 }
  0xa3   : > { %v592_v27 = vpop.f32.mrf.mxu0  ;;  %v705_v28 = vpop.f32.mrf.mxu1 }
  0xa4   : > { %v593_v30 = vadd.f32 %v592_v27, %v4324_v25  ;;  %v706_v31 = vadd.f32 %v705_v28, %v4326_v26 }
  0xa6   : > { %v4331_v32 = vmax.f32 %v593_v30, 0.0  ;;  %v4333_v33 = vmax.f32 %v706_v31, 0.0  ;;  %3752 = vmatmul.msk.f32.gmra.mxu0 %vm471_vm1, %v445_v29  ;;  %3785 = vmatmul.msk.f32.gmra.mxu1 %vm471_vm1, %v445_v29 }
  0xa8   : > { %v867_v35 = vadd.f32 %v4333_v33, %v4331_v32  ;;  %v1002_v41 = vmul.f32 %v4331_v32, %v4331_v32  ;;  %v1003_v42 = vmul.f32 %v4333_v33, %v4333_v33 }
  0xaa   : > { %868 = vadd.xlane.f32.xlu0 %v867_v35  ;;  %v1066_v47 = vadd.f32 %v1003_v42, %v1002_v41  ;;  %v1971_v35 = vld [vmem:[#allocation2 + $0x1f8] sm:$0xff] }
  0xab   : > { %v595_v36 = vpop.f32.mrf.mxu0  ;;  %v708_v37 = vpop.f32.mrf.mxu1  ;;  %2317 = vmatpush.msrb.mxu1 %v1971_v35 }
  0xac   : > { %v596_v39 = vadd.f32 %v595_v36, %v4324_v25  ;;  %v709_v40 = vadd.f32 %v708_v37, %v4326_v26  ;;  %v1937_v36 = vld [vmem:[#allocation2 + $0xe8] sm:$0xff] }
  0xad   : > { %v459_v37 = vld [vmem:[%s4241_s30 + $0xf0] sm:$0xff]  ;;  %2205 = vmatpush.msrb.mxu0 %v1937_v36 }
  0xae   : > { %v4349_v43 = vmax.f32 %v596_v39, 0.0  ;;  %v4351_v44 = vmax.f32 %v709_v40, 0.0  ;;  %3753 = vmatmul.msk.f32.gmra.mxu0 %vm471_vm1, %v446_v38  ;;  %3786 = vmatmul.msk.f32.gmra.mxu1 %vm471_vm1, %v446_v38 }
  0xaf   : > { %3766 = vmatmul.msk.f32.gmra.mxu2 %vm471_vm1, %v459_v37  ;;  %3799 = vmatmul.msk.f32.gmra.mxu3 %vm471_vm1, %v459_v37 }
  0xb0   : > { %v870_v46 = vadd.f32 %v4351_v44, %v4349_v43  ;;  %v1004_v53 = vmul.f32 %v4349_v43, %v4349_v43  ;;  %v1005_v54 = vmul.f32 %v4351_v44, %v4351_v44 }
  0xb2   : > { %871 = vadd.xlane.f32.xlu1 %v870_v46  ;;  %1067 = vadd.xlane.f32.xlu0 %v1066_v47  ;;  %v1069_v59 = vadd.f32 %v1005_v54, %v1004_v53 }
  0xb3   : > { %v598_v48 = vpop.f32.mrf.mxu0  ;;  %v711_v49 = vpop.f32.mrf.mxu1 }
  0xb4   : > { %v599_v51 = vadd.f32 %v598_v48, %v4324_v25  ;;  %v712_v52 = vadd.f32 %v711_v49, %v4326_v26  ;;  %v1969_v49 = vld [vmem:[#allocation2 + $0x1e8] sm:$0xff] }
  0xb5   : > { %2318 = vmatpush.msrb.mxu1 %v1969_v49  ;;  %v1929_v49 = vld [vmem:[#allocation2 + $0xa8] sm:$0xff] }
  0xb6   : > { %v4367_v55 = vmax.f32 %v599_v51, 0.0  ;;  %v4369_v56 = vmax.f32 %v712_v52, 0.0  ;;  %3754 = vmatmul.msk.f32.gmra.mxu0 %vm471_vm1, %v447_v50  ;;  %3787 = vmatmul.msk.f32.gmra.mxu1 %vm471_vm1, %v447_v50  ;;  %v1935_v50 = vld [vmem:[#allocation2 + $0xd8] sm:$0xff]  ;;  %v460_v51 = vld [vmem:[%s4241_s30 + $0xf8] sm:$0xff] }
  0xb7   : > { %2206 = vmatpush.msrb.mxu0 %v1935_v50  ;;  %3767 = vmatmul.msk.f32.gmra.mxu2 %vm471_vm1, %v460_v51 }
  0xb8   : > { %v873_v58 = vadd.f32 %v4369_v56, %v4367_v55  ;;  %v1006_v1 = vmul.f32 %v4367_v55, %v4367_v55  ;;  %v1007_v2 = vmul.f32 %v4369_v56, %v4369_v56  ;;  %3800 = vmatmul.msk.f32.gmra.mxu3 %vm471_vm1, %v460_v51 }
  0xba   : > { %874 = vadd.xlane.f32.xlu2 %v873_v58  ;;  %1070 = vadd.xlane.f32.xlu1 %v1069_v59  ;;  %v1072_v7 = vadd.f32 %v1007_v2, %v1006_v1  ;;  %v1933_v1 = vld [vmem:[#allocation2 + $0xc8] sm:$0xff] }
  0xbb   : > { %v601_v60 = vpop.f32.mrf.mxu0  ;;  %v714_v61 = vpop.f32.mrf.mxu1  ;;  %2207 = vmatpush.msrb.mxu0 %v1933_v1 }
  0xbc   : > { %v602_v63 = vadd.f32 %v601_v60, %v4324_v25  ;;  %v715_v0 = vadd.f32 %v714_v61, %v4326_v26 }
  0xbe   : > { %v4385_v3 = vmax.f32 %v602_v63, 0.0  ;;  %v4387_v4 = vmax.f32 %v715_v0, 0.0  ;;  %3755 = vmatmul.msk.f32.gmra.mxu0 %vm471_vm1, %v448_v62  ;;  %3788 = vmatmul.msk.f32.gmra.mxu1 %vm471_vm1, %v448_v62  ;;  %v1967_v0 = vld [vmem:[#allocation2 + $0x1d8] sm:$0xff] }
  0xbf   : > { %2319 = vmatpush.msrb.mxu1 %v1967_v0 }
  0xc0   : > { %v876_v8 = vadd.f32 %v4387_v4, %v4385_v3  ;;  %v1008_v9 = vmul.f32 %v4385_v3, %v4385_v3  ;;  %v1009_v10 = vmul.f32 %v4387_v4, %v4387_v4 }
  0xc2   : > { %1073 = vadd.xlane.f32.xlu2 %v1072_v7  ;;  %877 = vadd.xlane.f32.xlu0 %v876_v8  ;;  %v1075_v11 = vadd.f32 %v1009_v10, %v1008_v9 }
  0xc3   : > { %v604_v12 = vpop.f32.mrf.mxu0  ;;  %v717_v13 = vpop.f32.mrf.mxu1 }
  0xc4   : > { %v605_v15 = vadd.f32 %v604_v12, %v4324_v25  ;;  %v718_v16 = vadd.f32 %v717_v13, %v4326_v26  ;;  %1076 = vadd.xlane.f32.xlu1 %v1075_v11 }
  0xc6   : > { %v4403_v18 = vmax.f32 %v605_v15, 0.0  ;;  %v4405_v19 = vmax.f32 %v718_v16, 0.0  ;;  %3756 = vmatmul.msk.f32.gmra.mxu0 %vm471_vm1, %v449_v14  ;;  %3789 = vmatmul.msk.f32.gmra.mxu1 %vm471_vm1, %v449_v14 }
  0xc8   : > { %v879_v21 = vadd.f32 %v4405_v19, %v4403_v18  ;;  %v1010_v22 = vmul.f32 %v4403_v18, %v4403_v18  ;;  %v1011_v23 = vmul.f32 %v4405_v19, %v4405_v19 }
  0xca   : > { %880 = vadd.xlane.f32.xlu2 %v879_v21  ;;  %v1078_v24 = vadd.f32 %v1011_v23, %v1010_v22 }
  0xcb   : > { %v607_v27 = vpop.f32.mrf.mxu0  ;;  %v720_v28 = vpop.f32.mrf.mxu1 }
  0xcc   : > { %v608_v29 = vadd.f32 %v607_v27, %v4324_v25  ;;  %v721_v30 = vadd.f32 %v720_v28, %v4326_v26  ;;  %1079 = vadd.xlane.f32.xlu0 %v1078_v24 }
  0xce   : > { %v4420_v31 = vmax.f32 %v608_v29, 0.0  ;;  %v4422_v34 = vmax.f32 %v721_v30, 0.0  ;;  %3757 = vmatmul.msk.f32.gmra.mxu0 %vm471_vm1, %v4299_v17  ;;  %v1965_v29 = vld [vmem:[#allocation2 + $0x1c8] sm:$0xff]  ;;  %v1931_v30 = vld [vmem:[#allocation2 + $0xb8] sm:$0xff] }
  0xcf   : > { %2320 = vmatpush.msrb.mxu1 %v1965_v29  ;;  %2208 = vmatpush.msrb.mxu0 %v1931_v30  ;;  %v1936_v29 = vld [vmem:[#allocation2 + $0xe0] sm:$0xff] }
  0xd0   : > { %v882_v38 = vadd.f32 %v4422_v34, %v4420_v31  ;;  %v1012_v39 = vmul.f32 %v4420_v31, %v4420_v31  ;;  %v1013_v40 = vmul.f32 %v4422_v34, %v4422_v34  ;;  %v1968_v30 = vld [vmem:[#allocation2 + $0x1e0] sm:$0xff] }
  0xd1   : > { %2209 = vmatpush.msrb.mxu0 %v1929_v49  ;;  %v1964_v49 = vld [vmem:[#allocation2 + $0x1c0] sm:$0xff] }
  0xd2   : > { %883 = vadd.xlane.f32.xlu1 %v882_v38  ;;  %v1081_v17 = vadd.f32 %v1013_v40, %v1012_v39 }
  0xd3   : > { %v610_v41 = vpop.f32.mrf.mxu0  ;;  %v723_v42 = vpop.f32.mrf.mxu1 }
  0xd4   : > { %v611_v45 = vadd.f32 %v610_v41, %v4324_v25  ;;  %v724_v46 = vadd.f32 %v723_v42, %v4326_v26  ;;  %1082 = vadd.xlane.f32.xlu2 %v1081_v17 }
  0xd6   : > { %v4437_v47 = vmax.f32 %v611_v45, 0.0  ;;  %v4439_v48 = vmax.f32 %v724_v46, 0.0  ;;  %v1963_v46 = vld [vmem:[#allocation2 + $0x1b8] sm:$0xff] }
  0xd7   : > { %2321 = vmatpush.msrb.mxu1 %v1963_v46  ;;  %v1932_v46 = vld [vmem:[#allocation2 + $0xc0] sm:$0xff] }
  0xd8   : > { %v885_v52 = vadd.f32 %v4439_v48, %v4437_v47  ;;  %v1014_v53 = vmul.f32 %v4437_v47, %v4437_v47  ;;  %v1015_v54 = vmul.f32 %v4439_v48, %v4439_v48 }
  0xda   : > { %886 = vadd.xlane.f32.xlu0 %v885_v52  ;;  %v1084_v57 = vadd.f32 %v1015_v54, %v1014_v53 }
  0xdb   : > { %v613_v58 = vpop.f32.mrf.mxu0  ;;  %v726_v59 = vpop.f32.mrf.mxu1 }
  0xdc   : > { %v614_v60 = vadd.f32 %v613_v58, %v4324_v25  ;;  %v727_v61 = vadd.f32 %v726_v59, %v4326_v26  ;;  %1085 = vadd.xlane.f32.xlu1 %v1084_v57 }
  0xde   : > { %v4452_v62 = vmax.f32 %v614_v60, 0.0  ;;  %v4454_v63 = vmax.f32 %v727_v61, 0.0 }
  0xe0   : > { %v888_v2 = vadd.f32 %v4454_v63, %v4452_v62  ;;  %v1016_v5 = vmul.f32 %v4452_v62, %v4452_v62  ;;  %v1017_v6 = vmul.f32 %v4454_v63, %v4454_v63 }
  0xe2   : > { %889 = vadd.xlane.f32.xlu2 %v888_v2  ;;  %v1087_v7 = vadd.f32 %v1017_v6, %v1016_v5  ;;  %v1961_v5 = vld [vmem:[#allocation2 + $0x1a8] sm:$0xff] }
  0xe3   : > { %v616_v8 = vpop.f32.mrf.mxu0  ;;  %v729_v9 = vpop.f32.mrf.mxu1  ;;  %2322 = vmatpush.msrb.mxu1 %v1961_v5 }
  0xe4   : > { %v617_v10 = vadd.f32 %v616_v8, %v4324_v25  ;;  %v730_v11 = vadd.f32 %v729_v9, %v4326_v26  ;;  %1088 = vadd.xlane.f32.xlu0 %v1087_v7 }
  0xe6   : > { %v4464_v12 = vmax.f32 %v617_v10, 0.0  ;;  %v4466_v13 = vmax.f32 %v730_v11, 0.0 }
  0xe8   : > { %v891_v14 = vadd.f32 %v4466_v13, %v4464_v12  ;;  %v1018_v15 = vmul.f32 %v4464_v12, %v4464_v12  ;;  %v1019_v16 = vmul.f32 %v4466_v13, %v4466_v13 }
  0xea   : > { %892 = vadd.xlane.f32.xlu1 %v891_v14  ;;  %v1090_v20 = vadd.f32 %v1019_v16, %v1018_v15  ;;  %v4116_v15 = vmov 256.0   ;;  %v1927_v16 = vld [vmem:[#allocation2 + $0x98] sm:$0xff] }
  0xeb   : > { %v619_v21 = vpop.f32.mrf.mxu0  ;;  %v732_v22 = vpop.f32.mrf.mxu1  ;;  %3870 = vrcp.f32 %v4116_v15  ;;  %2210 = vmatpush.msrb.mxu0 %v1927_v16 }
  0xec   : > { %v620_v23 = vadd.f32 %v619_v21, %v4324_v25  ;;  %v733_v24 = vadd.f32 %v732_v22, %v4326_v26  ;;  %1091 = vadd.xlane.f32.xlu2 %v1090_v20  ;;  %v1938_v20 = vld [vmem:[#allocation2 + $0xf0] sm:$0xff] }
  0xed   : > { %v1970_v21 = vld [vmem:[#allocation2 + $0x1f0] sm:$0xff]  ;;  %1978 = vmatpush.msrb.mxu2 %v1938_v20  ;;  %v4539_v20 = vpop.f32.mrf.mxu3 }
  0xee   : > { %v4476_v27 = vmax.f32 %v620_v23, 0.0  ;;  %v4478_v28 = vmax.f32 %v733_v24, 0.0  ;;  %2091 = vmatpush.msrb.mxu3 %v1970_v21  ;;  %v1925_v21 = vld [vmem:[#allocation2 + $0x88] sm:$0xff] }
  0xef   : > { %1979 = vmatpush.msrb.mxu2 %v1936_v29  ;;  %2211 = vmatpush.msrb.mxu0 %v1925_v21 }
  0xf0   : > { %7512 = vst [vmem:[#allocation8_spill] sm:$0xff] %v4476_v27  ;;  %v894_v35 = vadd.f32 %v4478_v28, %v4476_v27  ;;  %v1020_v36 = vmul.f32 %v4476_v27, %v4476_v27  ;;  %v1021_v37 = vmul.f32 %v4478_v28, %v4478_v28  ;;  %2092 = vmatpush.msrb.mxu3 %v1968_v30  ;;  %v1957_v30 = vld [vmem:[#allocation2 + $0x188] sm:$0xff] }
  0xf1   : > { %7513 = vst [vmem:[#allocation9_spill] sm:$0xff] %v4478_v28 }
  0xf2   : > { %895 = vadd.xlane.f32.xlu0 %v894_v35  ;;  %v1093_v38 = vadd.f32 %v1021_v37, %v1020_v36 }
  0xf3   : > { %v622_v39 = vpop.f32.mrf.mxu0  ;;  %v735_v40 = vpop.f32.mrf.mxu1 }
  0xf4   : > { %v623_v17 = vadd.f32 %v622_v39, %v4324_v25  ;;  %v736_v41 = vadd.f32 %v735_v40, %v4326_v26  ;;  %1094 = vadd.xlane.f32.xlu1 %v1093_v38  ;;  %v1934_v38 = vld [vmem:[#allocation2 + $0xd0] sm:$0xff]  ;;  %v4522_v40 = vpop.eup %3870 }
  0xf5   : > { %v1966_v39 = vld [vmem:[#allocation2 + $0x1d0] sm:$0xff]  ;;  %1980 = vmatpush.msrb.mxu2 %v1934_v38  ;;  %v1923_v38 = vld [vmem:[#allocation2 + $0x78] sm:$0xff]  ;;  %vm968_vm2 = vweird.f32 %v4522_v40  ;;  %v4562_v21 = vpop.f32.mrf.mxu3 }
  0xf6   : > { %v4488_v42 = vmax.f32 %v623_v17, 0.0  ;;  %v4490_v45 = vmax.f32 %v736_v41, 0.0  ;;  %2093 = vmatpush.msrb.mxu3 %v1966_v39  ;;  %2212 = vmatpush.msrb.mxu0 %v1923_v38 }
  0xf7   : > { %1981 = vmatpush.msrb.mxu2 %v1932_v46  ;;  %v1955_v46 = vld [vmem:[#allocation2 + $0x178] sm:$0xff] }
  0xf8   : > { %7514 = vst [vmem:[#allocation10_spill] sm:$0xff] %v4488_v42  ;;  %v897_v50 = vadd.f32 %v4490_v45, %v4488_v42  ;;  %v1022_v51 = vmul.f32 %v4488_v42, %v4488_v42  ;;  %v1023_v52 = vmul.f32 %v4490_v45, %v4490_v45  ;;  %2094 = vmatpush.msrb.mxu3 %v1964_v49  ;;  %v1920_v49 = vld [vmem:[#allocation2 + $0x60] sm:$0xff] }
  0xf9   : > { %7515 = vst [vmem:[#allocation11_spill] sm:$0xff] %v4490_v45 }
  0xfa   : > { %898 = vadd.xlane.f32.xlu2 %v897_v50  ;;  %v1096_v53 = vadd.f32 %v1023_v52, %v1022_v51  ;;  %v964_v52 = vmul.f32 256.0, %v4522_v40 }
  0xfb   : > { %v625_v54 = vpop.f32.mrf.mxu0  ;;  %v738_v57 = vpop.f32.mrf.mxu1 }
  0xfc   : > { %v626_v58 = vadd.f32 %v625_v54, %v4324_v25  ;;  %v739_v59 = vadd.f32 %v738_v57, %v4326_v26  ;;  %1097 = vadd.xlane.f32.xlu0 %v1096_v53  ;;  %v1930_v53 = vld [vmem:[#allocation2 + $0xb0] sm:$0xff] }
  0xfd   : > { %v1962_v54 = vld [vmem:[#allocation2 + $0x1b0] sm:$0xff]  ;;  %1982 = vmatpush.msrb.mxu2 %v1930_v53  ;;  %v1921_v53 = vld [vmem:[#allocation2 + $0x68] sm:$0xff] }
  0xfe   : > { %v4500_v60 = vmax.f32 %v626_v58, 0.0  ;;  %v4502_v61 = vmax.f32 %v739_v59, 0.0  ;;  %2095 = vmatpush.msrb.mxu3 %v1962_v54  ;;  %2213 = vmatpush.msrb.mxu0 %v1921_v53 }
 0x100   : > { %7516 = vst [vmem:[#allocation12_spill] sm:$0xff] %v4500_v60  ;;  %v900_v0 = vadd.f32 %v4502_v61, %v4500_v60  ;;  %v1024_v1 = vmul.f32 %v4500_v60, %v4500_v60  ;;  %v1025_v2 = vmul.f32 %v4502_v61, %v4502_v61 }
 0x101   : > { %7517 = vst [vmem:[#allocation13_spill] sm:$0xff] %v4502_v61 }
 0x102   : > { %901 = vadd.xlane.f32.xlu1 %v900_v0  ;;  %v1099_v6 = vadd.f32 %v1025_v2, %v1024_v1  ;;  %v1928_v0 = vld [vmem:[#allocation2 + $0xa0] sm:$0xff] }
 0x103   : > { %v628_v7 = vpop.f32.mrf.mxu0  ;;  %v741_v8 = vpop.f32.mrf.mxu1  ;;  %v1960_v1 = vld [vmem:[#allocation2 + $0x1a0] sm:$0xff]  ;;  %1983 = vmatpush.msrb.mxu2 %v1928_v0 }
 0x104   : > { %v629_v9 = vadd.f32 %v628_v7, %v4324_v25  ;;  %v742_v10 = vadd.f32 %v741_v8, %v4326_v26  ;;  %1100 = vadd.xlane.f32.xlu2 %v1099_v6  ;;  %v965_v7 = vsub.f32 1.0, %v964_v52  ;;  %v1959_v8 = vld [vmem:[#allocation2 + $0x198] sm:$0xff]  ;;  %2096 = vmatpush.msrb.mxu3 %v1960_v1  ;;  %v1952_v52 = vld [vmem:[#allocation2 + $0x160] sm:$0xff]  ;;  %v1918_v1 = vld [vmem:[#allocation2 + $0x50] sm:$0xff] }
 0x105   : > { %2323 = vmatpush.msrb.mxu1 %v1959_v8  ;;  %v1951_v8 = vld [vmem:[#allocation2 + $0x158] sm:$0xff] }
 0x106   : > { %v4512_v11 = vmax.f32 %v629_v9, 0.0  ;;  %v4514_v14 = vmax.f32 %v742_v10, 0.0  ;;  %v1926_v9 = vld [vmem:[#allocation2 + $0x90] sm:$0xff] }
 0x107   : > { %v1958_v10 = vld [vmem:[#allocation2 + $0x190] sm:$0xff]  ;;  %1984 = vmatpush.msrb.mxu2 %v1926_v9  ;;  %2324 = vmatpush.msrb.mxu1 %v1957_v30  ;;  %v1917_v30 = vld [vmem:[#allocation2 + $0x48] sm:$0xff] }
 0x108   : > { %7518 = vst [vmem:[#allocation14_spill] sm:$0xff] %v4512_v11  ;;  %v903_v22 = vadd.f32 %v4514_v14, %v4512_v11  ;;  %v1026_v23 = vmul.f32 %v4512_v11, %v4512_v11  ;;  %v1027_v24 = vmul.f32 %v4514_v14, %v4514_v14  ;;  %2097 = vmatpush.msrb.mxu3 %v1958_v10 }
 0x109   : > { %7519 = vst [vmem:[#allocation15_spill] sm:$0xff] %v4514_v14  ;;  %2325 = vmatpush.msrb.mxu1 %v1955_v46 }
 0x10a   : > { %904 = vadd.xlane.f32.xlu0 %v903_v22  ;;  %v1102_v35 = vadd.f32 %v1027_v24, %v1026_v23  ;;  %v1924_v22 = vld [vmem:[#allocation2 + $0x80] sm:$0xff] }
 0x10b   : > { %v631_v36 = vpop.f32.mrf.mxu0  ;;  %v744_v37 = vpop.f32.mrf.mxu1  ;;  %v1956_v23 = vld [vmem:[#allocation2 + $0x180] sm:$0xff]  ;;  %1985 = vmatpush.msrb.mxu2 %v1924_v22 }
 0x10c   : > { %v632_v17 = vadd.f32 %v631_v36, %v4324_v25  ;;  %v745_v41 = vadd.f32 %v744_v37, %v4326_v26  ;;  %1103 = vadd.xlane.f32.xlu1 %v1102_v35  ;;  %v966_v35 = vmul.f32 %v4522_v40, %v965_v7  ;;  %2098 = vmatpush.msrb.mxu3 %v1956_v23  ;;  %v1922_v36 = vld [vmem:[#allocation2 + $0x70] sm:$0xff]  ;;  %v1916_v22 = vld [vmem:[#allocation2 + $0x40] sm:$0xff] }
 0x10d   : > { %v1954_v37 = vld [vmem:[#allocation2 + $0x170] sm:$0xff]  ;;  %1986 = vmatpush.msrb.mxu2 %v1922_v36  ;;  %v1948_v23 = vld [vmem:[#allocation2 + $0x140] sm:$0xff]  ;;  %v1949_v36 = vld [vmem:[#allocation2 + $0x148] sm:$0xff] }
 0x10e   : > { %v4526_v50 = vmax.f32 %v632_v17, 0.0  ;;  %v4528_v51 = vmax.f32 %v745_v41, 0.0  ;;  %2099 = vmatpush.msrb.mxu3 %v1954_v37  ;;  %v967_v0 = vadd.f32 %v4522_v40, %v966_v35 }
 0x10f   : > { %1987 = vmatpush.msrb.mxu2 %v1920_v49 }
 0x110   : > { %7520 = vst [vmem:[#allocation16_spill] sm:$0xff] %v4526_v50  ;;  %v906_v57 = vadd.f32 %v4528_v51, %v4526_v50  ;;  %v1028_v58 = vmul.f32 %v4526_v50, %v4526_v50  ;;  %v1029_v59 = vmul.f32 %v4528_v51, %v4528_v51  ;;  %2100 = vmatpush.msrb.mxu3 %v1952_v52  ;;  %v1912_v52 = vld [vmem:[#allocation2 + $0x20] sm:$0xff] }
 0x111   : > { %7521 = vst [vmem:[#allocation17_spill] sm:$0xff] %v4528_v51  ;;  %1988 = vmatpush.msrb.mxu2 %v1918_v1  ;;  %v4565_v35 = vsel %vm968_vm2, %v4522_v40, %v967_v0  ;;  %v1947_v40 = vld [vmem:[#allocation2 + $0x138] sm:$0xff] }
 0x112   : > { %907 = vadd.xlane.f32.xlu2 %v906_v57  ;;  %v1105_v2 = vadd.f32 %v1029_v59, %v1028_v58  ;;  %v1953_v57 = vld [vmem:[#allocation2 + $0x168] sm:$0xff]  ;;  %7526 = vst [vmem:[#allocation22_spill] sm:$0xff] %v4565_v35 }
 0x113   : > { %v634_v5 = vpop.f32.mrf.mxu0  ;;  %v747_v6 = vpop.f32.mrf.mxu1  ;;  %2326 = vmatpush.msrb.mxu1 %v1953_v57  ;;  %1989 = vmatpush.msrb.mxu2 %v1916_v22 }
 0x114   : > { %v635_v15 = vadd.f32 %v634_v5, %v4324_v25  ;;  %v748_v16 = vadd.f32 %v747_v6, %v4326_v26  ;;  %1106 = vadd.xlane.f32.xlu0 %v1105_v2  ;;  %v1950_v2 = vld [vmem:[#allocation2 + $0x150] sm:$0xff]  ;;  %v1919_v5 = vld [vmem:[#allocation2 + $0x58] sm:$0xff] }
 0x115   : > { %2101 = vmatpush.msrb.mxu3 %v1950_v2  ;;  %2214 = vmatpush.msrb.mxu0 %v1919_v5  ;;  %v1945_v2 = vld [vmem:[#allocation2 + $0x128] sm:$0xff]  ;;  %v1910_v5 = vld [vmem:[#allocation2 + $0x10] sm:$0xff] }
 0x116   : > { %v4541_v24 = vmax.f32 %v635_v15, 0.0  ;;  %v4543_v29 = vmax.f32 %v748_v16, 0.0  ;;  %v4560_v16 = vpop.f32.mrf.mxu2  ;;  %2327 = vmatpush.msrb.mxu1 %v1951_v8  ;;  %v1942_v8 = vld [vmem:[#allocation2 + $0x110] sm:$0xff] }
 0x117   : > { %2102 = vmatpush.msrb.mxu3 %v1948_v23  ;;  %2215 = vmatpush.msrb.mxu0 %v1917_v30 }
 0x118   : > { %7522 = vst [vmem:[#allocation18_spill] sm:$0xff] %v4541_v24  ;;  %v909_v39 = vadd.f32 %v4543_v29, %v4541_v24  ;;  %v1030_v17 = vmul.f32 %v4541_v24, %v4541_v24  ;;  %v1031_v41 = vmul.f32 %v4543_v29, %v4543_v29  ;;  %2328 = vmatpush.msrb.mxu1 %v1949_v36  ;;  %v1911_v36 = vld [vmem:[#allocation2 + $0x18] sm:$0xff] }
 0x119   : > { %7523 = vst [vmem:[#allocation19_spill] sm:$0xff] %v4543_v29 }
 0x11a   : > { %910 = vadd.xlane.f32.xlu1 %v909_v39  ;;  %v1108_v54 = vadd.f32 %v1031_v41, %v1030_v17  ;;  %v1914_v39 = vld [vmem:[#allocation2 + $0x30] sm:$0xff]  ;;  %v1915_v41 = vld [vmem:[#allocation2 + $0x38] sm:$0xff]  ;;  %2329 = vmatpush.msrb.mxu1 %v1947_v40  ;;  %v1940_v40 = vld [vmem:[#allocation2 + $0x100] sm:$0xff] }
 0x11b   : > { %v637_v58 = vpop.f32.mrf.mxu0  ;;  %v750_v59 = vpop.f32.mrf.mxu1  ;;  %v1946_v17 = vld [vmem:[#allocation2 + $0x130] sm:$0xff]  ;;  %1990 = vmatpush.msrb.mxu2 %v1914_v39  ;;  %2216 = vmatpush.msrb.mxu0 %v1915_v41 }
 0x11c   : > { %v638_v6 = vadd.f32 %v637_v58, %v4324_v25  ;;  %v751_v7 = vadd.f32 %v750_v59, %v4326_v26  ;;  %1109 = vadd.xlane.f32.xlu2 %v1108_v54  ;;  %2103 = vmatpush.msrb.mxu3 %v1946_v17  ;;  %v1944_v58 = vld [vmem:[#allocation2 + $0x120] sm:$0xff]  ;;  %v1913_v59 = vld [vmem:[#allocation2 + $0x28] sm:$0xff] }
 0x11d   : > { %v869_v9 = vpop.xlane.xlu0 %868  ;;  %1991 = vmatpush.msrb.mxu2 %v1912_v52  ;;  %2217 = vmatpush.msrb.mxu0 %v1913_v59  ;;  %v1909_v52 = vld [vmem:[#allocation2 + $0x8] sm:$0xff] }
 0x11e   : > { %v4556_v10 = vmax.f32 %v638_v6, 0.0  ;;  %v4558_v15 = vmax.f32 %v751_v7, 0.0  ;;  %v4574_v49 = vmul.f32 %v4565_v35, %v869_v9  ;;  %2104 = vmatpush.msrb.mxu3 %v1944_v58  ;;  %2330 = vmatpush.msrb.mxu1 %v1945_v2  ;;  %v4587_v41 = vpop.f32.mrf.mxu2 }
 0x11f   : > { %1992 = vmatpush.msrb.mxu2 %v1910_v5  ;;  %2218 = vmatpush.msrb.mxu0 %v1911_v36 }
 0x120   : > { %7524 = vst [vmem:[#allocation20_spill] sm:$0xff] %v4556_v10  ;;  %v912_v37 = vadd.f32 %v4558_v15, %v4556_v10  ;;  %v1032_v38 = vmul.f32 %v4556_v10, %v4556_v10  ;;  %v1033_v46 = vmul.f32 %v4558_v15, %v4558_v15  ;;  %v1194_v23 = vmul.f32 %v4574_v49, %v4574_v49 }
 0x121   : > { %7525 = vst [vmem:[#allocation21_spill] sm:$0xff] %v4558_v15  ;;  %2105 = vmatpush.msrb.mxu3 %v1942_v8  ;;  %2219 = vmatpush.msrb.mxu0 %v1909_v52 }
 0x122   : > { %913 = vadd.xlane.f32.xlu0 %v912_v37  ;;  %v1111_v57 = vadd.f32 %v1033_v46, %v1032_v38  ;;  %v1943_v37 = vld [vmem:[#allocation2 + $0x118] sm:$0xff]  ;;  %v1908_v38 = vld [vmem:[#allocation2] sm:$0xff]  ;;  %v4589_v46 = vpop.f32.mrf.mxu3 }
 0x123   : > { %v640_v53 = vpop.f32.mrf.mxu0  ;;  %v753_v54 = vpop.f32.mrf.mxu1  ;;  %2331 = vmatpush.msrb.mxu1 %v1943_v37  ;;  %1993 = vmatpush.msrb.mxu2 %v1908_v38 }
 0x124   : > { %v641_v0 = vadd.f32 %v640_v53, %v4324_v25  ;;  %v754_v1 = vadd.f32 %v753_v54, %v4326_v26  ;;  %1112 = vadd.xlane.f32.xlu1 %v1111_v57  ;;  %v1941_v57 = vld [vmem:[#allocation2 + $0x108] sm:$0xff]  ;;  %2106 = vmatpush.msrb.mxu3 %v1940_v40 }
 0x125   : > { %v872_v6 = vpop.xlane.xlu1 %871  ;;  %v1068_v7 = vpop.xlane.xlu0 %1067  ;;  %2332 = vmatpush.msrb.mxu1 %v1941_v57 }
 0x126   : > { %v4578_v9 = vmax.f32 %v641_v0, 0.0  ;;  %v4580_v22 = vmax.f32 %v754_v1, 0.0  ;;  %v1162_v30 = vmul.f32 %v1068_v7, %v4565_v35  ;;  %v4596_v59 = vmul.f32 %v4565_v35, %v872_v6 }
 0x128   : > { %7527 = vst [vmem:[#allocation23_spill] sm:$0xff] %v4578_v9  ;;  %v1226_v39 = vsub.f32 %v1162_v30, %v1194_v23  ;;  %v915_v17 = vadd.f32 %v4580_v22, %v4578_v9  ;;  %v1034_v53 = vmul.f32 %v4578_v9, %v4578_v9  ;;  %v1035_v54 = vmul.f32 %v4580_v22, %v4580_v22 }
 0x129   : > { %7528 = vst [vmem:[#allocation24_spill] sm:$0xff] %v4580_v22  ;;  %v1195_v37 = vmul.f32 %v4596_v59, %v4596_v59 }
 0x12a   : > { %v1258_v58 = vmax.f32 %v1226_v39, 0.0  ;;  %916 = vadd.xlane.f32.xlu2 %v915_v17  ;;  %v1114_v2 = vadd.f32 %v1035_v54, %v1034_v53  ;;  %v769_v39 = vadd.f32 %v4539_v20, %v4326_v26 }
 0x12b   : > { %v643_v0 = vpop.f32.mrf.mxu0  ;;  %v756_v1 = vpop.f32.mrf.mxu1 }
 0x12c   : > { %v4598_v5 = vadd.f32 1e-05, %v1258_v58  ;;  %v644_v7 = vadd.f32 %v643_v0, %v4324_v25  ;;  %v757_v8 = vadd.f32 %v756_v1, %v4326_v26  ;;  %1115 = vadd.xlane.f32.xlu0 %v1114_v2  ;;  %v4621_v58 = vpop.f32.mrf.mxu2  ;;  %v4623_v0 = vpop.f32.mrf.mxu3 }
 0x12d   : > { %v875_v23 = vpop.xlane.xlu2 %874  ;;  %v1071_v30 = vpop.xlane.xlu1 %1070 }
 0x12e   : > { %3872 = vrsqrt.f32 %v4598_v5  ;;  %v4603_v36 = vmax.f32 %v644_v7, 0.0  ;;  %v4605_v6 = vmax.f32 %v757_v8, 0.0  ;;  %v1163_v38 = vmul.f32 %v1071_v30, %v4565_v35 }
 0x12f   : > { %v4619_v53 = vmul.f32 %v4565_v35, %v875_v23  ;;  %v4627_v8 = vmax.f32 %v769_v39, 0.0  ;;  %v659_v23 = vadd.f32 %v4560_v16, %v4324_v25  ;;  %vm1392_vm4 = vweird.f32 %v4598_v5 }
 0x130   : > { %7529 = vst [vmem:[#allocation25_spill] sm:$0xff] %v4603_v36  ;;  %v918_v17 = vadd.f32 %v4605_v6, %v4603_v36  ;;  %v1036_v40 = vmul.f32 %v4603_v36, %v4603_v36  ;;  %v1037_v52 = vmul.f32 %v4605_v6, %v4605_v6  ;;  %v1227_v54 = vsub.f32 %v1163_v38, %v1195_v37 }
 0x131   : > { %7530 = vst [vmem:[#allocation26_spill] sm:$0xff] %v4605_v6  ;;  %v1196_v39 = vmul.f32 %v4619_v53, %v4619_v53 }
 0x132   : > { %919 = vadd.xlane.f32.xlu1 %v918_v17  ;;  %v1117_v57 = vadd.f32 %v1037_v52, %v1036_v40  ;;  %v1259_v20 = vmax.f32 %v1227_v54, 0.0  ;;  %v772_v17 = vadd.f32 %v4562_v21, %v4326_v26  ;;  %v865_v54 = vld [vmem:[%s7386_s3] sm:$0x3]  ;;  %v1290_v21 = vsub.f32 %v4331_v32, %v4574_v49 }
 0x133   : > { %v646_v1 = vpop.f32.mrf.mxu0  ;;  %v759_v2 = vpop.f32.mrf.mxu1  ;;  %v4664_v9 = vperm.slane %v865_v54, 1 }
 0x134   : > { %v4625_v7 = vpop.eup %3872  ;;  %v647_v30 = vadd.f32 %v646_v1, %v4324_v25  ;;  %v760_v6 = vadd.f32 %v759_v2, %v4326_v26  ;;  %1118 = vadd.xlane.f32.xlu2 %v1117_v57  ;;  %v4635_v38 = vadd.f32 1e-05, %v1259_v20 }
 0x135   : > { %v1387_v37 = vmul.f32 %v4625_v7, %v4598_v5  ;;  %v1074_v40 = vpop.xlane.xlu2 %1073  ;;  %v878_v52 = vpop.xlane.xlu0 %877  ;;  %vm1393_vm3 = vweird.f32 %v4625_v7 }
 0x136   : > { %v4644_v57 = vmax.f32 %v647_v30, 0.0  ;;  %v4646_v16 = vmax.f32 %v760_v6, 0.0  ;;  %v1164_v1 = vmul.f32 %v1074_v40, %v4565_v35  ;;  %v4650_v20 = vmul.f32 %v4565_v35, %v878_v52  ;;  %v866_v40 = vld [vmem:[%s7387_s4] sm:$0x3]  ;;  %vm1394_vm5 = vmor %vm1392_vm4, %vm1393_vm3 }
 0x137   : > { %v1388_v36 = vmul.f32 %v4625_v7, %v1387_v37  ;;  %3874 = vrsqrt.f32 %v4635_v38  ;;  %v1077_v22 = vpop.xlane.xlu1 %1076  ;;  %v4662_v52 = vperm.slane %v865_v54, 0  ;;  %v4679_v51 = vperm.slane %v866_v40, 0 }
 0x138   : > { %7531 = vst [vmem:[#allocation27_spill] sm:$0xff] %v4644_v57  ;;  %v1228_v30 = vsub.f32 %v1164_v1, %v1196_v39  ;;  %v1165_v6 = vmul.f32 %v1077_v22, %v4565_v35  ;;  %v1197_v2 = vmul.f32 %v4650_v20, %v4650_v20  ;;  %v921_v37 = vadd.f32 %v4646_v16, %v4644_v57 }
 0x139   : > { %7532 = vst [vmem:[#allocation28_spill] sm:$0xff] %v4646_v16  ;;  %v1389_v32 = vmul.f32 0.5, %v1388_v36  ;;  %v1038_v39 = vmul.f32 %v4644_v57, %v4644_v57  ;;  %v4672_v1 = vmax.f32 %v659_v23, 0.0  ;;  %v4674_v22 = vmax.f32 %v772_v17, 0.0 }
 0x13a   : > { %v1260_v15 = vmax.f32 %v1228_v30, 0.0  ;;  %v1039_v10 = vmul.f32 %v4646_v16, %v4646_v16  ;;  %v1229_v36 = vsub.f32 %v1165_v6, %v1197_v2  ;;  %922 = vadd.xlane.f32.xlu0 %v921_v37  ;;  %v4685_v30 = vpop.f32.mrf.mxu2  ;;  %v662_v16 = vadd.f32 %v4587_v41, %v4324_v25 }
 0x13b   : > { %7533 = vst [vmem:[#allocation29_spill] sm:$0xff] %v4674_v22  ;;  %v1390_v54 = vsub.f32 1.5, %v1389_v32  ;;  %v649_v29 = vpop.f32.mrf.mxu0  ;;  %v762_v24 = vpop.f32.mrf.mxu1  ;;  %vm1402_vm6 = vweird.f32 %v4635_v38 }
 0x13c   : > { %v4681_v50 = vadd.f32 1e-05, %v1260_v15  ;;  %v650_v23 = vadd.f32 %v649_v29, %v4324_v25  ;;  %v763_v17 = vadd.f32 %v762_v24, %v4326_v26  ;;  %v1120_v57 = vadd.f32 %v1039_v10, %v1038_v39  ;;  %v4693_v15 = vpop.f32.mrf.mxu3 }
 0x13d   : > { %v4687_v14 = vpop.eup %3874  ;;  %v1391_v2 = vmul.f32 %v4625_v7, %v1390_v54  ;;  %v1261_v6 = vmax.f32 %v1229_v36, 0.0  ;;  %v881_v37 = vpop.xlane.xlu2 %880  ;;  %v4739_v45 = vmax.f32 %v662_v16, 0.0 }
 0x13e   : > { %v1397_v24 = vmul.f32 %v4687_v14, %v4635_v38  ;;  %3876 = vrsqrt.f32 %v4681_v50  ;;  %v4702_v10 = vmax.f32 %v650_v23, 0.0  ;;  %1121 = vadd.xlane.f32.xlu1 %v1120_v57  ;;  %v4706_v5 = vmax.f32 %v763_v17, 0.0 }
 0x13f   : > { %v4704_v39 = vadd.f32 1e-05, %v1261_v6  ;;  %v4709_v54 = vmul.f32 %v4565_v35, %v881_v37  ;;  %v1080_v36 = vpop.xlane.xlu0 %1079  ;;  %v1395_v29 = vsel %vm1394_vm5, %v4625_v7, %v1391_v2  ;;  %v775_v57 = vadd.f32 %v4589_v46, %v4326_v26 }
 0x140   : > { %7534 = vst [vmem:[#allocation30_spill] sm:$0xff] %v4702_v10  ;;  %v1398_v32 = vmul.f32 %v4687_v14, %v1397_v24  ;;  %v1166_v11 = vmul.f32 %v1080_v36, %v4565_v35  ;;  %v1706_v23 = vmul.f32 %v1395_v29, %v1290_v21  ;;  %v1040_v17 = vmul.f32 %v4702_v10, %v4702_v10 }
 0x141   : > { %7535 = vst [vmem:[#allocation31_spill] sm:$0xff] %v4706_v5  ;;  %3878 = vrsqrt.f32 %v4704_v39  ;;  %v4721_v6 = vperm.slane %v866_v40, 1  ;;  %v1198_v2 = vmul.f32 %v4709_v54, %v4709_v54  ;;  %v924_v41 = vadd.f32 %v4706_v5, %v4702_v10 }
 0x142   : > { %v1041_v21 = vmul.f32 %v4706_v5, %v4706_v5  ;;  %v1399_v37 = vmul.f32 0.5, %v1398_v32  ;;  %v1775_v40 = vmul.f32 %v4662_v52, %v1706_v23  ;;  %v7536_v7 = vsub.f32 %v4333_v33, %v4574_v49 }
 0x143   : > { %v652_v24 = vpop.f32.mrf.mxu0  ;;  %v765_v36 = vpop.f32.mrf.mxu1  ;;  %v1230_v10 = vsub.f32 %v1166_v11, %v1198_v2  ;;  %925 = vadd.xlane.f32.xlu2 %v924_v41  ;;  %vm1403_vm7 = vweird.f32 %v4687_v14  ;;  %vm1412_vm8 = vweird.f32 %v4681_v50  ;;  %v7541_v38 = vsub.f32 %v4351_v44, %v4596_v59 }
 0x144   : > { %v1707_v61 = vmul.f32 %v1395_v29, %v7536_v7  ;;  %v4737_v60 = vpop.eup %3876  ;;  %v653_v5 = vadd.f32 %v652_v24, %v4324_v25  ;;  %v766_v42 = vadd.f32 %v765_v36, %v4326_v26  ;;  %v1123_v46 = vadd.f32 %v1041_v21, %v1040_v17  ;;  %v4754_v7 = vpop.f32.mrf.mxu2  ;;  %vm1404_vm9 = vmor %vm1402_vm6, %vm1403_vm7 }
 0x145   : > { %v1407_v32 = vmul.f32 %v4737_v60, %v4681_v50  ;;  %v884_v28 = vpop.xlane.xlu1 %883  ;;  %v1844_v23 = vadd.f32 %v4679_v51, %v1775_v40  ;;  %v1262_v49 = vmax.f32 %v1230_v10, 0.0  ;;  %v1400_v41 = vsub.f32 1.5, %v1399_v37 }
 0x146   : > { %v1776_v33 = vmul.f32 %v4664_v9, %v1707_v61  ;;  %v4747_v29 = vmax.f32 %v653_v5, 0.0  ;;  %v4749_v16 = vmax.f32 %v766_v42, 0.0  ;;  %v4752_v11 = vmul.f32 %v4565_v35, %v884_v28  ;;  %1124 = vadd.xlane.f32.xlu0 %v1123_v46  ;;  %v4762_v5 = vpop.f32.mrf.mxu3 }
 0x147   : > { %v4756_v2 = vpop.eup %3878  ;;  %v1408_v17 = vmul.f32 %v4737_v60, %v1407_v32  ;;  %v4759_v21 = vmax.f32 %v775_v57, 0.0  ;;  %1994 = vmatmul.f32.vlgmr.msrb.gmra.mxu2 %v1844_v23  ;;  %v1083_v10 = vpop.xlane.xlu2 %1082  ;;  %v4766_v42 = vadd.f32 1e-05, %v1262_v49  ;;  %v665_v24 = vadd.f32 %v4621_v58, %v4324_v25  ;;  %2220 = vmatmul.f32.vlgmr.msrb.gmra.mxu0 %v1844_v23 }
 0x148   : > { %7537 = vst [vmem:[#allocation32_spill] sm:$0xff] %v4747_v29  ;;  %v1845_v61 = vadd.f32 %v4721_v6, %v1776_v33  ;;  %v778_v37 = vadd.f32 %v4623_v0, %v4326_v26  ;;  %v1167_v57 = vmul.f32 %v1083_v10, %v4565_v35  ;;  %v1199_v46 = vmul.f32 %v4752_v11, %v4752_v11 }
 0x149   : > { %7538 = vst [vmem:[#allocation33_spill] sm:$0xff] %v4749_v16  ;;  %v927_v36 = vadd.f32 %v4749_v16, %v4747_v29  ;;  %v1417_v58 = vmul.f32 %v4756_v2, %v4704_v39  ;;  %3880 = vrsqrt.f32 %v4766_v42  ;;  %v1042_v0 = vmul.f32 %v4747_v29, %v4747_v29 }
 0x14a   : > { %7539 = vst [vmem:[#allocation34_spill] sm:$0xff] %v4759_v21  ;;  %2107 = vmatmul.f32.vlgmr.msrb.gmra.mxu3 %v1845_v61  ;;  %2333 = vmatmul.f32.vlgmr.msrb.gmra.mxu1 %v1845_v61  ;;  %v1409_v32 = vmul.f32 0.5, %v1408_v17  ;;  %v1231_v23 = vsub.f32 %v1167_v57, %v1199_v46  ;;  %v1043_v49 = vmul.f32 %v4749_v16, %v4749_v16  ;;  %v4788_v10 = vmax.f32 %v665_v24, 0.0 }
 0x14b   : > { %928 = vadd.xlane.f32.xlu1 %v927_v36  ;;  %v655_v33 = vpop.f32.mrf.mxu0  ;;  %v1401_v61 = vmul.f32 %v4687_v14, %v1400_v41  ;;  %v4790_v40 = vmax.f32 %v778_v37, 0.0  ;;  %v1418_v41 = vmul.f32 %v4756_v2, %v1417_v58  ;;  %vm1422_vm10 = vweird.f32 %v4704_v39 }
 0x14c   : > { %v656_v28 = vadd.f32 %v655_v33, %v4324_v25  ;;  %v1263_v57 = vmax.f32 %v1231_v23, 0.0  ;;  %v1126_v46 = vadd.f32 %v1043_v49, %v1042_v0  ;;  %v1410_v16 = vsub.f32 1.5, %v1409_v32 }
 0x14d   : > { %v887_v36 = vpop.xlane.xlu0 %886  ;;  %v1405_v33 = vsel %vm1404_vm9, %v4687_v14, %v1401_v61  ;;  %v7540_v0 = vsub.f32 %v4349_v43, %v4596_v59  ;;  %v1045_v61 = vmul.f32 %v4627_v8, %v4627_v8  ;;  %v4823_v43 = vpop.f32.mrf.mxu2  ;;  %v781_v59 = vadd.f32 %v4693_v15, %v4326_v26 }
 0x14e   : > { %v4800_v24 = vmax.f32 %v656_v28, 0.0  ;;  %v4803_v37 = vmul.f32 %v4565_v35, %v887_v36  ;;  %v4806_v29 = vadd.f32 1e-05, %v1263_v57  ;;  %1127 = vadd.xlane.f32.xlu2 %v1126_v46  ;;  %v1709_v49 = vmul.f32 %v1405_v33, %v7541_v38  ;;  %v4831_v57 = vpop.f32.mrf.mxu3 }
 0x14f   : > { %v1708_v23 = vmul.f32 %v1405_v33, %v7540_v0  ;;  %v1086_v58 = vpop.xlane.xlu1 %1085  ;;  %v4814_v28 = vpop.eup %3880  ;;  %v668_v36 = vadd.f32 %v4685_v30, %v4324_v25  ;;  %v933_v15 = vadd.f32 %v4674_v22, %v4672_v1  ;;  %vm1413_vm11 = vweird.f32 %v4737_v60 }
 0x150   : > { %v1168_v14 = vmul.f32 %v1086_v58, %v4565_v35  ;;  %v1200_v32 = vmul.f32 %v4803_v37, %v4803_v37  ;;  %v1427_v44 = vmul.f32 %v4814_v28, %v4766_v42  ;;  %3882 = vrsqrt.f32 %v4806_v29  ;;  %vm1414_vm12 = vmor %vm1412_vm8, %vm1413_vm11 }
 0x151   : > { %v1777_v30 = vmul.f32 %v4662_v52, %v1708_v23  ;;  %v1778_v46 = vmul.f32 %v4664_v9, %v1709_v49  ;;  %v930_v0 = vadd.f32 %v4627_v8, %v4800_v24  ;;  %v1044_v38 = vmul.f32 %v4800_v24, %v4800_v24 }
 0x152   : > { %v1232_v33 = vsub.f32 %v1168_v14, %v1200_v32  ;;  %v1419_v58 = vmul.f32 0.5, %v1418_v41  ;;  %v1411_v23 = vmul.f32 %v4737_v60, %v1410_v16  ;;  %v4847_v41 = vmax.f32 %v668_v36, 0.0 }
 0x153   : > { %v1846_v17 = vadd.f32 %v4679_v51, %v1777_v30  ;;  %v1847_v27 = vadd.f32 %v4721_v6, %v1778_v46  ;;  %931 = vadd.xlane.f32.xlu0 %v930_v0  ;;  %v1129_v14 = vadd.f32 %v1045_v61, %v1044_v38  ;;  %v1046_v16 = vmul.f32 %v4672_v1, %v4672_v1 }
 0x154   : > { %v1264_v49 = vmax.f32 %v1232_v33, 0.0  ;;  %v1047_v46 = vmul.f32 %v4674_v22, %v4674_v22  ;;  %v1428_v61 = vmul.f32 %v4814_v28, %v1427_v44  ;;  %v4866_v38 = vmax.f32 %v781_v59, 0.0 }
 0x155   : > { %1997 = vmatmul.f32.gmra.mxu2 %v1846_v17  ;;  %2223 = vmatmul.f32.gmra.mxu0 %v1846_v17  ;;  %v890_v30 = vpop.xlane.xlu2 %889  ;;  %v1415_v17 = vsel %vm1414_vm12, %v4737_v60, %v1411_v23  ;;  %v7542_v44 = vsub.f32 %v4367_v55, %v4619_v53  ;;  %v1420_v22 = vsub.f32 1.5, %v1419_v58  ;;  %v1048_v23 = vmul.f32 %v4739_v45, %v4739_v45 }
 0x156   : > { %2110 = vmatmul.f32.gmra.mxu3 %v1847_v27  ;;  %2336 = vmatmul.f32.gmra.mxu1 %v1847_v27  ;;  %v4856_v33 = vadd.f32 1e-05, %v1264_v49  ;;  %v4859_v36 = vmul.f32 %v4565_v35, %v890_v30  ;;  %v4862_v0 = vpop.eup %3882  ;;  %v7543_v49 = vsub.f32 %v4369_v56, %v4619_v53  ;;  %v1132_v60 = vadd.f32 %v1047_v46, %v1046_v16  ;;  %v4888_v46 = vpop.f32.mrf.mxu2 }
 0x157   : > { %934 = vadd.xlane.f32.xlu2 %v933_v15  ;;  %1130 = vadd.xlane.f32.xlu1 %v1129_v14  ;;  %v1710_v27 = vmul.f32 %v1415_v17, %v7542_v44  ;;  %v1089_v32 = vpop.xlane.xlu0 %1088  ;;  %v671_v59 = vadd.f32 %v4754_v7, %v4324_v25  ;;  %v1429_v56 = vmul.f32 0.5, %v1428_v61  ;;  %v1049_v16 = vmul.f32 %v4759_v21, %v4759_v21 }
 0x158   : > { %v1711_v30 = vmul.f32 %v1415_v17, %v7543_v49  ;;  %3884 = vrsqrt.f32 %v4856_v33  ;;  %v1201_v14 = vmul.f32 %v4859_v36, %v4859_v36  ;;  %v1169_v58 = vmul.f32 %v1089_v32, %v4565_v35 }
 0x159   : > { %v1779_v15 = vmul.f32 %v4662_v52, %v1710_v27  ;;  %v1437_v7 = vmul.f32 %v4862_v0, %v4806_v29  ;;  %v936_v61 = vadd.f32 %v4759_v21, %v4739_v45  ;;  %v4896_v27 = vpop.f32.mrf.mxu3  ;;  %vm1432_vm13 = vweird.f32 %v4766_v42 }
 0x15a   : > { %v1780_v55 = vmul.f32 %v4664_v9, %v1711_v30  ;;  %v1233_v32 = vsub.f32 %v1169_v58, %v1201_v14  ;;  %v1135_v49 = vadd.f32 %v1049_v16, %v1048_v23  ;;  %v1421_v30 = vmul.f32 %v4756_v2, %v1420_v22 }
 0x15b   : > { %v1848_v17 = vadd.f32 %v4679_v51, %v1779_v15  ;;  %1133 = vadd.xlane.f32.xlu0 %v1132_v60  ;;  %v4904_v50 = vmax.f32 %v671_v59, 0.0  ;;  %vm1423_vm14 = vweird.f32 %v4756_v2  ;;  %v784_v60 = vadd.f32 %v4762_v5, %v4326_v26 }
 0x15c   : > { %v1849_v44 = vadd.f32 %v4721_v6, %v1780_v55  ;;  %v1265_v23 = vmax.f32 %v1233_v32, 0.0  ;;  %vm1424_vm15 = vmor %vm1422_vm10, %vm1423_vm14  ;;  %v1430_v59 = vsub.f32 1.5, %v1429_v56  ;;  %v1438_v58 = vmul.f32 %v4862_v0, %v1437_v7 }
 0x15d   : > { %2000 = vmatmul.f32.gmra.mxu2 %v1848_v17  ;;  %2226 = vmatmul.f32.gmra.mxu0 %v1848_v17  ;;  %v893_v55 = vpop.xlane.xlu1 %892  ;;  %v1425_v16 = vsel %vm1424_vm15, %v4756_v2, %v1421_v30  ;;  %v939_v17 = vadd.f32 %v4790_v40, %v4788_v10  ;;  %v7544_v39 = vsub.f32 %v4385_v3, %v4650_v20  ;;  %vm1433_vm1 = vweird.f32 %v4814_v28 }
 0x15e   : > { %v4907_v21 = vpop.eup %3884  ;;  %2113 = vmatmul.f32.gmra.mxu3 %v1849_v44  ;;  %2339 = vmatmul.f32.gmra.mxu1 %v1849_v44  ;;  %v4914_v14 = vmul.f32 %v4565_v35, %v893_v55  ;;  %v4924_v32 = vadd.f32 1e-05, %v1265_v23  ;;  %v1050_v56 = vmul.f32 %v4788_v10, %v4788_v10  ;;  %v674_v7 = vadd.f32 %v4823_v43, %v4324_v25  ;;  %v679_v22 = vpop.f32.mrf.mxu2  ;;  %vm1434_vm3 = vmor %vm1432_vm13, %vm1433_vm1 }
 0x15f   : > { %1136 = vadd.xlane.f32.xlu2 %v1135_v49  ;;  %937 = vadd.xlane.f32.xlu1 %v936_v61  ;;  %v1092_v5 = vpop.xlane.xlu2 %1091  ;;  %v1447_v44 = vmul.f32 %v4907_v21, %v4856_v33  ;;  %v1712_v55 = vmul.f32 %v1425_v16, %v7544_v39  ;;  %v7545_v2 = vsub.f32 %v4387_v4, %v4650_v20  ;;  %v1439_v39 = vmul.f32 0.5, %v1438_v58 }
 0x160   : > { %v1170_v49 = vmul.f32 %v1092_v5, %v4565_v35  ;;  %v1202_v30 = vmul.f32 %v4914_v14, %v4914_v14  ;;  %3886 = vrsqrt.f32 %v4924_v32  ;;  %v1051_v23 = vmul.f32 %v4790_v40, %v4790_v40 }
 0x161   : > { %v1713_v61 = vmul.f32 %v1425_v16, %v7545_v2  ;;  %v1781_v3 = vmul.f32 %v4662_v52, %v1712_v55  ;;  %vm1442_vm2 = vweird.f32 %v4806_v29  ;;  %v942_v43 = vadd.f32 %v4866_v38, %v4847_v41 }
 0x162   : > { %v1234_v20 = vsub.f32 %v1170_v49, %v1202_v30  ;;  %v1448_v16 = vmul.f32 %v4907_v21, %v1447_v44  ;;  %v1138_v55 = vadd.f32 %v1051_v23, %v1050_v56  ;;  %v1431_v2 = vmul.f32 %v4814_v28, %v1430_v59 }
 0x163   : > { %v1782_v4 = vmul.f32 %v4664_v9, %v1713_v61  ;;  %v1850_v5 = vadd.f32 %v4679_v51, %v1781_v3  ;;  %940 = vadd.xlane.f32.xlu0 %v939_v17  ;;  %v787_v15 = vadd.f32 %v4831_v57, %v4326_v26  ;;  %v792_v17 = vpop.f32.mrf.mxu3  ;;  %v4960_v44 = vmax.f32 %v784_v60, 0.0 }
 0x164   : > { %v1266_v49 = vmax.f32 %v1234_v20, 0.0  ;;  %v1435_v56 = vsel %vm1434_vm3, %v4814_v28, %v1431_v2  ;;  %v1052_v57 = vmul.f32 %v4847_v41, %v4847_v41  ;;  %v7546_v42 = vsub.f32 %v4403_v18, %v4709_v54 }
 0x165   : > { %v1851_v61 = vadd.f32 %v4721_v6, %v1782_v4  ;;  %v896_v30 = vpop.xlane.xlu0 %895  ;;  %2003 = vmatmul.f32.gmra.mxu2 %v1850_v5  ;;  %2229 = vmatmul.f32.gmra.mxu0 %v1850_v5  ;;  %v7547_v60 = vsub.f32 %v4405_v19, %v4709_v54  ;;  %v1053_v5 = vmul.f32 %v4866_v38, %v4866_v38  ;;  %v1440_v2 = vsub.f32 1.5, %v1439_v39 }
 0x166   : > { %v4963_v59 = vmul.f32 %v4565_v35, %v896_v30  ;;  %v4968_v3 = vadd.f32 1e-05, %v1266_v49  ;;  %v1714_v23 = vmul.f32 %v1435_v56, %v7546_v42  ;;  %v4978_v28 = vpop.eup %3886  ;;  %v4980_v30 = vmul.f32 0.5, %v1448_v16 }
 0x167   : > { %2116 = vmatmul.f32.gmra.mxu3 %v1851_v61  ;;  %2342 = vmatmul.f32.gmra.mxu1 %v1851_v61  ;;  %v1715_v4 = vmul.f32 %v1435_v56, %v7547_v60  ;;  %v1095_v20 = vpop.xlane.xlu1 %1094  ;;  %v4982_v61 = vmax.f32 %v674_v7, 0.0  ;;  %v1457_v49 = vmul.f32 %v4978_v28, %v4924_v32  ;;  %v677_v19 = vadd.f32 %v4888_v46, %v4324_v25 }
 0x168   : > { %943 = vadd.xlane.f32.xlu2 %v942_v43  ;;  %1139 = vadd.xlane.f32.xlu1 %v1138_v55  ;;  %v1171_v18 = vmul.f32 %v1095_v20, %v4565_v35  ;;  %3888 = vrsqrt.f32 %v4968_v3  ;;  %v1783_v54 = vmul.f32 %v4662_v52, %v1714_v23  ;;  %v1203_v7 = vmul.f32 %v4963_v59, %v4963_v59 }
 0x169   : > { %v1784_v39 = vmul.f32 %v4664_v9, %v1715_v4  ;;  %v1141_v16 = vadd.f32 %v1053_v5, %v1052_v57  ;;  %v1054_v43 = vmul.f32 %v4904_v50, %v4904_v50  ;;  %v1458_v55 = vmul.f32 %v4978_v28, %v1457_v49 }
 0x16a   : > { %v790_v56 = vadd.f32 %v4896_v27, %v4326_v26  ;;  %v1055_v42 = vmul.f32 %v4960_v44, %v4960_v44  ;;  %vm1443_vm4 = vweird.f32 %v4862_v0  ;;  %vm1452_vm5 = vweird.f32 %v4856_v33 }
 0x16b   : > { %v5003_v46 = vmax.f32 %v787_v15, 0.0  ;;  %v1852_v23 = vadd.f32 %v4679_v51, %v1783_v54  ;;  %v1235_v57 = vsub.f32 %v1171_v18, %v1203_v7  ;;  %1142 = vadd.xlane.f32.xlu0 %v1141_v16  ;;  %v945_v60 = vadd.f32 %v4960_v44, %v4904_v50  ;;  %vm1444_vm6 = vmor %vm1442_vm2, %vm1443_vm4 }
 0x16c   : > { %v1450_v4 = vsub.f32 1.5, %v4980_v30  ;;  %v1853_v27 = vadd.f32 %v4721_v6, %v1784_v39  ;;  %v1144_v20 = vadd.f32 %v1055_v42, %v1054_v43  ;;  %v1441_v49 = vmul.f32 %v4862_v0, %v1440_v2  ;;  %v682_v30 = vpop.f32.mrf.mxu2  ;;  %v795_v43 = vpop.f32.mrf.mxu3 }
 0x16d   : > { %v899_v5 = vpop.xlane.xlu2 %898  ;;  %v5011_v58 = vmax.f32 %v677_v19, 0.0  ;;  %2006 = vmatmul.f32.gmra.mxu2 %v1852_v23  ;;  %2232 = vmatmul.f32.gmra.mxu0 %v1852_v23  ;;  %v1267_v15 = vmax.f32 %v1235_v57, 0.0  ;;  %v680_v54 = vadd.f32 %v679_v22, %v4324_v25  ;;  %v5023_v7 = vmul.f32 0.5, %v1458_v55 }
 0x16e   : > { %v5015_v18 = vmul.f32 %v4565_v35, %v899_v5  ;;  %v5021_v39 = vpop.eup %3888  ;;  %v5025_v2 = vmax.f32 %v790_v56, 0.0  ;;  %v793_v19 = vadd.f32 %v792_v17, %v4326_v26  ;;  %v1445_v22 = vsel %vm1444_vm6, %v4862_v0, %v1441_v49 }
 0x16f   : > { %2119 = vmatmul.f32.gmra.mxu3 %v1853_v27  ;;  %2345 = vmatmul.f32.gmra.mxu1 %v1853_v27  ;;  %v1098_v16 = vpop.xlane.xlu0 %1097  ;;  %v1467_v42 = vmul.f32 %v5021_v39, %v4968_v3  ;;  %v5031_v29 = vadd.f32 1e-05, %v1267_v15  ;;  %v948_v55 = vadd.f32 %v5003_v46, %v4982_v61  ;;  %v1056_v56 = vmul.f32 %v4982_v61, %v4982_v61 }
 0x170   : > { %1145 = vadd.xlane.f32.xlu2 %v1144_v20  ;;  %946 = vadd.xlane.f32.xlu1 %v945_v60  ;;  %v7548_v17 = vsub.f32 %v4420_v31, %v4752_v11  ;;  %v7549_v0 = vsub.f32 %v4422_v34, %v4752_v11  ;;  %v1204_v27 = vmul.f32 %v5015_v18, %v5015_v18  ;;  %v5048_v5 = vmax.f32 %v680_v54, 0.0 }
 0x171   : > { %v1172_v20 = vmul.f32 %v1098_v16, %v4565_v35  ;;  %v1468_v60 = vmul.f32 %v5021_v39, %v1467_v42  ;;  %3890 = vrsqrt.f32 %v5031_v29  ;;  %v1057_v49 = vmul.f32 %v5003_v46, %v5003_v46 }
 0x172   : > { %v1716_v23 = vmul.f32 %v1445_v22, %v7548_v17  ;;  %v1717_v57 = vmul.f32 %v1445_v22, %v7549_v0  ;;  %v951_v11 = vadd.f32 %v5025_v2, %v5011_v58  ;;  %v683_v16 = vadd.f32 %v682_v30, %v4324_v25 }
 0x173   : > { %v1236_v34 = vsub.f32 %v1172_v20, %v1204_v27  ;;  %v5056_v22 = vmul.f32 0.5, %v1468_v60  ;;  %949 = vadd.xlane.f32.xlu0 %v948_v55  ;;  %v796_v42 = vadd.f32 %v795_v43, %v4326_v26  ;;  %v1451_v54 = vmul.f32 %v4907_v21, %v1450_v4 }
 0x174   : > { %v1785_v31 = vmul.f32 %v4662_v52, %v1716_v23  ;;  %v1786_v15 = vmul.f32 %v4664_v9, %v1717_v57  ;;  %v1147_v53 = vadd.f32 %v1057_v49, %v1056_v56  ;;  %vm1462_vm7 = vweird.f32 %v4924_v32 }
 0x175   : > { %v1268_v23 = vmax.f32 %v1236_v34, 0.0  ;;  %v902_v57 = vpop.xlane.xlu1 %901  ;;  %v5064_v27 = vmax.f32 %v793_v19, 0.0  ;;  %vm1453_vm8 = vweird.f32 %v4907_v21  ;;  %v1460_v30 = vsub.f32 1.5, %v5023_v7 }
 0x176   : > { %v1854_v17 = vadd.f32 %v4679_v51, %v1785_v31  ;;  %v1855_v0 = vadd.f32 %v4721_v6, %v1786_v15  ;;  %v5067_v20 = vmul.f32 %v4565_v35, %v902_v57  ;;  %vm1454_vm9 = vmor %vm1452_vm5, %vm1453_vm8  ;;  %v1058_v55 = vmul.f32 %v5011_v58, %v5011_v58 }
 0x177   : > { %v5071_v4 = vadd.f32 1e-05, %v1268_v23  ;;  %v1101_v43 = vpop.xlane.xlu2 %1100  ;;  %v1059_v19 = vmul.f32 %v5025_v2, %v5025_v2  ;;  %v5079_v56 = vpop.eup %3890  ;;  %v5082_v7 = vmax.f32 %v683_v16, 0.0  ;;  %v5084_v49 = vmax.f32 %v796_v42, 0.0 }
 0x178   : > { %2009 = vmatmul.f32.gmra.mxu2 %v1854_v17  ;;  %2122 = vmatmul.f32.gmra.mxu3 %v1855_v0  ;;  %v1455_v33 = vsel %vm1454_vm9, %v4907_v21, %v1451_v54  ;;  %v1477_v31 = vmul.f32 %v5079_v56, %v5031_v29  ;;  %v7550_v15 = vsub.f32 %v4437_v47, %v4803_v37  ;;  %v685_v16 = vpop.f32.mrf.mxu2  ;;  %vm1463_vm10 = vweird.f32 %v4978_v28 }
 0x179   : > { %2235 = vmatmul.f32.gmra.mxu0 %v1854_v17  ;;  %2348 = vmatmul.f32.gmra.mxu1 %v1855_v0  ;;  %3892 = vrsqrt.f32 %v5071_v4  ;;  %v1060_v17 = vmul.f32 %v5048_v5, %v5048_v5  ;;  %v798_v0 = vpop.f32.mrf.mxu3  ;;  %v7551_v42 = vsub.f32 %v4439_v48, %v4803_v37  ;;  %v1173_v54 = vmul.f32 %v1101_v43, %v4565_v35  ;;  %vm1464_vm11 = vmor %vm1462_vm7, %vm1463_vm10 }
 0x17a   : > { %952 = vadd.xlane.f32.xlu2 %v951_v11  ;;  %1148 = vadd.xlane.f32.xlu1 %v1147_v53  ;;  %v1718_v34 = vmul.f32 %v1455_v33, %v7550_v15  ;;  %v1205_v23 = vmul.f32 %v5067_v20, %v5067_v20  ;;  %v1150_v11 = vadd.f32 %v1059_v19, %v1058_v55  ;;  %vm1472_vm12 = vweird.f32 %v4968_v3 }
 0x17b   : > { %v1719_v21 = vmul.f32 %v1455_v33, %v7551_v42  ;;  %v1478_v53 = vmul.f32 %v5079_v56, %v1477_v31  ;;  %v1061_v57 = vmul.f32 %v5064_v27, %v5064_v27  ;;  %v686_v48 = vadd.f32 %v685_v16, %v4324_v25 }
 0x17c   : > { %v1787_v47 = vmul.f32 %v4662_v52, %v1718_v34  ;;  %v1237_v60 = vsub.f32 %v1173_v54, %v1205_v23  ;;  %1151 = vadd.xlane.f32.xlu0 %v1150_v11  ;;  %v799_v37 = vadd.f32 %v798_v0, %v4326_v26  ;;  %v954_v19 = vadd.f32 %v5064_v27, %v5048_v5 }
 0x17d   : > { %v1788_v15 = vmul.f32 %v4664_v9, %v1719_v21  ;;  %v1153_v55 = vadd.f32 %v1061_v57, %v1060_v17  ;;  %v905_v33 = vpop.xlane.xlu0 %904  ;;  %v1461_v31 = vmul.f32 %v4978_v28, %v1460_v30  ;;  %v5113_v34 = vmul.f32 0.5, %v1478_v53 }
 0x17e   : > { %v1856_v43 = vadd.f32 %v4679_v51, %v1787_v47  ;;  %v1269_v21 = vmax.f32 %v1237_v60, 0.0  ;;  %v5116_v54 = vmax.f32 %v686_v48, 0.0  ;;  %v5124_v26 = vmax.f32 %v799_v37, 0.0 }
 0x17f   : > { %v1857_v42 = vadd.f32 %v4721_v6, %v1788_v15  ;;  %v5122_v25 = vpop.eup %3892  ;;  %v5127_v17 = vmul.f32 %v4565_v35, %v905_v33  ;;  %v1465_v30 = vsel %vm1464_vm11, %v4978_v28, %v1461_v31  ;;  %v1104_v16 = vpop.xlane.xlu1 %1103  ;;  %v957_v60 = vadd.f32 %v5084_v49, %v5082_v7 }
 0x180   : > { %7552 = vst [vmem:[#allocation35_spill] sm:$0xff] %v5116_v54  ;;  %2012 = vmatmul.f32.gmra.mxu2 %v1856_v43  ;;  %v1487_v0 = vmul.f32 %v5122_v25, %v5071_v4  ;;  %v5134_v32 = vadd.f32 1e-05, %v1269_v21  ;;  %v7554_v23 = vsub.f32 %v4452_v62, %v4859_v36  ;;  %v7555_v53 = vsub.f32 %v4454_v63, %v4859_v36 }
 0x181   : > { %7553 = vst [vmem:[#allocation36_spill] sm:$0xff] %v5124_v26  ;;  %2125 = vmatmul.f32.gmra.mxu3 %v1857_v42  ;;  %2238 = vmatmul.f32.gmra.mxu0 %v1856_v43  ;;  %v1306_v28 = vsub.f32 %v4464_v12, %v4914_v14  ;;  %v1307_v57 = vsub.f32 %v4466_v13, %v4914_v14  ;;  %vm1473_vm13 = vweird.f32 %v5021_v39  ;;  %v1480_v63 = vsub.f32 1.5, %v5113_v34 }
 0x182   : > { %v1720_v11 = vmul.f32 %v1465_v30, %v7554_v23  ;;  %v1721_v47 = vmul.f32 %v1465_v30, %v7555_v53  ;;  %2351 = vmatmul.f32.gmra.mxu1 %v1857_v42  ;;  %1154 = vadd.xlane.f32.xlu2 %v1153_v55  ;;  %v1174_v15 = vmul.f32 %v1104_v16, %v4565_v35  ;;  %3894 = vrsqrt.f32 %v5134_v32  ;;  %vm1474_vm14 = vmor %vm1472_vm12, %vm1473_vm13 }
 0x183   : > { %v1488_v48 = vmul.f32 %v5122_v25, %v1487_v0  ;;  %955 = vadd.xlane.f32.xlu1 %v954_v19  ;;  %v1206_v13 = vmul.f32 %v5127_v17, %v5127_v17  ;;  %v1062_v36 = vmul.f32 %v5082_v7, %v5082_v7  ;;  %v960_v37 = vadd.f32 %v5124_v26, %v5116_v54 }
 0x184   : > { %v1789_v62 = vmul.f32 %v4662_v52, %v1720_v11  ;;  %v1790_v12 = vmul.f32 %v4664_v9, %v1721_v47  ;;  %958 = vadd.xlane.f32.xlu0 %v957_v60  ;;  %v1063_v43 = vmul.f32 %v5084_v49, %v5084_v49  ;;  %v7556_v55 = vsub.f32 1.5, %v5056_v22 }
 0x185   : > { %v1489_v14 = vmul.f32 0.5, %v1488_v48  ;;  %v1238_v31 = vsub.f32 %v1174_v15, %v1206_v13  ;;  %v908_v34 = vpop.xlane.xlu2 %907  ;;  %v1064_v42 = vmul.f32 %v5116_v54, %v5116_v54  ;;  %v1065_v21 = vmul.f32 %v5124_v26, %v5124_v26 }
 0x186   : > { %v1471_v19 = vmul.f32 %v5021_v39, %v7556_v55  ;;  %v1858_v33 = vadd.f32 %v4679_v51, %v1789_v62  ;;  %v1859_v30 = vadd.f32 %v4721_v6, %v1790_v12  ;;  %v1156_v16 = vadd.f32 %v1063_v43, %v1062_v36  ;;  %v7557_v36 = vld [vmem:[#allocation8_spill] sm:$0xff]  ;;  %v7558_v43 = vld [vmem:[#allocation9_spill] sm:$0xff] }
 0x187   : > { %v5174_v22 = vmul.f32 %v4565_v35, %v908_v34  ;;  %vm1482_vm15 = vweird.f32 %v5031_v29  ;;  %v1270_v0 = vmax.f32 %v1238_v31, 0.0  ;;  %v1107_v11 = vpop.xlane.xlu0 %1106  ;;  %v1490_v47 = vsub.f32 1.5, %v1489_v14 }
 0x188   : > { %v1475_v60 = vsel %vm1474_vm14, %v5021_v39, %v1471_v19  ;;  %2015 = vmatmul.f32.gmra.mxu2 %v1858_v33  ;;  %v5178_v53 = vpop.eup %3894  ;;  %v1159_v48 = vadd.f32 %v1065_v21, %v1064_v42  ;;  %vm1483_vm1 = vweird.f32 %v5079_v56  ;;  %v1175_v12 = vmul.f32 %v1107_v11, %v4565_v35 }
 0x189   : > { %v1722_v3 = vmul.f32 %v1475_v60, %v1306_v28  ;;  %v1723_v23 = vmul.f32 %v1475_v60, %v1307_v57  ;;  %2128 = vmatmul.f32.gmra.mxu3 %v1859_v30  ;;  %2241 = vmatmul.f32.gmra.mxu0 %v1858_v33  ;;  %v1207_v15 = vmul.f32 %v5174_v22, %v5174_v22  ;;  %v5185_v62 = vadd.f32 1e-05, %v1270_v0  ;;  %vm1484_vm2 = vmor %vm1482_vm15, %vm1483_vm1 }
 0x18a   : > { %v1497_v39 = vmul.f32 %v5178_v53, %v5134_v32  ;;  %2354 = vmatmul.f32.gmra.mxu1 %v1859_v30  ;;  %961 = vadd.xlane.f32.xlu2 %v960_v37  ;;  %v1481_v13 = vmul.f32 %v5079_v56, %v1480_v63  ;;  %v1308_v14 = vsub.f32 %v7557_v36, %v4963_v59  ;;  %vm1492_vm3 = vweird.f32 %v5071_v4 }
 0x18b   : > { %v1791_v28 = vmul.f32 %v4662_v52, %v1722_v3  ;;  %v1792_v57 = vmul.f32 %v4664_v9, %v1723_v23  ;;  %1157 = vadd.xlane.f32.xlu1 %v1156_v16  ;;  %v1309_v55 = vsub.f32 %v7558_v43, %v4963_v59  ;;  %3896 = vrsqrt.f32 %v5185_v62  ;;  %v7559_v23 = vld [vmem:[#allocation10_spill] sm:$0xff] }
 0x18c   : > { %v1498_v19 = vmul.f32 %v5178_v53, %v1497_v39  ;;  %v1239_v37 = vsub.f32 %v1175_v12, %v1207_v15  ;;  %1160 = vadd.xlane.f32.xlu0 %v1159_v48  ;;  %v1485_v33 = vsel %vm1484_vm2, %v5079_v56, %v1481_v13  ;;  %v1491_v63 = vmul.f32 %v5122_v25, %v1490_v47 }
 0x18d   : > { %v1860_v31 = vadd.f32 %v4679_v51, %v1791_v28  ;;  %v1861_v34 = vadd.f32 %v4721_v6, %v1792_v57  ;;  %v911_v59 = vpop.xlane.xlu1 %910  ;;  %v1724_v42 = vmul.f32 %v1485_v33, %v1308_v14  ;;  %vm1493_vm4 = vweird.f32 %v5122_v25  ;;  %v7560_v57 = vld [vmem:[#allocation11_spill] sm:$0xff] }
 0x18e   : > { %v1499_v21 = vmul.f32 0.5, %v1498_v19  ;;  %v1271_v30 = vmax.f32 %v1239_v37, 0.0  ;;  %v5206_v29 = vmul.f32 %v4565_v35, %v911_v59  ;;  %v1725_v16 = vmul.f32 %v1485_v33, %v1309_v55  ;;  %vm1494_vm5 = vmor %vm1492_vm3, %vm1493_vm4 }
 0x18f   : > { %v1110_v60 = vpop.xlane.xlu2 %1109  ;;  %v1310_v11 = vsub.f32 %v7559_v23, %v5015_v18  ;;  %v1793_v47 = vmul.f32 %v4662_v52, %v1724_v42  ;;  %v1495_v48 = vsel %vm1494_vm5, %v5122_v25, %v1491_v63  ;;  %v1311_v12 = vsub.f32 %v7560_v57, %v5015_v18 }
 0x190   : > { %2018 = vmatmul.f32.gmra.mxu2 %v1860_v31  ;;  %v5208_v56 = vadd.f32 1e-05, %v1271_v30  ;;  %v1176_v0 = vmul.f32 %v1110_v60, %v4565_v35  ;;  %v1208_v15 = vmul.f32 %v5206_v29, %v5206_v29  ;;  %v1500_v39 = vsub.f32 1.5, %v1499_v21 }
 0x191   : > { %2131 = vmatmul.f32.gmra.mxu3 %v1861_v34  ;;  %2244 = vmatmul.f32.gmra.mxu0 %v1860_v31  ;;  %v5213_v3 = vpop.eup %3896  ;;  %v1794_v4 = vmul.f32 %v4664_v9, %v1725_v16  ;;  %vm1502_vm6 = vweird.f32 %v5134_v32  ;;  %v1726_v14 = vmul.f32 %v1495_v48, %v1310_v11  ;;  %v1862_v43 = vadd.f32 %v4679_v51, %v1793_v47  ;;  %v7561_v11 = vld [vmem:[#allocation12_spill] sm:$0xff] }
 0x192   : > { %2357 = vmatmul.f32.gmra.mxu1 %v1861_v34  ;;  %v1507_v28 = vmul.f32 %v5213_v3, %v5185_v62  ;;  %3898 = vrsqrt.f32 %v5208_v56  ;;  %v1240_v13 = vsub.f32 %v1176_v0, %v1208_v15  ;;  %v1727_v19 = vmul.f32 %v1495_v48, %v1311_v12 }
 0x193   : > { %vm1503_vm7 = vweird.f32 %v5178_v53  ;;  %v1863_v33 = vadd.f32 %v4721_v6, %v1794_v4  ;;  %v1501_v18 = vmul.f32 %v5178_v53, %v1500_v39  ;;  %v1795_v59 = vmul.f32 %v4662_v52, %v1726_v14  ;;  %v7562_v39 = vld [vmem:[#allocation13_spill] sm:$0xff] }
 0x194   : > { %v1508_v36 = vmul.f32 %v5213_v3, %v1507_v28  ;;  %v1272_v25 = vmax.f32 %v1240_v13, 0.0  ;;  %v1796_v16 = vmul.f32 %v4664_v9, %v1727_v19  ;;  %vm1504_vm8 = vmor %vm1502_vm6, %vm1503_vm7  ;;  %v1312_v47 = vsub.f32 %v7561_v11, %v5067_v20 }
 0x195   : > { %v914_v55 = vpop.xlane.xlu0 %913  ;;  %v1505_v23 = vsel %vm1504_vm8, %v5178_v53, %v1501_v18  ;;  %v1313_v28 = vsub.f32 %v7562_v39, %v5067_v20  ;;  %vm1512_vm9 = vweird.f32 %v5185_v62  ;;  %v1864_v4 = vadd.f32 %v4679_v51, %v1795_v59 }
 0x196   : > { %v1509_v37 = vmul.f32 0.5, %v1508_v36  ;;  %v5233_v63 = vmul.f32 %v4565_v35, %v914_v55  ;;  %v5236_v31 = vadd.f32 1e-05, %v1272_v25  ;;  %v1865_v57 = vadd.f32 %v4721_v6, %v1796_v16  ;;  %v7563_v16 = vld [vmem:[#allocation14_spill] sm:$0xff] }
 0x197   : > { %v1113_v42 = vpop.xlane.xlu1 %1112  ;;  %v1728_v13 = vmul.f32 %v1505_v23, %v1312_v47  ;;  %vm1513_vm10 = vweird.f32 %v5213_v3  ;;  %v1729_v14 = vmul.f32 %v1505_v23, %v1313_v28  ;;  %v7564_v23 = vld [vmem:[#allocation15_spill] sm:$0xff]  ;;  %vm1522_vm12 = vweird.f32 %v5208_v56 }
 0x198   : > { %2021 = vmatmul.f32.gmra.mxu2 %v1862_v43  ;;  %v5238_v34 = vpop.eup %3898  ;;  %v1209_v21 = vmul.f32 %v5233_v63, %v5233_v63  ;;  %3900 = vrsqrt.f32 %v5236_v31  ;;  %v1177_v60 = vmul.f32 %v1113_v42, %v4565_v35  ;;  %v1510_v0 = vsub.f32 1.5, %v1509_v37  ;;  %vm1514_vm11 = vmor %vm1512_vm9, %vm1513_vm10 }
 0x199   : > { %2134 = vmatmul.f32.gmra.mxu3 %v1863_v33  ;;  %2247 = vmatmul.f32.gmra.mxu0 %v1862_v43  ;;  %v1517_v30 = vmul.f32 %v5238_v34, %v5208_v56  ;;  %v1797_v37 = vmul.f32 %v4662_v52, %v1728_v13  ;;  %v1315_v11 = vsub.f32 %v7564_v23, %v5127_v17  ;;  %vm1523_vm13 = vweird.f32 %v5238_v34 }
 0x19a   : > { %2360 = vmatmul.f32.gmra.mxu1 %v1863_v33  ;;  %v1241_v48 = vsub.f32 %v1177_v60, %v1209_v21  ;;  %v1511_v43 = vmul.f32 %v5213_v3, %v1510_v0  ;;  %v1798_v21 = vmul.f32 %v4664_v9, %v1729_v14  ;;  %v1314_v60 = vsub.f32 %v7563_v16, %v5127_v17  ;;  %vm1524_vm14 = vmor %vm1522_vm12, %vm1523_vm13 }
 0x19b   : > { %v1518_v15 = vmul.f32 %v5238_v34, %v1517_v30  ;;  %v1866_v47 = vadd.f32 %v4679_v51, %v1797_v37  ;;  %vm1532_vm15 = vweird.f32 %v5236_v31 }
 0x19c   : > { %v1273_v32 = vmax.f32 %v1241_v48, 0.0  ;;  %v1515_v30 = vsel %vm1514_vm11, %v5213_v3, %v1511_v43  ;;  %v1867_v28 = vadd.f32 %v4721_v6, %v1798_v21 }
 0x19d   : > { %v917_v12 = vpop.xlane.xlu2 %916  ;;  %v1519_v53 = vmul.f32 0.5, %v1518_v15  ;;  %v1730_v39 = vmul.f32 %v1515_v30, %v1314_v60 }
 0x19e   : > { %v5263_v36 = vmul.f32 %v4565_v35, %v917_v12  ;;  %v5266_v25 = vpop.eup %3900  ;;  %v5268_v20 = vadd.f32 1e-05, %v1273_v32 }
 0x19f   : > { %v1527_v55 = vmul.f32 %v5266_v25, %v5236_v31  ;;  %v1116_v19 = vpop.xlane.xlu0 %1115  ;;  %v1520_v59 = vsub.f32 1.5, %v1519_v53  ;;  %v1799_v14 = vmul.f32 %v4662_v52, %v1730_v39  ;;  %vm1533_vm1 = vweird.f32 %v5266_v25 }
 0x1a0   : > { %2024 = vmatmul.f32.gmra.mxu2 %v1864_v4  ;;  %3902 = vrsqrt.f32 %v5268_v20  ;;  %v1210_v33 = vmul.f32 %v5263_v36, %v5263_v36  ;;  %v1178_v18 = vmul.f32 %v1116_v19, %v4565_v35  ;;  %vm1534_vm2 = vmor %vm1532_vm15, %vm1533_vm1  ;;  %vm1542_vm3 = vweird.f32 %v5268_v20 }
 0x1a1   : > { %2137 = vmatmul.f32.gmra.mxu3 %v1865_v57  ;;  %2250 = vmatmul.f32.gmra.mxu0 %v1864_v4  ;;  %v1528_v42 = vmul.f32 %v5266_v25, %v1527_v55  ;;  %v1731_v4 = vmul.f32 %v1515_v30, %v1315_v11  ;;  %v1868_v16 = vadd.f32 %v4679_v51, %v1799_v14  ;;  %v7567_v14 = vld [vmem:[#allocation18_spill] sm:$0xff] }
 0x1a2   : > { %2363 = vmatmul.f32.gmra.mxu1 %v1865_v57  ;;  %v1242_v0 = vsub.f32 %v1178_v18, %v1210_v33  ;;  %v1521_v57 = vmul.f32 %v5238_v34, %v1520_v59  ;;  %v7565_v18 = vld [vmem:[#allocation16_spill] sm:$0xff] }
 0x1a3   : > { %v1529_v62 = vmul.f32 0.5, %v1528_v42  ;;  %v1800_v19 = vmul.f32 %v4664_v9, %v1731_v4  ;;  %v1316_v59 = vsub.f32 %v7565_v18, %v5174_v22  ;;  %v7566_v42 = vld [vmem:[#allocation17_spill] sm:$0xff] }
 0x1a4   : > { %v1274_v15 = vmax.f32 %v1242_v0, 0.0  ;;  %v1525_v33 = vsel %vm1524_vm14, %v5238_v34, %v1521_v57  ;;  %v1317_v21 = vsub.f32 %v7566_v42, %v5174_v22 }
 0x1a5   : > { %v920_v48 = vpop.xlane.xlu1 %919  ;;  %v1530_v53 = vsub.f32 1.5, %v1529_v62  ;;  %v1732_v60 = vmul.f32 %v1525_v33, %v1316_v59  ;;  %v1869_v34 = vadd.f32 %v4721_v6, %v1800_v19 }
 0x1a6   : > { %v5293_v3 = vmul.f32 %v4565_v35, %v920_v48  ;;  %v5296_v32 = vpop.eup %3902  ;;  %v5298_v17 = vadd.f32 1e-05, %v1274_v15  ;;  %v1733_v0 = vmul.f32 %v1525_v33, %v1317_v21 }
 0x1a7   : > { %v1119_v12 = vpop.xlane.xlu2 %1118  ;;  %v1537_v13 = vmul.f32 %v5296_v32, %v5268_v20  ;;  %v1531_v30 = vmul.f32 %v5266_v25, %v1530_v53  ;;  %v1801_v48 = vmul.f32 %v4662_v52, %v1732_v60  ;;  %vm1543_vm4 = vweird.f32 %v5296_v32 }
 0x1a8   : > { %2027 = vmatmul.f32.gmra.mxu2 %v1866_v47  ;;  %3904 = vrsqrt.f32 %v5298_v17  ;;  %v1179_v43 = vmul.f32 %v1119_v12, %v4565_v35  ;;  %v1211_v37 = vmul.f32 %v5293_v3, %v5293_v3  ;;  %v1802_v39 = vmul.f32 %v4664_v9, %v1733_v0  ;;  %vm1544_vm5 = vmor %vm1542_vm3, %vm1543_vm4 }
 0x1a9   : > { %2140 = vmatmul.f32.gmra.mxu3 %v1867_v28  ;;  %2253 = vmatmul.f32.gmra.mxu0 %v1866_v47  ;;  %v1538_v55 = vmul.f32 %v5296_v32, %v1537_v13  ;;  %v1535_v57 = vsel %vm1534_vm2, %v5266_v25, %v1531_v30  ;;  %v1870_v25 = vadd.f32 %v4679_v51, %v1801_v48  ;;  %v7569_v48 = vld [vmem:[#allocation20_spill] sm:$0xff]  ;;  %vm1552_vm6 = vweird.f32 %v5298_v17 }
 0x1aa   : > { %2366 = vmatmul.f32.gmra.mxu1 %v1867_v28  ;;  %v1243_v56 = vsub.f32 %v1179_v43, %v1211_v37  ;;  %v1318_v43 = vsub.f32 %v7567_v14, %v5206_v29  ;;  %v1871_v33 = vadd.f32 %v4721_v6, %v1802_v39  ;;  %v1320_v39 = vsub.f32 %v7569_v48, %v5233_v63 }
 0x1ab   : > { %v1539_v23 = vmul.f32 0.5, %v1538_v55  ;;  %v7568_v55 = vld [vmem:[#allocation19_spill] sm:$0xff] }
 0x1ac   : > { %v1275_v11 = vmax.f32 %v1243_v56, 0.0  ;;  %v1319_v19 = vsub.f32 %v7568_v55, %v5206_v29  ;;  %v1734_v18 = vmul.f32 %v1535_v57, %v1318_v43 }
 0x1ad   : > { %v923_v62 = vpop.xlane.xlu0 %922  ;;  %v1540_v12 = vsub.f32 1.5, %v1539_v23 }
 0x1ae   : > { %v5323_v47 = vpop.eup %3904  ;;  %v5326_v22 = vmul.f32 %v4565_v35, %v923_v62  ;;  %v5330_v15 = vadd.f32 1e-05, %v1275_v11  ;;  %v1735_v56 = vmul.f32 %v1535_v57, %v1319_v19  ;;  %v1803_v23 = vmul.f32 %v4662_v52, %v1734_v18  ;;  %v7570_v57 = vld [vmem:[#allocation21_spill] sm:$0xff] }
 0x1af   : > { %v1547_v31 = vmul.f32 %v5323_v47, %v5298_v17  ;;  %v1541_v59 = vmul.f32 %v5296_v32, %v1540_v12  ;;  %v1321_v12 = vsub.f32 %v7570_v57, %v5233_v63  ;;  %vm1553_vm7 = vweird.f32 %v5323_v47 }
 0x1b0   : > { %2030 = vmatmul.f32.gmra.mxu2 %v1868_v16  ;;  %v1212_v4 = vmul.f32 %v5326_v22, %v5326_v22  ;;  %3906 = vrsqrt.f32 %v5330_v15  ;;  %v1804_v11 = vmul.f32 %v4664_v9, %v1735_v56  ;;  %vm1554_vm8 = vmor %vm1552_vm6, %vm1553_vm7  ;;  %v7571_v56 = vld [vmem:[#allocation23_spill] sm:$0xff]  ;;  %vm1562_vm9 = vweird.f32 %v5330_v15 }
 0x1b1   : > { %2143 = vmatmul.f32.gmra.mxu3 %v1869_v34  ;;  %2256 = vmatmul.f32.gmra.mxu0 %v1868_v16  ;;  %v1122_v28 = vpop.xlane.xlu1 %1121  ;;  %v1548_v13 = vmul.f32 %v5323_v47, %v1547_v31  ;;  %v1545_v31 = vsel %vm1544_vm5, %v5296_v32, %v1541_v59 }
 0x1b2   : > { %2369 = vmatmul.f32.gmra.mxu1 %v1869_v34  ;;  %v1180_v53 = vmul.f32 %v1122_v28, %v4565_v35  ;;  %v1736_v32 = vmul.f32 %v1545_v31, %v1320_v39  ;;  %v1873_v55 = vadd.f32 %v4721_v6, %v1804_v11  ;;  %v7572_v11 = vld [vmem:[#allocation24_spill] sm:$0xff] }
 0x1b3   : > { %v1549_v42 = vmul.f32 0.5, %v1548_v13 }
 0x1b4   : > { %v1244_v37 = vsub.f32 %v1180_v53, %v1212_v4  ;;  %v1872_v53 = vadd.f32 %v4679_v51, %v1803_v23 }
 0x1b5   : > { %v1550_v34 = vsub.f32 1.5, %v1549_v42 }
 0x1b6   : > { %v1276_v21 = vmax.f32 %v1244_v37, 0.0  ;;  %v926_v30 = vpop.xlane.xlu2 %925  ;;  %v5349_v16 = vpop.eup %3906  ;;  %v1737_v37 = vmul.f32 %v1545_v31, %v1321_v12 }
 0x1b7   : > { %v5354_v60 = vmul.f32 %v4565_v35, %v926_v30  ;;  %v1557_v0 = vmul.f32 %v5349_v16, %v5330_v15  ;;  %v1551_v43 = vmul.f32 %v5323_v47, %v1550_v34  ;;  %v1322_v30 = vsub.f32 %v7571_v56, %v5263_v36 }
 0x1b8   : > { %2033 = vmatmul.f32.gmra.mxu2 %v1870_v25  ;;  %v5351_v29 = vadd.f32 1e-05, %v1276_v21  ;;  %v1805_v21 = vmul.f32 %v4662_v52, %v1736_v32  ;;  %vm1563_vm10 = vweird.f32 %v5349_v16 }
 0x1b9   : > { %2146 = vmatmul.f32.gmra.mxu3 %v1871_v33  ;;  %2259 = vmatmul.f32.gmra.mxu0 %v1870_v25  ;;  %v1125_v62 = vpop.xlane.xlu0 %1124  ;;  %v1558_v20 = vmul.f32 %v5349_v16, %v1557_v0  ;;  %v1213_v28 = vmul.f32 %v5354_v60, %v5354_v60  ;;  %v1806_v0 = vmul.f32 %v4664_v9, %v1737_v37  ;;  %vm1564_vm11 = vmor %vm1562_vm9, %vm1563_vm10 }
 0x1ba   : > { %2372 = vmatmul.f32.gmra.mxu1 %v1871_v33  ;;  %3908 = vrsqrt.f32 %v5351_v29  ;;  %v1181_v4 = vmul.f32 %v1125_v62, %v4565_v35  ;;  %v1555_v17 = vsel %vm1554_vm8, %v5323_v47, %v1551_v43  ;;  %v1323_v62 = vsub.f32 %v7572_v11, %v5263_v36  ;;  %v7574_v43 = vld [vmem:[#allocation25_spill] sm:$0xff] }
 0x1bb   : > { %v1559_v13 = vmul.f32 0.5, %v1558_v20  ;;  %v1874_v20 = vadd.f32 %v4679_v51, %v1805_v21  ;;  %v1875_v36 = vadd.f32 %v4721_v6, %v1806_v0  ;;  %vm1572_vm12 = vweird.f32 %v5351_v29 }
 0x1bc   : > { %v1245_v14 = vsub.f32 %v1181_v4, %v1213_v28  ;;  %v1738_v4 = vmul.f32 %v1555_v17, %v1322_v30  ;;  %v1739_v47 = vmul.f32 %v1555_v17, %v1323_v62  ;;  %v7576_v30 = vld [vmem:[#allocation26_spill] sm:$0xff] }
 0x1bd   : > { %v1560_v18 = vsub.f32 1.5, %v1559_v13  ;;  %v1325_v0 = vsub.f32 %v7576_v30, %v5293_v3 }
 0x1be   : > { %v929_v19 = vpop.xlane.xlu1 %928  ;;  %v1277_v25 = vmax.f32 %v1245_v14, 0.0 }
 0x1bf   : > { %v5380_v33 = vmul.f32 %v4565_v35, %v929_v19  ;;  %v1561_v39 = vmul.f32 %v5349_v16, %v1560_v18  ;;  %v1808_v18 = vmul.f32 %v4664_v9, %v1739_v47 }
 0x1c0   : > { %2036 = vmatmul.f32.gmra.mxu2 %v1872_v53  ;;  %v5382_v63 = vpop.eup %3908  ;;  %v5388_v42 = vadd.f32 1e-05, %v1277_v25  ;;  %v1807_v25 = vmul.f32 %v4662_v52, %v1738_v4 }
 0x1c1   : > { %2149 = vmatmul.f32.gmra.mxu3 %v1873_v55  ;;  %2262 = vmatmul.f32.gmra.mxu0 %v1872_v53  ;;  %v1567_v59 = vmul.f32 %v5382_v63, %v5351_v29  ;;  %v1128_v23 = vpop.xlane.xlu2 %1127  ;;  %v1214_v34 = vmul.f32 %v5380_v33, %v5380_v33  ;;  %v1565_v14 = vsel %vm1564_vm11, %v5349_v16, %v1561_v39  ;;  %vm1573_vm13 = vweird.f32 %v5382_v63 }
 0x1c2   : > { %2375 = vmatmul.f32.gmra.mxu1 %v1873_v55  ;;  %3910 = vrsqrt.f32 %v5388_v42  ;;  %v1182_v48 = vmul.f32 %v1128_v23, %v4565_v35  ;;  %v1324_v55 = vsub.f32 %v7574_v43, %v5293_v3  ;;  %v1876_v62 = vadd.f32 %v4679_v51, %v1807_v25  ;;  %vm1574_vm14 = vmor %vm1572_vm12, %vm1573_vm13 }
 0x1c3   : > { %v1568_v31 = vmul.f32 %v5382_v63, %v1567_v59  ;;  %v1741_v3 = vmul.f32 %v1565_v14, %v1325_v0  ;;  %vm1582_vm15 = vweird.f32 %v5388_v42 }
 0x1c4   : > { %v1246_v28 = vsub.f32 %v1182_v48, %v1214_v34  ;;  %v5407_v53 = vpop.f32.mrf.mxu0  ;;  %v1740_v23 = vmul.f32 %v1565_v14, %v1324_v55  ;;  %v7579_v55 = vld [vmem:[#allocation27_spill] sm:$0xff] }
 0x1c5   : > { %v1569_v57 = vmul.f32 0.5, %v1568_v31  ;;  %7573 = vst [vmem:[#allocation8_spill] sm:$0xff] %v5407_v53  ;;  %v1877_v31 = vadd.f32 %v4721_v6, %v1808_v18  ;;  %v1326_v25 = vsub.f32 %v7579_v55, %v5326_v22  ;;  %v1810_v18 = vmul.f32 %v4664_v9, %v1741_v3 }
 0x1c6   : > { %v1278_v12 = vmax.f32 %v1246_v28, 0.0  ;;  %v932_v13 = vpop.xlane.xlu0 %931 }
 0x1c7   : > { %v5410_v15 = vmul.f32 %v4565_v35, %v932_v13  ;;  %v5419_v37 = vpop.f32.mrf.mxu1  ;;  %v1570_v59 = vsub.f32 1.5, %v1569_v57 }
 0x1c8   : > { %2039 = vmatmul.f32.gmra.mxu2 %v1874_v20  ;;  %v5413_v32 = vpop.eup %3910  ;;  %v5417_v19 = vadd.f32 1e-05, %v1278_v12  ;;  %7575 = vst [vmem:[#allocation9_spill] sm:$0xff] %v5419_v37  ;;  %v1809_v12 = vmul.f32 %v4662_v52, %v1740_v23  ;;  %v7581_v23 = vld [vmem:[#allocation28_spill] sm:$0xff] }
 0x1c9   : > { %2152 = vmatmul.f32.gmra.mxu3 %v1875_v36  ;;  %2265 = vmatmul.f32.gmra.mxu0 %v1874_v20  ;;  %v1577_v21 = vmul.f32 %v5413_v32, %v5388_v42  ;;  %v1215_v11 = vmul.f32 %v5410_v15, %v5410_v15  ;;  %v1571_v39 = vmul.f32 %v5382_v63, %v1570_v59  ;;  %vm1583_vm1 = vweird.f32 %v5413_v32 }
 0x1ca   : > { %2378 = vmatmul.f32.gmra.mxu1 %v1875_v36  ;;  %v935_v56 = vpop.xlane.xlu2 %934  ;;  %v1131_v16 = vpop.xlane.xlu1 %1130  ;;  %3912 = vrsqrt.f32 %v5417_v19  ;;  %vm1584_vm2 = vmor %vm1582_vm15, %vm1583_vm1  ;;  %vm1592_vm3 = vweird.f32 %v5417_v19 }
 0x1cb   : > { %v1578_v34 = vmul.f32 %v5413_v32, %v1577_v21  ;;  %v1183_v17 = vmul.f32 %v1131_v16, %v4565_v35  ;;  %v5436_v48 = vmul.f32 %v4565_v35, %v935_v56  ;;  %v5440_v4 = vpop.f32.mrf.mxu2  ;;  %v1575_v0 = vsel %vm1574_vm14, %v5382_v63, %v1571_v39 }
 0x1cc   : > { %7577 = vst [vmem:[#allocation10_spill] sm:$0xff] %v5440_v4  ;;  %v1879_v63 = vadd.f32 %v4721_v6, %v1810_v18  ;;  %v1742_v39 = vmul.f32 %v1575_v0, %v1326_v25 }
 0x1cd   : > { %v1579_v20 = vmul.f32 0.5, %v1578_v34  ;;  %v1247_v28 = vsub.f32 %v1183_v17, %v1215_v11  ;;  %v5442_v47 = vpop.f32.mrf.mxu3  ;;  %v1216_v57 = vmul.f32 %v5436_v48, %v5436_v48  ;;  %v1327_v34 = vsub.f32 %v7581_v23, %v5326_v22 }
 0x1ce   : > { %7578 = vst [vmem:[#allocation11_spill] sm:$0xff] %v5442_v47  ;;  %v1134_v36 = vpop.xlane.xlu0 %1133  ;;  %v1878_v11 = vadd.f32 %v4679_v51, %v1809_v12  ;;  %v1811_v18 = vmul.f32 %v4662_v52, %v1742_v39 }
 0x1cf   : > { %v1279_v13 = vmax.f32 %v1247_v28, 0.0  ;;  %v1184_v14 = vmul.f32 %v1134_v36, %v4565_v35  ;;  %v1580_v59 = vsub.f32 1.5, %v1579_v20  ;;  %v1743_v12 = vmul.f32 %v1575_v0, %v1327_v34 }
 0x1d0   : > { %2042 = vmatmul.f32.gmra.mxu2 %v1876_v62  ;;  %v5448_v43 = vpop.eup %3912  ;;  %v1880_v39 = vadd.f32 %v4679_v51, %v1811_v18 }
 0x1d1   : > { %2155 = vmatmul.f32.gmra.mxu3 %v1877_v31  ;;  %2268 = vmatmul.f32.gmra.mxu0 %v1876_v62  ;;  %v1587_v21 = vmul.f32 %v5448_v43, %v5417_v19  ;;  %v5459_v56 = vadd.f32 1e-05, %v1279_v13  ;;  %v1248_v17 = vsub.f32 %v1184_v14, %v1216_v57  ;;  %v1581_v28 = vmul.f32 %v5413_v32, %v1580_v59 }
 0x1d2   : > { %2381 = vmatmul.f32.gmra.mxu1 %v1877_v31  ;;  %v5461_v16 = vpop.f32.mrf.mxu0  ;;  %v1137_v30 = vpop.xlane.xlu2 %1136  ;;  %v1812_v34 = vmul.f32 %v4664_v9, %v1743_v12  ;;  %vm1593_vm4 = vweird.f32 %v5448_v43 }
 0x1d3   : > { %7580 = vst [vmem:[#allocation12_spill] sm:$0xff] %v5461_v16  ;;  %v5467_v29 = vpop.f32.mrf.mxu1  ;;  %v938_v62 = vpop.xlane.xlu1 %937  ;;  %v1588_v31 = vmul.f32 %v5448_v43, %v1587_v21  ;;  %3914 = vrsqrt.f32 %v5459_v56  ;;  %v1185_v3 = vmul.f32 %v1137_v30, %v4565_v35  ;;  %v1280_v22 = vmax.f32 %v1248_v17, 0.0  ;;  %vm1594_vm5 = vmor %vm1592_vm3, %vm1593_vm4 }
 0x1d4   : > { %7582 = vst [vmem:[#allocation13_spill] sm:$0xff] %v5467_v29  ;;  %v5474_v20 = vmul.f32 %v4565_v35, %v938_v62  ;;  %v1585_v17 = vsel %vm1584_vm2, %v5413_v32, %v1581_v28  ;;  %vm1602_vm6 = vweird.f32 %v5459_v56 }
 0x1d5   : > { %v1589_v57 = vmul.f32 0.5, %v1588_v31  ;;  %v5481_v13 = vadd.f32 1e-05, %v1280_v22  ;;  %v7588_v31 = vld [vmem:[#allocation31_spill] sm:$0xff] }
 0x1d6   : > { %v1217_v36 = vmul.f32 %v5474_v20, %v5474_v20  ;;  %v941_v14 = vpop.xlane.xlu0 %940 }
 0x1d7   : > { %v1590_v30 = vsub.f32 1.5, %v1589_v57  ;;  %3916 = vrsqrt.f32 %v5481_v13  ;;  %v5507_v22 = vmul.f32 %v4565_v35, %v941_v14  ;;  %vm1612_vm9 = vweird.f32 %v5481_v13 }
 0x1d8   : > { %2045 = vmatmul.f32.gmra.mxu2 %v1878_v11  ;;  %v1249_v55 = vsub.f32 %v1185_v3, %v1217_v36  ;;  %v5483_v21 = vpop.f32.mrf.mxu2  ;;  %v1329_v3 = vsub.f32 %v7588_v31, %v5354_v60 }
 0x1d9   : > { %2158 = vmatmul.f32.gmra.mxu3 %v1879_v63  ;;  %2271 = vmatmul.f32.gmra.mxu0 %v1878_v11  ;;  %7583 = vst [vmem:[#allocation14_spill] sm:$0xff] %v5483_v21  ;;  %v5489_v25 = vpop.f32.mrf.mxu3  ;;  %v5492_v59 = vpop.eup %3914  ;;  %v7586_v11 = vld [vmem:[#allocation30_spill] sm:$0xff]  ;;  %v1591_v57 = vmul.f32 %v5448_v43, %v1590_v30 }
 0x1da   : > { %2384 = vmatmul.f32.gmra.mxu1 %v1879_v63  ;;  %7584 = vst [vmem:[#allocation15_spill] sm:$0xff] %v5489_v25  ;;  %v1281_v0 = vmax.f32 %v1249_v55, 0.0  ;;  %v5494_v23 = vpop.f32.mrf.mxu0  ;;  %v1328_v62 = vsub.f32 %v7586_v11, %v5354_v60  ;;  %v1597_v32 = vmul.f32 %v5492_v59, %v5459_v56  ;;  %v1881_v60 = vadd.f32 %v4721_v6, %v1812_v34 }
 0x1db   : > { %7585 = vst [vmem:[#allocation16_spill] sm:$0xff] %v5494_v23  ;;  %v5501_v42 = vpop.f32.mrf.mxu1  ;;  %v1140_v63 = vpop.xlane.xlu1 %1139  ;;  %v1745_v55 = vmul.f32 %v1585_v17, %v1329_v3  ;;  %v1218_v11 = vmul.f32 %v5507_v22, %v5507_v22  ;;  %vm1603_vm7 = vweird.f32 %v5492_v59  ;;  %v1336_v23 = vsub.f32 %v4739_v45, %v5474_v20 }
 0x1dc   : > { %7587 = vst [vmem:[#allocation17_spill] sm:$0xff] %v5501_v42  ;;  %v1744_v28 = vmul.f32 %v1585_v17, %v1328_v62  ;;  %v5514_v36 = vadd.f32 1e-05, %v1281_v0  ;;  %v944_v12 = vpop.xlane.xlu2 %943  ;;  %v1186_v14 = vmul.f32 %v1140_v63, %v4565_v35  ;;  %v1598_v30 = vmul.f32 %v5492_v59, %v1597_v32  ;;  %vm1604_vm8 = vmor %vm1602_vm6, %vm1603_vm7 }
 0x1dd   : > { %v5522_v62 = vpop.eup %3916  ;;  %v5530_v0 = vmul.f32 %v4565_v35, %v944_v12  ;;  %v1814_v3 = vmul.f32 %v4664_v9, %v1745_v55  ;;  %v1595_v63 = vsel %vm1594_vm5, %v5448_v43, %v1591_v57  ;;  %v7593_v12 = vld [vmem:[#allocation33_spill] sm:$0xff] }
 0x1de   : > { %v1143_v18 = vpop.xlane.xlu0 %1142  ;;  %v1813_v17 = vmul.f32 %v4662_v52, %v1744_v28  ;;  %3918 = vrsqrt.f32 %v5514_v36  ;;  %v1331_v47 = vsub.f32 %v7593_v12, %v5380_v33  ;;  %v1607_v28 = vmul.f32 %v5522_v62, %v5481_v13 }
 0x1df   : > { %v1219_v32 = vmul.f32 %v5530_v0, %v5530_v0  ;;  %v1250_v53 = vsub.f32 %v1186_v14, %v1218_v11  ;;  %v1599_v57 = vmul.f32 0.5, %v1598_v30  ;;  %v1883_v25 = vadd.f32 %v4721_v6, %v1814_v3 }
 0x1e0   : > { %2048 = vmatmul.f32.gmra.mxu2 %v1880_v39  ;;  %v5520_v31 = vpop.f32.mrf.mxu2  ;;  %v1747_v21 = vmul.f32 %v1595_v63, %v1331_v47  ;;  %v1608_v12 = vmul.f32 %v5522_v62, %v1607_v28  ;;  %vm1613_vm10 = vweird.f32 %v5522_v62  ;;  %vm1622_vm12 = vweird.f32 %v5514_v36 }
 0x1e1   : > { %2161 = vmatmul.f32.gmra.mxu3 %v1881_v60  ;;  %2274 = vmatmul.f32.gmra.mxu0 %v1880_v39  ;;  %7589 = vst [vmem:[#allocation18_spill] sm:$0xff] %v5520_v31  ;;  %v5532_v34 = vpop.f32.mrf.mxu3  ;;  %v7591_v39 = vld [vmem:[#allocation32_spill] sm:$0xff]  ;;  %v1282_v14 = vmax.f32 %v1250_v53, 0.0  ;;  %v1600_v11 = vsub.f32 1.5, %v1599_v57  ;;  %vm1614_vm11 = vmor %vm1612_vm9, %vm1613_vm10 }
 0x1e2   : > { %2387 = vmatmul.f32.gmra.mxu1 %v1881_v60  ;;  %7590 = vst [vmem:[#allocation19_spill] sm:$0xff] %v5532_v34  ;;  %v1330_v19 = vsub.f32 %v7591_v39, %v5380_v33  ;;  %v5540_v37 = vpop.f32.mrf.mxu0  ;;  %v1187_v60 = vmul.f32 %v1143_v18, %v4565_v35  ;;  %v1882_v39 = vadd.f32 %v4679_v51, %v1813_v17 }
 0x1e3   : > { %7592 = vst [vmem:[#allocation20_spill] sm:$0xff] %v5540_v37  ;;  %v947_v43 = vpop.xlane.xlu1 %946 }
 0x1e4   : > { %v5549_v55 = vpop.f32.mrf.mxu1  ;;  %v1746_v4 = vmul.f32 %v1595_v63, %v1330_v19  ;;  %v1251_v34 = vsub.f32 %v1187_v60, %v1219_v32  ;;  %v5554_v18 = vmul.f32 %v4565_v35, %v947_v43  ;;  %v5556_v33 = vpop.eup %3918  ;;  %v1816_v32 = vmul.f32 %v4664_v9, %v1747_v21 }
 0x1e5   : > { %7594 = vst [vmem:[#allocation21_spill] sm:$0xff] %v5549_v55  ;;  %v1146_v30 = vpop.xlane.xlu2 %1145  ;;  %v1617_v53 = vmul.f32 %v5556_v33, %v5514_v36  ;;  %v5570_v43 = vadd.f32 1e-05, %v1282_v14  ;;  %vm1623_vm13 = vweird.f32 %v5556_v33 }
 0x1e6   : > { %v1815_v3 = vmul.f32 %v4662_v52, %v1746_v4  ;;  %v1188_v47 = vmul.f32 %v1146_v30, %v4565_v35  ;;  %v1220_v63 = vmul.f32 %v5554_v18, %v5554_v18  ;;  %v1283_v60 = vmax.f32 %v1251_v34, 0.0  ;;  %v1972_v4 = vld [vmem:[%s7389_s6] sm:$0x3]  ;;  %v950_v21 = vpop.xlane.xlu0 %949  ;;  %vm1624_vm14 = vmor %vm1622_vm12, %vm1623_vm13 }
 0x1e7   : > { %v1885_v34 = vadd.f32 %v4721_v6, %v1816_v32  ;;  %v5583_v55 = vperm.slane %v1972_v4, 1  ;;  %3920 = vrsqrt.f32 %v5570_v43  ;;  %v5586_v56 = vperm.slane %v1972_v4, 0 }
 0x1e8   : > { %2051 = vmatmul.f32.gmra.mxu2 %v1882_v39  ;;  %v5559_v17 = vpop.f32.mrf.mxu2  ;;  %v1884_v30 = vadd.f32 %v4679_v51, %v1815_v3  ;;  %v5581_v14 = vadd.f32 1e-05, %v1283_v60  ;;  %v5589_v3 = vmul.f32 %v4565_v35, %v950_v21  ;;  %v1332_v32 = vsub.f32 %v4800_v24, %v5410_v15 }
 0x1e9   : > { %2164 = vmatmul.f32.gmra.mxu3 %v1883_v25  ;;  %2277 = vmatmul.f32.gmra.mxu0 %v1882_v39  ;;  %7595 = vst [vmem:[#allocation23_spill] sm:$0xff] %v5559_v17  ;;  %v1601_v39 = vmul.f32 %v5492_v59, %v1600_v11  ;;  %vm1632_vm15 = vweird.f32 %v5570_v43 }
 0x1ea   : > { %2390 = vmatmul.f32.gmra.mxu1 %v1883_v25  ;;  %v5565_v19 = vpop.f32.mrf.mxu3  ;;  %v2233_v28 = vpop.f32.mrf.mxu0  ;;  %v1609_v25 = vmul.f32 0.5, %v1608_v12  ;;  %v1618_v12 = vmul.f32 %v5556_v33, %v1617_v53  ;;  %7597 = vst [vmem:[#allocation25_spill] sm:$0xff] %v5583_v55  ;;  %v1333_v53 = vsub.f32 %v4627_v8, %v5410_v15  ;;  %3922 = vrsqrt.f32 %v5581_v14 }
 0x1eb   : > { %7596 = vst [vmem:[#allocation24_spill] sm:$0xff] %v5565_v19  ;;  %v1252_v19 = vsub.f32 %v1188_v47, %v1220_v63  ;;  %v1605_v63 = vsel %vm1604_vm8, %v5492_v59, %v1601_v39  ;;  %v1221_v15 = vmul.f32 %v5589_v3, %v5589_v3  ;;  %vm1642_vm2 = vweird.f32 %v5581_v14 }
 0x1ec   : > { %v2346_v57 = vpop.f32.mrf.mxu1  ;;  %v1610_v11 = vsub.f32 1.5, %v1609_v25  ;;  %7598 = vst [vmem:[#allocation26_spill] sm:$0xff] %v5586_v56  ;;  %v2234_v25 = vadd.f32 %v2233_v28, %v5583_v55  ;;  %v1619_v4 = vmul.f32 0.5, %v1618_v12  ;;  %v1748_v24 = vmul.f32 %v1605_v63, %v1332_v32 }
 0x1ed   : > { %v1149_v17 = vpop.xlane.xlu1 %1148  ;;  %v1284_v60 = vmax.f32 %v1252_v19, 0.0  ;;  %v953_v59 = vpop.xlane.xlu2 %952  ;;  %v1749_v39 = vmul.f32 %v1605_v63, %v1333_v53  ;;  %v1334_v32 = vsub.f32 %v4672_v1, %v5436_v48 }
 0x1ee   : > { %v1189_v8 = vmul.f32 %v1149_v17, %v4565_v35  ;;  %v5605_v12 = vpop.eup %3920  ;;  %v1620_v63 = vsub.f32 1.5, %v1619_v4 }
 0x1ef   : > { %v5607_v29 = vadd.f32 1e-05, %v1284_v60  ;;  %v1818_v37 = vmul.f32 %v4664_v9, %v1749_v39  ;;  %v1152_v17 = vpop.xlane.xlu0 %1151  ;;  %vm1633_vm1 = vweird.f32 %v5605_v12 }
 0x1f0   : > { %2054 = vmatmul.f32.gmra.mxu2 %v1884_v30  ;;  %v2007_v47 = vpop.f32.mrf.mxu2  ;;  %vm5718_vm5 = vmor %vm1632_vm15, %vm1633_vm1 }
 0x1f1   : > { %2167 = vmatmul.f32.gmra.mxu3 %v1885_v34  ;;  %2280 = vmatmul.f32.gmra.mxu0 %v1884_v30  ;;  %v2008_v21 = vadd.f32 %v2007_v47, %v5586_v56  ;;  %v1611_v30 = vmul.f32 %v5522_v62, %v1610_v11  ;;  %v2347_v47 = vadd.f32 %v2346_v57, %v2234_v25  ;;  %v5621_v57 = vpop.eup %3922  ;;  %3924 = vrsqrt.f32 %v5607_v29 }
 0x1f2   : > { %2393 = vmatmul.f32.gmra.mxu1 %v1885_v34  ;;  %v2120_v42 = vpop.f32.mrf.mxu3  ;;  %v1817_v11 = vmul.f32 %v4662_v52, %v1748_v24  ;;  %v1627_v25 = vmul.f32 %v5605_v12, %v5570_v43  ;;  %v1887_v4 = vadd.f32 %v4721_v6, %v1818_v37  ;;  %vm1643_vm3 = vweird.f32 %v5621_v57 }
 0x1f3   : > { %v2121_v19 = vadd.f32 %v2120_v42, %v2008_v21  ;;  %v5616_v42 = vmul.f32 %v4565_v35, %v953_v59  ;;  %v1615_v60 = vsel %vm1614_vm11, %v5522_v62, %v1611_v30  ;;  %v1253_v21 = vsub.f32 %v1189_v8, %v1221_v15  ;;  %vm5742_vm7 = vmor %vm1642_vm2, %vm1643_vm3 }
 0x1f4   : > { %v1886_v13 = vadd.f32 %v4679_v51, %v1817_v11  ;;  %v5628_v1 = vmax.f32 %v2347_v47, 0.0  ;;  %v1190_v62 = vmul.f32 %v1152_v17, %v4565_v35  ;;  %v1621_v8 = vmul.f32 %v5556_v33, %v1620_v63 }
 0x1f5   : > { %v5618_v53 = vmax.f32 %v2121_v19, 0.0  ;;  %v1222_v59 = vmul.f32 %v5616_v42, %v5616_v42  ;;  %v7601_v19 = vld [vmem:[#allocation29_spill] sm:$0xff]  ;;  %v1637_v15 = vmul.f32 %v5621_v57, %v5581_v14  ;;  %v1285_v11 = vmax.f32 %v1253_v21, 0.0 }
 0x1f6   : > { %v2236_v28 = vpop.f32.mrf.mxu0  ;;  %v2349_v34 = vpop.f32.mrf.mxu1  ;;  %7600 = vst [vmem:[#allocation28_spill] sm:$0xff] %v5628_v1  ;;  %v1335_v31 = vsub.f32 %v7601_v19, %v5436_v48  ;;  %v1628_v16 = vmul.f32 %v5605_v12, %v1627_v25  ;;  %v1625_v25 = vsel %vm1624_vm14, %v5556_v33, %v1621_v8  ;;  %vm1652_vm4 = vweird.f32 %v5607_v29 }
 0x1f7   : > { %7599 = vst [vmem:[#allocation27_spill] sm:$0xff] %v5618_v53  ;;  %v956_v24 = vpop.xlane.xlu1 %955  ;;  %v2237_v37 = vadd.f32 %v2236_v28, %v5583_v55  ;;  %v2508_v48 = vadd.f32 %v5628_v1, %v5618_v53  ;;  %v1750_v28 = vmul.f32 %v1615_v60, %v1334_v32  ;;  %v1254_v26 = vsub.f32 %v1190_v62, %v1222_v59  ;;  %v959_v33 = vpop.xlane.xlu0 %958 }
 0x1f8   : > { %2057 = vmatmul.f32.gmra.mxu2 %v1886_v13  ;;  %v5645_v63 = vmul.f32 %v4565_v35, %v956_v24  ;;  %v1751_v19 = vmul.f32 %v1615_v60, %v1335_v31  ;;  %v5659_v60 = vpop.eup %3924  ;;  %v1155_v24 = vpop.xlane.xlu2 %1154  ;;  %v5666_v36 = vadd.f32 1e-05, %v1285_v11  ;;  %v1629_v8 = vmul.f32 0.5, %v1628_v16 }
 0x1f9   : > { %2170 = vmatmul.f32.gmra.mxu3 %v1887_v4  ;;  %2283 = vmatmul.f32.gmra.mxu0 %v1886_v13  ;;  %v2350_v32 = vadd.f32 %v2349_v34, %v2237_v37  ;;  %v1819_v45 = vmul.f32 %v4662_v52, %v1750_v28  ;;  %v1191_v62 = vmul.f32 %v1155_v24, %v4565_v35  ;;  %v1286_v37 = vmax.f32 %v1254_v26, 0.0 }
 0x1fa   : > { %2396 = vmatmul.f32.gmra.mxu1 %v1887_v4  ;;  %2509 = vadd.xlane.f32.xlu2 %v2508_v48  ;;  %v1820_v59 = vmul.f32 %v4664_v9, %v1751_v19  ;;  %v1223_v34 = vmul.f32 %v5645_v63, %v5645_v63  ;;  %v1647_v11 = vmul.f32 %v5659_v60, %v5607_v29  ;;  %3926 = vrsqrt.f32 %v5666_v36 }
 0x1fb   : > { %v2010_v30 = vpop.f32.mrf.mxu2  ;;  %v2123_v39 = vpop.f32.mrf.mxu3  ;;  %v5680_v28 = vmax.f32 %v2350_v32, 0.0  ;;  %v1888_v19 = vadd.f32 %v4679_v51, %v1819_v45  ;;  %v1630_v32 = vsub.f32 1.5, %v1629_v8  ;;  %v5686_v1 = vadd.f32 1e-05, %v1286_v37 }
 0x1fc   : > { %v2011_v47 = vadd.f32 %v2010_v30, %v5586_v56  ;;  %v7602_v30 = vld [vmem:[#allocation34_spill] sm:$0xff]  ;;  %v1889_v16 = vadd.f32 %v4721_v6, %v1820_v59  ;;  %v1255_v26 = vsub.f32 %v1191_v62, %v1223_v34  ;;  %v5699_v34 = vmul.f32 %v4565_v35, %v959_v33 }
 0x1fd   : > { %v1337_v54 = vsub.f32 %v7602_v30, %v5474_v20  ;;  %v1638_v20 = vmul.f32 %v5621_v57, %v1637_v15  ;;  %7604 = vst [vmem:[#allocation31_spill] sm:$0xff] %v5680_v28  ;;  %v2635_v59 = vmul.f32 %v5680_v28, %v5680_v28  ;;  %3928 = vrsqrt.f32 %v5686_v1 }
 0x1fe   : > { %v2239_v17 = vpop.f32.mrf.mxu0  ;;  %v2124_v13 = vadd.f32 %v2123_v39, %v2011_v47  ;;  %vm1653_vm6 = vweird.f32 %v5659_v60  ;;  %vm1662_vm9 = vweird.f32 %v5666_v36  ;;  %vm1672_vm12 = vweird.f32 %v5686_v1 }
 0x1ff   : > { %v2352_v4 = vpop.f32.mrf.mxu1  ;;  %v2240_v39 = vadd.f32 %v2239_v17, %v5583_v55  ;;  %v1752_v17 = vmul.f32 %v1625_v25, %v1336_v23  ;;  %v1753_v24 = vmul.f32 %v1625_v25, %v1337_v54  ;;  %v1639_v21 = vmul.f32 0.5, %v1638_v20  ;;  %v1158_v37 = vpop.xlane.xlu1 %1157  ;;  %vm5793_vm8 = vmor %vm1652_vm4, %vm1653_vm6 }
 0x200   : > { %v5674_v47 = vmax.f32 %v2124_v13, 0.0  ;;  %2060 = vmatmul.f32.gmra.mxu2 %v1888_v19  ;;  %v1161_v14 = vpop.xlane.xlu0 %1160 }
 0x201   : > { %v2353_v13 = vadd.f32 %v2352_v4, %v2240_v39  ;;  %2286 = vmatmul.f32.gmra.mxu0 %v1888_v19  ;;  %2173 = vmatmul.f32.gmra.mxu3 %v1889_v16  ;;  %v1648_v4 = vmul.f32 %v5659_v60, %v1647_v11  ;;  %v1640_v62 = vsub.f32 1.5, %v1639_v21  ;;  %v1287_v39 = vmax.f32 %v1255_v26, 0.0  ;;  %v5709_v11 = vpop.eup %3926 }
 0x202   : > { %7603 = vst [vmem:[#allocation30_spill] sm:$0xff] %v5674_v47  ;;  %2399 = vmatmul.f32.gmra.mxu1 %v1889_v16  ;;  %v2511_v54 = vadd.f32 %v5680_v28, %v5674_v47  ;;  %v2634_v45 = vmul.f32 %v5674_v47, %v5674_v47  ;;  %v1822_v16 = vmul.f32 %v4664_v9, %v1753_v24  ;;  %vm1663_vm10 = vweird.f32 %v5709_v11 }
 0x203   : > { %v2013_v15 = vpop.f32.mrf.mxu2  ;;  %v5701_v8 = vmax.f32 %v2353_v13, 0.0  ;;  %v1649_v33 = vmul.f32 0.5, %v1648_v4  ;;  %v1641_v24 = vmul.f32 %v5621_v57, %v1640_v62  ;;  %vm5842_vm11 = vmor %vm1662_vm9, %vm1663_vm10 }
 0x204   : > { %v2126_v30 = vpop.f32.mrf.mxu3  ;;  %v2014_v48 = vadd.f32 %v2013_v15, %v5586_v56  ;;  %2512 = vadd.xlane.f32.xlu1 %v2511_v54  ;;  %v1224_v54 = vmul.f32 %v5699_v34, %v5699_v34 }
 0x206   : > { %v2242_v31 = vpop.f32.mrf.mxu0  ;;  %v2127_v25 = vadd.f32 %v2126_v30, %v2014_v48  ;;  %v2703_v48 = vadd.f32 %v2635_v59, %v2634_v45  ;;  %v1821_v30 = vmul.f32 %v4662_v52, %v1752_v17  ;;  %v5729_v45 = vadd.f32 1e-05, %v1287_v39  ;;  %v962_v59 = vpop.xlane.xlu2 %961 }
 0x207   : > { %v2355_v23 = vpop.f32.mrf.mxu1  ;;  %v2243_v20 = vadd.f32 %v2242_v31, %v5583_v55  ;;  %v1631_v31 = vmul.f32 %v5605_v12, %v1630_v32  ;;  %v1192_v32 = vmul.f32 %v1158_v37, %v4565_v35  ;;  %v1891_v37 = vadd.f32 %v4721_v6, %v1822_v16 }
 0x208   : > { %v5703_v15 = vmax.f32 %v2127_v25, 0.0  ;;  %2704 = vadd.xlane.f32.xlu0 %v2703_v48  ;;  %v1890_v43 = vadd.f32 %v4679_v51, %v1821_v30  ;;  %v2637_v25 = vmul.f32 %v5701_v8, %v5701_v8  ;;  %3930 = vrsqrt.f32 %v5729_v45 }
 0x209   : > { %v2356_v19 = vadd.f32 %v2355_v23, %v2243_v20  ;;  %v1657_v20 = vmul.f32 %v5709_v11, %v5666_v36  ;;  %v1635_v16 = vsel %vm5718_vm5, %v5605_v12, %v1631_v31  ;;  %v1256_v47 = vsub.f32 %v1192_v32, %v1224_v54  ;;  %2176 = vmatmul.f32.gmra.mxu3 %v1891_v37 }
 0x20a   : > { %v2636_v17 = vmul.f32 %v5703_v15, %v5703_v15  ;;  %2063 = vmatmul.f32.gmra.mxu2 %v1890_v43  ;;  %2289 = vmatmul.f32.gmra.mxu0 %v1890_v43  ;;  %v2514_v12 = vadd.f32 %v5701_v8, %v5703_v15  ;;  %v7610_v31 = vsub.f32 %v4790_v40, %v5507_v22  ;;  %vm1682_vm15 = vweird.f32 %v5729_v45 }
 0x20b   : > { %v2016_v21 = vpop.f32.mrf.mxu2  ;;  %v5746_v39 = vmax.f32 %v2356_v19, 0.0  ;;  %2402 = vmatmul.f32.gmra.mxu1 %v1891_v37  ;;  %v7609_v19 = vsub.f32 %v4788_v10, %v5507_v22  ;;  %v1658_v13 = vmul.f32 %v5709_v11, %v1657_v20 }
 0x20c   : > { %v2129_v26 = vpop.f32.mrf.mxu3  ;;  %v2017_v23 = vadd.f32 %v2016_v21, %v5586_v56  ;;  %v2706_v28 = vadd.f32 %v2637_v25, %v2636_v17  ;;  %v5761_v17 = vmul.f32 %v4565_v35, %v962_v59  ;;  %v1193_v25 = vmul.f32 %v1161_v14, %v4565_v35 }
 0x20d   : > { %v1754_v43 = vmul.f32 %v1635_v16, %v7609_v19  ;;  %v2639_v22 = vmul.f32 %v5746_v39, %v5746_v39 }
 0x20e   : > { %v2245_v4 = vpop.f32.mrf.mxu0  ;;  %v2130_v48 = vadd.f32 %v2129_v26, %v2017_v23  ;;  %v5752_v26 = vpop.eup %3928  ;;  %v1650_v23 = vsub.f32 1.5, %v1649_v33  ;;  %2707 = vadd.xlane.f32.xlu2 %v2706_v28  ;;  %v1755_v33 = vmul.f32 %v1635_v16, %v7610_v31  ;;  %v1225_v28 = vmul.f32 %v5761_v17, %v5761_v17 }
 0x20f   : > { %v2358_v21 = vpop.f32.mrf.mxu1  ;;  %v2246_v30 = vadd.f32 %v2245_v4, %v5583_v55  ;;  %v1823_v32 = vmul.f32 %v4662_v52, %v1754_v43  ;;  %v1645_v4 = vsel %vm5742_vm7, %v5621_v57, %v1641_v24  ;;  %v1667_v37 = vmul.f32 %v5752_v26, %v5686_v1 }
 0x210   : > { %v5754_v53 = vmax.f32 %v2130_v48, 0.0  ;;  %2515 = vadd.xlane.f32.xlu0 %v2514_v12  ;;  %v1651_v20 = vmul.f32 %v5659_v60, %v1650_v23  ;;  %v1288_v48 = vmax.f32 %v1256_v47, 0.0  ;;  %v1824_v62 = vmul.f32 %v4664_v9, %v1755_v33 }
 0x211   : > { %v2359_v59 = vadd.f32 %v2358_v21, %v2246_v30  ;;  %v1892_v57 = vadd.f32 %v4679_v51, %v1823_v32  ;;  %v7611_v21 = vsub.f32 %v4847_v41, %v5530_v0  ;;  %v1659_v47 = vmul.f32 0.5, %v1658_v13  ;;  %v5802_v41 = vpop.eup %3930 }
 0x212   : > { %v2638_v10 = vmul.f32 %v5754_v53, %v5754_v53  ;;  %v1893_v19 = vadd.f32 %v4721_v6, %v1824_v62  ;;  %v7614_v31 = vsub.f32 %v4866_v38, %v5530_v0  ;;  %v1257_v32 = vsub.f32 %v1193_v25, %v1225_v28 }
 0x213   : > { %v2019_v54 = vpop.f32.mrf.mxu2  ;;  %v1756_v30 = vmul.f32 %v1645_v4, %v7611_v21  ;;  %2066 = vmatmul.f32.gmra.mxu2 %v1892_v57  ;;  %2292 = vmatmul.f32.gmra.mxu0 %v1892_v57  ;;  %v2517_v13 = vadd.f32 %v5746_v39, %v5754_v53  ;;  %v1668_v38 = vmul.f32 %v5752_v26, %v1667_v37  ;;  %v5813_v0 = vadd.f32 1e-05, %v1288_v48 }
 0x214   : > { %v2132_v40 = vpop.f32.mrf.mxu3  ;;  %v2020_v24 = vadd.f32 %v2019_v54, %v5586_v56  ;;  %v2709_v14 = vadd.f32 %v2639_v22, %v2638_v10  ;;  %v1757_v33 = vmul.f32 %v1645_v4, %v7614_v31  ;;  %v5804_v54 = vmax.f32 %v2359_v59, 0.0  ;;  %2179 = vmatmul.f32.gmra.mxu3 %v1893_v19  ;;  %2405 = vmatmul.f32.gmra.mxu1 %v1893_v19 }
 0x215   : > { %v1342_v10 = vsub.f32 %v4904_v50, %v5554_v18  ;;  %v1343_v22 = vsub.f32 %v4960_v44, %v5554_v18  ;;  %v1655_v4 = vsel %vm5793_vm8, %v5659_v60, %v1651_v20  ;;  %v1825_v50 = vmul.f32 %v4662_v52, %v1756_v30 }
 0x216   : > { %v2248_v16 = vpop.f32.mrf.mxu0  ;;  %7615 = vst [vmem:[#allocation32_spill] sm:$0xff] %v5804_v54  ;;  %v2133_v29 = vadd.f32 %v2132_v40, %v2020_v24  ;;  %2710 = vadd.xlane.f32.xlu1 %v2709_v14  ;;  %2518 = vadd.xlane.f32.xlu2 %v2517_v13  ;;  %v1660_v59 = vsub.f32 1.5, %v1659_v47  ;;  %v1826_v44 = vmul.f32 %v4664_v9, %v1757_v33  ;;  %v1289_v40 = vmax.f32 %v1257_v32, 0.0 }
 0x217   : > { %v2249_v43 = vadd.f32 %v2248_v16, %v5583_v55  ;;  %v2361_v12 = vpop.f32.mrf.mxu1  ;;  %v2641_v20 = vmul.f32 %v5804_v54, %v5804_v54  ;;  %v1758_v62 = vmul.f32 %v1655_v4, %v1342_v10  ;;  %v1669_v57 = vmul.f32 0.5, %v1668_v38 }
 0x218   : > { %v5818_v28 = vmax.f32 %v2133_v29, 0.0  ;;  %v1677_v24 = vmul.f32 %v5802_v41, %v5729_v45  ;;  %3932 = vrsqrt.f32 %v5813_v0  ;;  %v1894_v14 = vadd.f32 %v4679_v51, %v1825_v50 }
 0x219   : > { %v2362_v25 = vadd.f32 %v2361_v12, %v2249_v43  ;;  %v1759_v47 = vmul.f32 %v1655_v4, %v1343_v22  ;;  %v1661_v19 = vmul.f32 %v5709_v11, %v1660_v59  ;;  %v1895_v43 = vadd.f32 %v4721_v6, %v1826_v44 }
 0x21a   : > { %7616 = vst [vmem:[#allocation33_spill] sm:$0xff] %v5818_v28  ;;  %v2640_v60 = vmul.f32 %v5818_v28, %v5818_v28  ;;  %v5846_v32 = vadd.f32 1e-05, %v1289_v40  ;;  %v2520_v13 = vadd.f32 %v5804_v54, %v5818_v28  ;;  %v1670_v10 = vsub.f32 1.5, %v1669_v57 }
 0x21b   : > { %v2022_v18 = vpop.f32.mrf.mxu2  ;;  %v5832_v16 = vmax.f32 %v2362_v25, 0.0  ;;  %2069 = vmatmul.f32.gmra.mxu2 %v1894_v14  ;;  %2295 = vmatmul.f32.gmra.mxu0 %v1894_v14  ;;  %v1678_v22 = vmul.f32 %v5802_v41, %v1677_v24  ;;  %v1827_v36 = vmul.f32 %v4662_v52, %v1758_v62  ;;  %v1344_v59 = vsub.f32 %v4982_v61, %v5589_v3 }
 0x21c   : > { %v2023_v37 = vadd.f32 %v2022_v18, %v5586_v56  ;;  %v2135_v48 = vpop.f32.mrf.mxu3  ;;  %v2712_v23 = vadd.f32 %v2641_v20, %v2640_v60  ;;  %2182 = vmatmul.f32.gmra.mxu3 %v1895_v43  ;;  %2408 = vmatmul.f32.gmra.mxu1 %v1895_v43  ;;  %v1828_v44 = vmul.f32 %v4664_v9, %v1759_v47  ;;  %3934 = vrsqrt.f32 %v5846_v32 }
 0x21d   : > { %7617 = vst [vmem:[#allocation29_spill] sm:$0xff] %v5832_v16  ;;  %v2643_v25 = vmul.f32 %v5832_v16, %v5832_v16  ;;  %v1665_v40 = vsel %vm5842_vm11, %v5709_v11, %v1661_v19  ;;  %v1671_v62 = vmul.f32 %v5752_v26, %v1670_v10  ;;  %vm1673_vm13 = vweird.f32 %v5752_v26 }
 0x21e   : > { %v2136_v21 = vadd.f32 %v2135_v48, %v2023_v37  ;;  %v2251_v30 = vpop.f32.mrf.mxu0  ;;  %2713 = vadd.xlane.f32.xlu0 %v2712_v23  ;;  %2521 = vadd.xlane.f32.xlu1 %v2520_v13  ;;  %v5858_v50 = vpop.eup %3932  ;;  %v1345_v37 = vsub.f32 %v5003_v46, %v5589_v3  ;;  %v1679_v61 = vmul.f32 0.5, %v1678_v22  ;;  %v1896_v11 = vadd.f32 %v4679_v51, %v1827_v36  ;;  %vm5880_vm14 = vmor %vm1672_vm12, %vm1673_vm13 }
 0x21f   : > { %v2252_v12 = vadd.f32 %v2251_v30, %v5583_v55  ;;  %v2364_v31 = vpop.f32.mrf.mxu1  ;;  %v1760_v46 = vmul.f32 %v1665_v40, %v1344_v59  ;;  %v1687_v3 = vmul.f32 %v5858_v50, %v5813_v0  ;;  %v1346_v36 = vsub.f32 %v5011_v58, %v5616_v42 }
 0x220   : > { %v5848_v29 = vmax.f32 %v2136_v21, 0.0  ;;  %v1897_v21 = vadd.f32 %v4721_v6, %v1828_v44  ;;  %v1761_v1 = vmul.f32 %v1665_v40, %v1345_v37  ;;  %v1675_v59 = vsel %vm5880_vm14, %v5752_v26, %v1671_v62 }
 0x221   : > { %v2365_v38 = vadd.f32 %v2364_v31, %v2252_v12  ;;  %v1680_v12 = vsub.f32 1.5, %v1679_v61  ;;  %v1829_v13 = vmul.f32 %v4662_v52, %v1760_v46  ;;  %v1347_v44 = vsub.f32 %v5025_v2, %v5616_v42 }
 0x222   : > { %7620 = vst [vmem:[#allocation34_spill] sm:$0xff] %v5848_v29  ;;  %v2642_v4 = vmul.f32 %v5848_v29, %v5848_v29  ;;  %v2523_v43 = vadd.f32 %v5832_v16, %v5848_v29  ;;  %v5888_v31 = vpop.eup %3934  ;;  %vm1683_vm1 = vweird.f32 %v5802_v41  ;;  %v1762_v62 = vmul.f32 %v1675_v59, %v1346_v36 }
 0x223   : > { %v2025_v18 = vpop.f32.mrf.mxu2  ;;  %v5873_v57 = vmax.f32 %v2365_v38, 0.0  ;;  %2072 = vmatmul.f32.gmra.mxu2 %v1896_v11  ;;  %2298 = vmatmul.f32.gmra.mxu0 %v1896_v11  ;;  %v1688_v38 = vmul.f32 %v5858_v50, %v1687_v3  ;;  %v1681_v58 = vmul.f32 %v5802_v41, %v1680_v12  ;;  %v1898_v2 = vadd.f32 %v4679_v51, %v1829_v13  ;;  %vm1684_vm2 = vmor %vm1682_vm15, %vm1683_vm1 }
 0x224   : > { %v2026_v48 = vadd.f32 %v2025_v18, %v5586_v56  ;;  %v2138_v60 = vpop.f32.mrf.mxu3  ;;  %v2715_v20 = vadd.f32 %v2643_v25, %v2642_v4  ;;  %2185 = vmatmul.f32.gmra.mxu3 %v1897_v21  ;;  %2411 = vmatmul.f32.gmra.mxu1 %v1897_v21  ;;  %v1830_v4 = vmul.f32 %v4664_v9, %v1761_v1  ;;  %vm1692_vm3 = vweird.f32 %v5813_v0 }
 0x225   : > { %7621 = vst [vmem:[#allocation37_spill] sm:$0xff] %v5873_v57  ;;  %v2645_v22 = vmul.f32 %v5873_v57, %v5873_v57  ;;  %v1689_v61 = vmul.f32 0.5, %v1688_v38  ;;  %v1763_v46 = vmul.f32 %v1675_v59, %v1347_v44  ;;  %v1685_v45 = vsel %vm1684_vm2, %v5802_v41, %v1681_v58 }
 0x226   : > { %v2139_v24 = vadd.f32 %v2138_v60, %v2026_v48  ;;  %v2254_v14 = vpop.f32.mrf.mxu0  ;;  %2716 = vadd.xlane.f32.xlu2 %v2715_v20  ;;  %2524 = vadd.xlane.f32.xlu0 %v2523_v43  ;;  %v1697_v60 = vmul.f32 %v5888_v31, %v5846_v32  ;;  %v1899_v11 = vadd.f32 %v4721_v6, %v1830_v4  ;;  %vm1693_vm4 = vweird.f32 %v5858_v50 }
 0x227   : > { %v2255_v30 = vadd.f32 %v2254_v14, %v5583_v55  ;;  %v2367_v23 = vpop.f32.mrf.mxu1  ;;  %v1690_v43 = vsub.f32 1.5, %v1689_v61  ;;  %v1832_v12 = vmul.f32 %v4664_v9, %v1763_v46  ;;  %v1348_v13 = vsub.f32 %v5048_v5, %v5645_v63  ;;  %vm1694_vm5 = vmor %vm1692_vm3, %vm1693_vm4 }
 0x228   : > { %v5884_v19 = vmax.f32 %v2139_v24, 0.0  ;;  %v1698_v21 = vmul.f32 %v5888_v31, %v1697_v60  ;;  %v1349_v4 = vsub.f32 %v5064_v27, %v5645_v63  ;;  %vm1702_vm6 = vweird.f32 %v5846_v32 }
 0x229   : > { %v2368_v33 = vadd.f32 %v2367_v23, %v2255_v30  ;;  %v1831_v23 = vmul.f32 %v4662_v52, %v1762_v62  ;;  %vm1703_vm7 = vweird.f32 %v5888_v31  ;;  %v1351_v32 = vsub.f32 %v5084_v49, %v5699_v34 }
 0x22a   : > { %7624 = vst [vmem:[#allocation38_spill] sm:$0xff] %v5884_v19  ;;  %v2644_v10 = vmul.f32 %v5884_v19, %v5884_v19  ;;  %v2526_v48 = vadd.f32 %v5873_v57, %v5884_v19  ;;  %v1699_v41 = vmul.f32 0.5, %v1698_v21  ;;  %vm5965_vm8 = vmor %vm1702_vm6, %vm1703_vm7 }
 0x22b   : > { %v2028_v25 = vpop.f32.mrf.mxu2  ;;  %v5912_v26 = vmax.f32 %v2368_v33, 0.0  ;;  %2075 = vmatmul.f32.gmra.mxu2 %v1898_v2  ;;  %2301 = vmatmul.f32.gmra.mxu0 %v1898_v2  ;;  %v1900_v5 = vadd.f32 %v4679_v51, %v1831_v23 }
 0x22c   : > { %v2029_v18 = vadd.f32 %v2028_v25, %v5586_v56  ;;  %v2141_v40 = vpop.f32.mrf.mxu3  ;;  %v2718_v37 = vadd.f32 %v2645_v22, %v2644_v10  ;;  %2188 = vmatmul.f32.gmra.mxu3 %v1899_v11  ;;  %2414 = vmatmul.f32.gmra.mxu1 %v1899_v11  ;;  %v1764_v25 = vmul.f32 %v1685_v45, %v1348_v13  ;;  %v1700_v60 = vsub.f32 1.5, %v1699_v41  ;;  %v7629_v41 = vld [vmem:[#allocation35_spill] sm:$0xff] }
 0x22d   : > { %7625 = vst [vmem:[#allocation39_spill] sm:$0xff] %v5912_v26  ;;  %v2647_v47 = vmul.f32 %v5912_v26, %v5912_v26 }
 0x22e   : > { %v2142_v42 = vadd.f32 %v2141_v40, %v2029_v18  ;;  %v2257_v20 = vpop.f32.mrf.mxu0  ;;  %2719 = vadd.xlane.f32.xlu1 %v2718_v37  ;;  %2527 = vadd.xlane.f32.xlu2 %v2526_v48  ;;  %v1765_v40 = vmul.f32 %v1685_v45, %v1349_v4  ;;  %v1691_v37 = vmul.f32 %v5858_v50, %v1690_v43 }
 0x22f   : > { %v2258_v24 = vadd.f32 %v2257_v20, %v5583_v55  ;;  %v2370_v14 = vpop.f32.mrf.mxu1  ;;  %v1901_v48 = vadd.f32 %v4721_v6, %v1832_v12  ;;  %v1701_v23 = vmul.f32 %v5888_v31, %v1700_v60 }
 0x230   : > { %v5919_v3 = vmax.f32 %v2142_v42, 0.0  ;;  %v1833_v42 = vmul.f32 %v4662_v52, %v1764_v25  ;;  %v1834_v0 = vmul.f32 %v4664_v9, %v1765_v40  ;;  %v1695_v11 = vsel %vm1694_vm5, %v5858_v50, %v1691_v37 }
 0x231   : > { %v2371_v30 = vadd.f32 %v2370_v14, %v2258_v24  ;;  %v1350_v24 = vsub.f32 %v5082_v7, %v5699_v34  ;;  %v1767_v34 = vmul.f32 %v1695_v11, %v1351_v32  ;;  %v1352_v25 = vsub.f32 %v7629_v41, %v5761_v17 }
 0x232   : > { %7626 = vst [vmem:[#allocation40_spill] sm:$0xff] %v5919_v3  ;;  %v2646_v1 = vmul.f32 %v5919_v3, %v5919_v3  ;;  %v2529_v38 = vadd.f32 %v5912_v26, %v5919_v3  ;;  %v1902_v7 = vadd.f32 %v4679_v51, %v1833_v42  ;;  %v1903_v12 = vadd.f32 %v4721_v6, %v1834_v0 }
 0x233   : > { %v2031_v33 = vpop.f32.mrf.mxu2  ;;  %v5938_v59 = vmax.f32 %v2371_v30, 0.0  ;;  %2078 = vmatmul.f32.gmra.mxu2 %v1900_v5  ;;  %2304 = vmatmul.f32.gmra.mxu0 %v1900_v5  ;;  %v1766_v43 = vmul.f32 %v1695_v11, %v1350_v24  ;;  %v1836_v5 = vmul.f32 %v4664_v9, %v1767_v34 }
 0x234   : > { %v2032_v10 = vadd.f32 %v2031_v33, %v5586_v56  ;;  %v2144_v22 = vpop.f32.mrf.mxu3  ;;  %v2721_v36 = vadd.f32 %v2647_v47, %v2646_v1  ;;  %2191 = vmatmul.f32.gmra.mxu3 %v1901_v48  ;;  %2417 = vmatmul.f32.gmra.mxu1 %v1901_v48  ;;  %v7630_v48 = vld [vmem:[#allocation36_spill] sm:$0xff] }
 0x235   : > { %v2649_v62 = vmul.f32 %v5938_v59, %v5938_v59 }
 0x236   : > { %v2145_v44 = vadd.f32 %v2144_v22, %v2032_v10  ;;  %v2260_v18 = vpop.f32.mrf.mxu0  ;;  %2722 = vadd.xlane.f32.xlu0 %v2721_v36  ;;  %2530 = vadd.xlane.f32.xlu1 %v2529_v38  ;;  %v1705_v10 = vsel %vm5965_vm8, %v5888_v31, %v1701_v23  ;;  %v1835_v36 = vmul.f32 %v4662_v52, %v1766_v43 }
 0x237   : > { %v2261_v27 = vadd.f32 %v2260_v18, %v5583_v55  ;;  %v2373_v63 = vpop.f32.mrf.mxu1 }
 0x238   : > { %v5946_v58 = vmax.f32 %v2145_v44, 0.0 }
 0x239   : > { %v2374_v2 = vadd.f32 %v2373_v63, %v2261_v27  ;;  %v1353_v27 = vsub.f32 %v7630_v48, %v5761_v17  ;;  %v1768_v63 = vmul.f32 %v1705_v10, %v1352_v25 }
 0x23a   : > { %v2648_v20 = vmul.f32 %v5946_v58, %v5946_v58  ;;  %v2532_v30 = vadd.f32 %v5938_v59, %v5946_v58 }
 0x23b   : > { %v2034_v61 = vpop.f32.mrf.mxu2  ;;  %v5969_v50 = vmax.f32 %v2374_v2, 0.0  ;;  %2081 = vmatmul.f32.gmra.mxu2 %v1902_v7  ;;  %2307 = vmatmul.f32.gmra.mxu0 %v1902_v7  ;;  %v1904_v2 = vadd.f32 %v4679_v51, %v1835_v36  ;;  %v1769_v11 = vmul.f32 %v1705_v10, %v1353_v27  ;;  %v1837_v17 = vmul.f32 %v4662_v52, %v1768_v63 }
 0x23c   : > { %v2035_v14 = vadd.f32 %v2034_v61, %v5586_v56  ;;  %v2147_v46 = vpop.f32.mrf.mxu3  ;;  %v2724_v21 = vadd.f32 %v2649_v62, %v2648_v20  ;;  %2194 = vmatmul.f32.gmra.mxu3 %v1903_v12  ;;  %2420 = vmatmul.f32.gmra.mxu1 %v1903_v12  ;;  %v1905_v62 = vadd.f32 %v4721_v6, %v1836_v5 }
 0x23d   : > { %v2651_v4 = vmul.f32 %v5969_v50, %v5969_v50  ;;  %v1838_v32 = vmul.f32 %v4664_v9, %v1769_v11  ;;  %v1906_v52 = vadd.f32 %v4679_v51, %v1837_v17 }
 0x23e   : > { %v2148_v47 = vadd.f32 %v2147_v46, %v2035_v14  ;;  %v2263_v45 = vpop.f32.mrf.mxu0  ;;  %2725 = vadd.xlane.f32.xlu2 %v2724_v21  ;;  %2533 = vadd.xlane.f32.xlu0 %v2532_v30 }
 0x23f   : > { %v2264_v33 = vadd.f32 %v2263_v45, %v5583_v55  ;;  %v2376_v49 = vpop.f32.mrf.mxu1 }
 0x240   : > { %v5974_v13 = vmax.f32 %v2148_v47, 0.0 }
 0x241   : > { %v2377_v22 = vadd.f32 %v2376_v49, %v2264_v33  ;;  %v1907_v33 = vadd.f32 %v4721_v6, %v1838_v32 }
 0x242   : > { %v2650_v38 = vmul.f32 %v5974_v13, %v5974_v13  ;;  %v2535_v31 = vadd.f32 %v5969_v50, %v5974_v13 }
 0x243   : > { %v2037_v44 = vpop.f32.mrf.mxu2  ;;  %v5992_v60 = vmax.f32 %v2377_v22, 0.0  ;;  %2084 = vmatmul.f32.gmra.mxu2 %v1904_v2  ;;  %2310 = vmatmul.f32.gmra.mxu0 %v1904_v2 }
 0x244   : > { %v2038_v18 = vadd.f32 %v2037_v44, %v5586_v56  ;;  %v2150_v40 = vpop.f32.mrf.mxu3  ;;  %v2727_v37 = vadd.f32 %v2651_v4, %v2650_v38  ;;  %2197 = vmatmul.f32.gmra.mxu3 %v1905_v62  ;;  %2423 = vmatmul.f32.gmra.mxu1 %v1905_v62 }
 0x245   : > { %v2653_v30 = vmul.f32 %v5992_v60, %v5992_v60 }
 0x246   : > { %v2151_v42 = vadd.f32 %v2150_v40, %v2038_v18  ;;  %v2266_v20 = vpop.f32.mrf.mxu0  ;;  %2728 = vadd.xlane.f32.xlu1 %v2727_v37  ;;  %2536 = vadd.xlane.f32.xlu2 %v2535_v31 }
 0x247   : > { %v2267_v0 = vadd.f32 %v2266_v20, %v5583_v55  ;;  %v2379_v61 = vpop.f32.mrf.mxu1 }
 0x248   : > { %v5997_v24 = vmax.f32 %v2151_v42, 0.0 }
 0x249   : > { %v2380_v14 = vadd.f32 %v2379_v61, %v2267_v0 }
 0x24a   : > { %v2538_v46 = vadd.f32 %v5992_v60, %v5997_v24  ;;  %v2652_v21 = vmul.f32 %v5997_v24, %v5997_v24 }
 0x24b   : > { %v2040_v23 = vpop.f32.mrf.mxu2  ;;  %v6008_v45 = vmax.f32 %v2380_v14, 0.0  ;;  %2087 = vmatmul.f32.gmra.mxu2 %v1906_v52  ;;  %2313 = vmatmul.f32.gmra.mxu0 %v1906_v52 }
 0x24c   : > { %v2041_v1 = vadd.f32 %v2040_v23, %v5586_v56  ;;  %v2153_v7 = vpop.f32.mrf.mxu3  ;;  %2539 = vadd.xlane.f32.xlu0 %v2538_v46  ;;  %v2730_v47 = vadd.f32 %v2653_v30, %v2652_v21  ;;  %2200 = vmatmul.f32.gmra.mxu3 %v1907_v33 }
 0x24d   : > { %2426 = vmatmul.f32.gmra.mxu1 %v1907_v33  ;;  %v2655_v51 = vmul.f32 %v6008_v45, %v6008_v45 }
 0x24e   : > { %v2154_v43 = vadd.f32 %v2153_v7, %v2041_v1  ;;  %v2269_v12 = vpop.f32.mrf.mxu0  ;;  %2731 = vadd.xlane.f32.xlu1 %v2730_v47 }
 0x24f   : > { %v2270_v49 = vadd.f32 %v2269_v12, %v5583_v55  ;;  %v2382_v34 = vpop.f32.mrf.mxu1 }
 0x250   : > { %v6013_v9 = vmax.f32 %v2154_v43, 0.0 }
 0x251   : > { %v6015_v10 = vadd.f32 %v2382_v34, %v2270_v49 }
 0x252   : > { %v2654_v22 = vmul.f32 %v6013_v9, %v6013_v9  ;;  %v2541_v41 = vadd.f32 %v6008_v45, %v6013_v9 }
 0x253   : > { %7631 = vst [vmem:[#allocation35_spill] sm:$0xff] %v6015_v10  ;;  %v2043_v36 = vpop.f32.mrf.mxu2 }
 0x254   : > { %v2044_v6 = vadd.f32 %v2043_v36, %v5586_v56  ;;  %v2156_v38 = vpop.f32.mrf.mxu3  ;;  %v2733_v4 = vadd.f32 %v2655_v51, %v2654_v22 }
 0x256   : > { %v6024_v25 = vadd.f32 %v2156_v38, %v2044_v6  ;;  %v2272_v5 = vpop.f32.mrf.mxu0  ;;  %2734 = vadd.xlane.f32.xlu2 %v2733_v4  ;;  %2542 = vadd.xlane.f32.xlu1 %v2541_v41 }
 0x257   : > { %v2273_v44 = vadd.f32 %v2272_v5, %v5583_v55  ;;  %v2385_v18 = vpop.f32.mrf.mxu1 }
 0x258   : > { %7632 = vst [vmem:[#allocation36_spill] sm:$0xff] %v6024_v25 }
 0x259   : > { %v6027_v40 = vadd.f32 %v2385_v18, %v2273_v44 }
 0x25b   : > { %7633 = vst [vmem:[#allocation41_spill] sm:$0xff] %v6027_v40  ;;  %v2046_v37 = vpop.f32.mrf.mxu2 }
 0x25c   : > { %v2047_v31 = vadd.f32 %v2046_v37, %v5586_v56  ;;  %v2159_v48 = vpop.f32.mrf.mxu3 }
 0x25e   : > { %v6030_v27 = vadd.f32 %v2159_v48, %v2047_v31  ;;  %v2275_v63 = vpop.f32.mrf.mxu0 }
 0x25f   : > { %v2276_v2 = vadd.f32 %v2275_v63, %v5583_v55  ;;  %v2388_v42 = vpop.f32.mrf.mxu1 }
 0x260   : > { %7634 = vst [vmem:[#allocation42_spill] sm:$0xff] %v6030_v27 }
 0x261   : > { %v6033_v20 = vadd.f32 %v2388_v42, %v2276_v2 }
 0x263   : > { %7635 = vst [vmem:[#allocation43_spill] sm:$0xff] %v6033_v20  ;;  %v2049_v62 = vpop.f32.mrf.mxu2  ;;  %v7659_v20 = vld [vmem:[#allocation19_spill] sm:$0xff] }
 0x264   : > { %v2050_v0 = vadd.f32 %v2049_v62, %v5586_v56  ;;  %v2162_v61 = vpop.f32.mrf.mxu3 }
 0x266   : > { %v6036_v11 = vadd.f32 %v2162_v61, %v2050_v0  ;;  %v2278_v17 = vpop.f32.mrf.mxu0 }
 0x267   : > { %v2279_v14 = vadd.f32 %v2278_v17, %v5583_v55  ;;  %v2391_v46 = vpop.f32.mrf.mxu1 }
 0x268   : > { %7636 = vst [vmem:[#allocation44_spill] sm:$0xff] %v6036_v11 }
 0x269   : > { %v6039_v21 = vadd.f32 %v2391_v46, %v2279_v14 }
 0x26b   : > { %7637 = vst [vmem:[#allocation45_spill] sm:$0xff] %v6039_v21  ;;  %v2052_v30 = vpop.f32.mrf.mxu2 }
 0x26c   : > { %v2053_v32 = vadd.f32 %v2052_v30, %v5586_v56  ;;  %v2165_v23 = vpop.f32.mrf.mxu3 }
 0x26d   : > { %v6051_v38 = vpop.xlane.xlu2 %2509 }
 0x26e   : > { %v6042_v1 = vadd.f32 %v2165_v23, %v2053_v32  ;;  %v2281_v7 = vpop.f32.mrf.mxu0  ;;  %7639 = vst [vmem:[#allocation47_spill] sm:$0xff] %v6051_v38 }
 0x26f   : > { %v2282_v47 = vadd.f32 %v2281_v7, %v5583_v55  ;;  %v2394_v52 = vpop.f32.mrf.mxu1 }
 0x270   : > { %7638 = vst [vmem:[#allocation46_spill] sm:$0xff] %v6042_v1 }
 0x271   : > { %v6045_v43 = vadd.f32 %v2394_v52, %v2282_v47 }
 0x273   : > { %v2055_v12 = vpop.f32.mrf.mxu2 }
 0x274   : > { %v2056_v33 = vadd.f32 %v2055_v12, %v5586_v56  ;;  %v2168_v49 = vpop.f32.mrf.mxu3 }
 0x276   : > { %v6048_v34 = vadd.f32 %v2168_v49, %v2056_v33  ;;  %v2284_v22 = vpop.f32.mrf.mxu0 }
 0x277   : > { %v2397_v51 = vpop.f32.mrf.mxu1  ;;  %v2285_v36 = vadd.f32 %v2284_v22, %v5583_v55  ;;  %v2513_v6 = vpop.xlane.xlu1 %2512 }
 0x278   : > { %v6056_v41 = vmul.f32 %v2513_v6, %v4565_v35 }
 0x279   : > { %v6053_v4 = vadd.f32 %v2397_v51, %v2285_v36 }
 0x27a   : > { %v6060_v5 = vmul.f32 %v6056_v41, %v6056_v41 }
 0x27b   : > { %v2705_v44 = vpop.xlane.xlu0 %2704  ;;  %v2058_v18 = vpop.f32.mrf.mxu2 }
 0x27c   : > { %v6063_v37 = vmul.f32 %v2705_v44, %v4565_v35  ;;  %v2059_v31 = vadd.f32 %v2058_v18, %v5586_v56  ;;  %v2171_v48 = vpop.f32.mrf.mxu3 }
 0x27e   : > { %v6068_v2 = vadd.f32 %v2171_v48, %v2059_v31  ;;  %v2287_v42 = vpop.f32.mrf.mxu0 }
 0x27f   : > { %v2288_v62 = vadd.f32 %v2287_v42, %v5583_v55  ;;  %v2400_v0 = vpop.f32.mrf.mxu1 }
 0x281   : > { %v2708_v61 = vpop.xlane.xlu2 %2707  ;;  %v6071_v17 = vadd.f32 %v2400_v0, %v2288_v62 }
 0x282   : > { %v2790_v32 = vmul.f32 %v2708_v61, %v4565_v35 }
 0x283   : > { %v2516_v14 = vpop.xlane.xlu0 %2515  ;;  %v2061_v30 = vpop.f32.mrf.mxu2 }
 0x284   : > { %v6074_v46 = vmul.f32 %v2516_v14, %v4565_v35  ;;  %v2062_v7 = vadd.f32 %v2061_v30, %v5586_v56  ;;  %v2174_v47 = vpop.f32.mrf.mxu3 }
 0x286   : > { %v2822_v23 = vmul.f32 %v6074_v46, %v6074_v46  ;;  %v6080_v12 = vadd.f32 %v2174_v47, %v2062_v7 }
 0x287   : > { %v2290_v33 = vpop.f32.mrf.mxu0 }
 0x288   : > { %v2854_v52 = vsub.f32 %v2790_v32, %v2822_v23  ;;  %v2291_v51 = vadd.f32 %v2290_v33, %v5583_v55  ;;  %v2403_v36 = vpop.f32.mrf.mxu1 }
 0x289   : > { %v2711_v49 = vpop.xlane.xlu1 %2710  ;;  %v2519_v6 = vpop.xlane.xlu2 %2518 }
 0x28a   : > { %v2886_v22 = vmax.f32 %v2854_v52, 0.0  ;;  %v6084_v44 = vmul.f32 %v2519_v6, %v4565_v35  ;;  %v2791_v31 = vmul.f32 %v2711_v49, %v4565_v35  ;;  %v2404_v42 = vadd.f32 %v2403_v36, %v2291_v51 }
 0x28c   : > { %v2982_v18 = vadd.f32 1e-05, %v2886_v22  ;;  %v2823_v48 = vmul.f32 %v6084_v44, %v6084_v44  ;;  %v2177_v14 = vpop.f32.mrf.mxu3  ;;  %v6090_v23 = vmax.f32 %v2404_v42, 0.0 }
 0x28d   : > { %v2064_v0 = vpop.f32.mrf.mxu2 }
 0x28e   : > { %3936 = vrsqrt.f32 %v2982_v18  ;;  %v2855_v62 = vsub.f32 %v2791_v31, %v2823_v48  ;;  %v2065_v61 = vadd.f32 %v2064_v0, %v5586_v56  ;;  %7640 = vst [vmem:[#allocation48_spill] sm:$0xff] %v6090_v23  ;;  %v2671_v31 = vmul.f32 %v6090_v23, %v6090_v23 }
 0x28f   : > { %vm3074_vm10 = vweird.f32 %v2982_v18 }
 0x290   : > { %v2887_v30 = vmax.f32 %v2855_v62, 0.0  ;;  %v2293_v32 = vpop.f32.mrf.mxu0  ;;  %v2178_v7 = vadd.f32 %v2177_v14, %v2065_v61 }
 0x291   : > { %v2406_v47 = vpop.f32.mrf.mxu1  ;;  %v2294_v33 = vadd.f32 %v2293_v32, %v5583_v55  ;;  %v6104_v62 = vpop.xlane.xlu0 %2713 }
 0x292   : > { %v6092_v52 = vadd.f32 1e-05, %v2887_v30  ;;  %v6095_v22 = vmax.f32 %v2178_v7, 0.0 }
 0x293   : > { %v2407_v42 = vadd.f32 %v2406_v47, %v2294_v33 }
 0x294   : > { %v3937_v49 = vpop.eup %3936  ;;  %7641 = vst [vmem:[#allocation49_spill] sm:$0xff] %v6095_v22  ;;  %3938 = vrsqrt.f32 %v6092_v52  ;;  %v2565_v51 = vadd.f32 %v6090_v23, %v6095_v22  ;;  %v2670_v36 = vmul.f32 %v6095_v22, %v6095_v22  ;;  %vm3084_vm13 = vweird.f32 %v6092_v52 }
 0x295   : > { %v3069_v6 = vmul.f32 %v3937_v49, %v2982_v18  ;;  %vm3075_vm9 = vweird.f32 %v3937_v49  ;;  %v6107_v25 = vmax.f32 %v2407_v42, 0.0 }
 0x296   : > { %v2067_v0 = vpop.f32.mrf.mxu2  ;;  %2566 = vadd.xlane.f32.xlu2 %v2565_v51  ;;  %v2757_v30 = vadd.f32 %v2671_v31, %v2670_v36  ;;  %v2924_v31 = vsub.f32 %v5703_v15, %v6074_v46  ;;  %vm3076_vm11 = vmor %vm3074_vm10, %vm3075_vm9 }
 0x297   : > { %v3070_v48 = vmul.f32 %v3937_v49, %v3069_v6  ;;  %v2068_v61 = vadd.f32 %v2067_v0, %v5586_v56  ;;  %v2180_v14 = vpop.f32.mrf.mxu3  ;;  %7642 = vst [vmem:[#allocation50_spill] sm:$0xff] %v6107_v25  ;;  %v6109_v6 = vpop.xlane.xlu1 %2521 }
 0x298   : > { %v2296_v7 = vpop.f32.mrf.mxu0  ;;  %2758 = vadd.xlane.f32.xlu1 %v2757_v30 }
 0x299   : > { %v3071_v32 = vmul.f32 0.5, %v3070_v48  ;;  %v2181_v63 = vadd.f32 %v2180_v14, %v2068_v61  ;;  %v2409_v38 = vpop.f32.mrf.mxu1  ;;  %v2297_v47 = vadd.f32 %v2296_v7, %v5583_v55  ;;  %v6112_v33 = vpop.xlane.xlu2 %2716  ;;  %v2925_v48 = vsub.f32 %v5701_v8, %v6074_v46 }
 0x29a   : > { %v3939_v10 = vpop.eup %3938  ;;  %v6130_v8 = vpop.xlane.xlu0 %2524 }
 0x29b   : > { %v3072_v22 = vsub.f32 1.5, %v3071_v32  ;;  %v3079_v0 = vmul.f32 %v3939_v10, %v6092_v52  ;;  %v6115_v51 = vmax.f32 %v2181_v63, 0.0  ;;  %v2410_v14 = vadd.f32 %v2409_v38, %v2297_v47 }
 0x29c   : > { %v2673_v63 = vmul.f32 %v6107_v25, %v6107_v25  ;;  %vm3085_vm12 = vweird.f32 %v3939_v10 }
 0x29d   : > { %7643 = vst [vmem:[#allocation51_spill] sm:$0xff] %v6115_v51  ;;  %v3073_v36 = vmul.f32 %v3937_v49, %v3072_v22  ;;  %v3080_v42 = vmul.f32 %v3939_v10, %v3079_v0  ;;  %v2672_v32 = vmul.f32 %v6115_v51, %v6115_v51  ;;  %v2568_v38 = vadd.f32 %v6107_v25, %v6115_v51  ;;  %vm3086_vm14 = vmor %vm3084_vm13, %vm3085_vm12 }
 0x29e   : > { %v2070_v30 = vpop.f32.mrf.mxu2 }
 0x29f   : > { %v3077_v61 = vsel %vm3076_vm11, %v3937_v49, %v3073_v36  ;;  %v3081_v22 = vmul.f32 0.5, %v3080_v42  ;;  %v2071_v15 = vadd.f32 %v2070_v30, %v5586_v56  ;;  %v2183_v23 = vpop.f32.mrf.mxu3  ;;  %v2760_v49 = vadd.f32 %v2673_v63, %v2672_v32 }
 0x2a0   : > { %v6125_v7 = vmul.f32 %v3077_v61, %v2924_v31  ;;  %v6127_v18 = vmul.f32 %v3077_v61, %v2925_v48  ;;  %v2299_v46 = vpop.f32.mrf.mxu0  ;;  %2569 = vadd.xlane.f32.xlu1 %v2568_v38  ;;  %v6138_v61 = vmax.f32 %v2410_v14, 0.0  ;;  %v2926_v32 = vsub.f32 %v5754_v53, %v6084_v44 }
 0x2a1   : > { %v3082_v47 = vsub.f32 1.5, %v3081_v22  ;;  %v2184_v0 = vadd.f32 %v2183_v23, %v2071_v15  ;;  %v2412_v36 = vpop.f32.mrf.mxu1  ;;  %v2300_v31 = vadd.f32 %v2299_v46, %v5583_v55  ;;  %2761 = vadd.xlane.f32.xlu0 %v2760_v49  ;;  %v6135_v48 = vpop.xlane.xlu1 %2719  ;;  %v2927_v23 = vsub.f32 %v5746_v39, %v6084_v44 }
 0x2a2   : > { %7644 = vst [vmem:[#allocation52_spill] sm:$0xff] %v6125_v7  ;;  %v6146_v63 = vpop.xlane.xlu2 %2527  ;;  %v2675_v53 = vmul.f32 %v6138_v61, %v6138_v61 }
 0x2a3   : > { %7645 = vst [vmem:[#allocation53_spill] sm:$0xff] %v6127_v18  ;;  %v3083_v42 = vmul.f32 %v3939_v10, %v3082_v47  ;;  %v6140_v30 = vmax.f32 %v2184_v0, 0.0  ;;  %v2413_v49 = vadd.f32 %v2412_v36, %v2300_v31 }
 0x2a4   : > { %7646 = vst [vmem:[#allocation54_spill] sm:$0xff] %v6138_v61 }
 0x2a5   : > { %7647 = vst [vmem:[#allocation55_spill] sm:$0xff] %v6140_v30  ;;  %v3087_v22 = vsel %vm3086_vm14, %v3939_v10, %v3083_v42  ;;  %v2674_v47 = vmul.f32 %v6140_v30, %v6140_v30  ;;  %v2571_v44 = vadd.f32 %v6138_v61, %v6140_v30  ;;  %v7653_v61 = vld [vmem:[#allocation16_spill] sm:$0xff] }
 0x2a6   : > { %v6148_v15 = vmul.f32 %v3087_v22, %v2926_v32  ;;  %v6150_v46 = vmul.f32 %v3087_v22, %v2927_v23  ;;  %v2073_v52 = vpop.f32.mrf.mxu2  ;;  %v6162_v32 = vmax.f32 %v2413_v49, 0.0  ;;  %v7651_v23 = vld [vmem:[#allocation12_spill] sm:$0xff]  ;;  %v2228_v30 = vadd.f32 %v7653_v61, %v5583_v55 }
 0x2a7   : > { %v2074_v14 = vadd.f32 %v2073_v52, %v5586_v56  ;;  %v2186_v38 = vpop.f32.mrf.mxu3  ;;  %v2763_v31 = vadd.f32 %v2675_v53, %v2674_v47  ;;  %v2225_v22 = vadd.f32 %v7651_v23, %v5583_v55  ;;  %v7655_v53 = vld [vmem:[#allocation20_spill] sm:$0xff] }
 0x2a8   : > { %7648 = vst [vmem:[#allocation56_spill] sm:$0xff] %v6148_v15  ;;  %v2302_v39 = vpop.f32.mrf.mxu0  ;;  %v2677_v47 = vmul.f32 %v6162_v32, %v6162_v32  ;;  %v7658_v15 = vld [vmem:[#allocation17_spill] sm:$0xff] }
 0x2a9   : > { %7649 = vst [vmem:[#allocation57_spill] sm:$0xff] %v6150_v46  ;;  %v6159_v10 = vpop.xlane.xlu0 %2722  ;;  %v2187_v0 = vadd.f32 %v2186_v38, %v2074_v14  ;;  %v2303_v42 = vadd.f32 %v2302_v39, %v5583_v55  ;;  %v2415_v36 = vpop.f32.mrf.mxu1  ;;  %2572 = vadd.xlane.f32.xlu0 %v2571_v44  ;;  %2764 = vadd.xlane.f32.xlu2 %v2763_v31  ;;  %v7654_v14 = vld [vmem:[#allocation18_spill] sm:$0xff] }
 0x2aa   : > { %7650 = vst [vmem:[#allocation58_spill] sm:$0xff] %v6162_v32  ;;  %v2531_v25 = vpop.xlane.xlu1 %2530  ;;  %v2002_v38 = vadd.f32 %v7654_v14, %v5586_v56  ;;  %v2231_v44 = vadd.f32 %v7655_v53, %v5583_v55  ;;  %v2341_v27 = vadd.f32 %v7658_v15, %v2228_v30  ;;  %v7660_v53 = vsub.f32 %v6063_v37, %v6060_v5  ;;  %v7665_v15 = vld [vmem:[#allocation23_spill] sm:$0xff] }
 0x2ab   : > { %v6166_v52 = vmax.f32 %v2187_v0, 0.0  ;;  %v2416_v18 = vadd.f32 %v2415_v36, %v2303_v42  ;;  %v7656_v42 = vld [vmem:[#allocation13_spill] sm:$0xff]  ;;  %v2005_v5 = vadd.f32 %v7665_v15, %v5586_v56 }
 0x2ac   : > { %v2338_v36 = vadd.f32 %v7656_v42, %v2225_v22  ;;  %v2115_v54 = vadd.f32 %v7659_v20, %v2002_v38  ;;  %v6208_v42 = vmax.f32 %v2341_v27, 0.0  ;;  %v6223_v27 = vmul.f32 %v6109_v6, %v4565_v35 }
 0x2ad   : > { %7652 = vst [vmem:[#allocation12_spill] sm:$0xff] %v6166_v52  ;;  %v2676_v49 = vmul.f32 %v6166_v52, %v6166_v52  ;;  %v6180_v7 = vmax.f32 %v2416_v18, 0.0  ;;  %v2574_v40 = vadd.f32 %v6162_v32, %v6166_v52 }
 0x2ae   : > { %v2076_v39 = vpop.f32.mrf.mxu2  ;;  %7666 = vst [vmem:[#allocation13_spill] sm:$0xff] %v6208_v42 }
 0x2af   : > { %v2077_v0 = vadd.f32 %v2076_v39, %v5586_v56  ;;  %v2189_v31 = vpop.f32.mrf.mxu3  ;;  %v2766_v61 = vadd.f32 %v2677_v47, %v2676_v49  ;;  %7657 = vst [vmem:[#allocation16_spill] sm:$0xff] %v6180_v7  ;;  %v2885_v39 = vmax.f32 %v7660_v53, 0.0  ;;  %v7661_v49 = vld [vmem:[#allocation21_spill] sm:$0xff] }
 0x2b0   : > { %v2305_v23 = vpop.f32.mrf.mxu0  ;;  %v2344_v18 = vadd.f32 %v7661_v49, %v2231_v44  ;;  %v2679_v44 = vmul.f32 %v6180_v7, %v6180_v7 }
 0x2b1   : > { %v2726_v51 = vpop.xlane.xlu2 %2725  ;;  %v2190_v14 = vadd.f32 %v2189_v31, %v2077_v0  ;;  %v2418_v46 = vpop.f32.mrf.mxu1  ;;  %v2306_v21 = vadd.f32 %v2305_v23, %v5583_v55  ;;  %2767 = vadd.xlane.f32.xlu1 %v2766_v61  ;;  %2575 = vadd.xlane.f32.xlu2 %v2574_v40  ;;  %v6193_v0 = vmax.f32 %v2338_v36, 0.0  ;;  %v7664_v31 = vld [vmem:[#allocation14_spill] sm:$0xff]  ;;  %v6210_v36 = vmax.f32 %v2115_v54, 0.0 }
 0x2b2   : > { %v2534_v22 = vpop.xlane.xlu0 %2533  ;;  %v6197_v30 = vadd.f32 %v7664_v31, %v5586_v56  ;;  %v6212_v23 = vadd.f32 1e-05, %v2885_v39  ;;  %v6214_v53 = vmax.f32 %v2344_v18, 0.0  ;;  %7670 = vst [vmem:[#allocation14_spill] sm:$0xff] %v6223_v27  ;;  %v6226_v54 = vmul.f32 %v2531_v25, %v4565_v35 }
 0x2b3   : > { %v6191_v47 = vmax.f32 %v2190_v14, 0.0  ;;  %7663 = vst [vmem:[#allocation20_spill] sm:$0xff] %v6193_v0  ;;  %v6202_v37 = vmul.f32 %v2534_v22, %v4565_v35  ;;  %v2419_v61 = vadd.f32 %v2418_v46, %v2306_v21  ;;  %v6218_v22 = vmul.f32 %v6130_v8, %v4565_v35  ;;  %v7672_v8 = vld [vmem:[#allocation24_spill] sm:$0xff] }
 0x2b4   : > { %7667 = vst [vmem:[#allocation17_spill] sm:$0xff] %v6210_v36  ;;  %v2118_v18 = vadd.f32 %v7672_v8, %v2005_v5  ;;  %3940 = vrsqrt.f32 %v6212_v23  ;;  %v2792_v5 = vmul.f32 %v6104_v62, %v4565_v35  ;;  %vm3064_vm1 = vweird.f32 %v6212_v23 }
 0x2b5   : > { %7662 = vst [vmem:[#allocation18_spill] sm:$0xff] %v6191_v47  ;;  %v2678_v38 = vmul.f32 %v6191_v47, %v6191_v47  ;;  %v2577_v21 = vadd.f32 %v6180_v7, %v6191_v47  ;;  %v6238_v25 = vmax.f32 %v2419_v61, 0.0  ;;  %v2824_v61 = vmul.f32 %v6223_v27, %v6223_v27 }
 0x2b6   : > { %v2079_v14 = vpop.f32.mrf.mxu2  ;;  %7668 = vst [vmem:[#allocation19_spill] sm:$0xff] %v6214_v53  ;;  %v2793_v47 = vmul.f32 %v6112_v33, %v4565_v35 }
 0x2b7   : > { %7669 = vst [vmem:[#allocation21_spill] sm:$0xff] %v6218_v22  ;;  %v2080_v49 = vadd.f32 %v2079_v14, %v5586_v56  ;;  %v2192_v31 = vpop.f32.mrf.mxu3  ;;  %v2769_v15 = vadd.f32 %v2679_v44, %v2678_v38  ;;  %v2828_v14 = vmul.f32 %v6202_v37, %v6202_v37 }
 0x2b8   : > { %7671 = vst [vmem:[#allocation23_spill] sm:$0xff] %v6226_v54  ;;  %v2308_v39 = vpop.f32.mrf.mxu0 }
 0x2b9   : > { %v2729_v20 = vpop.xlane.xlu1 %2728  ;;  %v2537_v40 = vpop.xlane.xlu2 %2536  ;;  %v2193_v38 = vadd.f32 %v2192_v31, %v2080_v49  ;;  %v2309_v44 = vadd.f32 %v2308_v39, %v5583_v55  ;;  %2770 = vadd.xlane.f32.xlu0 %v2769_v15  ;;  %7673 = vst [vmem:[#allocation24_spill] sm:$0xff] %v6238_v25  ;;  %2578 = vadd.xlane.f32.xlu1 %v2577_v21 }
 0x2ba   : > { %v6231_v46 = vmul.f32 %v2537_v40, %v4565_v35  ;;  %v2421_v6 = vpop.f32.mrf.mxu1  ;;  %v2797_v7 = vmul.f32 %v2729_v20, %v4565_v35  ;;  %v2825_v49 = vmul.f32 %v6218_v22, %v6218_v22  ;;  %v2796_v31 = vmul.f32 %v2726_v51, %v4565_v35 }
 0x2bb   : > { %v6248_v39 = vmax.f32 %v2193_v38, 0.0  ;;  %v6254_v20 = vmul.f32 %v6146_v63, %v4565_v35  ;;  %v2827_v21 = vmul.f32 %v6226_v54, %v6226_v54  ;;  %v2795_v51 = vmul.f32 %v6159_v10, %v4565_v35 }
 0x2bc   : > { %v2829_v40 = vmul.f32 %v6231_v46, %v6231_v46  ;;  %v2860_v38 = vsub.f32 %v2796_v31, %v2828_v14  ;;  %v2422_v32 = vadd.f32 %v2421_v6, %v2309_v44  ;;  %v2681_v63 = vmul.f32 %v6238_v25, %v6238_v25  ;;  %v6274_v14 = vpop.eup %3940 }
 0x2bd   : > { %7674 = vst [vmem:[#allocation59_spill] sm:$0xff] %v6248_v39  ;;  %v2680_v28 = vmul.f32 %v6248_v39, %v6248_v39  ;;  %v2580_v10 = vadd.f32 %v6238_v25, %v6248_v39  ;;  %v2856_v44 = vsub.f32 %v2792_v5, %v2824_v61  ;;  %v2826_v6 = vmul.f32 %v6254_v20, %v6254_v20 }
 0x2be   : > { %7675 = vst [vmem:[#allocation60_spill] sm:$0xff] %v6254_v20  ;;  %v2861_v8 = vsub.f32 %v2797_v7, %v2829_v40  ;;  %v2082_v11 = vpop.f32.mrf.mxu2  ;;  %v6269_v7 = vmax.f32 %v2118_v18, 0.0  ;;  %v2857_v40 = vsub.f32 %v2793_v47, %v2825_v49  ;;  %v2859_v31 = vsub.f32 %v2795_v51, %v2827_v21  ;;  %v7679_v51 = vld [vmem:[#allocation27_spill] sm:$0xff] }
 0x2bf   : > { %v2540_v15 = vpop.xlane.xlu0 %2539  ;;  %v2083_v33 = vadd.f32 %v2082_v11, %v5586_v56  ;;  %v2195_v1 = vpop.f32.mrf.mxu3  ;;  %v2772_v16 = vadd.f32 %v2681_v63, %v2680_v28  ;;  %v6278_v29 = vmax.f32 %v2422_v32, 0.0  ;;  %v2794_v47 = vmul.f32 %v6135_v48, %v4565_v35 }
 0x2c0   : > { %v2893_v52 = vmax.f32 %v2861_v8, 0.0  ;;  %v6267_v27 = vmul.f32 %v2540_v15, %v4565_v35  ;;  %7676 = vst [vmem:[#allocation61_spill] sm:$0xff] %v6269_v7  ;;  %v2311_v8 = vpop.f32.mrf.mxu0  ;;  %v2892_v15 = vmax.f32 %v2860_v38, 0.0  ;;  %v3059_v28 = vmul.f32 %v6274_v14, %v6212_v23 }
 0x2c1   : > { %v2732_v62 = vpop.xlane.xlu1 %2731  ;;  %7677 = vst [vmem:[#allocation62_spill] sm:$0xff] %v6278_v29  ;;  %v2196_v18 = vadd.f32 %v2195_v1, %v2083_v33  ;;  %2581 = vadd.xlane.f32.xlu0 %v2580_v10  ;;  %v2312_v5 = vadd.f32 %v2311_v8, %v5583_v55  ;;  %2773 = vadd.xlane.f32.xlu2 %v2772_v16  ;;  %v2889_v32 = vmax.f32 %v2857_v40, 0.0  ;;  %v2888_v38 = vmax.f32 %v2856_v44, 0.0  ;;  %v7680_v33 = vld [vmem:[#allocation28_spill] sm:$0xff] }
 0x2c2   : > { %v2798_v11 = vmul.f32 %v2732_v62, %v4565_v35  ;;  %v6283_v49 = vadd.f32 1e-05, %v2893_v52  ;;  %v2830_v61 = vmul.f32 %v6267_v27, %v6267_v27  ;;  %v2424_v1 = vpop.f32.mrf.mxu1  ;;  %v2632_v62 = vmul.f32 %v7679_v51, %v7679_v51 }
 0x2c3   : > { %v6290_v21 = vmax.f32 %v2196_v18, 0.0  ;;  %v2858_v48 = vsub.f32 %v2794_v47, %v2826_v6  ;;  %v2633_v16 = vmul.f32 %v7680_v33, %v7680_v33  ;;  %v2891_v10 = vmax.f32 %v2859_v31, 0.0 }
 0x2c4   : > { %v2862_v52 = vsub.f32 %v2798_v11, %v2830_v61  ;;  %v6296_v8 = vadd.f32 1e-05, %v2892_v15  ;;  %v2683_v40 = vmul.f32 %v6278_v29, %v6278_v29  ;;  %3942 = vrsqrt.f32 %v6283_v49 }
 0x2c5   : > { %7678 = vst [vmem:[#allocation63_spill] sm:$0xff] %v6290_v21  ;;  %v2682_v25 = vmul.f32 %v6290_v21, %v6290_v21  ;;  %v2425_v18 = vadd.f32 %v2424_v1, %v2312_v5  ;;  %v3060_v47 = vmul.f32 %v6274_v14, %v3059_v28  ;;  %v6307_v31 = vadd.f32 1e-05, %v2889_v32 }
 0x2c6   : > { %v2894_v51 = vmax.f32 %v2862_v52, 0.0  ;;  %v2085_v44 = vpop.f32.mrf.mxu2  ;;  %v2890_v39 = vmax.f32 %v2858_v48, 0.0  ;;  %v2583_v5 = vadd.f32 %v6278_v29, %v6290_v21  ;;  %v6316_v52 = vadd.f32 1e-05, %v2888_v38  ;;  %v7684_v48 = vld [vmem:[#allocation15_spill] sm:$0xff] }
 0x2c7   : > { %7681 = vst [vmem:[#allocation64_spill] sm:$0xff] %v6307_v31  ;;  %v2086_v15 = vadd.f32 %v2085_v44, %v5586_v56  ;;  %v2198_v61 = vpop.f32.mrf.mxu3  ;;  %v2775_v33 = vadd.f32 %v2683_v40, %v2682_v25  ;;  %3944 = vrsqrt.f32 %v6296_v8  ;;  %v6322_v25 = vmax.f32 %v2425_v18, 0.0 }
 0x2c8   : > { %v6310_v22 = vadd.f32 1e-05, %v2894_v51  ;;  %v2314_v57 = vpop.f32.mrf.mxu0  ;;  %7682 = vst [vmem:[#allocation65_spill] sm:$0xff] %v6316_v52  ;;  %v6328_v40 = vadd.f32 %v7684_v48, %v6197_v30  ;;  %v6339_v18 = vadd.f32 1e-05, %v2890_v39  ;;  %v3061_v30 = vmul.f32 0.5, %v3060_v47 }
 0x2c9   : > { %v2543_v63 = vpop.xlane.xlu1 %2542  ;;  %v2735_v6 = vpop.xlane.xlu2 %2734  ;;  %2776 = vadd.xlane.f32.xlu1 %v2775_v33  ;;  %7683 = vst [vmem:[#allocation66_spill] sm:$0xff] %v6322_v25  ;;  %v2199_v32 = vadd.f32 %v2198_v61, %v2086_v15  ;;  %v2315_v51 = vadd.f32 %v2314_v57, %v5583_v55  ;;  %2584 = vadd.xlane.f32.xlu2 %v2583_v5  ;;  %vm3065_vm15 = vweird.f32 %v6274_v14  ;;  %vm3134_vm9 = vweird.f32 %v6296_v8 }
 0x2ca   : > { %v6304_v11 = vmul.f32 %v2543_v63, %v4565_v35  ;;  %v6318_v63 = vadd.f32 1e-05, %v2891_v10  ;;  %v2799_v28 = vmul.f32 %v2735_v6, %v4565_v35  ;;  %3946 = vrsqrt.f32 %v6310_v22  ;;  %v6336_v44 = vpop.eup %3942  ;;  %vm3066_vm13 = vmor %vm3064_vm1, %vm3065_vm15 }
 0x2cb   : > { %v6330_v10 = vadd.f32 %v2633_v16, %v2632_v62  ;;  %v6334_v33 = vadd.f32 %v6208_v42, %v6210_v36  ;;  %3948 = vrsqrt.f32 %v6307_v31  ;;  %v6341_v6 = vmax.f32 %v2199_v32, 0.0  ;;  %v2427_v62 = vpop.f32.mrf.mxu1 }
 0x2cc   : > { %v2831_v1 = vmul.f32 %v6304_v11, %v6304_v11  ;;  %v2630_v57 = vmul.f32 %v6269_v7, %v6269_v7  ;;  %3950 = vrsqrt.f32 %v6316_v52  ;;  %v2631_v15 = vmul.f32 %v6214_v53, %v6214_v53 }
 0x2cd   : > { %7685 = vst [vmem:[#allocation15_spill] sm:$0xff] %v6341_v6  ;;  %3952 = vrsqrt.f32 %v6318_v63  ;;  %v2428_v61 = vadd.f32 %v2427_v62, %v2315_v51  ;;  %v2684_v39 = vmul.f32 %v6341_v6, %v6341_v6  ;;  %v3139_v47 = vmul.f32 %v6336_v44, %v6283_v49 }
 0x2ce   : > { %v2863_v38 = vsub.f32 %v2799_v28, %v2831_v1  ;;  %v2088_v5 = vpop.f32.mrf.mxu2  ;;  %v2685_v1 = vmul.f32 %v6322_v25, %v6322_v25  ;;  %v6353_v28 = vpop.eup %3944  ;;  %3954 = vrsqrt.f32 %v6339_v18  ;;  %v6365_v29 = vadd.f32 %v2631_v15, %v2630_v57  ;;  %v7689_v15 = vld [vmem:[#allocation30_spill] sm:$0xff] }
 0x2cf   : > { %v2089_v48 = vadd.f32 %v2088_v5, %v5586_v56  ;;  %v6369_v21 = vadd.f32 %v6214_v53, %v6269_v7  ;;  %v6372_v35 = vmax.f32 %v6045_v43, 0.0  ;;  %v6383_v57 = vmax.f32 %v6053_v4, 0.0 }
 0x2d0   : > { %v2895_v16 = vmax.f32 %v2863_v38, 0.0  ;;  %v2586_v38 = vadd.f32 %v6322_v25, %v6341_v6  ;;  %v6362_v51 = vpop.eup %3946  ;;  %v2778_v62 = vadd.f32 %v2685_v1, %v2684_v39  ;;  %v2201_v25 = vpop.f32.mrf.mxu3  ;;  %v6387_v43 = vmax.f32 %v2428_v61, 0.0  ;;  %v7691_v61 = vld [vmem:[#allocation31_spill] sm:$0xff] }
 0x2d1   : > { %7686 = vst [vmem:[#allocation67_spill] sm:$0xff] %v6372_v35  ;;  %v3149_v5 = vmul.f32 %v6362_v51, %v6310_v22  ;;  %v6380_v39 = vpop.eup %3948  ;;  %v2202_v6 = vadd.f32 %v2201_v25, %v2089_v48  ;;  %v3062_v7 = vsub.f32 1.5, %v3061_v30  ;;  %v3140_v4 = vmul.f32 %v6336_v44, %v3139_v47 }
 0x2d2   : > { %v6357_v32 = vadd.f32 1e-05, %v2895_v16  ;;  %v6375_v16 = vmax.f32 %v6048_v34, 0.0  ;;  %2587 = vadd.xlane.f32.xlu1 %v2586_v38  ;;  %7688 = vst [vmem:[#allocation69_spill] sm:$0xff] %v6383_v57  ;;  %v2494_v34 = vld [vmem:[%s7390_s7] sm:$0x3]  ;;  %2779 = vadd.xlane.f32.xlu0 %v2778_v62  ;;  %v6392_v53 = vpop.eup %3950  ;;  %v3129_v38 = vmul.f32 %v6353_v28, %v6296_v8  ;;  %v3099_v47 = vmul.f32 %v6380_v39, %v6307_v31 }
 0x2d3   : > { %7690 = vst [vmem:[#allocation30_spill] sm:$0xff] %v6387_v43  ;;  %v3150_v55 = vmul.f32 %v6362_v51, %v3149_v5  ;;  %v6398_v42 = vpop.eup %3952  ;;  %v6403_v36 = vmax.f32 %v6068_v2, 0.0  ;;  %v6406_v25 = vmax.f32 %v6071_v17, 0.0  ;;  %v6408_v48 = vmax.f32 %v2202_v6, 0.0 }
 0x2d4   : > { %7687 = vst [vmem:[#allocation68_spill] sm:$0xff] %v6375_v16  ;;  %3956 = vrsqrt.f32 %v6357_v32  ;;  %v6411_v30 = vmax.f32 %v6080_v12, 0.0  ;;  %v6415_v5 = vperm.slane %v2494_v34, 0  ;;  %v6417_v0 = vpop.eup %3954  ;;  %v6419_v1 = vperm.slane %v2494_v34, 1 }
 0x2d5   : > { %7692 = vst [vmem:[#allocation31_spill] sm:$0xff] %v6403_v36  ;;  %v3151_v62 = vmul.f32 0.5, %v3150_v55  ;;  %v2686_v2 = vmul.f32 %v6408_v48, %v6408_v48  ;;  %v2687_v17 = vmul.f32 %v6387_v43, %v6387_v43  ;;  %v6427_v12 = vmul.f32 %v6372_v35, %v6372_v35 }
 0x2d6   : > { %7693 = vst [vmem:[#allocation70_spill] sm:$0xff] %v6408_v48  ;;  %v6430_v31 = vmul.f32 %v6274_v14, %v3062_v7  ;;  %v3119_v55 = vmul.f32 %v6398_v42, %v6318_v63  ;;  %v3130_v34 = vmul.f32 %v6353_v28, %v3129_v38  ;;  %v3141_v56 = vmul.f32 0.5, %v3140_v4 }
 0x2d7   : > { %7694 = vst [vmem:[#allocation71_spill] sm:$0xff] %v6427_v12  ;;  %v3152_v26 = vsub.f32 1.5, %v3151_v62  ;;  %v2781_v20 = vadd.f32 %v2687_v17, %v2686_v2  ;;  %v2589_v3 = vadd.f32 %v6387_v43, %v6408_v48  ;;  %v3089_v12 = vmul.f32 %v6392_v53, %v6316_v52 }
 0x2d8   : > { %v3100_v54 = vmul.f32 %v6380_v39, %v3099_v47  ;;  %v2559_v7 = vadd.f32 %v6383_v57, %v6403_v36  ;;  %v2668_v38 = vmul.f32 %v6411_v30, %v6411_v30  ;;  %v3109_v4 = vmul.f32 %v6417_v0, %v6339_v18 }
 0x2d9   : > { %2782 = vadd.xlane.f32.xlu2 %v2781_v20  ;;  %v2669_v2 = vmul.f32 %v6406_v25, %v6406_v25  ;;  %v3120_v47 = vmul.f32 %v6398_v42, %v3119_v55  ;;  %v6454_v17 = vmul.f32 %v6375_v16, %v6375_v16  ;;  %v6458_v43 = vadd.f32 %v6372_v35, %v6375_v16  ;;  %v2495_v20 = vld [vmem:[%s7391_s8] sm:$0x3] }
 0x2da   : > { %v3957_v6 = vpop.eup %3956  ;;  %2701 = vadd.xlane.f32.xlu1 %v6330_v10  ;;  %2590 = vadd.xlane.f32.xlu0 %v2589_v3  ;;  %v3131_v10 = vmul.f32 0.5, %v3130_v34  ;;  %v3142_v48 = vsub.f32 1.5, %v3141_v56  ;;  %vm3155_vm2 = vweird.f32 %v6362_v51  ;;  %v3090_v55 = vmul.f32 %v6392_v53, %v3089_v12 }
 0x2db   : > { %v3159_v19 = vmul.f32 %v3957_v6, %v6357_v32  ;;  %7695 = vst [vmem:[#allocation72_spill] sm:$0xff] %v6458_v43  ;;  %v6467_v34 = vmul.f32 0.5, %v3100_v54  ;;  %v2754_v52 = vadd.f32 %v2669_v2, %v2668_v38  ;;  %v2562_v35 = vadd.f32 %v6406_v25, %v6411_v30 }
 0x2dc   : > { %v3110_v16 = vmul.f32 %v6417_v0, %v3109_v4  ;;  %vm3154_vm3 = vweird.f32 %v6310_v22  ;;  %vm3165_vm4 = vweird.f32 %v3957_v6  ;;  %vm3145_vm5 = vweird.f32 %v6336_v44 }
 0x2dd   : > { %v3160_v62 = vmul.f32 %v3957_v6, %v3159_v19  ;;  %v3153_v19 = vmul.f32 %v6362_v51, %v3152_v26  ;;  %v3121_v26 = vmul.f32 0.5, %v3120_v47  ;;  %vm3156_vm6 = vmor %vm3154_vm3, %vm3155_vm2  ;;  %v6474_v43 = vperm.slane %v2495_v20, 0 }
 0x2de   : > { %v3143_v54 = vmul.f32 %v6336_v44, %v3142_v48  ;;  %vm3164_vm7 = vweird.f32 %v6357_v32  ;;  %v2940_v4 = vsub.f32 %v5997_v24, %v6267_v27  ;;  %v2942_v22 = vsub.f32 %v6013_v9, %v6304_v11 }
 0x2df   : > { %v3161_v3 = vmul.f32 0.5, %v3160_v62  ;;  %v3132_v62 = vsub.f32 1.5, %v3131_v10  ;;  %v3157_v38 = vsel %vm3156_vm6, %v6362_v51, %v3153_v19  ;;  %v2943_v2 = vsub.f32 %v6008_v45, %v6304_v11  ;;  %vm3166_vm8 = vmor %vm3164_vm7, %vm3165_vm4 }
 0x2e0   : > { %v6485_v47 = vperm.slane %v2495_v20, 1  ;;  %v3111_v10 = vmul.f32 0.5, %v3110_v16  ;;  %vm3144_vm10 = vweird.f32 %v6283_v49  ;;  %v2941_v24 = vsub.f32 %v5992_v60, %v6267_v27 }
 0x2e1   : > { %v3162_v56 = vsub.f32 1.5, %v3161_v3  ;;  %2755 = vadd.xlane.f32.xlu2 %v2754_v52  ;;  %vm3146_vm11 = vmor %vm3144_vm10, %vm3145_vm5  ;;  %v3356_v11 = vmul.f32 %v3157_v38, %v2940_v4  ;;  %v3122_v51 = vsub.f32 1.5, %v3121_v26  ;;  %v3133_v48 = vmul.f32 %v6353_v28, %v3132_v62  ;;  %v7698_v62 = vld [vmem:[#allocation23_spill] sm:$0xff] }
 0x2e2   : > { %2560 = vadd.xlane.f32.xlu1 %v2559_v7  ;;  %2563 = vadd.xlane.f32.xlu0 %v2562_v35  ;;  %vm3135_vm12 = vweird.f32 %v6353_v28  ;;  %v3147_v16 = vsel %vm3146_vm11, %v6336_v44, %v3143_v54  ;;  %v2938_v35 = vsub.f32 %v5974_v13, %v6231_v46  ;;  %v3357_v49 = vmul.f32 %v3157_v38, %v2941_v24  ;;  %v7699_v54 = vld [vmem:[#allocation40_spill] sm:$0xff] }
 0x2e3   : > { %v3163_v12 = vmul.f32 %v3957_v6, %v3162_v56  ;;  %v3112_v52 = vsub.f32 1.5, %v3111_v10  ;;  %vm3125_vm14 = vweird.f32 %v6398_v42  ;;  %v3067_v44 = vsel %vm3066_vm13, %v6274_v14, %v6430_v31  ;;  %vm3136_vm15 = vmor %vm3134_vm9, %vm3135_vm12 }
 0x2e4   : > { %v3354_v23 = vmul.f32 %v3147_v16, %v2938_v35  ;;  %v3425_v19 = vmul.f32 %v6415_v5, %v3356_v11  ;;  %v3123_v3 = vmul.f32 %v6398_v42, %v3122_v51  ;;  %v3137_v20 = vsel %vm3136_vm15, %v6353_v28, %v3133_v48 }
 0x2e5   : > { %v3167_v32 = vsel %vm3166_vm8, %v3957_v6, %v3163_v12  ;;  %v2939_v6 = vsub.f32 %v5969_v50, %v6231_v46  ;;  %v7696_v50 = vsub.f32 %v7689_v15, %v6056_v41  ;;  %v7697_v14 = vsub.f32 %v7691_v61, %v6056_v41 }
 0x2e6   : > { %v3358_v9 = vmul.f32 %v3167_v32, %v2942_v22  ;;  %v3359_v45 = vmul.f32 %v3167_v32, %v2943_v2  ;;  %v6527_v31 = vmax.f32 %v6328_v40, 0.0  ;;  %v2936_v56 = vsub.f32 %v5946_v58, %v6202_v37  ;;  %v7700_v22 = vld [vmem:[#allocation60_spill] sm:$0xff]  ;;  %v7701_v2 = vld [vmem:[#allocation38_spill] sm:$0xff] }
 0x2e7   : > { %v6519_v46 = vmul.f32 %v3067_v44, %v7696_v50  ;;  %v6524_v8 = vmul.f32 %v3067_v44, %v7697_v14  ;;  %v3355_v26 = vmul.f32 %v3147_v16, %v2939_v6  ;;  %v3426_v28 = vmul.f32 %v6419_v1, %v3357_v49  ;;  %v7707_v6 = vld [vmem:[#allocation72_spill] sm:$0xff] }
 0x2e8   : > { %v3427_v60 = vmul.f32 %v6415_v5, %v3358_v9  ;;  %v3428_v27 = vmul.f32 %v6419_v1, %v3359_v45  ;;  %v3091_v15 = vmul.f32 0.5, %v3090_v55  ;;  %vm3124_vm1 = vweird.f32 %v6318_v63 }
 0x2e9   : > { %2698 = vadd.xlane.f32.xlu2 %v6365_v29  ;;  %v2666_v41 = vmul.f32 %v6403_v36, %v6403_v36  ;;  %v2667_v40 = vmul.f32 %v6383_v57, %v6383_v57  ;;  %vm3126_vm2 = vmor %vm3124_vm1, %vm3125_vm14  ;;  %v2937_v58 = vsub.f32 %v5938_v59, %v6202_v37  ;;  %v3494_v63 = vadd.f32 %v6474_v43, %v3425_v19 }
 0x2ea   : > { %v3496_v13 = vadd.f32 %v6474_v43, %v3427_v60  ;;  %v3497_v7 = vadd.f32 %v6485_v47, %v3428_v27  ;;  %2503 = vadd.xlane.f32.xlu1 %v6334_v33  ;;  %2506 = vadd.xlane.f32.xlu0 %v6369_v21  ;;  %v3352_v33 = vmul.f32 %v3137_v20, %v2936_v56  ;;  %v3102_v21 = vsub.f32 1.5, %v6467_v34  ;;  %v7702_v34 = vld [vmem:[#allocation71_spill] sm:$0xff]  ;;  %v7704_v60 = vld [vmem:[#allocation26_spill] sm:$0xff]  ;;  %v7710_v56 = vld [vmem:[#allocation17_spill] sm:$0xff] }
 0x2eb   : > { %v3423_v29 = vmul.f32 %v6415_v5, %v3354_v23  ;;  %v3113_v61 = vmul.f32 %v6417_v0, %v3112_v52  ;;  %vm3115_vm3 = vweird.f32 %v6417_v0  ;;  %v3127_v55 = vsel %vm3126_vm2, %v6398_v42, %v3123_v3  ;;  %v7703_v42 = vld [vmem:[#allocation39_spill] sm:$0xff]  ;;  %v7705_v27 = vld [vmem:[#allocation10_spill] sm:$0xff]  ;;  %v7706_v52 = vld [vmem:[#allocation64_spill] sm:$0xff] }
 0x2ec   : > { %3543 = vmatpush.xpose.msra.mxu2 %v3496_v13  ;;  %3563 = vmatpush.xpose.msra.mxu3 %v3497_v7  ;;  %v2934_v12 = vsub.f32 %v7699_v54, %v7698_v62  ;;  %v3353_v38 = vmul.f32 %v3137_v20, %v2937_v58  ;;  %v3495_v59 = vadd.f32 %v6485_v47, %v3426_v28  ;;  %v3092_v4 = vsub.f32 1.5, %v3091_v15  ;;  %v7709_v13 = vld [vmem:[#allocation37_spill] sm:$0xff]  ;;  %v7712_v15 = vld [vmem:[#allocation34_spill] sm:$0xff] }
 0x2ed   : > { %v3424_v37 = vmul.f32 %v6419_v1, %v3355_v26  ;;  %v2932_v10 = vsub.f32 %v7701_v2, %v7700_v22  ;;  %vm3114_vm4 = vweird.f32 %v6339_v18  ;;  %v2748_v32 = vadd.f32 %v7702_v34, %v6454_v17  ;;  %v7711_v28 = vld [vmem:[#allocation21_spill] sm:$0xff] }
 0x2ee   : > { %vm3116_vm5 = vmor %vm3114_vm4, %vm3115_vm3  ;;  %v2935_v24 = vsub.f32 %v7703_v42, %v7698_v62  ;;  %v3492_v9 = vadd.f32 %v6474_v43, %v3423_v29  ;;  %v3421_v45 = vmul.f32 %v6415_v5, %v3352_v33  ;;  %v3350_v11 = vmul.f32 %v3127_v55, %v2934_v12 }
 0x2ef   : > { %v3103_v51 = vmul.f32 %v6380_v39, %v3102_v21  ;;  %vm3105_vm6 = vweird.f32 %v6380_v39  ;;  %v3117_v48 = vsel %vm3116_vm5, %v6417_v0, %v3113_v61  ;;  %v2751_v18 = vadd.f32 %v2667_v40, %v2666_v41  ;;  %v7708_v0 = vld [vmem:[#allocation20_spill] sm:$0xff]  ;;  %v7714_v61 = vld [vmem:[#allocation13_spill] sm:$0xff] }
 0x2f0   : > { %3544 = vmatpush.xpose.msra.mxu2 %v3494_v63  ;;  %3564 = vmatpush.xpose.msra.mxu3 %v3495_v59  ;;  %v3493_v17 = vadd.f32 %v6485_v47, %v3424_v37  ;;  %v3422_v16 = vmul.f32 %v6419_v1, %v3353_v38  ;;  %v3351_v35 = vmul.f32 %v3127_v55, %v2935_v24  ;;  %vm3104_vm7 = vweird.f32 %v7706_v52  ;;  %v7713_v63 = vld [vmem:[#allocation65_spill] sm:$0xff]  ;;  %v7716_v59 = vld [vmem:[#allocation46_spill] sm:$0xff]  ;;  %v7727_v52 = vld [vmem:[#allocation11_spill] sm:$0xff] }
 0x2f1   : > { %v1996_v49 = vadd.f32 %v7705_v27, %v7704_v60  ;;  %2557 = vadd.xlane.f32.xlu2 %v7707_v6  ;;  %v2626_v44 = vmul.f32 %v6527_v31, %v6527_v31  ;;  %v2627_v23 = vmul.f32 %v7708_v0, %v7708_v0  ;;  %vm3106_vm8 = vmor %vm3104_vm7, %vm3105_vm6  ;;  %v2933_v7 = vsub.f32 %v7709_v13, %v7700_v22  ;;  %v7715_v55 = vld [vmem:[#allocation29_spill] sm:$0xff] }
 0x2f2   : > { %2749 = vadd.xlane.f32.xlu1 %v2748_v32  ;;  %2752 = vadd.xlane.f32.xlu0 %v2751_v18  ;;  %v3348_v19 = vmul.f32 %v3117_v48, %v2932_v10  ;;  %v3490_v3 = vadd.f32 %v6474_v43, %v3421_v45  ;;  %v3419_v20 = vmul.f32 %v6415_v5, %v3350_v11  ;;  %vm3095_vm9 = vweird.f32 %v6392_v53  ;;  %v7719_v22 = vld [vmem:[#allocation33_spill] sm:$0xff]  ;;  %v7721_v45 = vld [vmem:[#allocation8_spill] sm:$0xff] }
 0x2f3   : > { %v3093_v50 = vmul.f32 %v6392_v53, %v3092_v4  ;;  %v3107_v14 = vsel %vm3106_vm8, %v6380_v39, %v3103_v51  ;;  %v2628_v26 = vmul.f32 %v7710_v56, %v7710_v56  ;;  %v2930_v41 = vsub.f32 %v7712_v15, %v7711_v28  ;;  %v7718_v4 = vld [vmem:[#allocation14_spill] sm:$0xff]  ;;  %v7722_v51 = vld [vmem:[#allocation44_spill] sm:$0xff]  ;;  %v7724_v18 = vld [vmem:[#allocation45_spill] sm:$0xff] }
 0x2f4   : > { %3545 = vmatpush.xpose.msra.mxu2 %v3492_v9  ;;  %3565 = vmatpush.xpose.msra.mxu3 %v3493_v17  ;;  %v3349_v40 = vmul.f32 %v3117_v48, %v2933_v7  ;;  %v3491_v58 = vadd.f32 %v6485_v47, %v3422_v16  ;;  %v3420_v33 = vmul.f32 %v6419_v1, %v3351_v35  ;;  %vm3094_vm10 = vweird.f32 %v7713_v63  ;;  %v7720_v9 = vld [vmem:[#allocation25_spill] sm:$0xff] }
 0x2f5   : > { %v2691_v29 = vadd.f32 %v2627_v23, %v2626_v44  ;;  %v2499_v21 = vadd.f32 %v7708_v0, %v6527_v31  ;;  %v2629_v39 = vmul.f32 %v7714_v61, %v7714_v61  ;;  %vm3096_vm11 = vmor %vm3094_vm10, %vm3095_vm9  ;;  %v2931_v62 = vsub.f32 %v7715_v55, %v7711_v28  ;;  %v7728_v23 = vld [vmem:[#allocation43_spill] sm:$0xff]  ;;  %v7734_v55 = vld [vmem:[#allocation56_spill] sm:$0xff] }
 0x2f6   : > { %v3346_v54 = vmul.f32 %v3107_v14, %v2930_v41  ;;  %v3488_v12 = vadd.f32 %v6474_v43, %v3419_v20  ;;  %v3417_v38 = vmul.f32 %v6415_v5, %v3348_v19  ;;  %v6599_v37 = vmax.f32 %v7716_v59, 0.0  ;;  %v7730_v20 = vld [vmem:[#allocation9_spill] sm:$0xff] }
 0x2f7   : > { %v2928_v2 = vsub.f32 %v7719_v22, %v7718_v4  ;;  %v2694_v10 = vadd.f32 %v2629_v39, %v2628_v26  ;;  %v3097_v34 = vsel %vm3096_vm11, %v6392_v53, %v3093_v50  ;;  %v3347_v32 = vmul.f32 %v3107_v14, %v2931_v62  ;;  %v7726_v53 = vld [vmem:[#allocation32_spill] sm:$0xff] }
 0x2f8   : > { %3546 = vmatpush.xpose.msra.mxu2 %v3490_v3  ;;  %3566 = vmatpush.xpose.msra.mxu3 %v3491_v58  ;;  %7717 = vst [vmem:[#allocation23_spill] sm:$0xff] %v6599_v37  ;;  %v3489_v42 = vadd.f32 %v6485_v47, %v3420_v33  ;;  %v3418_v24 = vmul.f32 %v6419_v1, %v3349_v40  ;;  %v6609_v48 = vmax.f32 %v7722_v51, 0.0  ;;  %v6612_v17 = vmax.f32 %v7724_v18, 0.0 }
 0x2f9   : > { %v2222_v11 = vadd.f32 %v7721_v45, %v7720_v9  ;;  %2500 = vadd.xlane.f32.xlu2 %v2499_v21  ;;  %v2929_v16 = vsub.f32 %v7726_v53, %v7718_v4  ;;  %v3486_v35 = vadd.f32 %v6474_v43, %v3417_v38  ;;  %v3415_v60 = vmul.f32 %v6415_v5, %v3346_v54  ;;  %v7737_v4 = vld [vmem:[#allocation57_spill] sm:$0xff]  ;;  %v7741_v45 = vld [vmem:[#allocation35_spill] sm:$0xff] }
 0x2fa   : > { %2692 = vadd.xlane.f32.xlu1 %v2691_v29  ;;  %7723 = vst [vmem:[#allocation40_spill] sm:$0xff] %v6609_v48  ;;  %2695 = vadd.xlane.f32.xlu0 %v2694_v10  ;;  %v3344_v27 = vmul.f32 %v3097_v34, %v2928_v2  ;;  %v2109_v6 = vadd.f32 %v7727_v52, %v1996_v49  ;;  %v6622_v13 = vmax.f32 %v7728_v23, 0.0  ;;  %v7732_v29 = vld [vmem:[#allocation42_spill] sm:$0xff]  ;;  %v7738_v10 = vld [vmem:[#allocation36_spill] sm:$0xff] }
 0x2fb   : > { %7725 = vst [vmem:[#allocation60_spill] sm:$0xff] %v6612_v17  ;;  %v2662_v44 = vmul.f32 %v6599_v37, %v6599_v37  ;;  %v3487_v7 = vadd.f32 %v6485_v47, %v3418_v24  ;;  %v3416_v19 = vmul.f32 %v6419_v1, %v3347_v32  ;;  %v3345_v3 = vmul.f32 %v3097_v34, %v2929_v16  ;;  %v7740_v24 = vld [vmem:[#allocation52_spill] sm:$0xff]  ;;  %v7743_v16 = vld [vmem:[#allocation53_spill] sm:$0xff] }
 0x2fc   : > { %3547 = vmatpush.xpose.msra.mxu2 %v3488_v12  ;;  %3567 = vmatpush.xpose.msra.mxu3 %v3489_v42  ;;  %7729 = vst [vmem:[#allocation38_spill] sm:$0xff] %v6622_v13  ;;  %v2335_v50 = vadd.f32 %v7730_v20, %v2222_v11  ;;  %v2663_v14 = vmul.f32 %v6612_v17, %v6612_v17  ;;  %v6633_v15 = vmax.f32 %v2109_v6, 0.0  ;;  %v6642_v21 = vmax.f32 %v7732_v29, 0.0  ;;  %v7735_v12 = vld [vmem:[#allocation41_spill] sm:$0xff] }
 0x2fd   : > { %v2550_v49 = vadd.f32 %v6622_v13, %v6609_v48  ;;  %v3484_v26 = vadd.f32 %v6474_v43, %v3415_v60  ;;  %v3413_v28 = vmul.f32 %v6415_v5, %v3344_v27  ;;  %v2553_v40 = vadd.f32 %v6612_v17, %v6599_v37  ;;  %v7744_v27 = vld [vmem:[#allocation22_spill] sm:$0xff] }
 0x2fe   : > { %v2745_v41 = vadd.f32 %v2663_v14, %v2662_v44  ;;  %v3485_v58 = vadd.f32 %v6485_v47, %v3416_v19  ;;  %v3414_v33 = vmul.f32 %v6419_v1, %v3345_v3  ;;  %v6639_v63 = vmax.f32 %v2335_v50, 0.0  ;;  %7733 = vst [vmem:[#allocation39_spill] sm:$0xff] %v6642_v21 }
 0x2ff   : > { %v3482_v39 = vadd.f32 %v6474_v43, %v3413_v28  ;;  %v3411_v62 = vmul.f32 %v6415_v5, %v7734_v55  ;;  %v2624_v54 = vmul.f32 %v6633_v15, %v6633_v15  ;;  %v6650_v38 = vmax.f32 %v7735_v12, 0.0 }
 0x300   : > { %3548 = vmatpush.xpose.msra.mxu2 %v3486_v35  ;;  %3568 = vmatpush.xpose.msra.mxu3 %v3487_v7  ;;  %7731 = vst [vmem:[#allocation71_spill] sm:$0xff] %v6639_v63  ;;  %v3483_v59 = vadd.f32 %v6485_v47, %v3414_v33  ;;  %v3412_v22 = vmul.f32 %v6419_v1, %v7737_v4  ;;  %v6658_v34 = vmax.f32 %v7738_v10, 0.0  ;;  %v6666_v11 = vmax.f32 %v7741_v45, 0.0 }
 0x301   : > { %2746 = vadd.xlane.f32.xlu2 %v2745_v41  ;;  %7736 = vst [vmem:[#allocation26_spill] sm:$0xff] %v6650_v38  ;;  %v2625_v2 = vmul.f32 %v6639_v63, %v6639_v63  ;;  %v2547_v32 = vadd.f32 %v6650_v38, %v6642_v21  ;;  %v3480_v42 = vadd.f32 %v6474_v43, %v3411_v62 }
 0x302   : > { %2551 = vadd.xlane.f32.xlu1 %v2550_v49  ;;  %2554 = vadd.xlane.f32.xlu0 %v2553_v40  ;;  %7739 = vst [vmem:[#allocation10_spill] sm:$0xff] %v6658_v34  ;;  %v3409_v9 = vmul.f32 %v6415_v5, %v7740_v24  ;;  %v2496_v18 = vadd.f32 %v6639_v63, %v6633_v15 }
 0x303   : > { %7742 = vst [vmem:[#allocation64_spill] sm:$0xff] %v6666_v11  ;;  %v2688_v51 = vadd.f32 %v2625_v2, %v2624_v54  ;;  %v3481_v53 = vadd.f32 %v6485_v47, %v3412_v22  ;;  %v3410_v35 = vmul.f32 %v6419_v1, %v7743_v16  ;;  %v2656_v6 = vmul.f32 %v6658_v34, %v6658_v34 }
 0x304   : > { %3549 = vmatpush.xpose.msra.mxu2 %v3484_v26  ;;  %3569 = vmatpush.xpose.msra.mxu3 %v3485_v58  ;;  %v3478_v44 = vadd.f32 %v6474_v43, %v3409_v9  ;;  %v3407_v23 = vmul.f32 %v6415_v5, %v6519_v46  ;;  %v2657_v19 = vmul.f32 %v6666_v11, %v6666_v11 }
 0x305   : > { %v2658_v3 = vmul.f32 %v6642_v21, %v6642_v21  ;;  %v2660_v20 = vmul.f32 %v6609_v48, %v6609_v48  ;;  %v3479_v46 = vadd.f32 %v6485_v47, %v3410_v35  ;;  %v3408_v49 = vmul.f32 %v6419_v1, %v6524_v8 }
 0x306   : > { %v2659_v26 = vmul.f32 %v6650_v38, %v6650_v38  ;;  %v2661_v28 = vmul.f32 %v6622_v13, %v6622_v13  ;;  %v2736_v40 = vadd.f32 %v2657_v19, %v2656_v6  ;;  %v3476_v58 = vadd.f32 %v6474_v43, %v3407_v23 }
 0x308   : > { %3550 = vmatpush.xpose.msra.mxu2 %v3482_v39  ;;  %3570 = vmatpush.xpose.msra.mxu3 %v3483_v59  ;;  %v2739_v33 = vadd.f32 %v2659_v26, %v2658_v3  ;;  %v2742_v29 = vadd.f32 %v2661_v28, %v2660_v20  ;;  %v3477_v39 = vadd.f32 %v6485_v47, %v3408_v49 }
 0x309   : > { %2689 = vadd.xlane.f32.xlu2 %v2688_v51  ;;  %v2567_v60 = vpop.xlane.xlu2 %2566  ;;  %v2544_v59 = vadd.f32 %v6666_v11, %v6658_v34  ;;  %v7760_v34 = vld [vmem:[#allocation27_spill] sm:$0xff] }
 0x30a   : > { %2548 = vadd.xlane.f32.xlu1 %v2547_v32  ;;  %2497 = vadd.xlane.f32.xlu0 %v2496_v18  ;;  %v6674_v52 = vmul.f32 %v2567_v60, %v7744_v27 }
 0x30b   : > { %v2759_v7 = vpop.xlane.xlu1 %2758 }
 0x30c   : > { %3551 = vmatpush.xpose.msra.mxu2 %v3480_v42  ;;  %3571 = vmatpush.xpose.msra.mxu3 %v3481_v53  ;;  %v6688_v50 = vmul.f32 %v2759_v7, %v7744_v27  ;;  %v6692_v14 = vmul.f32 %v6674_v52, %v6674_v52 }
 0x30e   : > { %v2871_v41 = vsub.f32 %v6688_v50, %v6692_v14 }
 0x310   : > { %3552 = vmatpush.xpose.msra.mxu2 %v3478_v44  ;;  %3572 = vmatpush.xpose.msra.mxu3 %v3479_v46 }
 0x311   : > { %2740 = vadd.xlane.f32.xlu2 %v2739_v33 }
 0x312   : > { %2737 = vadd.xlane.f32.xlu1 %v2736_v40  ;;  %2743 = vadd.xlane.f32.xlu0 %v2742_v29 }
 0x313   : > { %v2570_v8 = vpop.xlane.xlu1 %2569 }
 0x314   : > { %3553 = vmatpush.xpose.msra.mxu2 %v3476_v58  ;;  %3573 = vmatpush.xpose.msra.mxu3 %v3477_v39  ;;  %v2762_v55 = vpop.xlane.xlu0 %2761  ;;  %v6706_v62 = vmul.f32 %v2570_v8, %v7744_v27 }
 0x315   : > { %v6713_v12 = vmul.f32 %v2762_v55, %v7744_v27 }
 0x316   : > { %v6710_v54 = vmul.f32 %v6706_v62, %v6706_v62 }
 0x318   : > { %v2872_v4 = vsub.f32 %v6713_v12, %v6710_v54 }
 0x31a   : > { %2545 = vadd.xlane.f32.xlu0 %v2544_v59  ;;  %v2904_v50 = vmax.f32 %v2872_v4, 0.0 }
 0x31c   : > { %v2573_v22 = vpop.xlane.xlu0 %2572  ;;  %v2765_v2 = vpop.xlane.xlu2 %2764 }
 0x31d   : > { %v2617_v10 = vmul.f32 %v2573_v22, %v7744_v27  ;;  %v2809_v32 = vmul.f32 %v2765_v2, %v7744_v27  ;;  %v7745_v2 = vld [vmem:[#allocation55_spill] sm:$0xff] }
 0x31f   : > { %v2841_v42 = vmul.f32 %v2617_v10, %v2617_v10 }
 0x321   : > { %v2873_v24 = vsub.f32 %v2809_v32, %v2841_v42  ;;  %v2962_v32 = vsub.f32 %v7745_v2, %v2617_v10  ;;  %v7746_v42 = vld [vmem:[#allocation54_spill] sm:$0xff] }
 0x323   : > { %v2905_v9 = vmax.f32 %v2873_v24, 0.0  ;;  %v2963_v24 = vsub.f32 %v7746_v42, %v2617_v10  ;;  %v7749_v10 = vld [vmem:[#allocation12_spill] sm:$0xff] }
 0x324   : > { %v2768_v45 = vpop.xlane.xlu1 %2767  ;;  %v2576_v18 = vpop.xlane.xlu2 %2575 }
 0x325   : > { %v3001_v51 = vadd.f32 1e-05, %v2905_v9  ;;  %v2618_v53 = vmul.f32 %v2576_v18, %v7744_v27  ;;  %v2810_v16 = vmul.f32 %v2768_v45, %v7744_v27 }
 0x327   : > { %3958 = vrsqrt.f32 %v3001_v51  ;;  %v2842_v35 = vmul.f32 %v2618_v53, %v2618_v53  ;;  %vm3264_vm13 = vweird.f32 %v3001_v51 }
 0x329   : > { %v2874_v60 = vsub.f32 %v2810_v16, %v2842_v35 }
 0x32b   : > { %v2906_v44 = vmax.f32 %v2874_v60, 0.0 }
 0x32c   : > { %v2771_v6 = vpop.xlane.xlu0 %2770  ;;  %v2579_v23 = vpop.xlane.xlu1 %2578 }
 0x32d   : > { %v3959_v7 = vpop.eup %3958  ;;  %v6724_v19 = vmul.f32 %v2579_v23, %v7744_v27  ;;  %v3002_v20 = vadd.f32 1e-05, %v2906_v44  ;;  %v6731_v49 = vmul.f32 %v2771_v6, %v7744_v27 }
 0x32e   : > { %v3259_v3 = vmul.f32 %v3959_v7, %v3001_v51  ;;  %vm3265_vm12 = vweird.f32 %v3959_v7 }
 0x32f   : > { %v6728_v46 = vmul.f32 %v6724_v19, %v6724_v19  ;;  %3960 = vrsqrt.f32 %v3002_v20  ;;  %vm3266_vm14 = vmor %vm3264_vm13, %vm3265_vm12  ;;  %vm3274_vm1 = vweird.f32 %v3002_v20 }
 0x330   : > { %v3260_v26 = vmul.f32 %v3959_v7, %v3259_v3 }
 0x332   : > { %v3261_v40 = vmul.f32 0.5, %v3260_v26 }
 0x334   : > { %v2582_v58 = vpop.xlane.xlu0 %2581  ;;  %v3262_v33 = vsub.f32 1.5, %v3261_v40  ;;  %v2774_v29 = vpop.xlane.xlu2 %2773  ;;  %v2964_v40 = vsub.f32 %v7749_v10, %v2618_v53 }
 0x335   : > { %v2620_v39 = vmul.f32 %v2582_v58, %v7744_v27  ;;  %v3961_v8 = vpop.eup %3960  ;;  %v2812_v59 = vmul.f32 %v2774_v29, %v7744_v27  ;;  %v7750_v58 = vld [vmem:[#allocation58_spill] sm:$0xff] }
 0x336   : > { %v3263_v55 = vmul.f32 %v3959_v7, %v3262_v33  ;;  %v3269_v9 = vmul.f32 %v3961_v8, %v3002_v20  ;;  %vm3275_vm15 = vweird.f32 %v3961_v8  ;;  %v7753_v20 = vld [vmem:[#allocation47_spill] sm:$0xff] }
 0x337   : > { %v2844_v22 = vmul.f32 %v2620_v39, %v2620_v39  ;;  %vm3276_vm2 = vmor %vm3274_vm1, %vm3275_vm15 }
 0x338   : > { %v3267_v45 = vsel %vm3266_vm14, %v3959_v7, %v3263_v55  ;;  %v3270_v60 = vmul.f32 %v3961_v8, %v3269_v9  ;;  %v2965_v7 = vsub.f32 %v7750_v58, %v2618_v53  ;;  %v6757_v9 = vmul.f32 %v7753_v20, %v7744_v27 }
 0x339   : > { %v2876_v18 = vsub.f32 %v2812_v59, %v2844_v22  ;;  %v6739_v16 = vmul.f32 %v3267_v45, %v2962_v32  ;;  %v6741_v35 = vmul.f32 %v3267_v45, %v2963_v24 }
 0x33a   : > { %v3271_v44 = vmul.f32 0.5, %v3270_v60  ;;  %v2920_v38 = vsub.f32 %v7760_v34, %v6757_v9 }
 0x33b   : > { %7747 = vst [vmem:[#allocation72_spill] sm:$0xff] %v6739_v16  ;;  %v2908_v6 = vmax.f32 %v2876_v18, 0.0 }
 0x33c   : > { %7748 = vst [vmem:[#allocation20_spill] sm:$0xff] %v6741_v35  ;;  %v6743_v23 = vpop.xlane.xlu1 %2776  ;;  %v3272_v3 = vsub.f32 1.5, %v3271_v44  ;;  %v2585_v2 = vpop.xlane.xlu2 %2584 }
 0x33d   : > { %v3004_v51 = vadd.f32 1e-05, %v2908_v6  ;;  %v6798_v4 = vmul.f32 %v2585_v2, %v7744_v27 }
 0x33e   : > { %v3273_v26 = vmul.f32 %v3961_v8, %v3272_v3  ;;  %v2820_v3 = vmul.f32 %v6757_v9, %v6757_v9 }
 0x33f   : > { %3962 = vrsqrt.f32 %v3004_v51  ;;  %vm3294_vm4 = vweird.f32 %v3004_v51 }
 0x340   : > { %v3277_v33 = vsel %vm3276_vm2, %v3961_v8, %v3273_v26  ;;  %v7754_v26 = vld [vmem:[#allocation59_spill] sm:$0xff] }
 0x341   : > { %v6747_v29 = vmul.f32 %v3277_v33, %v2964_v40  ;;  %v6749_v55 = vmul.f32 %v3277_v33, %v2965_v7  ;;  %v2968_v10 = vsub.f32 %v7754_v26, %v2620_v39  ;;  %v7755_v40 = vld [vmem:[#allocation24_spill] sm:$0xff] }
 0x342   : > { %v2969_v58 = vsub.f32 %v7755_v40, %v2620_v39 }
 0x343   : > { %7751 = vst [vmem:[#allocation37_spill] sm:$0xff] %v6747_v29 }
 0x344   : > { %7752 = vst [vmem:[#allocation17_spill] sm:$0xff] %v6749_v55 }
 0x345   : > { %v6751_v59 = vpop.xlane.xlu1 %2587  ;;  %v3963_v22 = vpop.eup %3962 }
 0x346   : > { %v6753_v32 = vpop.xlane.xlu0 %2779  ;;  %v3289_v42 = vmul.f32 %v3963_v22, %v3004_v51  ;;  %vm3295_vm3 = vweird.f32 %v3963_v22 }
 0x347   : > { %vm3296_vm5 = vmor %vm3294_vm4, %vm3295_vm3  ;;  %v2814_v17 = vmul.f32 %v6753_v32, %v7744_v27 }
 0x348   : > { %v3290_v24 = vmul.f32 %v3963_v22, %v3289_v42  ;;  %v2903_v42 = vmax.f32 %v2871_v41, 0.0 }
 0x34a   : > { %v3291_v45 = vmul.f32 0.5, %v3290_v24 }
 0x34c   : > { %v3292_v53 = vsub.f32 1.5, %v3291_v45  ;;  %v2783_v60 = vpop.xlane.xlu2 %2782 }
 0x34d   : > { %v2702_v8 = vpop.xlane.xlu1 %2701 }
 0x34e   : > { %v2788_v18 = vmul.f32 %v2702_v8, %v7744_v27  ;;  %v2591_v6 = vpop.xlane.xlu0 %2590  ;;  %v3293_v44 = vmul.f32 %v3963_v22, %v3292_v53  ;;  %v6773_v8 = vadd.f32 1e-05, %v2903_v42 }
 0x350   : > { %v3297_v7 = vsel %vm3296_vm5, %v3963_v22, %v3293_v44  ;;  %v2852_v33 = vsub.f32 %v2788_v18, %v2820_v3  ;;  %v6786_v3 = vadd.f32 1e-05, %v2904_v50  ;;  %vm3244_vm15 = vweird.f32 %v6773_v8 }
 0x351   : > { %v6767_v24 = vmul.f32 %v3297_v7, %v2968_v10  ;;  %v6769_v20 = vmul.f32 %v3297_v7, %v2969_v58 }
 0x352   : > { %v2884_v45 = vmax.f32 %v2852_v33, 0.0  ;;  %vm3254_vm2 = vweird.f32 %v6786_v3 }
 0x353   : > { %7756 = vst [vmem:[#allocation21_spill] sm:$0xff] %v6767_v24 }
 0x354   : > { %7757 = vst [vmem:[#allocation34_spill] sm:$0xff] %v6769_v20  ;;  %v6771_v51 = vadd.f32 1e-05, %v2884_v45  ;;  %v2756_v26 = vpop.xlane.xlu2 %2755 }
 0x355   : > { %v2561_v53 = vpop.xlane.xlu1 %2560  ;;  %v2806_v14 = vmul.f32 %v2756_v26, %v7744_v27 }
 0x356   : > { %v2564_v28 = vpop.xlane.xlu0 %2563  ;;  %3964 = vrsqrt.f32 %v6771_v51  ;;  %vm3054_vm7 = vweird.f32 %v6771_v51 }
 0x357   : > { %v6777_v39 = vmul.f32 %v2564_v28, %v7744_v27  ;;  %3966 = vrsqrt.f32 %v6773_v8  ;;  %v6790_v28 = vmul.f32 %v2591_v6, %v7744_v27 }
 0x358   : > { %3968 = vrsqrt.f32 %v6786_v3 }
 0x359   : > { %v2838_v41 = vmul.f32 %v6777_v39, %v6777_v39  ;;  %v2847_v50 = vmul.f32 %v6790_v28, %v6790_v28 }
 0x35b   : > { %v2870_v18 = vsub.f32 %v2806_v14, %v2838_v41  ;;  %v7758_v41 = vsub.f32 %v6731_v49, %v6728_v46  ;;  %v6826_v46 = vmul.f32 %v6751_v59, %v7744_v27 }
 0x35c   : > { %v3965_v22 = vpop.eup %3964  ;;  %v2699_v40 = vpop.xlane.xlu2 %2698 }
 0x35d   : > { %v2504_v44 = vpop.xlane.xlu1 %2503  ;;  %v3049_v10 = vmul.f32 %v3965_v22, %v6771_v51  ;;  %v2902_v7 = vmax.f32 %v2870_v18, 0.0  ;;  %v6795_v12 = vpop.eup %3966  ;;  %v2787_v45 = vmul.f32 %v2699_v40, %v7744_v27  ;;  %v2907_v18 = vmax.f32 %v7758_v41, 0.0 }
 0x35e   : > { %v2507_v58 = vpop.xlane.xlu0 %2506  ;;  %v3239_v14 = vmul.f32 %v6795_v12, %v6773_v8  ;;  %v6837_v34 = vpop.eup %3968  ;;  %vm3055_vm6 = vweird.f32 %v3965_v22  ;;  %v6865_v37 = vmul.f32 %v2504_v44, %v7744_v27  ;;  %vm3245_vm1 = vweird.f32 %v6795_v12 }
 0x35f   : > { %v6793_v54 = vmul.f32 %v2507_v58, %v7744_v27  ;;  %v3050_v33 = vmul.f32 %v3965_v22, %v3049_v10  ;;  %v6800_v42 = vadd.f32 1e-05, %v2902_v7  ;;  %v2845_v10 = vmul.f32 %v6798_v4, %v6798_v4  ;;  %vm3056_vm8 = vmor %vm3054_vm7, %vm3055_vm6 }
 0x360   : > { %v2815_v58 = vmul.f32 %v2783_v60, %v7744_v27  ;;  %v6818_v7 = vmul.f32 %v2561_v53, %v7744_v27  ;;  %v3240_v60 = vmul.f32 %v6795_v12, %v3239_v14  ;;  %v3249_v48 = vmul.f32 %v6837_v34, %v6786_v3  ;;  %vm3246_vm7 = vmor %vm3244_vm15, %vm3245_vm1 }
 0x361   : > { %v2819_v6 = vmul.f32 %v6793_v54, %v6793_v54  ;;  %v3051_v26 = vmul.f32 0.5, %v3050_v33  ;;  %3970 = vrsqrt.f32 %v6800_v42  ;;  %vm3234_vm10 = vweird.f32 %v6800_v42 }
 0x362   : > { %7759 = vst [vmem:[#allocation65_spill] sm:$0xff] %v6818_v7  ;;  %v2879_v49 = vsub.f32 %v2815_v58, %v2847_v50  ;;  %vm3255_vm3 = vweird.f32 %v6837_v34 }
 0x363   : > { %v2851_v2 = vsub.f32 %v2787_v45, %v2819_v6  ;;  %v3052_v40 = vsub.f32 1.5, %v3051_v26  ;;  %v2813_v45 = vmul.f32 %v6743_v23, %v7744_v27  ;;  %v6839_v23 = vadd.f32 1e-05, %v2907_v18 }
 0x364   : > { %v2558_v6 = vpop.xlane.xlu2 %2557  ;;  %v2911_v18 = vmax.f32 %v2879_v49, 0.0 }
 0x365   : > { %v2883_v33 = vmax.f32 %v2851_v2, 0.0  ;;  %v2750_v11 = vpop.xlane.xlu1 %2749  ;;  %v6832_v53 = vmul.f32 %v2558_v6, %v7744_v27  ;;  %v2877_v21 = vsub.f32 %v2813_v45, %v2845_v10  ;;  %v3053_v59 = vmul.f32 %v3965_v22, %v3052_v40  ;;  %v7761_v40 = vld [vmem:[#allocation28_spill] sm:$0xff] }
 0x366   : > { %v2753_v26 = vpop.xlane.xlu0 %2752  ;;  %v2804_v14 = vmul.f32 %v2750_v11, %v7744_v27  ;;  %v2846_v6 = vmul.f32 %v6826_v46, %v6826_v46  ;;  %v2921_v45 = vsub.f32 %v7761_v40, %v6757_v9  ;;  %v6867_v35 = vadd.f32 1e-05, %v2911_v18 }
 0x367   : > { %v6829_v41 = vadd.f32 1e-05, %v2883_v33  ;;  %v6835_v2 = vmul.f32 %v2753_v26, %v7744_v27  ;;  %v3971_v50 = vpop.eup %3970  ;;  %v2836_v58 = vmul.f32 %v6832_v53, %v6832_v53  ;;  %v6847_v33 = vmul.f32 %v6818_v7, %v6818_v7 }
 0x368   : > { %v3229_v10 = vmul.f32 %v3971_v50, %v6800_v42  ;;  %v6855_v26 = vmul.f32 0.5, %v3240_v60  ;;  %v3057_v49 = vsel %vm3056_vm8, %v3965_v22, %v3053_v59  ;;  %vm3235_vm9 = vweird.f32 %v3971_v50  ;;  %vm3256_vm8 = vmor %vm3254_vm2, %vm3255_vm3 }
 0x369   : > { %3972 = vrsqrt.f32 %v6829_v41  ;;  %v2868_v11 = vsub.f32 %v2804_v14, %v2836_v58  ;;  %v3336_v40 = vmul.f32 %v3057_v49, %v2920_v38  ;;  %v2909_v14 = vmax.f32 %v2877_v21, 0.0  ;;  %vm3236_vm11 = vmor %vm3234_vm10, %vm3235_vm9 }
 0x36a   : > { %v3230_v51 = vmul.f32 %v3971_v50, %v3229_v10  ;;  %3974 = vrsqrt.f32 %v6839_v23  ;;  %v2878_v58 = vsub.f32 %v2814_v17, %v2846_v6  ;;  %v3337_v17 = vmul.f32 %v3057_v49, %v2921_v45 }
 0x36b   : > { %v2900_v9 = vmax.f32 %v2868_v11, 0.0  ;;  %v3405_v21 = vmul.f32 %v6415_v5, %v3336_v40  ;;  %v2818_v18 = vmul.f32 %v6865_v37, %v6865_v37  ;;  %v2957_v45 = vsub.f32 %v6406_v25, %v6777_v39 }
 0x36c   : > { %v3231_v13 = vmul.f32 0.5, %v3230_v51  ;;  %v2501_v16 = vpop.xlane.xlu2 %2500  ;;  %vm3044_vm13 = vweird.f32 %v6829_v41  ;;  %vm3284_vm15 = vweird.f32 %v6839_v23  ;;  %vm3324_vm3 = vweird.f32 %v6867_v35 }
 0x36d   : > { %v2693_v60 = vpop.xlane.xlu1 %2692  ;;  %v6869_v32 = vadd.f32 1e-05, %v2900_v9  ;;  %v6872_v22 = vmul.f32 %v2501_v16, %v7744_v27  ;;  %v2956_v16 = vsub.f32 %v6411_v30, %v6777_v39  ;;  %v3474_v9 = vadd.f32 %v6474_v43, %v3405_v21 }
 0x36e   : > { %v2696_v55 = vpop.xlane.xlu0 %2695  ;;  %v3232_v59 = vsub.f32 1.5, %v3231_v13  ;;  %v2785_v38 = vmul.f32 %v2693_v60, %v7744_v27  ;;  %v2910_v60 = vmax.f32 %v2878_v58, 0.0  ;;  %v3406_v30 = vmul.f32 %v6419_v1, %v3337_v17 }
 0x36f   : > { %v3973_v29 = vpop.eup %3972  ;;  %v2786_v44 = vmul.f32 %v2696_v55, %v7744_v27  ;;  %3976 = vrsqrt.f32 %v6869_v32  ;;  %v2817_v6 = vmul.f32 %v6872_v22, %v6872_v22  ;;  %3554 = vmatpush.xpose.msra.mxu2 %v3474_v9  ;;  %v3250_v21 = vmul.f32 %v6837_v34, %v3249_v48  ;;  %v7764_v48 = vld [vmem:[#allocation49_spill] sm:$0xff]  ;;  %v7769_v9 = vld [vmem:[#allocation68_spill] sm:$0xff] }
 0x370   : > { %v3039_v10 = vmul.f32 %v3973_v29, %v6829_v41  ;;  %v3233_v55 = vmul.f32 %v3971_v50, %v3232_v59  ;;  %v6886_v11 = vpop.eup %3974  ;;  %3978 = vrsqrt.f32 %v6867_v35  ;;  %vm3045_vm12 = vweird.f32 %v3973_v29 }
 0x371   : > { %v2849_v51 = vsub.f32 %v2785_v38, %v2817_v6  ;;  %v2850_v49 = vsub.f32 %v2786_v44, %v2818_v18  ;;  %v3475_v39 = vadd.f32 %v6485_v47, %v3406_v30  ;;  %v6904_v17 = vadd.f32 1e-05, %v2909_v14  ;;  %vm3046_vm14 = vmor %vm3044_vm13, %vm3045_vm12  ;;  %v7770_v14 = vld [vmem:[#allocation67_spill] sm:$0xff] }
 0x372   : > { %v3040_v13 = vmul.f32 %v3973_v29, %v3039_v10  ;;  %v3237_v40 = vsel %vm3236_vm11, %v3971_v50, %v3233_v55  ;;  %v6913_v55 = vadd.f32 1e-05, %v2910_v60  ;;  %v3251_v41 = vmul.f32 0.5, %v3250_v21  ;;  %v7767_v60 = vld [vmem:[#allocation50_spill] sm:$0xff] }
 0x373   : > { %v6893_v59 = vmul.f32 %v3237_v40, %v2956_v16  ;;  %v6895_v42 = vmul.f32 %v3237_v40, %v2957_v45  ;;  %v2881_v10 = vmax.f32 %v2849_v51, 0.0  ;;  %v2882_v24 = vmax.f32 %v2850_v49, 0.0  ;;  %3574 = vmatpush.xpose.msra.mxu3 %v3475_v39  ;;  %v7766_v49 = vld [vmem:[#allocation51_spill] sm:$0xff] }
 0x374   : > { %v3041_v20 = vmul.f32 0.5, %v3040_v13  ;;  %v6899_v44 = vpop.xlane.xlu2 %2746  ;;  %v3242_v16 = vsub.f32 1.5, %v6855_v26  ;;  %v7765_v26 = vld [vmem:[#allocation61_spill] sm:$0xff]  ;;  %v3252_v40 = vsub.f32 1.5, %v3251_v41  ;;  %vm3214_vm5 = vweird.f32 %v6869_v32 }
 0x375   : > { %7762 = vst [vmem:[#allocation13_spill] sm:$0xff] %v6893_v59  ;;  %v3977_v50 = vpop.eup %3976  ;;  %v6906_v38 = vadd.f32 1e-05, %v2881_v10  ;;  %v6908_v6 = vadd.f32 1e-05, %v2882_v24  ;;  %v2918_v45 = vsub.f32 %v7765_v26, %v6793_v54  ;;  %vm3285_vm1 = vweird.f32 %v6886_v11 }
 0x376   : > { %7763 = vst [vmem:[#allocation29_spill] sm:$0xff] %v6895_v42  ;;  %v3042_v25 = vsub.f32 1.5, %v3041_v20  ;;  %v6901_v58 = vpop.xlane.xlu0 %2554  ;;  %v3209_v20 = vmul.f32 %v3977_v50, %v6869_v32  ;;  %v6924_v51 = vpop.eup %3978  ;;  %vm3215_vm4 = vweird.f32 %v3977_v50  ;;  %v2953_v42 = vsub.f32 %v7770_v14, %v6832_v53 }
 0x377   : > { %3980 = vrsqrt.f32 %v6906_v38  ;;  %vm3216_vm6 = vmor %vm3214_vm5, %vm3215_vm4  ;;  %vm3024_vm10 = vweird.f32 %v6906_v38  ;;  %vm3034_vm13 = vweird.f32 %v6908_v6  ;;  %vm3325_vm2 = vweird.f32 %v6924_v51 }
 0x378   : > { %v3043_v18 = vmul.f32 %v3973_v29, %v3042_v25  ;;  %v3210_v24 = vmul.f32 %v3977_v50, %v3209_v20  ;;  %3982 = vrsqrt.f32 %v6908_v6  ;;  %v3243_v25 = vmul.f32 %v6795_v12, %v3242_v16  ;;  %vm3326_vm5 = vmor %vm3324_vm3, %vm3325_vm2 }
 0x379   : > { %3984 = vrsqrt.f32 %v6904_v17  ;;  %v3319_v16 = vmul.f32 %v6924_v51, %v6867_v35  ;;  %vm3304_vm4 = vweird.f32 %v6904_v17  ;;  %v7781_v35 = vld [vmem:[#allocation70_spill] sm:$0xff] }
 0x37a   : > { %v3047_v13 = vsel %vm3046_vm14, %v3973_v29, %v3043_v18  ;;  %v7768_v29 = vld [vmem:[#allocation19_spill] sm:$0xff]  ;;  %v3211_v10 = vmul.f32 0.5, %v3210_v24  ;;  %3986 = vrsqrt.f32 %v6913_v55 }
 0x37b   : > { %v2919_v30 = vsub.f32 %v7768_v29, %v6793_v54  ;;  %v3334_v39 = vmul.f32 %v3047_v13, %v2918_v45  ;;  %v3279_v54 = vmul.f32 %v6886_v11, %v6839_v23  ;;  %v3320_v8 = vmul.f32 %v6924_v51, %v3319_v16 }
 0x37c   : > { %v3212_v18 = vsub.f32 1.5, %v3211_v10  ;;  %v2690_v24 = vpop.xlane.xlu2 %2689 }
 0x37d   : > { %v3335_v21 = vmul.f32 %v3047_v13, %v2919_v30  ;;  %v3981_v26 = vpop.eup %3980  ;;  %v2952_v13 = vsub.f32 %v7769_v9, %v6832_v53  ;;  %v3403_v9 = vmul.f32 %v6415_v5, %v3334_v39  ;;  %v2784_v36 = vmul.f32 %v2690_v24, %v7744_v27 }
 0x37e   : > { %v2498_v20 = vpop.xlane.xlu0 %2497  ;;  %v6944_v45 = vpop.eup %3982  ;;  %v3213_v30 = vmul.f32 %v3977_v50, %v3212_v18  ;;  %v3019_v41 = vmul.f32 %v3981_v26, %v6906_v38  ;;  %v3280_v39 = vmul.f32 %v6886_v11, %v3279_v54  ;;  %vm3025_vm9 = vweird.f32 %v3981_v26 }
 0x37f   : > { %v6942_v29 = vmul.f32 %v2498_v20, %v7744_v27  ;;  %v6950_v10 = vpop.eup %3984  ;;  %v7771_v20 = vsub.f32 %v6835_v2, %v6847_v33  ;;  %v3029_v57 = vmul.f32 %v6944_v45, %v6908_v6  ;;  %v3404_v7 = vmul.f32 %v6419_v1, %v3335_v21  ;;  %vm3026_vm12 = vmor %vm3024_vm10, %vm3025_vm9 }
 0x380   : > { %v3217_v18 = vsel %vm3216_vm6, %v3977_v50, %v3213_v30  ;;  %v3020_v32 = vmul.f32 %v3981_v26, %v3019_v41  ;;  %v6963_v63 = vpop.eup %3986  ;;  %v3253_v50 = vmul.f32 %v6837_v34, %v3252_v40  ;;  %v3299_v21 = vmul.f32 %v6950_v10, %v6904_v17 }
 0x381   : > { %v2901_v59 = vmax.f32 %v7771_v20, 0.0  ;;  %v6965_v53 = vmul.f32 %v3217_v18, %v2952_v13  ;;  %v6967_v14 = vmul.f32 %v3217_v18, %v2953_v42  ;;  %v3030_v2 = vmul.f32 %v6944_v45, %v3029_v57 }
 0x382   : > { %v2816_v33 = vmul.f32 %v6942_v29, %v6942_v29  ;;  %v3021_v24 = vmul.f32 0.5, %v3020_v32  ;;  %v3472_v57 = vadd.f32 %v6474_v43, %v3403_v9  ;;  %v6982_v30 = vsel %vm3246_vm7, %v6795_v12, %v3243_v25 }
 0x383   : > { %v3031_v42 = vmul.f32 0.5, %v3030_v2  ;;  %v3309_v41 = vmul.f32 %v6963_v63, %v6913_v55  ;;  %v3473_v40 = vadd.f32 %v6485_v47, %v3404_v7  ;;  %v6992_v54 = vadd.f32 1e-05, %v2901_v59 }
 0x384   : > { %v2848_v13 = vsub.f32 %v2784_v36, %v2816_v33  ;;  %v3022_v20 = vsub.f32 1.5, %v3021_v24  ;;  %3555 = vmatpush.xpose.msra.mxu2 %v3472_v57  ;;  %v3257_v25 = vsel %vm3256_vm8, %v6837_v34, %v3253_v50  ;;  %v7772_v7 = vsub.f32 %v7764_v48, %v6674_v52  ;;  %vm7078_vm8 = vmor %vm3284_vm15, %vm3285_vm1 }
 0x385   : > { %v3032_v36 = vsub.f32 1.5, %v3031_v42  ;;  %3575 = vmatpush.xpose.msra.mxu3 %v3473_v40  ;;  %vm3035_vm11 = vweird.f32 %v6944_v45  ;;  %v7773_v18 = vsub.f32 %v7766_v49, %v6706_v62  ;;  %v3281_v38 = vmul.f32 0.5, %v3280_v39 }
 0x386   : > { %v2880_v9 = vmax.f32 %v2848_v13, 0.0  ;;  %v3023_v12 = vmul.f32 %v3981_v26, %v3022_v20  ;;  %v7000_v16 = vmul.f32 %v6982_v30, %v7772_v7  ;;  %v7774_v34 = vsub.f32 %v7767_v60, %v6706_v62  ;;  %vm3036_vm14 = vmor %vm3034_vm13, %vm3035_vm11 }
 0x387   : > { %v3033_v3 = vmul.f32 %v6944_v45, %v3032_v36  ;;  %v7009_v32 = vmul.f32 %v3257_v25, %v7773_v18  ;;  %v3310_v2 = vmul.f32 %v6963_v63, %v3309_v41  ;;  %v3321_v33 = vmul.f32 0.5, %v3320_v8 }
 0x388   : > { %v7004_v59 = vadd.f32 1e-05, %v2880_v9  ;;  %v7014_v48 = vmul.f32 %v3257_v25, %v7774_v34  ;;  %v3027_v50 = vsel %vm3026_vm12, %v3981_v26, %v3023_v12  ;;  %v2916_v24 = vsub.f32 %v7710_v56, %v6865_v37  ;;  %v7778_v9 = vld [vmem:[#allocation63_spill] sm:$0xff] }
 0x389   : > { %v2917_v49 = vsub.f32 %v7714_v61, %v6865_v37  ;;  %v2914_v39 = vsub.f32 %v6527_v31, %v6872_v22  ;;  %v3300_v62 = vmul.f32 %v6950_v10, %v3299_v21  ;;  %v3037_v60 = vsel %vm3036_vm14, %v6944_v45, %v3033_v3  ;;  %v7775_v61 = vld [vmem:[#allocation48_spill] sm:$0xff]  ;;  %v7776_v31 = vld [vmem:[#allocation18_spill] sm:$0xff] }
 0x38a   : > { %3988 = vrsqrt.f32 %v7004_v59  ;;  %v2915_v6 = vsub.f32 %v7708_v0, %v6872_v22  ;;  %v3332_v56 = vmul.f32 %v3037_v60, %v2916_v24  ;;  %v2959_v37 = vsub.f32 %v7775_v61, %v6674_v52  ;;  %v7777_v45 = vld [vmem:[#allocation16_spill] sm:$0xff]  ;;  %v2552_v22 = vpop.xlane.xlu1 %2551 }
 0x38b   : > { %3990 = vrsqrt.f32 %v6992_v54  ;;  %v3330_v26 = vmul.f32 %v3027_v50, %v2914_v39  ;;  %v3333_v42 = vmul.f32 %v3037_v60, %v2917_v49  ;;  %v2966_v13 = vsub.f32 %v7776_v31, %v6724_v19 }
 0x38c   : > { %v3322_v57 = vsub.f32 1.5, %v3321_v33  ;;  %v3282_v41 = vsub.f32 1.5, %v3281_v38  ;;  %v3311_v8 = vmul.f32 0.5, %v3310_v2  ;;  %v3331_v21 = vmul.f32 %v3027_v50, %v2915_v6  ;;  %v7779_v38 = vld [vmem:[#allocation62_spill] sm:$0xff] }
 0x38d   : > { %v3401_v20 = vmul.f32 %v6415_v5, %v3332_v56  ;;  %v2967_v40 = vsub.f32 %v7777_v45, %v6724_v19  ;;  %v3301_v0 = vmul.f32 0.5, %v3300_v62  ;;  %v2970_v12 = vsub.f32 %v7778_v9, %v6798_v4  ;;  %v7780_v56 = vld [vmem:[#allocation15_spill] sm:$0xff] }
 0x38e   : > { %v3402_v7 = vmul.f32 %v6419_v1, %v3333_v42  ;;  %v3399_v3 = vmul.f32 %v6415_v5, %v3330_v26  ;;  %v2971_v34 = vsub.f32 %v7779_v38, %v6798_v4  ;;  %v3323_v2 = vmul.f32 %v6924_v51, %v3322_v57  ;;  %v2744_v26 = vpop.xlane.xlu0 %2743 }
 0x38f   : > { %v3470_v25 = vadd.f32 %v6474_v43, %v3401_v20  ;;  %v3283_v50 = vmul.f32 %v6886_v11, %v3282_v41  ;;  %v3312_v24 = vsub.f32 1.5, %v3311_v8  ;;  %v3400_v39 = vmul.f32 %v6419_v1, %v3331_v21 }
 0x390   : > { %v3989_v36 = vpop.eup %3988  ;;  %v3471_v49 = vadd.f32 %v6485_v47, %v3402_v7  ;;  %v3302_v62 = vsub.f32 1.5, %v3301_v0  ;;  %v7057_v60 = vmul.f32 %v6901_v58, %v7744_v27  ;;  %v2972_v42 = vsub.f32 %v7780_v56, %v6826_v46  ;;  %v7782_v0 = vld [vmem:[#allocation30_spill] sm:$0xff] }
 0x391   : > { %v7044_v18 = vpop.eup %3990  ;;  %v3009_v33 = vmul.f32 %v3989_v36, %v7004_v59  ;;  %3556 = vmatpush.xpose.msra.mxu2 %v3470_v25  ;;  %v3468_v41 = vadd.f32 %v6474_v43, %v3399_v3  ;;  %vm3305_vm6 = vweird.f32 %v6950_v10  ;;  %v2974_v58 = vsub.f32 %v7781_v35, %v6790_v28 }
 0x392   : > { %v3219_v57 = vmul.f32 %v7044_v18, %v6992_v54  ;;  %3576 = vmatpush.xpose.msra.mxu3 %v3471_v49  ;;  %v3327_v8 = vsel %vm3326_vm5, %v6924_v51, %v3323_v2  ;;  %v3313_v20 = vmul.f32 %v6963_v63, %v3312_v24  ;;  %vm3315_vm7 = vweird.f32 %v6963_v63  ;;  %vm7087_vm10 = vmor %vm3304_vm4, %vm3305_vm6  ;;  %v7787_v24 = vld [vmem:[#allocation66_spill] sm:$0xff] }
 0x393   : > { %v3010_v6 = vmul.f32 %v3989_v36, %v3009_v33  ;;  %v2975_v25 = vsub.f32 %v7782_v0, %v6790_v28  ;;  %v3469_v7 = vadd.f32 %v6485_v47, %v3400_v39  ;;  %v3303_v51 = vmul.f32 %v6950_v10, %v3302_v62 }
 0x394   : > { %v2835_v2 = vmul.f32 %v7057_v60, %v7057_v60  ;;  %vm3015_vm9 = vweird.f32 %v3989_v36  ;;  %v2973_v23 = vsub.f32 %v7787_v24, %v6826_v46  ;;  %vm3314_vm11 = vweird.f32 %v6913_v55  ;;  %v7788_v55 = vld [vmem:[#allocation71_spill] sm:$0xff] }
 0x395   : > { %v3011_v21 = vmul.f32 0.5, %v3010_v6  ;;  %3557 = vmatpush.xpose.msra.mxu2 %v3468_v41  ;;  %v3390_v49 = vmul.f32 %v3327_v8, %v2974_v58  ;;  %v3220_v39 = vmul.f32 %v7044_v18, %v3219_v57  ;;  %vm3316_vm12 = vmor %vm3314_vm11, %vm3315_vm7  ;;  %v3391_v62 = vmul.f32 %v3327_v8, %v2975_v25  ;;  %v2549_v6 = vpop.xlane.xlu1 %2548 }
 0x396   : > { %3577 = vmatpush.xpose.msra.mxu3 %v3469_v7  ;;  %v2803_v17 = vmul.f32 %v6899_v44, %v7744_v27  ;;  %vm3014_vm13 = vweird.f32 %v7004_v59  ;;  %v2912_v46 = vsub.f32 %v6633_v15, %v6942_v29  ;;  %v2913_v41 = vsub.f32 %v7788_v55, %v6942_v29  ;;  %v2546_v0 = vpop.xlane.xlu0 %2545  ;;  %v7790_v55 = vld [vmem:[#allocation31_spill] sm:$0xff] }
 0x397   : > { %v3012_v33 = vsub.f32 1.5, %v3011_v21  ;;  %vm3016_vm14 = vmor %vm3014_vm13, %vm3015_vm9  ;;  %v3317_v57 = vsel %vm3316_vm12, %v6963_v63, %v3313_v20  ;;  %v3287_v35 = vsel %vm7078_vm8, %v6886_v11, %v3283_v50  ;;  %v3307_v44 = vsel %vm7087_vm10, %v6950_v10, %v3303_v51  ;;  %v2741_v11 = vpop.xlane.xlu2 %2740 }
 0x398   : > { %v7113_v59 = vmul.f32 %v2552_v22, %v7744_v27  ;;  %v2867_v58 = vsub.f32 %v2803_v17, %v2835_v2  ;;  %v3221_v8 = vmul.f32 0.5, %v3220_v39  ;;  %v7118_v63 = vmul.f32 %v3287_v35, %v2966_v13 }
 0x399   : > { %v3013_v56 = vmul.f32 %v3989_v36, %v3012_v33  ;;  %v3459_v20 = vmul.f32 %v6415_v5, %v3390_v49  ;;  %v2802_v50 = vmul.f32 %v2744_v26, %v7744_v27  ;;  %v3388_v10 = vmul.f32 %v3317_v57, %v2972_v42 }
 0x39a   : > { %v7125_v22 = vmul.f32 %v3287_v35, %v2967_v40  ;;  %v7129_v25 = vmul.f32 %v2549_v6, %v7744_v27  ;;  %v3389_v13 = vmul.f32 %v3317_v57, %v2973_v23  ;;  %v3386_v7 = vmul.f32 %v3307_v44, %v2970_v12  ;;  %v7791_v57 = vld [vmem:[#allocation69_spill] sm:$0xff] }
 0x39b   : > { %v3017_v15 = vsel %vm3016_vm14, %v3989_v36, %v3013_v56  ;;  %v3460_v36 = vmul.f32 %v6419_v1, %v3391_v62  ;;  %v2899_v26 = vmax.f32 %v2867_v58, 0.0  ;;  %v2834_v42 = vmul.f32 %v7113_v59, %v7113_v59 }
 0x39c   : > { %v3328_v21 = vmul.f32 %v3017_v15, %v2912_v46  ;;  %v3329_v29 = vmul.f32 %v3017_v15, %v2913_v41  ;;  %v3222_v45 = vsub.f32 1.5, %v3221_v8  ;;  %v2801_v40 = vmul.f32 %v2741_v11, %v7744_v27  ;;  %v7792_v8 = vld [vmem:[#allocation21_spill] sm:$0xff]  ;;  %v7793_v11 = vld [vmem:[#allocation34_spill] sm:$0xff] }
 0x39d   : > { %v7140_v3 = vmul.f32 %v2546_v0, %v7744_v27  ;;  %v2866_v2 = vsub.f32 %v2802_v50, %v2834_v42  ;;  %v3528_v9 = vadd.f32 %v6474_v43, %v3459_v20  ;;  %v3457_v12 = vmul.f32 %v6415_v5, %v3388_v10  ;;  %v2738_v62 = vpop.xlane.xlu1 %2737 }
 0x39e   : > { %v3397_v31 = vmul.f32 %v6415_v5, %v3328_v21  ;;  %v3398_v19 = vmul.f32 %v6419_v1, %v3329_v29  ;;  %v3387_v28 = vmul.f32 %v3307_v44, %v2971_v34  ;;  %v2833_v24 = vmul.f32 %v7129_v25, %v7129_v25 }
 0x39f   : > { %v3529_v23 = vadd.f32 %v6485_v47, %v3460_v36  ;;  %v3458_v49 = vmul.f32 %v6419_v1, %v3389_v13  ;;  %v7153_v39 = vadd.f32 1e-05, %v2899_v26  ;;  %v7159_v17 = vmul.f32 %v6982_v30, %v2959_v37  ;;  %v7789_v37 = vld [vmem:[#allocation65_spill] sm:$0xff] }
 0x3a0   : > { %v3466_v51 = vadd.f32 %v6474_v43, %v3397_v31  ;;  %v3467_v33 = vadd.f32 %v6485_v47, %v3398_v19  ;;  %v3223_v4 = vmul.f32 %v7044_v18, %v3222_v45  ;;  %vm3225_vm15 = vweird.f32 %v7044_v18 }
 0x3a1   : > { %v2865_v38 = vsub.f32 %v2801_v40, %v2833_v24  ;;  %v2832_v34 = vmul.f32 %v7140_v3, %v7140_v3  ;;  %v2898_v6 = vmax.f32 %v2866_v2, 0.0  ;;  %v3526_v56 = vadd.f32 %v6474_v43, %v3457_v12  ;;  %v7794_v40 = vld [vmem:[#allocation37_spill] sm:$0xff] }
 0x3a2   : > { %3558 = vmatpush.xpose.msra.mxu2 %v3466_v51  ;;  %3578 = vmatpush.xpose.msra.mxu3 %v3467_v33  ;;  %v3455_v46 = vmul.f32 %v6415_v5, %v3386_v7  ;;  %vm3224_vm1 = vweird.f32 %v6992_v54  ;;  %v2800_v52 = vmul.f32 %v2738_v62, %v7744_v27  ;;  %v3527_v30 = vadd.f32 %v6485_v47, %v3458_v49  ;;  %v7795_v2 = vld [vmem:[#allocation17_spill] sm:$0xff]  ;;  %v7797_v62 = vld [vmem:[#allocation20_spill] sm:$0xff] }
 0x3a3   : > { %v3456_v61 = vmul.f32 %v6419_v1, %v3387_v28  ;;  %v2954_v41 = vsub.f32 %v7790_v55, %v7789_v37  ;;  %vm3226_vm2 = vmor %vm3224_vm1, %vm3225_vm15  ;;  %3992 = vrsqrt.f32 %v7153_v39  ;;  %v2955_v35 = vsub.f32 %v7791_v57, %v7789_v37  ;;  %v7796_v28 = vld [vmem:[#allocation72_spill] sm:$0xff] }
 0x3a4   : > { %v2897_v44 = vmax.f32 %v2865_v38, 0.0  ;;  %v2864_v58 = vsub.f32 %v2800_v52, %v2832_v34  ;;  %v3227_v54 = vsel %vm3226_vm2, %v7044_v18, %v3223_v4  ;;  %v7177_v27 = vadd.f32 1e-05, %v2898_v6 }
 0x3a5   : > { %v3524_v15 = vadd.f32 %v6474_v43, %v3455_v46  ;;  %v3453_v21 = vmul.f32 %v6415_v5, %v7792_v8  ;;  %v7182_v29 = vmul.f32 %v3227_v54, %v2954_v41  ;;  %v3525_v20 = vadd.f32 %v6485_v47, %v3456_v61 }
 0x3a6   : > { %3583 = vmatpush.xpose.msrb.mxu2 %v3528_v9  ;;  %3603 = vmatpush.xpose.msrb.mxu3 %v3529_v23  ;;  %v3454_v50 = vmul.f32 %v6419_v1, %v7793_v11  ;;  %v7187_v0 = vmul.f32 %v3227_v54, %v2955_v35  ;;  %v2896_v10 = vmax.f32 %v2864_v58, 0.0  ;;  %v7191_v36 = vadd.f32 1e-05, %v2897_v44 }
 0x3a7   : > { %3994 = vrsqrt.f32 %v7177_v27  ;;  %v3522_v31 = vadd.f32 %v6474_v43, %v3453_v21  ;;  %v3451_v13 = vmul.f32 %v6415_v5, %v7118_v63  ;;  %v3452_v26 = vmul.f32 %v6419_v1, %v7125_v22  ;;  %v7798_v21 = vld [vmem:[#allocation13_spill] sm:$0xff] }
 0x3a8   : > { %v3523_v7 = vadd.f32 %v6485_v47, %v3454_v50  ;;  %v7202_v19 = vadd.f32 1e-05, %v2896_v10  ;;  %3996 = vrsqrt.f32 %v7191_v36  ;;  %v3449_v51 = vmul.f32 %v6415_v5, %v7794_v40  ;;  %v7799_v10 = vld [vmem:[#allocation29_spill] sm:$0xff] }
 0x3a9   : > { %v7189_v18 = vpop.eup %3992  ;;  %v3520_v45 = vadd.f32 %v6474_v43, %v3451_v13  ;;  %v3521_v63 = vadd.f32 %v6485_v47, %v3452_v26  ;;  %v3450_v33 = vmul.f32 %v6419_v1, %v7795_v2  ;;  %v3447_v24 = vmul.f32 %v6415_v5, %v7796_v28  ;;  %v7800_v13 = vld [vmem:[#allocation23_spill] sm:$0xff]  ;;  %v7801_v26 = vld [vmem:[#allocation60_spill] sm:$0xff] }
 0x3aa   : > { %3584 = vmatpush.xpose.msrb.mxu2 %v3526_v56  ;;  %3604 = vmatpush.xpose.msrb.mxu3 %v3527_v30  ;;  %v3199_v42 = vmul.f32 %v7189_v18, %v7153_v39  ;;  %3998 = vrsqrt.f32 %v7202_v19  ;;  %v3518_v12 = vadd.f32 %v6474_v43, %v3449_v51  ;;  %v3448_v4 = vmul.f32 %v6419_v1, %v7797_v62 }
 0x3ab   : > { %v3519_v49 = vadd.f32 %v6485_v47, %v3450_v33  ;;  %v3516_v6 = vadd.f32 %v6474_v43, %v3447_v24  ;;  %v3445_v56 = vmul.f32 %v6415_v5, %v7009_v32  ;;  %v3446_v37 = vmul.f32 %v6419_v1, %v7014_v48 }
 0x3ac   : > { %v3200_v9 = vmul.f32 %v7189_v18, %v3199_v42  ;;  %v3517_v61 = vadd.f32 %v6485_v47, %v3448_v4  ;;  %v3443_v57 = vmul.f32 %v6415_v5, %v7000_v16  ;;  %v3444_v54 = vmul.f32 %v6419_v1, %v7159_v17 }
 0x3ad   : > { %v7211_v22 = vpop.eup %3994  ;;  %v3514_v32 = vadd.f32 %v6474_v43, %v3445_v56  ;;  %v3515_v58 = vadd.f32 %v6485_v47, %v3446_v37  ;;  %vm3205_vm3 = vweird.f32 %v7189_v18  ;;  %vm3204_vm4 = vweird.f32 %v7153_v39  ;;  %v3531_v39 = vld [vmem:[%s7393_s10] sm:$0xf] }
 0x3ae   : > { %3585 = vmatpush.xpose.msrb.mxu2 %v3524_v15  ;;  %3605 = vmatpush.xpose.msrb.mxu3 %v3525_v20  ;;  %v3189_v23 = vmul.f32 %v7211_v22, %v7177_v27  ;;  %v7223_v38 = vpop.eup %3996  ;;  %v3201_v34 = vmul.f32 0.5, %v3200_v9  ;;  %v3530_v15 = vld [vmem:[%s7392_s9] sm:$0xff]  ;;  %v3512_v8 = vadd.f32 %v6474_v43, %v3443_v57  ;;  %v3441_v20 = vmul.f32 %v6415_v5, %v7798_v21  ;;  %vm3206_vm5 = vmor %vm3204_vm4, %vm3205_vm3  ;;  %v7805_v57 = vld [vmem:[#allocation26_spill] sm:$0xff] }
 0x3af   : > { %v3179_v52 = vmul.f32 %v7223_v38, %v7191_v36  ;;  %3538 = vst [vmem:[#allocation1] ss:$2 sm:$0xff] %v3530_v15  ;;  %v3513_v50 = vadd.f32 %v6485_v47, %v3444_v54  ;;  %v2951_v42 = vsub.f32 %v7801_v26, %v7057_v60  ;;  %v4117_v40 = vmov 0  }
 0x3b0   : > { %v7228_v46 = vpop.eup %3998  ;;  %v3190_v30 = vmul.f32 %v7211_v22, %v3189_v23  ;;  %v3202_v55 = vsub.f32 1.5, %v3201_v34  ;;  %3868 = vset.pattern.permute.xlu2 %v4117_v40  ;;  %vm3195_vm6 = vweird.f32 %v7211_v22  ;;  %v3439_v2 = vmul.f32 %v6415_v5, %v7182_v29  ;;  %3869 = vset.pattern.permute.xlu0 %v4117_v40 }
 0x3b1   : > { %v3169_v41 = vmul.f32 %v7228_v46, %v7202_v19  ;;  %v3180_v35 = vmul.f32 %v7223_v38, %v3179_v52  ;;  %3534 = vperm.xlu2 %3868, %v3531_v39   ;;  %vm3194_vm7 = vweird.f32 %v7177_v27  ;;  %vm3185_vm8 = vweird.f32 %v7223_v38  ;;  %v7803_v52 = vld [vmem:[#allocation38_spill] sm:$0xff] }
 0x3b2   : > { %3586 = vmatpush.xpose.msrb.mxu2 %v3522_v31  ;;  %3606 = vmatpush.xpose.msrb.mxu3 %v3523_v7  ;;  %v3191_v44 = vmul.f32 0.5, %v3190_v30  ;;  %v3203_v48 = vmul.f32 %v7189_v18, %v3202_v55  ;;  %v3442_v31 = vmul.f32 %v6419_v1, %v7799_v10  ;;  %v2950_v7 = vsub.f32 %v7800_v13, %v7057_v60  ;;  %vm3196_vm9 = vmor %vm3194_vm7, %vm3195_vm6 }
 0x3b3   : > { %v3170_v16 = vmul.f32 %v7228_v46, %v3169_v41  ;;  %v3181_v17 = vmul.f32 0.5, %v3180_v35  ;;  %v3437_v62 = vmul.f32 %v6415_v5, %v6965_v53  ;;  %v3438_v4 = vmul.f32 %v6419_v1, %v6967_v14  ;;  %v7804_v41 = vld [vmem:[#allocation39_spill] sm:$0xff] }
 0x3b4   : > { %v3192_v11 = vsub.f32 1.5, %v3191_v44  ;;  %v3511_v60 = vadd.f32 %v6485_v47, %v3442_v31  ;;  %v2949_v30 = vsub.f32 %v7803_v52, %v7113_v59  ;;  %vm3184_vm10 = vweird.f32 %v7191_v36 }
 0x3b5   : > { %v3171_v51 = vmul.f32 0.5, %v3170_v16  ;;  %v3182_v33 = vsub.f32 1.5, %v3181_v17  ;;  %vm3175_vm11 = vweird.f32 %v7228_v46  ;;  %vm3186_vm12 = vmor %vm3184_vm10, %vm3185_vm8  ;;  %v3506_v14 = vadd.f32 %v6474_v43, %v3437_v62 }
 0x3b6   : > { %3587 = vmatpush.xpose.msrb.mxu2 %v3520_v45  ;;  %3607 = vmatpush.xpose.msrb.mxu3 %v3521_v63  ;;  %v3207_v45 = vsel %vm3206_vm5, %v7189_v18, %v3203_v48  ;;  %v3510_v63 = vadd.f32 %v6474_v43, %v3441_v20  ;;  %v3193_v9 = vmul.f32 %v7211_v22, %v3192_v11  ;;  %v3539_v24 = vld.sshfl [vmem:[#allocation1] sm:$0xff pattern:$0x75316420]  ;;  %v3540_v23 = vld.sshfl [vmem:[#allocation1 + $0x8] sm:$0xff pattern:$0x75316420]  ;;  %vm3174_vm13 = vweird.f32 %v7202_v19 }
 0x3b7   : > { %v3440_v18 = vmul.f32 %v6419_v1, %v7187_v0  ;;  %v3367_v28 = vmul.f32 %v3207_v45, %v2951_v42  ;;  %v3172_v29 = vsub.f32 1.5, %v3171_v51  ;;  %3559 = vmatmul.f32.vlgmr.msra.gmra.mxu2 %v3539_v24  ;;  %3579 = vmatmul.f32.vlgmr.msra.gmra.mxu3 %v3540_v23  ;;  %v3183_v0 = vmul.f32 %v7223_v38, %v3182_v33  ;;  %vm3176_vm14 = vmor %vm3174_vm13, %vm3175_vm11  ;;  %v7807_v19 = vld [vmem:[#allocation64_spill] sm:$0xff] }
 0x3b8   : > { %v3197_v34 = vsel %vm3196_vm9, %v7211_v22, %v3193_v9  ;;  %v3507_v37 = vadd.f32 %v6485_v47, %v3438_v4  ;;  %v2947_v35 = vsub.f32 %v7805_v57, %v7129_v25  ;;  %v2945_v21 = vsub.f32 %v7807_v19, %v7140_v3 }
 0x3b9   : > { %v3509_v27 = vadd.f32 %v6485_v47, %v3440_v18  ;;  %v3173_v53 = vmul.f32 %v7228_v46, %v3172_v29  ;;  %v3436_v55 = vmul.f32 %v6419_v1, %v3367_v28  ;;  %v3187_v36 = vsel %vm3186_vm12, %v7223_v38, %v3183_v0 }
 0x3ba   : > { %3588 = vmatpush.xpose.msrb.mxu2 %v3518_v12  ;;  %3608 = vmatpush.xpose.msrb.mxu3 %v3519_v49  ;;  %v3366_v12 = vmul.f32 %v3207_v45, %v2950_v7  ;;  %v3508_v49 = vadd.f32 %v6474_v43, %v3439_v2  ;;  %v3363_v16 = vmul.f32 %v3187_v36, %v2947_v35 }
 0x3bb   : > { %v3177_v38 = vsel %vm3176_vm14, %v7228_v46, %v3173_v53  ;;  %v3505_v48 = vadd.f32 %v6485_v47, %v3436_v55 }
 0x3bc   : > { %v3435_v22 = vmul.f32 %v6415_v5, %v3366_v12  ;;  %v3432_v10 = vmul.f32 %v6419_v1, %v3363_v16 }
 0x3be   : > { %3589 = vmatpush.xpose.msrb.mxu2 %v3516_v6  ;;  %3609 = vmatpush.xpose.msrb.mxu3 %v3517_v61  ;;  %v7802_v6 = vld [vmem:[#allocation40_spill] sm:$0xff]  ;;  %v3504_v44 = vadd.f32 %v6474_v43, %v3435_v22 }
 0x3bf   : > { %v2948_v56 = vsub.f32 %v7802_v6, %v7113_v59  ;;  %v3365_v59 = vmul.f32 %v3197_v34, %v2949_v30 }
 0x3c1   : > { %v3364_v61 = vmul.f32 %v3197_v34, %v2948_v56  ;;  %v3434_v15 = vmul.f32 %v6419_v1, %v3365_v59 }
 0x3c2   : > { %3590 = vmatpush.xpose.msrb.mxu2 %v3514_v32  ;;  %3610 = vmatpush.xpose.msrb.mxu3 %v3515_v58  ;;  %v2946_v32 = vsub.f32 %v7804_v41, %v7129_v25  ;;  %v7806_v25 = vld [vmem:[#allocation10_spill] sm:$0xff] }
 0x3c3   : > { %v3433_v58 = vmul.f32 %v6415_v5, %v3364_v61  ;;  %v3503_v46 = vadd.f32 %v6485_v47, %v3434_v15 }
 0x3c4   : > { %v3362_v54 = vmul.f32 %v3187_v36, %v2946_v32 }
 0x3c5   : > { %v3502_v17 = vadd.f32 %v6474_v43, %v3433_v58 }
 0x3c6   : > { %3591 = vmatpush.xpose.msrb.mxu2 %v3512_v8  ;;  %3611 = vmatpush.xpose.msrb.mxu3 %v3513_v50  ;;  %v2944_v8 = vsub.f32 %v7806_v25, %v7140_v3  ;;  %v3431_v11 = vmul.f32 %v6415_v5, %v3362_v54  ;;  %v3361_v50 = vmul.f32 %v3177_v38, %v2945_v21 }
 0x3c7   : > { %v3501_v3 = vadd.f32 %v6485_v47, %v3432_v10 }
 0x3c8   : > { %v3360_v20 = vmul.f32 %v3177_v38, %v2944_v8  ;;  %v3500_v31 = vadd.f32 %v6474_v43, %v3431_v11  ;;  %v3430_v13 = vmul.f32 %v6419_v1, %v3361_v50 }
 0x3ca   : > { %3592 = vmatpush.xpose.msrb.mxu2 %v3510_v63  ;;  %3612 = vmatpush.xpose.msrb.mxu3 %v3511_v60  ;;  %v3429_v39 = vmul.f32 %v6415_v5, %v3360_v20  ;;  %v3499_v26 = vadd.f32 %v6485_v47, %v3430_v13 }
 0x3cc   : > { %v3498_v7 = vadd.f32 %v6474_v43, %v3429_v39 }
 0x3ce   : > { %3593 = vmatpush.xpose.msrb.mxu2 %v3508_v49  ;;  %3613 = vmatpush.xpose.msrb.mxu3 %v3509_v27 }
 0x3d2   : > { %3594 = vmatpush.xpose.msrb.mxu2 %v3506_v14  ;;  %3614 = vmatpush.xpose.msrb.mxu3 %v3507_v37 }
 0x3d6   : > { %3595 = vmatpush.xpose.msrb.mxu2 %v3504_v44  ;;  %3615 = vmatpush.xpose.msrb.mxu3 %v3505_v48 }
 0x3da   : > { %3596 = vmatpush.xpose.msrb.mxu2 %v3502_v17  ;;  %3616 = vmatpush.xpose.msrb.mxu3 %v3503_v46 }
 0x3de   : > { %3597 = vmatpush.xpose.msrb.mxu2 %v3500_v31  ;;  %3617 = vmatpush.xpose.msrb.mxu3 %v3501_v3 }
 0x3e2   : > { %3598 = vmatpush.xpose.msrb.mxu2 %v3498_v7  ;;  %3618 = vmatpush.xpose.msrb.mxu3 %v3499_v26 }
 0x3e5   : > { %3599 = vmatmul.f32.vlgmr.msrb.gmra.mxu2 %v3539_v24  ;;  %3619 = vmatmul.f32.vlgmr.msrb.gmra.mxu3 %v3540_v23 }
 0x40b   : > { %v3535_v40 = vpop.permute.xlu2 %3534 }
 0x43a   : > { %v3560_v42 = vpop.f32.mrf.mxu2  ;;  %v3580_v45 = vpop.f32.mrf.mxu3 }
 0x43b   : > { %v3561_v51 = vadd.f32 %v3560_v42, %v3535_v40 }
 0x43d   : > { %v3581_v33 = vadd.f32 %v3580_v45, %v3561_v51 }
 0x468   : > { %v3600_v5 = vpop.f32.mrf.mxu2  ;;  %v3620_v2 = vpop.f32.mrf.mxu3 }
 0x469   : > { %v3601_v63 = vadd.f32 %v3600_v5, %v3535_v40 }
 0x46b   : > { %v3621_v1 = vadd.f32 %v3620_v2, %v3601_v63 }
 0x46d   : > { %4000 = vtanh.f32 %v3621_v1 }
 0x46e   : > { %4002 = vtanh.f32 %v3581_v33 }
 0x473   : > { %v4001_v43 = vpop.eup %4000  ;;  %3638 = sbr.rel (!%p4217_p5) target bundleno = 1175 (0x497), region = 72 }
 0x474   : > { %v3627_v9 = vrot.slane %v4001_v43, 4  ;;  %v4003_v47 = vpop.eup %4002 }
 0x476   : > { %v3628_v60 = vsel %vm568_vm0, %v4003_v47, %v3627_v9 }
 0x477   : > { %3630 = vst [vmem:[%s409_s15] sm:$0xff] %v3628_v60 }
 0x478   : > { %s7817_s24 = smov (!%p3641_p0, %s3640_s24), 2 }
 0x479   : > { %s3803_s5 = sshll.u32 %s7817_s24, 2 }
 0x47a   : > { %s3644_s25 = ssub.s32 8, %s3803_s5 }
 0x47b   : > { %s3645_s29 = sshll.u32 %s3644_s25, 4 }
 0x47c   : > { %3646 = vsyncadd %s7328_s16, %s3645_s29  ;;  %p7337_p1 = scmp.ne.s32.totalorder %s3803_s5, 0  ;;  %s3810_s27 = sshll.u32 %s4200_s21, 3 }
 0x47d   : > { %s3649_s14 = scalar_lea.hbm %s7394_s11, %s3810_s27  ;;  %s7501_s22 = sshll.u32 %s7817_s24, 6 }
 0x47e   : > { %s7346_s0 = sshll.u32 %s409_s15, 4  ;;  %s3654_s1 = sshll.u32 %s3649_s14, 4  ;;  %s3653_s0 = int_to_ptr.vmem [resolvable:$true] %s7346_s0  ;;  %s3655_s1 = int_to_ptr.hbm [resolvable:$true] %s3654_s1 }
 0x47f   : > { %s4034_s25 = sshra.s32 %s3653_s0, 4  ;;  %s4036_s5 = sshrl.u32 %s7501_s22, 4  ;;  %s4035_s25 = int_to_ptr.vmem [resolvable:$true] %s4034_s25 }
 0x480   : > { %s4041_s29 = scalar_lea.vmem %s4035_s25, %s4036_s5  ;;  %s4118_s21 = smov [#allocation5]  }
 0x481   : > { %p4042_p2 = scmp.ne.s32.totalorder %s4035_s25, %s4041_s29  ;;  %s4045_s2 = scalar_lea.vmem %s4118_s21, 16 }
 0x482   : > { %p4047_p5 = scmp.lt.s32.totalorder %s4045_s2, %s4041_s29 }
 0x483   : > { %p4043_p3 = pnand %p4042_p2, %p7337_p1 }
 0x485   : > { %p4044_p4 = pneg %p4043_p3 }
 0x487   : > { %p4049_p7 = pnand %p4047_p5, %p4044_p4 }
 0x489   : > { %4052 = shalt.err (!%p4049_p7)
}
 0x48a   : > { %s4053_s15 = sshra.s32 %s3655_s1, 4  ;;  %s4064_s14 = scalar_lea.hbm %s7394_s11, 12  ;;  %s4054_s15 = int_to_ptr.hbm [resolvable:$true] %s4053_s15 }
 0x48b   : > { %s4060_s27 = scalar_lea.hbm %s4054_s15, %s4036_s5  ;;  %p4065_p11 = scmp.lt.s32.totalorder %s4054_s15, %s7394_s11 }
 0x48c   : > { %p4061_p8 = scmp.ne.s32.totalorder %s4054_s15, %s4060_s27  ;;  %p4066_p12 = scmp.lt.s32.totalorder %s4064_s14, %s4060_s27 }
 0x48e   : > { %p4062_p9 = pnand %p4061_p8, %p7337_p1  ;;  %p4067_p13 = por %p4066_p12, %p4065_p11 }
 0x490   : > { %p4063_p10 = pneg %p4062_p9 }
 0x492   : > { %p4068_p0 = pnand %p4067_p13, %p4063_p10 }
 0x494   : > { %4071 = shalt.err (!%p4068_p0)
}
 0x495   : > { %s7809_s2 = sshll.u32 %s7817_s24, 6 }
 0x496   : > { %3657 = dma.vmem_to_hbm [thread:$0]  (%p7337_p1), %s3653_s0, %s7809_s2, %s3655_s1, %s7328_s16  }
 0x497 PF: > { %p3830_p2 = scmp.ge.s32.totalorder %s4111_s20, 2  ;;  %s3666_s5 = sand.u32 1, %s4099_s17  }
 0x498   : > { %s3667_s22 = scalar_lea.sflag [#allocation4], %s3666_s5 }
 0x499   : > { %p3825_p3 = pnand %p3830_p2, %p4221_p6 }
 0x49b   : > { %p3826_p4 = pneg %p3825_p3 }
 0x49d   : > { %4094 = dma.done.wait (%p3826_p4), %s3667_s22, 128  }
 0x49e   : > { %4096 = vsyncadd (%p3826_p4), %s3667_s22, 4294967168  ;;  %p22_p5 = scmp.ge.s32.totalorder %s4204_s23, 4   ;;  %s7810_s17 = smov %s4103_s18 }
 0x49f   : > { %s7811_s18 = smov %s4107_s19  ;;  %s7812_s19 = smov %s4215_s26 }
 0x4a0   : > { %s7813_s20 = smov %s4204_s23  ;;  %24 = sbr.rel (!%p22_p5) target bundleno = 9 (0x9), region = 104 }
 0x4a5   :  { %3673 = vsyncpa [#allocation3], 1 }
 0x4a6   :  { %3675 = vsyncpa [#allocation3 + $0x1], 1 }
 0x4a7   :  { %3676 = vsyncpa [#allocation4], 1 }
 0x4a8   :  { %3678 = vsyncpa [#allocation4 + $0x1], 1 }

</bundles_post_ra>
